<compile_context>
chip_gen: v7x
topology: tpu7x:2x2x1
jax: 0.10.0
libtpu: 0.0.40
codegen_flags: <defaults>
</compile_context>

<pallas_src>
import math

import jax
import jax.numpy as jnp
from jax.experimental import pallas as pl
from jax.experimental.pallas import tpu as pltpu  # noqa: F401

HIDDEN = 26          # LSTM hidden size
GP = 32              # per-gate padded lane width (gates kept: i | g | o; forget pruned)
F_PRO = 54
OUT_DIM = 128

# ----------------------- packed-parameter static layout ----------------------- #

# 128-wide weight pack: (name, reserved rows).  Reserved rows are 8-aligned starts.
_W_LAYOUT = (("gcn1", 56), ("gcn2", 128), ("fcg1", 128), ("conv1", 40),
             ("conv2", 128), ("enfc1", 128), ("fc1", 256), ("fc_cat", 2 * GP),
             ("out", 128))
W_OFF = {}
_o = 0
for _n, _r in _W_LAYOUT:
    W_OFF[_n] = _o
    _o += _r
W_ROWS_TOTAL = _o                                   # 1056

W_REAL_ROWS = {"gcn1": F_PRO, "gcn2": 128, "fcg1": 128, "conv1": 34,
               "conv2": 128, "enfc1": 128, "fc1": 256, "fc_cat": 2 * GP, "out": 128}

# 192-wide LSTM gate-weight pack (fwd(i|g|o) | bwd(i|g|o), each gate 32 lanes).
L_OFF = {0: 0, 1: 128, 2: 128 + 2 * GP}
L_ROWS = {0: 128, 1: 2 * GP, 2: 2 * GP}
L_ROWS_TOTAL = 128 + 4 * GP                         # 256

# Bias pack: one row per bias, zero-padded to 256 lanes.
_BIAS_ORDER = ("gcn1", "gcn2", "fcg1", "conv1", "conv2", "enfc1", "fc1",
               "lstm0", "lstm1", "lstm2", "fc_cat", "out")
B_ROW = {n: i for i, n in enumerate(_BIAS_ORDER)}


# ------------------------------ fused kernel -------------------------------- #

def _gnnnet_kernel(x_ref, a_ref, pg_ref, en_ref, pe_ref, w_ref, lw_ref, b_ref, o_ref):
    f32 = jnp.float32
    bf16 = jnp.bfloat16

    def dot(a, b):
        return jnp.dot(a, b, preferred_element_type=f32)

    def weight(name, dtype=None):
        off = W_OFF[name]
        rows = W_REAL_ROWS[name]
        w = w_ref[off:off + rows, :]
        return w.astype(dtype) if dtype is not None else w

    def bias(name, width=128):
        r = B_ROW[name]
        return b_ref[r:r + 1, :width]

    # --- GNN branch: GCN -> relu -> GCN -> relu -> global-mean-pool -> fc -> relu ---
    # (all activations zero-padded to 128 lanes; pad columns stay 0 through relu)
    a_hat = a_ref[...]
    h = jnp.maximum(dot(a_hat, dot(x_ref[...], weight("gcn1"))) + bias("gcn1"), 0.0)
    h = jnp.maximum(dot(a_hat, dot(h, weight("gcn2"))) + bias("gcn2"), 0.0)
    xt = dot(pg_ref[...], h)                                           # gep  [B, 128]
    xt = jnp.maximum(dot(xt, weight("fcg1")) + bias("fcg1"), 0.0)      #      [B, 128]

    # --- CNN branch (Conv1d k=3,s=2,p=1 on length-1 input == centre-tap linear).
    #     All BatchNorms are eval-mode and folded host-side into these weights.
    #     The two big matmuls use bf16 MXU inputs with f32 accumulation. ---
    x = jnp.maximum(dot(en_ref[...].astype(bf16), weight("conv1", bf16))
                    + bias("conv1"), 0.0)                              # [M, 128]
    x = jnp.maximum(dot(x.astype(bf16), weight("conv2", bf16))
                    + bias("conv2"), 0.0)                              # [M, 128]
    # mean-pool over the 420-row groups (dense pool matrix; O(B^2) -- fine at small B)
    x = dot(pe_ref[...], x)                                            # [B, 128]
    x = jnp.maximum(dot(x, weight("enfc1")) + bias("enfc1"), 0.0)      # [B, 128]

    # --- fusion: fc1(cat(x, xt)) as one matmul over the lane-dense concat ---
    xc = jnp.concatenate([x, xt], axis=1)                              # [B, 256]
    xc = jnp.maximum(dot(xc, weight("fc1")) + bias("fc1"), 0.0)        # [B, 128]

    # --- 3-layer bidirectional LSTM over a length-1 sequence.
    #     h0 = c0 = 0 (PyTorch default): the W_hh@h0 term is zero and the forget gate
    #     only multiplies c0 == 0, so both are dropped (weights pruned host-side).
    #     Gate layout per direction: i|g|o, each padded to 32 lanes; padded lanes of
    #     the hidden state stay exactly 0 (sigmoid(0)*tanh(sigmoid(0)*tanh(0)) == 0). ---
    def lstm_step(gates):                      # gates: [B, 192]
        def one_dir(gd):                       # gd: [B, 96]
            i = jax.nn.sigmoid(gd[:, 0 * GP:1 * GP])
            g = jnp.tanh(gd[:, 1 * GP:2 * GP])
            o = jax.nn.sigmoid(gd[:, 2 * GP:3 * GP])
            return o * jnp.tanh(i * g)         # [B, 32], pad lanes == 0
        return one_dir(gates[:, :3 * GP]), one_dir(gates[:, 3 * GP:])

    gates = dot(xc, lw_ref[L_OFF[0]:L_OFF[0] + L_ROWS[0], :]) + bias("lstm0", 192)
    h_f, h_b = lstm_step(gates)
    for layer in (1, 2):
        hcat = jnp.concatenate([h_f, h_b], axis=1)                     # [B, 64]
        gates = (dot(hcat, lw_ref[L_OFF[layer]:L_OFF[layer] + L_ROWS[layer], :])
                 + bias(f"lstm{layer}", 192))
        h_f, h_b = lstm_step(gates)

    # --- head: fc_cat(cat(h_f, h_b)) -> out -> sigmoid (no relu, matching the spec) ---
    hcat = jnp.concatenate([h_f, h_b], axis=1)                         # [B, 64]
    xc2 = dot(hcat, weight("fc_cat")) + bias("fc_cat")                 # [B, 128]
    # out_w is column-0-padded to 128 lanes so the final store is lane-dense;
    # the wrapper takes column 0.
    o_ref[...] = jax.nn.sigmoid(dot(xc2, weight("out")) + bias("out"))


@jax.jit
def forward(packed, x_nodes, a_hat, pool_graph, en, pool_en):
    wpack, lpack, bpack = packed
    B = pool_graph.shape[0]
    # Single fused, grid-less pallas_call: every operand is a full-array VMEM resident.
    # (Only 8 operand DMAs: 5 data tensors + 3 packed parameter buffers.)
    out = pl.pallas_call(
        _gnnnet_kernel,
        out_shape=jax.ShapeDtypeStruct((B, 128), jnp.float32),
    )(x_nodes, a_hat, pool_graph, en, pool_en, wpack, lpack, bpack)
    return out[:, :1]


# ------------------------------- parameters --------------------------------- #

def init_params(key):
    """Raw (PyTorch-layout-equivalent) parameters, including eval-mode BN stats."""
    def u(k, shape, fan_in):
        s = 1.0 / math.sqrt(fan_in)
        return jax.random.uniform(k, shape, jnp.float32, -s, s)

    ks = iter(jax.random.split(key, 64))
    p = {}
    # GCNConv(54,54) / GCNConv(54,108) / pro_fc_g1: Linear(108,128)
    p["gcn1_w"] = u(next(ks), (F_PRO, F_PRO), F_PRO)
    p["gcn1_b"] = jnp.zeros((F_PRO,), jnp.float32)
    p["gcn2_w"] = u(next(ks), (F_PRO, 2 * F_PRO), F_PRO)
    p["gcn2_b"] = jnp.zeros((2 * F_PRO,), jnp.float32)
    p["fcg1_w"] = u(next(ks), (2 * F_PRO, OUT_DIM), 2 * F_PRO)
    p["fcg1_b"] = u(next(ks), (OUT_DIM,), 2 * F_PRO)
    # BatchNorm1d (eval mode): gamma/beta + running mean/var (non-trivial, to exercise folding)
    for name, c in (("bn0", 34), ("bn1", 100), ("bn2", 100)):
        p[f"{name}_gamma"] = 1.0 + 0.1 * jax.random.normal(next(ks), (c,), jnp.float32)
        p[f"{name}_beta"] = 0.1 * jax.random.normal(next(ks), (c,), jnp.float32)
        p[f"{name}_mean"] = 0.1 * jax.random.normal(next(ks), (c,), jnp.float32)
        p[f"{name}_var"] = 1.0 + jax.random.uniform(next(ks), (c,), jnp.float32)
    # Conv1d(34->100) / Conv1d(100->100), centre-tap linears (length-1 sequence)
    p["conv1_w"] = u(next(ks), (34, 100), 34 * 3)
    p["conv1_b"] = u(next(ks), (100,), 34 * 3)
    p["conv2_w"] = u(next(ks), (100, 100), 100 * 3)
    p["conv2_b"] = u(next(ks), (100,), 100 * 3)
    # enfc1: Linear(100,128)
    p["enfc1_w"] = u(next(ks), (100, OUT_DIM), 100)
    p["enfc1_b"] = u(next(ks), (OUT_DIM,), 100)
    # fc1: Linear(256,128), cat order [en, gnn]
    p["fc1_w"] = u(next(ks), (2 * OUT_DIM, 128), 2 * OUT_DIM)
    p["fc1_b"] = u(next(ks), (128,), 2 * OUT_DIM)
    # LSTM: 3 layers, bidirectional, hidden 26.  Stored forget-gate-pruned (c0 == 0)
    # with gate order i|g|o; effective bias = b_ih + b_hh.
    # TODO(synk): original nn.LSTM declares input_size=100 but is fed the 128-dim xc
    # (would raise in PyTorch); layer-0 input is sized 128 so the dataflow runs.
    for layer, din in ((0, 128), (1, 2 * HIDDEN), (2, 2 * HIDDEN)):
        for d in ("f", "b"):
            p[f"lstm{layer}_{d}_w"] = u(next(ks), (din, 3 * HIDDEN), HIDDEN)
            p[f"lstm{layer}_{d}_b"] = (u(next(ks), (3 * HIDDEN,), HIDDEN)
                                       + u(next(ks), (3 * HIDDEN,), HIDDEN))
    # TODO(synk): original reuses self.fc1 (in_features=256) on the 52-dim LSTM hidden
    # concat (would raise in PyTorch); we use a dedicated 52->128 projection instead.
    p["fc_cat_w"] = u(next(ks), (2 * HIDDEN, 128), 2 * HIDDEN)
    p["fc_cat_b"] = u(next(ks), (128,), 2 * HIDDEN)
    # out: Linear(128,1)
    p["out_w"] = u(next(ks), (128, 1), 128)
    p["out_b"] = u(next(ks), (1,), 128)
    return p


def pack_params(p, eps=1e-5):
    """Host-side: fold eval-mode BN, pad to lane-dense layouts, pack into 3 buffers."""
    f32 = jnp.float32

    def bn_scale_shift(name):
        s = p[f"{name}_gamma"] / jnp.sqrt(p[f"{name}_var"] + eps)
        return s, p[f"{name}_beta"] - p[f"{name}_mean"] * s

    # bn0 folded into conv1, conv1_bn into conv2, conv2_bn into enfc1 (pool rows sum to 1).
    s0, o0 = bn_scale_shift("bn0")
    conv1_w = s0[:, None] * p["conv1_w"]
    conv1_b = o0 @ p["conv1_w"] + p["conv1_b"]
    s1, o1 = bn_scale_shift("bn1")
    conv2_w = s1[:, None] * p["conv2_w"]
    conv2_b = o1 @ p["conv2_w"] + p["conv2_b"]
    s2, o2 = bn_scale_shift("bn2")
    enfc1_w = s2[:, None] * p["enfc1_w"]
    enfc1_b = o2 @ p["enfc1_w"] + p["enfc1_b"]

    # fc_cat rows mapped into the 32-lane-padded hidden layout [h_f(32) | h_b(32)].
    fc_cat_w = jnp.zeros((2 * GP, 128), f32)
    fc_cat_w = fc_cat_w.at[0:HIDDEN, :].set(p["fc_cat_w"][0:HIDDEN])
    fc_cat_w = fc_cat_w.at[GP:GP + HIDDEN, :].set(p["fc_cat_w"][HIDDEN:2 * HIDDEN])
    # out weight column-padded to 128 lanes (column 0 real).
    out_w = jnp.zeros((128, 128), f32).at[:, 0:1].set(p["out_w"])

    # --- 128-wide weight pack ---
    wpack = jnp.zeros((W_ROWS_TOTAL, 128), f32)
    for name, w in (("gcn1", p["gcn1_w"]), ("gcn2", p["gcn2_w"]), ("fcg1", p["fcg1_w"]),
                    ("conv1", conv1_w), ("conv2", conv2_w), ("enfc1", enfc1_w),
                    ("fc1", p["fc1_w"]), ("fc_cat", fc_cat_w), ("out", out_w)):
        off = W_OFF[name]
        wpack = wpack.at[off:off + w.shape[0], :w.shape[1]].set(w)

    # --- LSTM gate-weight pack (fwd(i|g|o)|bwd(i|g|o), each gate padded to 32 lanes) ---
    def pack_lstm_layer(lname, din_pad, split_rows):
        W = jnp.zeros((din_pad, 6 * GP), f32)
        bvec = jnp.zeros((6 * GP,), f32)
        for d, dname in enumerate(("f", "b")):
            w = p[f"{lname}_{dname}_w"]
            b = p[f"{lname}_{dname}_b"]
            for g in range(3):
                col0 = d * 3 * GP + g * GP
                src = w[:, g * HIDDEN:(g + 1) * HIDDEN]
                if split_rows:   # layer-1/2 input rows map to the padded [h_f | h_b] concat
                    W = W.at[0:HIDDEN, col0:col0 + HIDDEN].set(src[0:HIDDEN])
                    W = W.at[GP:GP + HIDDEN, col0:col0 + HIDDEN].set(src[HIDDEN:])
                else:
                    W = W.at[:src.shape[0], col0:col0 + HIDDEN].set(src)
                bvec = bvec.at[col0:col0 + HIDDEN].set(b[g * HIDDEN:(g + 1) * HIDDEN])
        return W, bvec

    l0_w, l0_b = pack_lstm_layer("lstm0", 128, False)
    l1_w, l1_b = pack_lstm_layer("lstm1", 2 * GP, True)
    l2_w, l2_b = pack_lstm_layer("lstm2", 2 * GP, True)
    lpack = jnp.zeros((L_ROWS_TOTAL, 6 * GP), f32)
    lpack = lpack.at[L_OFF[0]:L_OFF[0] + L_ROWS[0], :].set(l0_w)
    lpack = lpack.at[L_OFF[1]:L_OFF[1] + L_ROWS[1], :].set(l1_w)
    lpack = lpack.at[L_OFF[2]:L_OFF[2] + L_ROWS[2], :].set(l2_w)

    # --- bias pack ---
    bias_entries = (("gcn1", p["gcn1_b"]), ("gcn2", p["gcn2_b"]), ("fcg1", p["fcg1_b"]),
                    ("conv1", conv1_b), ("conv2", conv2_b), ("enfc1", enfc1_b),
                    ("fc1", p["fc1_b"]), ("lstm0", l0_b), ("lstm1", l1_b),
                    ("lstm2", l2_b), ("fc_cat", p["fc_cat_b"]), ("out", p["out_b"]))
    bpack = jnp.zeros((len(bias_entries), 256), f32)
    for name, b in bias_entries:
        bpack = bpack.at[B_ROW[name], :b.shape[0]].set(b)

    return wpack, lpack, bpack


# ---------------------------------- main ------------------------------------- #

if __name__ == "__main__":
    key = jax.random.PRNGKey(0)
    kx, ken, kp = jax.random.split(key, 3)

    B = 8                      # number of graphs / samples (multiple of 8 sublanes)
    NODES_PER_GRAPH = 8
    N = B * NODES_PER_GRAPH
    ROWS_PER_GRAPH = 420       # hard-coded group size in the original forward
    M = B * ROWS_PER_GRAPH

    # node features and "en" sequence features
    x_nodes = jax.random.normal(kx, (N, F_PRO), jnp.float32)
    en = jax.random.normal(ken, (M, 34), jnp.float32)

    # deterministic symmetric ring graph within each sample -> dense GCN-normalized adjacency
    src, dst = [], []
    for g in range(B):
        off = g * NODES_PER_GRAPH
        for i in range(NODES_PER_GRAPH):
            a, b = off + i, off + (i + 1) % NODES_PER_GRAPH
            src += [a, b]
            dst += [b, a]
    src = jnp.array(src, jnp.int32)
    dst = jnp.array(dst, jnp.int32)
    A = jnp.zeros((N, N), jnp.float32).at[dst, src].add(1.0)
    A = A + jnp.eye(N, dtype=jnp.float32)
    deg_inv_sqrt = 1.0 / jnp.sqrt(jnp.sum(A, axis=1))
    a_hat = deg_inv_sqrt[:, None] * A * deg_inv_sqrt[None, :]

    # global-mean-pool matrices (gep).  NOTE: dense pool matrices are O(B^2); fine at
    # small B, would be replaced by a segment-mean if B grew into the hundreds (v7x VMEM).
    node_batch = jnp.repeat(jnp.arange(B), NODES_PER_GRAPH)
    pool_graph = (jnp.arange(B)[:, None] == node_batch[None, :]).astype(jnp.float32)
    pool_graph = pool_graph / jnp.sum(pool_graph, axis=1, keepdims=True)
    en_batch = jnp.repeat(jnp.arange(B), ROWS_PER_GRAPH)
    pool_en = (jnp.arange(B)[:, None] == en_batch[None, :]).astype(jnp.float32)
    pool_en = pool_en / jnp.sum(pool_en, axis=1, keepdims=True)

    params = init_params(kp)
    packed = pack_params(params)
    out = forward(packed, x_nodes, a_hat, pool_graph, en, pool_en)
    out = jax.block_until_ready(out)
    assert out.shape == (B, 1)
    assert bool(jnp.all(jnp.isfinite(out)))
    print("KERNEL_OK")
</pallas_src>

<mosaic_0001>
module attributes {stable_mosaic.version = 11 : i64} {
  func.func @_gnnnet_kernel(%arg0: memref<64x54xf32, #tpu.memory_space<vmem>>, %arg1: memref<64x64xf32, #tpu.memory_space<vmem>>, %arg2: memref<8x64xf32, #tpu.memory_space<vmem>>, %arg3: memref<3360x34xf32, #tpu.memory_space<vmem>>, %arg4: memref<8x3360xf32, #tpu.memory_space<vmem>>, %arg5: memref<1056x128xf32, #tpu.memory_space<vmem>>, %arg6: memref<256x192xf32, #tpu.memory_space<vmem>>, %arg7: memref<12x256xf32, #tpu.memory_space<vmem>>, %arg8: memref<8x128xf32, #tpu.memory_space<vmem>>) attributes {dimension_semantics = [], scalar_prefetch = 0 : i64, scratch_operands = 0 : i64, tpu.core_type = #tpu.core_type<tc>} {
    %c0 = arith.constant 0 : index
    %c0_0 = arith.constant 0 : index
    %0 = vector.load %arg1[%c0, %c0_0] : memref<64x64xf32, #tpu.memory_space<vmem>>, vector<64x64xf32>
    %c0_1 = arith.constant 0 : index
    %c0_2 = arith.constant 0 : index
    %1 = vector.load %arg0[%c0_1, %c0_2] : memref<64x54xf32, #tpu.memory_space<vmem>>, vector<64x54xf32>
    %c0_3 = arith.constant 0 : index
    %c0_4 = arith.constant 0 : index
    %2 = vector.load %arg5[%c0_3, %c0_4] : memref<1056x128xf32, #tpu.memory_space<vmem>>, vector<54x128xf32>
    %cst = arith.constant dense<0.000000e+00> : vector<64x128xf32>
    %3 = tpu.matmul %1, %2, %cst {dimension_numbers = #tpu.dot_dimension_numbers<[1], [0], [0], [1], [0, 0, 1, 1], [], []>} : vector<64x54xf32>, vector<54x128xf32>, vector<64x128xf32> -> vector<64x128xf32>
    %cst_5 = arith.constant dense<0.000000e+00> : vector<64x128xf32>
    %4 = tpu.matmul %0, %3, %cst_5 {dimension_numbers = #tpu.dot_dimension_numbers<[1], [0], [0], [1], [0, 0, 1, 1], [], []>} : vector<64x64xf32>, vector<64x128xf32>, vector<64x128xf32> -> vector<64x128xf32>
    %c0_6 = arith.constant 0 : index
    %c0_7 = arith.constant 0 : index
    %5 = vector.load %arg7[%c0_6, %c0_7] : memref<12x256xf32, #tpu.memory_space<vmem>>, vector<1x128xf32>
    %6 = vector.broadcast %5 : vector<1x128xf32> to vector<64x128xf32>
    %7 = arith.addf %4, %6 : vector<64x128xf32>
    %cst_8 = arith.constant 0.000000e+00 : f32
    %8 = vector.broadcast %cst_8 : f32 to vector<64x128xf32>
    %9 = arith.maximumf %7, %8 : vector<64x128xf32>
    %c56 = arith.constant 56 : index
    %c0_9 = arith.constant 0 : index
    %10 = vector.load %arg5[%c56, %c0_9] : memref<1056x128xf32, #tpu.memory_space<vmem>>, vector<128x128xf32>
    %cst_10 = arith.constant dense<0.000000e+00> : vector<64x128xf32>
    %11 = tpu.matmul %9, %10, %cst_10 {dimension_numbers = #tpu.dot_dimension_numbers<[1], [0], [0], [1], [0, 0, 1, 1], [], []>} : vector<64x128xf32>, vector<128x128xf32>, vector<64x128xf32> -> vector<64x128xf32>
    %cst_11 = arith.constant dense<0.000000e+00> : vector<64x128xf32>
    %12 = tpu.matmul %0, %11, %cst_11 {dimension_numbers = #tpu.dot_dimension_numbers<[1], [0], [0], [1], [0, 0, 1, 1], [], []>} : vector<64x64xf32>, vector<64x128xf32>, vector<64x128xf32> -> vector<64x128xf32>
    %c1 = arith.constant 1 : index
    %c0_12 = arith.constant 0 : index
    %13 = vector.load %arg7[%c1, %c0_12] : memref<12x256xf32, #tpu.memory_space<vmem>>, vector<1x128xf32>
    %14 = vector.broadcast %13 : vector<1x128xf32> to vector<64x128xf32>
    %15 = arith.addf %12, %14 : vector<64x128xf32>
    %cst_13 = arith.constant 0.000000e+00 : f32
    %16 = vector.broadcast %cst_13 : f32 to vector<64x128xf32>
    %17 = arith.maximumf %15, %16 : vector<64x128xf32>
    %c0_14 = arith.constant 0 : index
    %c0_15 = arith.constant 0 : index
    %18 = vector.load %arg2[%c0_14, %c0_15] : memref<8x64xf32, #tpu.memory_space<vmem>>, vector<8x64xf32>
    %cst_16 = arith.constant dense<0.000000e+00> : vector<8x128xf32>
    %19 = tpu.matmul %18, %17, %cst_16 {dimension_numbers = #tpu.dot_dimension_numbers<[1], [0], [0], [1], [0, 0, 1, 1], [], []>} : vector<8x64xf32>, vector<64x128xf32>, vector<8x128xf32> -> vector<8x128xf32>
    %c184 = arith.constant 184 : index
    %c0_17 = arith.constant 0 : index
    %20 = vector.load %arg5[%c184, %c0_17] : memref<1056x128xf32, #tpu.memory_space<vmem>>, vector<128x128xf32>
    %cst_18 = arith.constant dense<0.000000e+00> : vector<8x128xf32>
    %21 = tpu.matmul %19, %20, %cst_18 {dimension_numbers = #tpu.dot_dimension_numbers<[1], [0], [0], [1], [0, 0, 1, 1], [], []>} : vector<8x128xf32>, vector<128x128xf32>, vector<8x128xf32> -> vector<8x128xf32>
    %c2 = arith.constant 2 : index
    %c0_19 = arith.constant 0 : index
    %22 = vector.load %arg7[%c2, %c0_19] : memref<12x256xf32, #tpu.memory_space<vmem>>, vector<1x128xf32>
    %23 = vector.broadcast %22 : vector<1x128xf32> to vector<8x128xf32>
    %24 = arith.addf %21, %23 : vector<8x128xf32>
    %cst_20 = arith.constant 0.000000e+00 : f32
    %25 = vector.broadcast %cst_20 : f32 to vector<8x128xf32>
    %26 = arith.maximumf %24, %25 : vector<8x128xf32>
    %c0_21 = arith.constant 0 : index
    %c0_22 = arith.constant 0 : index
    %27 = vector.load %arg3[%c0_21, %c0_22] : memref<3360x34xf32, #tpu.memory_space<vmem>>, vector<3360x34xf32>
    %28 = arith.truncf %27 : vector<3360x34xf32> to vector<3360x34xbf16>
    %c312 = arith.constant 312 : index
    %c0_23 = arith.constant 0 : index
    %29 = vector.load %arg5[%c312, %c0_23] : memref<1056x128xf32, #tpu.memory_space<vmem>>, vector<34x128xf32>
    %30 = arith.truncf %29 : vector<34x128xf32> to vector<34x128xbf16>
    %cst_24 = arith.constant dense<0.000000e+00> : vector<3360x128xf32>
    %31 = tpu.matmul %28, %30, %cst_24 {dimension_numbers = #tpu.dot_dimension_numbers<[1], [0], [0], [1], [0, 0, 1, 1], [], []>} : vector<3360x34xbf16>, vector<34x128xbf16>, vector<3360x128xf32> -> vector<3360x128xf32>
    %c3 = arith.constant 3 : index
    %c0_25 = arith.constant 0 : index
    %32 = vector.load %arg7[%c3, %c0_25] : memref<12x256xf32, #tpu.memory_space<vmem>>, vector<1x128xf32>
    %33 = vector.broadcast %32 : vector<1x128xf32> to vector<3360x128xf32>
    %34 = arith.addf %31, %33 : vector<3360x128xf32>
    %cst_26 = arith.constant 0.000000e+00 : f32
    %35 = vector.broadcast %cst_26 : f32 to vector<3360x128xf32>
    %36 = arith.maximumf %34, %35 : vector<3360x128xf32>
    %37 = arith.truncf %36 : vector<3360x128xf32> to vector<3360x128xbf16>
    %c352 = arith.constant 352 : index
    %c0_27 = arith.constant 0 : index
    %38 = vector.load %arg5[%c352, %c0_27] : memref<1056x128xf32, #tpu.memory_space<vmem>>, vector<128x128xf32>
    %39 = arith.truncf %38 : vector<128x128xf32> to vector<128x128xbf16>
    %cst_28 = arith.constant dense<0.000000e+00> : vector<3360x128xf32>
    %40 = tpu.matmul %37, %39, %cst_28 {dimension_numbers = #tpu.dot_dimension_numbers<[1], [0], [0], [1], [0, 0, 1, 1], [], []>} : vector<3360x128xbf16>, vector<128x128xbf16>, vector<3360x128xf32> -> vector<3360x128xf32>
    %c4 = arith.constant 4 : index
    %c0_29 = arith.constant 0 : index
    %41 = vector.load %arg7[%c4, %c0_29] : memref<12x256xf32, #tpu.memory_space<vmem>>, vector<1x128xf32>
    %42 = vector.broadcast %41 : vector<1x128xf32> to vector<3360x128xf32>
    %43 = arith.addf %40, %42 : vector<3360x128xf32>
    %cst_30 = arith.constant 0.000000e+00 : f32
    %44 = vector.broadcast %cst_30 : f32 to vector<3360x128xf32>
    %45 = arith.maximumf %43, %44 : vector<3360x128xf32>
    %c0_31 = arith.constant 0 : index
    %c0_32 = arith.constant 0 : index
    %46 = vector.load %arg4[%c0_31, %c0_32] : memref<8x3360xf32, #tpu.memory_space<vmem>>, vector<8x3360xf32>
    %cst_33 = arith.constant dense<0.000000e+00> : vector<8x128xf32>
    %47 = tpu.matmul %46, %45, %cst_33 {dimension_numbers = #tpu.dot_dimension_numbers<[1], [0], [0], [1], [0, 0, 1, 1], [], []>} : vector<8x3360xf32>, vector<3360x128xf32>, vector<8x128xf32> -> vector<8x128xf32>
    %c480 = arith.constant 480 : index
    %c0_34 = arith.constant 0 : index
    %48 = vector.load %arg5[%c480, %c0_34] : memref<1056x128xf32, #tpu.memory_space<vmem>>, vector<128x128xf32>
    %cst_35 = arith.constant dense<0.000000e+00> : vector<8x128xf32>
    %49 = tpu.matmul %47, %48, %cst_35 {dimension_numbers = #tpu.dot_dimension_numbers<[1], [0], [0], [1], [0, 0, 1, 1], [], []>} : vector<8x128xf32>, vector<128x128xf32>, vector<8x128xf32> -> vector<8x128xf32>
    %c5 = arith.constant 5 : index
    %c0_36 = arith.constant 0 : index
    %50 = vector.load %arg7[%c5, %c0_36] : memref<12x256xf32, #tpu.memory_space<vmem>>, vector<1x128xf32>
    %51 = vector.broadcast %50 : vector<1x128xf32> to vector<8x128xf32>
    %52 = arith.addf %49, %51 : vector<8x128xf32>
    %cst_37 = arith.constant 0.000000e+00 : f32
    %53 = vector.broadcast %cst_37 : f32 to vector<8x128xf32>
    %54 = arith.maximumf %52, %53 : vector<8x128xf32>
    %55 = tpu.concatenate %54, %26 in 1 : vector<8x128xf32>, vector<8x128xf32> -> vector<8x256xf32>
    %c608 = arith.constant 608 : index
    %c0_38 = arith.constant 0 : index
    %56 = vector.load %arg5[%c608, %c0_38] : memref<1056x128xf32, #tpu.memory_space<vmem>>, vector<256x128xf32>
    %cst_39 = arith.constant dense<0.000000e+00> : vector<8x128xf32>
    %57 = tpu.matmul %55, %56, %cst_39 {dimension_numbers = #tpu.dot_dimension_numbers<[1], [0], [0], [1], [0, 0, 1, 1], [], []>} : vector<8x256xf32>, vector<256x128xf32>, vector<8x128xf32> -> vector<8x128xf32>
    %c6 = arith.constant 6 : index
    %c0_40 = arith.constant 0 : index
    %58 = vector.load %arg7[%c6, %c0_40] : memref<12x256xf32, #tpu.memory_space<vmem>>, vector<1x128xf32>
    %59 = vector.broadcast %58 : vector<1x128xf32> to vector<8x128xf32>
    %60 = arith.addf %57, %59 : vector<8x128xf32>
    %cst_41 = arith.constant 0.000000e+00 : f32
    %61 = vector.broadcast %cst_41 : f32 to vector<8x128xf32>
    %62 = arith.maximumf %60, %61 : vector<8x128xf32>
    %c0_42 = arith.constant 0 : index
    %c0_43 = arith.constant 0 : index
    %63 = vector.load %arg6[%c0_42, %c0_43] : memref<256x192xf32, #tpu.memory_space<vmem>>, vector<128x192xf32>
    %cst_44 = arith.constant dense<0.000000e+00> : vector<8x192xf32>
    %64 = tpu.matmul %62, %63, %cst_44 {dimension_numbers = #tpu.dot_dimension_numbers<[1], [0], [0], [1], [0, 0, 1, 1], [], []>} : vector<8x128xf32>, vector<128x192xf32>, vector<8x192xf32> -> vector<8x192xf32>
    %c7 = arith.constant 7 : index
    %c0_45 = arith.constant 0 : index
    %65 = vector.load %arg7[%c7, %c0_45] : memref<12x256xf32, #tpu.memory_space<vmem>>, vector<1x192xf32>
    %66 = vector.broadcast %65 : vector<1x192xf32> to vector<8x192xf32>
    %67 = arith.addf %64, %66 : vector<8x192xf32>
    %68 = vector.extract_strided_slice %67 {offsets = [0, 0], sizes = [8, 96], strides = [1, 1]} : vector<8x192xf32> to vector<8x96xf32>
    %69 = vector.extract_strided_slice %68 {offsets = [0, 0], sizes = [8, 32], strides = [1, 1]} : vector<8x96xf32> to vector<8x32xf32>
    %70 = arith.negf %69 : vector<8x32xf32>
    %71 = math.exp %70 : vector<8x32xf32>
    %cst_46 = arith.constant 1.000000e+00 : f32
    %72 = vector.broadcast %cst_46 : f32 to vector<8x32xf32>
    %73 = arith.addf %72, %71 : vector<8x32xf32>
    %74 = arith.divf %72, %73 : vector<8x32xf32>
    %75 = vector.extract_strided_slice %68 {offsets = [0, 32], sizes = [8, 32], strides = [1, 1]} : vector<8x96xf32> to vector<8x32xf32>
    %76 = math.tanh %75 : vector<8x32xf32>
    %77 = vector.extract_strided_slice %68 {offsets = [0, 64], sizes = [8, 32], strides = [1, 1]} : vector<8x96xf32> to vector<8x32xf32>
    %78 = arith.negf %77 : vector<8x32xf32>
    %79 = math.exp %78 : vector<8x32xf32>
    %cst_47 = arith.constant 1.000000e+00 : f32
    %80 = vector.broadcast %cst_47 : f32 to vector<8x32xf32>
    %81 = arith.addf %80, %79 : vector<8x32xf32>
    %82 = arith.divf %80, %81 : vector<8x32xf32>
    %83 = arith.mulf %74, %76 : vector<8x32xf32>
    %84 = math.tanh %83 : vector<8x32xf32>
    %85 = arith.mulf %82, %84 : vector<8x32xf32>
    %86 = vector.extract_strided_slice %67 {offsets = [0, 96], sizes = [8, 96], strides = [1, 1]} : vector<8x192xf32> to vector<8x96xf32>
    %87 = vector.extract_strided_slice %86 {offsets = [0, 0], sizes = [8, 32], strides = [1, 1]} : vector<8x96xf32> to vector<8x32xf32>
    %88 = arith.negf %87 : vector<8x32xf32>
    %89 = math.exp %88 : vector<8x32xf32>
    %cst_48 = arith.constant 1.000000e+00 : f32
    %90 = vector.broadcast %cst_48 : f32 to vector<8x32xf32>
    %91 = arith.addf %90, %89 : vector<8x32xf32>
    %92 = arith.divf %90, %91 : vector<8x32xf32>
    %93 = vector.extract_strided_slice %86 {offsets = [0, 32], sizes = [8, 32], strides = [1, 1]} : vector<8x96xf32> to vector<8x32xf32>
    %94 = math.tanh %93 : vector<8x32xf32>
    %95 = vector.extract_strided_slice %86 {offsets = [0, 64], sizes = [8, 32], strides = [1, 1]} : vector<8x96xf32> to vector<8x32xf32>
    %96 = arith.negf %95 : vector<8x32xf32>
    %97 = math.exp %96 : vector<8x32xf32>
    %cst_49 = arith.constant 1.000000e+00 : f32
    %98 = vector.broadcast %cst_49 : f32 to vector<8x32xf32>
    %99 = arith.addf %98, %97 : vector<8x32xf32>
    %100 = arith.divf %98, %99 : vector<8x32xf32>
    %101 = arith.mulf %92, %94 : vector<8x32xf32>
    %102 = math.tanh %101 : vector<8x32xf32>
    %103 = arith.mulf %100, %102 : vector<8x32xf32>
    %104 = tpu.concatenate %85, %103 in 1 : vector<8x32xf32>, vector<8x32xf32> -> vector<8x64xf32>
    %c128 = arith.constant 128 : index
    %c0_50 = arith.constant 0 : index
    %105 = vector.load %arg6[%c128, %c0_50] : memref<256x192xf32, #tpu.memory_space<vmem>>, vector<64x192xf32>
    %cst_51 = arith.constant dense<0.000000e+00> : vector<8x192xf32>
    %106 = tpu.matmul %104, %105, %cst_51 {dimension_numbers = #tpu.dot_dimension_numbers<[1], [0], [0], [1], [0, 0, 1, 1], [], []>} : vector<8x64xf32>, vector<64x192xf32>, vector<8x192xf32> -> vector<8x192xf32>
    %c8 = arith.constant 8 : index
    %c0_52 = arith.constant 0 : index
    %107 = vector.load %arg7[%c8, %c0_52] : memref<12x256xf32, #tpu.memory_space<vmem>>, vector<1x192xf32>
    %108 = vector.broadcast %107 : vector<1x192xf32> to vector<8x192xf32>
    %109 = arith.addf %106, %108 : vector<8x192xf32>
    %110 = vector.extract_strided_slice %109 {offsets = [0, 0], sizes = [8, 96], strides = [1, 1]} : vector<8x192xf32> to vector<8x96xf32>
    %111 = vector.extract_strided_slice %110 {offsets = [0, 0], sizes = [8, 32], strides = [1, 1]} : vector<8x96xf32> to vector<8x32xf32>
    %112 = arith.negf %111 : vector<8x32xf32>
    %113 = math.exp %112 : vector<8x32xf32>
    %cst_53 = arith.constant 1.000000e+00 : f32
    %114 = vector.broadcast %cst_53 : f32 to vector<8x32xf32>
    %115 = arith.addf %114, %113 : vector<8x32xf32>
    %116 = arith.divf %114, %115 : vector<8x32xf32>
    %117 = vector.extract_strided_slice %110 {offsets = [0, 32], sizes = [8, 32], strides = [1, 1]} : vector<8x96xf32> to vector<8x32xf32>
    %118 = math.tanh %117 : vector<8x32xf32>
    %119 = vector.extract_strided_slice %110 {offsets = [0, 64], sizes = [8, 32], strides = [1, 1]} : vector<8x96xf32> to vector<8x32xf32>
    %120 = arith.negf %119 : vector<8x32xf32>
    %121 = math.exp %120 : vector<8x32xf32>
    %cst_54 = arith.constant 1.000000e+00 : f32
    %122 = vector.broadcast %cst_54 : f32 to vector<8x32xf32>
    %123 = arith.addf %122, %121 : vector<8x32xf32>
    %124 = arith.divf %122, %123 : vector<8x32xf32>
    %125 = arith.mulf %116, %118 : vector<8x32xf32>
    %126 = math.tanh %125 : vector<8x32xf32>
    %127 = arith.mulf %124, %126 : vector<8x32xf32>
    %128 = vector.extract_strided_slice %109 {offsets = [0, 96], sizes = [8, 96], strides = [1, 1]} : vector<8x192xf32> to vector<8x96xf32>
    %129 = vector.extract_strided_slice %128 {offsets = [0, 0], sizes = [8, 32], strides = [1, 1]} : vector<8x96xf32> to vector<8x32xf32>
    %130 = arith.negf %129 : vector<8x32xf32>
    %131 = math.exp %130 : vector<8x32xf32>
    %cst_55 = arith.constant 1.000000e+00 : f32
    %132 = vector.broadcast %cst_55 : f32 to vector<8x32xf32>
    %133 = arith.addf %132, %131 : vector<8x32xf32>
    %134 = arith.divf %132, %133 : vector<8x32xf32>
    %135 = vector.extract_strided_slice %128 {offsets = [0, 32], sizes = [8, 32], strides = [1, 1]} : vector<8x96xf32> to vector<8x32xf32>
    %136 = math.tanh %135 : vector<8x32xf32>
    %137 = vector.extract_strided_slice %128 {offsets = [0, 64], sizes = [8, 32], strides = [1, 1]} : vector<8x96xf32> to vector<8x32xf32>
    %138 = arith.negf %137 : vector<8x32xf32>
    %139 = math.exp %138 : vector<8x32xf32>
    %cst_56 = arith.constant 1.000000e+00 : f32
    %140 = vector.broadcast %cst_56 : f32 to vector<8x32xf32>
    %141 = arith.addf %140, %139 : vector<8x32xf32>
    %142 = arith.divf %140, %141 : vector<8x32xf32>
    %143 = arith.mulf %134, %136 : vector<8x32xf32>
    %144 = math.tanh %143 : vector<8x32xf32>
    %145 = arith.mulf %142, %144 : vector<8x32xf32>
    %146 = tpu.concatenate %127, %145 in 1 : vector<8x32xf32>, vector<8x32xf32> -> vector<8x64xf32>
    %c192 = arith.constant 192 : index
    %c0_57 = arith.constant 0 : index
    %147 = vector.load %arg6[%c192, %c0_57] : memref<256x192xf32, #tpu.memory_space<vmem>>, vector<64x192xf32>
    %cst_58 = arith.constant dense<0.000000e+00> : vector<8x192xf32>
    %148 = tpu.matmul %146, %147, %cst_58 {dimension_numbers = #tpu.dot_dimension_numbers<[1], [0], [0], [1], [0, 0, 1, 1], [], []>} : vector<8x64xf32>, vector<64x192xf32>, vector<8x192xf32> -> vector<8x192xf32>
    %c9 = arith.constant 9 : index
    %c0_59 = arith.constant 0 : index
    %149 = vector.load %arg7[%c9, %c0_59] : memref<12x256xf32, #tpu.memory_space<vmem>>, vector<1x192xf32>
    %150 = vector.broadcast %149 : vector<1x192xf32> to vector<8x192xf32>
    %151 = arith.addf %148, %150 : vector<8x192xf32>
    %152 = vector.extract_strided_slice %151 {offsets = [0, 0], sizes = [8, 96], strides = [1, 1]} : vector<8x192xf32> to vector<8x96xf32>
    %153 = vector.extract_strided_slice %152 {offsets = [0, 0], sizes = [8, 32], strides = [1, 1]} : vector<8x96xf32> to vector<8x32xf32>
    %154 = arith.negf %153 : vector<8x32xf32>
    %155 = math.exp %154 : vector<8x32xf32>
    %cst_60 = arith.constant 1.000000e+00 : f32
    %156 = vector.broadcast %cst_60 : f32 to vector<8x32xf32>
    %157 = arith.addf %156, %155 : vector<8x32xf32>
    %158 = arith.divf %156, %157 : vector<8x32xf32>
    %159 = vector.extract_strided_slice %152 {offsets = [0, 32], sizes = [8, 32], strides = [1, 1]} : vector<8x96xf32> to vector<8x32xf32>
    %160 = math.tanh %159 : vector<8x32xf32>
    %161 = vector.extract_strided_slice %152 {offsets = [0, 64], sizes = [8, 32], strides = [1, 1]} : vector<8x96xf32> to vector<8x32xf32>
    %162 = arith.negf %161 : vector<8x32xf32>
    %163 = math.exp %162 : vector<8x32xf32>
    %cst_61 = arith.constant 1.000000e+00 : f32
    %164 = vector.broadcast %cst_61 : f32 to vector<8x32xf32>
    %165 = arith.addf %164, %163 : vector<8x32xf32>
    %166 = arith.divf %164, %165 : vector<8x32xf32>
    %167 = arith.mulf %158, %160 : vector<8x32xf32>
    %168 = math.tanh %167 : vector<8x32xf32>
    %169 = arith.mulf %166, %168 : vector<8x32xf32>
    %170 = vector.extract_strided_slice %151 {offsets = [0, 96], sizes = [8, 96], strides = [1, 1]} : vector<8x192xf32> to vector<8x96xf32>
    %171 = vector.extract_strided_slice %170 {offsets = [0, 0], sizes = [8, 32], strides = [1, 1]} : vector<8x96xf32> to vector<8x32xf32>
    %172 = arith.negf %171 : vector<8x32xf32>
    %173 = math.exp %172 : vector<8x32xf32>
    %cst_62 = arith.constant 1.000000e+00 : f32
    %174 = vector.broadcast %cst_62 : f32 to vector<8x32xf32>
    %175 = arith.addf %174, %173 : vector<8x32xf32>
    %176 = arith.divf %174, %175 : vector<8x32xf32>
    %177 = vector.extract_strided_slice %170 {offsets = [0, 32], sizes = [8, 32], strides = [1, 1]} : vector<8x96xf32> to vector<8x32xf32>
    %178 = math.tanh %177 : vector<8x32xf32>
    %179 = vector.extract_strided_slice %170 {offsets = [0, 64], sizes = [8, 32], strides = [1, 1]} : vector<8x96xf32> to vector<8x32xf32>
    %180 = arith.negf %179 : vector<8x32xf32>
    %181 = math.exp %180 : vector<8x32xf32>
    %cst_63 = arith.constant 1.000000e+00 : f32
    %182 = vector.broadcast %cst_63 : f32 to vector<8x32xf32>
    %183 = arith.addf %182, %181 : vector<8x32xf32>
    %184 = arith.divf %182, %183 : vector<8x32xf32>
    %185 = arith.mulf %176, %178 : vector<8x32xf32>
    %186 = math.tanh %185 : vector<8x32xf32>
    %187 = arith.mulf %184, %186 : vector<8x32xf32>
    %188 = tpu.concatenate %169, %187 in 1 : vector<8x32xf32>, vector<8x32xf32> -> vector<8x64xf32>
    %c864 = arith.constant 864 : index
    %c0_64 = arith.constant 0 : index
    %189 = vector.load %arg5[%c864, %c0_64] : memref<1056x128xf32, #tpu.memory_space<vmem>>, vector<64x128xf32>
    %cst_65 = arith.constant dense<0.000000e+00> : vector<8x128xf32>
    %190 = tpu.matmul %188, %189, %cst_65 {dimension_numbers = #tpu.dot_dimension_numbers<[1], [0], [0], [1], [0, 0, 1, 1], [], []>} : vector<8x64xf32>, vector<64x128xf32>, vector<8x128xf32> -> vector<8x128xf32>
    %c10 = arith.constant 10 : index
    %c0_66 = arith.constant 0 : index
    %191 = vector.load %arg7[%c10, %c0_66] : memref<12x256xf32, #tpu.memory_space<vmem>>, vector<1x128xf32>
    %192 = vector.broadcast %191 : vector<1x128xf32> to vector<8x128xf32>
    %193 = arith.addf %190, %192 : vector<8x128xf32>
    %c928 = arith.constant 928 : index
    %c0_67 = arith.constant 0 : index
    %194 = vector.load %arg5[%c928, %c0_67] : memref<1056x128xf32, #tpu.memory_space<vmem>>, vector<128x128xf32>
    %cst_68 = arith.constant dense<0.000000e+00> : vector<8x128xf32>
    %195 = tpu.matmul %193, %194, %cst_68 {dimension_numbers = #tpu.dot_dimension_numbers<[1], [0], [0], [1], [0, 0, 1, 1], [], []>} : vector<8x128xf32>, vector<128x128xf32>, vector<8x128xf32> -> vector<8x128xf32>
    %c11 = arith.constant 11 : index
    %c0_69 = arith.constant 0 : index
    %196 = vector.load %arg7[%c11, %c0_69] : memref<12x256xf32, #tpu.memory_space<vmem>>, vector<1x128xf32>
    %197 = vector.broadcast %196 : vector<1x128xf32> to vector<8x128xf32>
    %198 = arith.addf %195, %197 : vector<8x128xf32>
    %199 = arith.negf %198 : vector<8x128xf32>
    %200 = math.exp %199 : vector<8x128xf32>
    %cst_70 = arith.constant 1.000000e+00 : f32
    %201 = vector.broadcast %cst_70 : f32 to vector<8x128xf32>
    %202 = arith.addf %201, %200 : vector<8x128xf32>
    %203 = arith.divf %201, %202 : vector<8x128xf32>
    %c0_71 = arith.constant 0 : index
    %c0_72 = arith.constant 0 : index
    %204 = vector.load %arg8[%c0_71, %c0_72] : memref<8x128xf32, #tpu.memory_space<vmem>>, vector<8x128xf32>
    tpu.vector_store %arg8[%c0_71, %c0_72], %203 {strides = array<i32>} : memref<8x128xf32, #tpu.memory_space<vmem>>, vector<8x128xf32>,
    return
  }
}

</mosaic_0001>

<bundles_post_ra>
// kernel: forward.1
= control target key start
LH: loop header
LB: loop body
LE: loop exit
PB: predicated region body
PF: predicated region fallthrough
CT: control target
= control target key end

     0   :  { %vm53_vm0 = vcmask 441344   ;;  %vm78_vm1 = vcmask 1045504   ;;  %vm188_vm2 = vcmask 523264   ;;  %vm11545_vm3 = vmmov 0   ;;  %s11548_s21 = smov 64   ;;  %s15491_s5 = inlined_call_operand.vmem [shape: f32[1056,128], index: 5, kind: input, shape index: {}]   ;;  %s15492_s0 = inlined_call_operand.vmem [shape: f32[64,54], index: 0, kind: input, shape index: {}]   ;;  %s15493_s1 = inlined_call_operand.vmem [shape: f32[64,64], index: 1, kind: input, shape index: {}]   ;;  %s15494_s7 = inlined_call_operand.vmem [shape: f32[12,256], index: 7, kind: input, shape index: {}]   ;;  %s15495_s3 = inlined_call_operand.vmem [shape: f32[3360,34], index: 3, kind: input, shape index: {}]   ;;  %s15496_s2 = inlined_call_operand.vmem [shape: f32[8,64], index: 2, kind: input, shape index: {}]   ;;  %s15497_s4 = inlined_call_operand.vmem [shape: f32[8,3360], index: 4, kind: input, shape index: {}]   ;;  %s15498_s6 = inlined_call_operand.vmem [shape: f32[256,192], index: 6, kind: input, shape index: {}]   ;;  %s15499_s8 = inlined_call_operand.vmem [shape: f32[8,128], index: 8, kind: output, shape index: {}]  }
   0x1   :  { %v46_v0 = vld [vmem:[%s15491_s5] sm:$0xff]  ;;  %v47_v1 = vld [vmem:[%s15491_s5 + $0x8] sm:$0xff]  ;;  %v48_v2 = vld [vmem:[%s15491_s5 + $0x10] sm:$0xff]  ;;  %vm1362_vm4 = vcmask 277504   ;;  %vm1993_vm5 = vcmask 1040384   ;;  %vm6525_vm6 = vcmask 261120  }
   0x2   :  { %v10784_v3 = vpack.c.bf16 %v47_v1, %v46_v0  ;;  %v49_v4 = vld [vmem:[%s15491_s5 + $0x18] sm:$0xff]  ;;  %v50_v6 = vld [vmem:[%s15491_s5 + $0x20] sm:$0xff]  ;;  %v51_v7 = vld [vmem:[%s15491_s5 + $0x28] sm:$0xff] }
   0x3   :  { %v10788_v5 = vpack.c.bf16 %v49_v4, %v48_v2  ;;  %v38_v8 = vld [vmem:[%s15492_s0] sm:$0xff]  ;;  %v10792_v9 = vpack.c.bf16 %v51_v7, %v50_v6  ;;  %v52_v10 = vld [vmem:[%s15491_s5 + $0x30] sm:$0x3f]  ;;  %v39_v11 = vld [vmem:[%s15492_s0 + $0x8] sm:$0xff] }
   0x4   :  { %10785 = vmatprep.subr.bf16.mxu1 %v10784_v3  ;;  %9656 = vmatprep.mubr.msk.f32.mxu1 %vm53_vm0, %v38_v8  ;;  %v40_v12 = vld [vmem:[%s15492_s0 + $0x10] sm:$0xff]  ;;  %v41_v13 = vld [vmem:[%s15492_s0 + $0x18] sm:$0xff]  ;;  %v42_v14 = vld [vmem:[%s15492_s0 + $0x20] sm:$0xff] }
   0x5   :  { %10787 = vmatpush3.bf16.msra.mxu1 %v10784_v3  ;;  %v43_v15 = vld [vmem:[%s15492_s0 + $0x28] sm:$0xff]  ;;  %v44_v16 = vld [vmem:[%s15492_s0 + $0x30] sm:$0xff]  ;;  %v45_v17 = vld [vmem:[%s15492_s0 + $0x38] sm:$0xff]  ;;  %s11547_s0 = smov 96  }
   0x6   :  { %10789 = vmatprep.subr.bf16.mxu1 %v10788_v5  ;;  %v11650_v18 = vld [vmem:[%s15493_s1] sm:$0xff]  ;;  %v326_v19 = vld [vmem:[%s15491_s5 + $0x38] sm:$0xff]  ;;  %v328_v21 = vld [vmem:[%s15491_s5 + $0x48] sm:$0xff] }
   0x7   :  { %v327_v20 = vld [vmem:[%s15491_s5 + $0x40] sm:$0xff]  ;;  %v329_v23 = vld [vmem:[%s15491_s5 + $0x50] sm:$0xff]  ;;  %v330_v25 = vld [vmem:[%s15491_s5 + $0x58] sm:$0xff] }
   0x8   :  { %v10812_v22 = vpack.c.bf16 %v327_v20, %v326_v19  ;;  %v10816_v24 = vpack.c.bf16 %v329_v23, %v328_v21  ;;  %v331_v26 = vld [vmem:[%s15491_s5 + $0x60] sm:$0xff]  ;;  %v332_v28 = vld [vmem:[%s15491_s5 + $0x68] sm:$0xff]  ;;  %v333_v29 = vld [vmem:[%s15491_s5 + $0x70] sm:$0xff] }
   0x9   :  { %10791 = vmatpush3.bf16.msra.mxu1 %v10788_v5  ;;  %v10820_v27 = vpack.c.bf16 %v331_v26, %v330_v25  ;;  %v10824_v30 = vpack.c.bf16 %v333_v29, %v332_v28  ;;  %v334_v31 = vld [vmem:[%s15491_s5 + $0x78] sm:$0xff]  ;;  %v335_v32 = vld [vmem:[%s15491_s5 + $0x80] sm:$0xff]  ;;  %v336_v34 = vld [vmem:[%s15491_s5 + $0x88] sm:$0xff] }
   0xa   :  { %10793 = vmatprep.subr.bf16.mxu1 %v10792_v9  ;;  %10813 = vmatprep.subr.bf16.mxu0 %v10812_v22  ;;  %v10828_v33 = vpack.c.bf16 %v335_v32, %v334_v31  ;;  %v337_v35 = vld [vmem:[%s15491_s5 + $0x90] sm:$0xff]  ;;  %v338_v37 = vld [vmem:[%s15491_s5 + $0x98] sm:$0xff]  ;;  %v339_v38 = vld [vmem:[%s15491_s5 + $0xa0] sm:$0xff] }
   0xb   :  { %10815 = vmatpush3.bf16.msra.mxu0 %v10812_v22  ;;  %v10832_v36 = vpack.c.bf16 %v337_v35, %v336_v34  ;;  %v10836_v39 = vpack.c.bf16 %v339_v38, %v338_v37  ;;  %v11699_v52 = vld [vmem:[%s15493_s1 + $0x8] sm:$0xff]  ;;  %v11704_v53 = vld [vmem:[%s15493_s1 + $0x10] sm:$0xff]  ;;  %v11713_v54 = vld [vmem:[%s15493_s1 + $0x18] sm:$0xff]  ;;  %v15502_v35 = vmov 0.0|0.0  }
   0xc   :  { %10817 = vmatprep.subr.bf16.mxu0 %v10816_v24  ;;  %v11718_v55 = vld [vmem:[%s15493_s1 + $0x20] sm:$0xff]  ;;  %v11727_v56 = vld [vmem:[%s15493_s1 + $0x28] sm:$0xff]  ;;  %v11732_v57 = vld [vmem:[%s15493_s1 + $0x30] sm:$0xff] }
   0xd   :  { %10795 = vmatpush3.bf16.msra.mxu1 %v10792_v9  ;;  %v11741_v58 = vld [vmem:[%s15493_s1 + $0x38] sm:$0xff]  ;;  %v340_v59 = vld [vmem:[%s15491_s5 + $0xa8] sm:$0xff]  ;;  %v341_v60 = vld [vmem:[%s15491_s5 + $0xb0] sm:$0xff] }
   0xe   :  { %9654 = vmatprep.subr.msk.mxu1 %vm78_vm1, %v52_v10  ;;  %v10840_v61 = vpack.c.bf16 %v341_v60, %v340_v59  ;;  %v187_v62 = vld [vmem:[%s15494_s7] ss:$0 sm:$0xff]  ;;  %v447_v37 = vld [vmem:[%s15494_s7 + $0x1] ss:$0 sm:$0xff] }
   0xf   :  { %10819 = vmatpush3.bf16.msra.mxu0 %v10816_v24 }
  0x10   :  { %10821 = vmatprep.subr.bf16.mxu0 %v10820_v27 }
  0x11   :  { %9655 = vmatpush3.msk.msra.mxu1 %vm78_vm1, %v52_v10 }
  0x12   :  { %9657 = vmatmul.mubr.msk.f32.vlgmr.msra.gmra.mrb[0].mxu1 %vm53_vm0, %v39_v11 }
  0x13   :  { %9659 = vmatprep.mubr.msk.f32.mxu1 %vm53_vm0, %v40_v12  ;;  %10823 = vmatpush3.bf16.msra.mxu0 %v10820_v27 }
  0x14   :  { %10825 = vmatprep.subr.bf16.mxu0 %v10824_v30 }
  0x16   :  { %9660 = vmatmul.mubr.msk.f32.gmra.mrb[2].mxu1 %vm53_vm0, %v41_v13 }
  0x17   :  { %9662 = vmatprep.mubr.msk.f32.mxu1 %vm53_vm0, %v42_v14  ;;  %10827 = vmatpush3.bf16.msra.mxu0 %v10824_v30 }
  0x18   :  { %10829 = vmatprep.subr.bf16.mxu0 %v10828_v33 }
  0x1a   :  { %9663 = vmatmul.mubr.msk.f32.gmra.mrb[4].mxu1 %vm53_vm0, %v43_v15 }
  0x1b   :  { %9665 = vmatprep.mubr.msk.f32.mxu1 %vm53_vm0, %v44_v16  ;;  %10831 = vmatpush3.bf16.msra.mxu0 %v10828_v33 }
  0x1c   :  { %10833 = vmatprep.subr.bf16.mxu0 %v10832_v36 }
  0x1e   :  { %9666 = vmatmul.mubr.msk.f32.gmra.mrb[6].mxu1 %vm53_vm0, %v45_v17 }
  0x1f   :  { %9684 = vmatprep.mubr.msk.f32.mxu1 %vm188_vm2, %v11650_v18  ;;  %10835 = vmatpush3.bf16.msra.mxu0 %v10832_v36  ;;  %v15500_v36 = vmov 0.0  }
  0x20   :  { %10837 = vmatprep.subr.bf16.mxu0 %v10836_v39 }
  0x23   :  { %10839 = vmatpush3.bf16.msra.mxu0 %v10836_v39 }
  0x24   :  { %10841 = vmatprep.subr.bf16.mxu0 %v10840_v61 }
  0x27   :  { %10843 = vmatpush3.bf16.msra.mxu0 %v10840_v61 }
  0x28   :  { %10872 = vmatprep.subr.bf16.mxu0 %v15502_v35 }
  0xe5   :  { %v9658_v40 = vpop.f32.mrb[0].mxu1 }
  0xe6   :  { %v148_v41 = vpop.f32.mrb[1].mxu1 }
  0xe7   :  { %v10796_v42 = vpack.c.bf16 %v9658_v40, %v148_v41 }
  0xe9   :  { %v9661_v43 = vpop.f32.mrb[2].mxu1  ;;  %10797 = vmatprep.subr.bf16.mxu1 %v10796_v42 }
  0xea   :  { %v158_v44 = vpop.f32.mrb[3].mxu1  ;;  %10799 = vmatpush3.bf16.msra.mxu1 %v10796_v42 }
  0xeb   :  { %v10800_v45 = vpack.c.bf16 %v9661_v43, %v158_v44 }
  0xed   :  { %v9664_v46 = vpop.f32.mrb[4].mxu1  ;;  %10801 = vmatprep.subr.bf16.mxu1 %v10800_v45 }
  0xee   :  { %v168_v47 = vpop.f32.mrb[5].mxu1  ;;  %10803 = vmatpush3.bf16.msra.mxu1 %v10800_v45 }
  0xef   :  { %v10804_v48 = vpack.c.bf16 %v9664_v46, %v168_v47 }
  0xf1   :  { %v9667_v49 = vpop.f32.mrb[6].mxu1  ;;  %10805 = vmatprep.subr.bf16.mxu1 %v10804_v48 }
  0xf2   :  { %v178_v50 = vpop.f32.mrb[7].mxu1  ;;  %10807 = vmatpush3.bf16.msra.mxu1 %v10804_v48 }
  0xf3   :  { %v10808_v51 = vpack.c.bf16 %v9667_v49, %v178_v50 }
  0xf5   :  { %10809 = vmatprep.subr.bf16.mxu1 %v10808_v51 }
  0xf6   :  { %10811 = vmatpush3.bf16.msra.mxu1 %v10808_v51 }
  0xf9   :  { %9685 = vmatmul.mubr.msk.f32.vlgmr.msra.gmra.mrb[8].mxu1 %vm188_vm2, %v11699_v52 }
  0xfa   :  { %9687 = vmatprep.mubr.msk.f32.mxu1 %vm188_vm2, %v11704_v53 }
  0xfd   :  { %9688 = vmatmul.mubr.msk.f32.gmra.mrb[10].mxu1 %vm188_vm2, %v11713_v54 }
  0xfe   :  { %9690 = vmatprep.mubr.msk.f32.mxu1 %vm188_vm2, %v11718_v55 }
 0x101   :  { %9691 = vmatmul.mubr.msk.f32.gmra.mrb[12].mxu1 %vm188_vm2, %v11727_v56 }
 0x102   :  { %9693 = vmatprep.mubr.msk.f32.mxu1 %vm188_vm2, %v11732_v57 }
 0x105   :  { %9694 = vmatmul.mubr.msk.f32.gmra.mrb[14].mxu1 %vm188_vm2, %v11741_v58 }
 0x106   :  { %9756 = vmatprep.mubr.msk.f32.mxu1 %vm188_vm2, %v11650_v18 }
 0x1cc   :  { %v9686_v63 = vpop.f32.mrb[8].mxu1 }
 0x1cd   :  { %v285_v0 = vadd.f32 %v9686_v63, %v187_v62  ;;  %v279_v1 = vpop.f32.mrb[9].mxu1  ;;  %v1353_v63 = vld [vmem:[%s15491_s5 + $0x138] sm:$0xff] }
 0x1ce   :  { %v280_v2 = vadd.f32 %v279_v1, %v187_v62 }
 0x1cf   :  { %v319_v7 = vmax.f32 %v285_v0, 0.0  ;;  %v1354_v0 = vld [vmem:[%s15491_s5 + $0x140] sm:$0xff] }
 0x1d0   :  { %v9689_v3 = vpop.f32.mrb[10].mxu1  ;;  %v318_v4 = vmax.f32 %v280_v2, 0.0 }
 0x1d1   :  { %v295_v5 = vadd.f32 %v9689_v3, %v187_v62  ;;  %v289_v6 = vpop.f32.mrb[11].mxu1  ;;  %v1358_v3 = vpack.c.bf16 %v1354_v0, %v1353_v63  ;;  %v751_v63 = vld [vmem:[%s15495_s3 + $0xe0] sm:$0xff]  ;;  %v752_v0 = vld [vmem:[%s15495_s3 + $0xe8] sm:$0xff] }
 0x1d2   :  { %v290_v8 = vadd.f32 %v289_v6, %v187_v62  ;;  %9728 = vmatprep.mubr.f32.mxu0 %v318_v4  ;;  %v723_v4 = vld [vmem:[%s15495_s3] sm:$0xff] }
 0x1d3   :  { %9729 = vmatmul.mubr.f32.vlgmr.msra.gmra.mrb[0].mxu0 %v319_v7  ;;  %v321_v13 = vmax.f32 %v295_v5, 0.0  ;;  %v724_v5 = vld [vmem:[%s15495_s3 + $0x8] sm:$0xff] }
 0x1d4   :  { %v9692_v9 = vpop.f32.mrb[12].mxu1  ;;  %v320_v10 = vmax.f32 %v290_v8, 0.0  ;;  %v1355_v7 = vld [vmem:[%s15491_s5 + $0x148] sm:$0xff]  ;;  %v1356_v8 = vld [vmem:[%s15491_s5 + $0x150] sm:$0xff] }
 0x1d5   :  { %v305_v11 = vadd.f32 %v9692_v9, %v187_v62  ;;  %v299_v12 = vpop.f32.mrb[13].mxu1  ;;  %v561_v9 = vld [vmem:[%s15496_s2] sm:$0xff] }
 0x1d6   :  { %v300_v14 = vadd.f32 %v299_v12, %v187_v62  ;;  %9731 = vmatprep.mubr.f32.mxu0 %v320_v10  ;;  %v1143_v10 = vpack.c.bf16 %v724_v5, %v723_v4  ;;  %v1357_v12 = vld [vmem:[%s15491_s5 + $0x158] sm:$0x3]  ;;  %v753_v4 = vld [vmem:[%s15495_s3 + $0xf0] sm:$0xff]  ;;  %v641_v5 = vld [vmem:[%s15491_s5 + $0xe8] sm:$0xff] }
 0x1d7   :  { %9732 = vmatmul.mubr.f32.gmra.mrb[2].mxu0 %v321_v13  ;;  %v323_v19 = vmax.f32 %v305_v11, 0.0  ;;  %v1359_v11 = vpack.c.bf16 %v1356_v8, %v1355_v7  ;;  %v1360_v13 = vpack.c.bf16 %v1357_v12, %v1357_v12  ;;  %v754_v7 = vld [vmem:[%s15495_s3 + $0xf8] sm:$0xff]  ;;  %v756_v12 = vld [vmem:[%s15495_s3 + $0x108] sm:$0xff] }
 0x1d8   :  { %v9695_v15 = vpop.f32.mrb[14].mxu1  ;;  %v322_v16 = vmax.f32 %v300_v14, 0.0  ;;  %v725_v14 = vld [vmem:[%s15495_s3 + $0x10] sm:$0xff] }
 0x1d9   :  { %v315_v17 = vadd.f32 %v9695_v15, %v187_v62  ;;  %v309_v18 = vpop.f32.mrb[15].mxu1  ;;  %v726_v15 = vld [vmem:[%s15495_s3 + $0x18] sm:$0xff] }
 0x1da   :  { %v310_v20 = vadd.f32 %v309_v18, %v187_v62  ;;  %9734 = vmatprep.mubr.f32.mxu0 %v322_v16  ;;  %v1995_v16 = vsel %vm1993_vm5, %v1360_v13, 0  ;;  %v728_v18 = vld [vmem:[%s15495_s3 + $0x28] sm:$0xff] }
 0x1db   :  { %9735 = vmatmul.mubr.f32.gmra.mrb[4].mxu0 %v323_v19  ;;  %v325_v22 = vmax.f32 %v315_v17, 0.0  ;;  %v727_v17 = vld [vmem:[%s15495_s3 + $0x20] sm:$0xff]  ;;  %v1144_v19 = vpack.c.bf16 %v726_v15, %v725_v14  ;;  %v1158_v14 = vpack.c.bf16 %v754_v7, %v753_v4 }
 0x1dc   :  { %v324_v21 = vmax.f32 %v310_v20, 0.0  ;;  %v1145_v20 = vpack.c.bf16 %v728_v18, %v727_v17  ;;  %v645_v17 = vld [vmem:[%s15491_s5 + $0x108] sm:$0xff]  ;;  %v646_v18 = vld [vmem:[%s15491_s5 + $0x110] sm:$0xff]  ;;  %v783_v4 = vld [vmem:[%s15495_s3 + $0x1e0] sm:$0xff] }
 0x1de   :  { %9737 = vmatprep.mubr.f32.mxu0 %v324_v21  ;;  %v729_v21 = vld [vmem:[%s15495_s3 + $0x30] sm:$0xff] }
 0x1df   :  { %9738 = vmatmul.mubr.f32.gmra.mrb[6].mxu0 %v325_v22  ;;  %v730_v22 = vld [vmem:[%s15495_s3 + $0x38] sm:$0xff] }
 0x1e0   :  { %9819 = vmatprep.mubr.msk.f32.mxu0 %vm11545_vm3, %v15500_v36 }
 0x2a6   :  { %v9730_v23 = vpop.f32.mrb[0].mxu0 }
 0x2a7   :  { %v408_v24 = vpop.f32.mrb[1].mxu0 }
 0x2a8   :  { %v10844_v25 = vpack.c.bf16 %v9730_v23, %v408_v24  ;;  %v731_v23 = vld [vmem:[%s15495_s3 + $0x40] sm:$0xff]  ;;  %v732_v24 = vld [vmem:[%s15495_s3 + $0x48] sm:$0xff] }
 0x2aa   :  { %v9733_v26 = vpop.f32.mrb[2].mxu0  ;;  %10845 = vmatprep.subr.bf16.mxu1 %v10844_v25 }
 0x2ab   :  { %v418_v27 = vpop.f32.mrb[3].mxu0  ;;  %10847 = vmatpush3.bf16.msra.mxu1 %v10844_v25  ;;  %v1146_v25 = vpack.c.bf16 %v730_v22, %v729_v21  ;;  %v647_v21 = vld [vmem:[%s15491_s5 + $0x118] sm:$0xff]  ;;  %v648_v22 = vld [vmem:[%s15491_s5 + $0x120] sm:$0xff] }
 0x2ac   :  { %v10848_v28 = vpack.c.bf16 %v9733_v26, %v418_v27  ;;  %v1147_v26 = vpack.c.bf16 %v732_v24, %v731_v23  ;;  %v733_v27 = vld [vmem:[%s15495_s3 + $0x50] sm:$0xff]  ;;  %v759_v23 = vld [vmem:[%s15495_s3 + $0x120] sm:$0xff]  ;;  %v760_v24 = vld [vmem:[%s15495_s3 + $0x128] sm:$0xff] }
 0x2ae   :  { %v9736_v29 = vpop.f32.mrb[4].mxu0  ;;  %10849 = vmatprep.subr.bf16.mxu1 %v10848_v28 }
 0x2af   :  { %v428_v30 = vpop.f32.mrb[5].mxu0  ;;  %10851 = vmatpush3.bf16.msra.mxu1 %v10848_v28  ;;  %v734_v28 = vld [vmem:[%s15495_s3 + $0x58] sm:$0xff] }
 0x2b0   :  { %v10852_v31 = vpack.c.bf16 %v9736_v29, %v428_v30  ;;  %v735_v29 = vld [vmem:[%s15495_s3 + $0x60] sm:$0xff]  ;;  %v736_v30 = vld [vmem:[%s15495_s3 + $0x68] sm:$0xff] }
 0x2b2   :  { %v9739_v32 = vpop.f32.mrb[6].mxu0  ;;  %10853 = vmatprep.subr.bf16.mxu1 %v10852_v31 }
 0x2b3   :  { %v438_v33 = vpop.f32.mrb[7].mxu0  ;;  %10855 = vmatpush3.bf16.msra.mxu1 %v10852_v31  ;;  %v1148_v31 = vpack.c.bf16 %v734_v28, %v733_v27  ;;  %v1161_v27 = vpack.c.bf16 %v760_v24, %v759_v23  ;;  %v649_v28 = vld [vmem:[%s15491_s5 + $0x128] sm:$0xff] }
 0x2b4   :  { %v10856_v34 = vpack.c.bf16 %v9739_v32, %v438_v33  ;;  %v1149_v32 = vpack.c.bf16 %v736_v30, %v735_v29  ;;  %v737_v33 = vld [vmem:[%s15495_s3 + $0x70] sm:$0xff]  ;;  %v796_v23 = vld [vmem:[%s15495_s3 + $0x248] sm:$0xff] }
 0x2b5   :  { %v650_v29 = vld [vmem:[%s15491_s5 + $0x130] sm:$0xff] }
 0x2b6   :  { %10857 = vmatprep.subr.bf16.mxu1 %v10856_v34  ;;  %v761_v30 = vld [vmem:[%s15495_s3 + $0x130] sm:$0xff] }
 0x2b7   :  { %10859 = vmatpush3.bf16.msra.mxu1 %v10856_v34  ;;  %v738_v34 = vld [vmem:[%s15495_s3 + $0x78] sm:$0xff] }
 0x2b8   :  { %10860 = vmatprep.subr.bf16.mxu1 %v15502_v35 }
 0x2ba   :  { %9757 = vmatmul.mubr.msk.f32.vlgmr.msra.gmra.mrb[16].mxu1 %vm188_vm2, %v11699_v52 }
 0x2bb   :  { %9759 = vmatprep.mubr.msk.f32.mxu1 %vm188_vm2, %v11704_v53 }
 0x2be   :  { %9760 = vmatmul.mubr.msk.f32.gmra.mrb[18].mxu1 %vm188_vm2, %v11713_v54 }
 0x2bf   :  { %9762 = vmatprep.mubr.msk.f32.mxu1 %vm188_vm2, %v11718_v55 }
 0x2c2   :  { %9763 = vmatmul.mubr.msk.f32.gmra.mrb[20].mxu1 %vm188_vm2, %v11727_v56 }
 0x2c3   :  { %9765 = vmatprep.mubr.msk.f32.mxu1 %vm188_vm2, %v11732_v57 }
 0x2c6   :  { %9766 = vmatmul.mubr.msk.f32.gmra.mrb[22].mxu1 %vm188_vm2, %v11741_v58 }
 0x2c7   :  { %9784 = vmatprep.mubr.msk.f32.mxu1 %vm11545_vm3, %v15500_v36 }
 0x38d   :  { %v9758_v38 = vpop.f32.mrb[16].mxu1 }
 0x38e   :  { %v520_v39 = vadd.f32 %v9758_v38, %v447_v37  ;;  %v514_v40 = vpop.f32.mrb[17].mxu1  ;;  %v740_v38 = vld [vmem:[%s15495_s3 + $0x88] sm:$0xff] }
 0x38f   :  { %v515_v41 = vadd.f32 %v514_v40, %v447_v37 }
 0x390   :  { %v554_v42 = vmax.f32 %v520_v39, 0.0  ;;  %v1150_v39 = vpack.c.bf16 %v738_v34, %v737_v33  ;;  %v763_v33 = vld [vmem:[%s15495_s3 + $0x140] sm:$0xff]  ;;  %v764_v34 = vld [vmem:[%s15495_s3 + $0x148] sm:$0xff] }
 0x391   :  { %v553_v43 = vmax.f32 %v515_v41, 0.0  ;;  %v9761_v44 = vpop.f32.mrb[18].mxu1  ;;  %v741_v41 = vld [vmem:[%s15495_s3 + $0x90] sm:$0xff] }
 0x392   :  { %v530_v45 = vadd.f32 %v9761_v44, %v447_v37  ;;  %v524_v46 = vpop.f32.mrb[19].mxu1  ;;  %v744_v44 = vld [vmem:[%s15495_s3 + $0xa8] sm:$0xff] }
 0x393   :  { %v10861_v47 = vpack.c.bf16 %v554_v42, %v553_v43  ;;  %v525_v48 = vadd.f32 %v524_v46, %v447_v37  ;;  %v742_v42 = vld [vmem:[%s15495_s3 + $0x98] sm:$0xff]  ;;  %v743_v43 = vld [vmem:[%s15495_s3 + $0xa0] sm:$0xff] }
 0x394   :  { %v556_v49 = vmax.f32 %v530_v45, 0.0  ;;  %v1152_v45 = vpack.c.bf16 %v742_v42, %v741_v41  ;;  %v1153_v46 = vpack.c.bf16 %v744_v44, %v743_v43  ;;  %v765_v42 = vld [vmem:[%s15495_s3 + $0x150] sm:$0xff]  ;;  %v766_v43 = vld [vmem:[%s15495_s3 + $0x158] sm:$0xff]  ;;  %v767_v44 = vld [vmem:[%s15495_s3 + $0x160] sm:$0xff] }
 0x395   :  { %v555_v50 = vmax.f32 %v525_v48, 0.0  ;;  %v9764_v51 = vpop.f32.mrb[20].mxu1  ;;  %10862 = vmatpush3.bf16.msra.mxu1 %v10861_v47  ;;  %v745_v47 = vld [vmem:[%s15495_s3 + $0xb0] sm:$0xff]  ;;  %v746_v48 = vld [vmem:[%s15495_s3 + $0xb8] sm:$0xff] }
 0x396   :  { %v540_v52 = vadd.f32 %v9764_v51, %v447_v37  ;;  %v534_v53 = vpop.f32.mrb[21].mxu1  ;;  %10863 = vmatprep.subr.bf16.mxu1 %v15502_v35  ;;  %v747_v51 = vld [vmem:[%s15495_s3 + $0xc0] sm:$0xff] }
 0x397   :  { %v10864_v54 = vpack.c.bf16 %v556_v49, %v555_v50  ;;  %v535_v55 = vadd.f32 %v534_v53, %v447_v37  ;;  %v635_v49 = vld [vmem:[%s15491_s5 + $0xb8] sm:$0xff]  ;;  %v636_v50 = vld [vmem:[%s15491_s5 + $0xc0] sm:$0xff] }
 0x398   :  { %v558_v56 = vmax.f32 %v540_v52, 0.0  ;;  %v748_v52 = vld [vmem:[%s15495_s3 + $0xc8] sm:$0xff]  ;;  %v10873_v53 = vpack.c.bf16 %v636_v50, %v635_v49  ;;  %v770_v49 = vld [vmem:[%s15495_s3 + $0x178] sm:$0xff]  ;;  %v771_v50 = vld [vmem:[%s15495_s3 + $0x180] sm:$0xff] }
 0x399   :  { %v557_v57 = vmax.f32 %v535_v55, 0.0  ;;  %v9767_v58 = vpop.f32.mrb[22].mxu1  ;;  %10865 = vmatpush3.bf16.msra.mxu1 %v10864_v54  ;;  %v1154_v54 = vpack.c.bf16 %v746_v48, %v745_v47  ;;  %v1155_v55 = vpack.c.bf16 %v748_v52, %v747_v51  ;;  %v769_v48 = vld [vmem:[%s15495_s3 + $0x170] sm:$0xff]  ;;  %v772_v51 = vld [vmem:[%s15495_s3 + $0x188] sm:$0xff] }
 0x39a   :  { %v550_v59 = vadd.f32 %v9767_v58, %v447_v37  ;;  %v544_v60 = vpop.f32.mrb[23].mxu1  ;;  %10866 = vmatprep.subr.bf16.mxu1 %v15502_v35  ;;  %10874 = vmatpush3.bf16.msra.mxu0 %v10873_v53  ;;  %v638_v58 = vld [vmem:[%s15491_s5 + $0xd0] sm:$0xff]  ;;  %v1166_v52 = vpack.c.bf16 %v770_v49, %v769_v48  ;;  %v1167_v53 = vpack.c.bf16 %v772_v51, %v771_v50  ;;  %v810_v48 = vld [vmem:[%s15495_s3 + $0x2b8] sm:$0xff]  ;;  %v811_v49 = vld [vmem:[%s15495_s3 + $0x2c0] sm:$0xff] }
 0x39b   :  { %v10867_v61 = vpack.c.bf16 %v558_v56, %v557_v57  ;;  %v545_v62 = vadd.f32 %v544_v60, %v447_v37  ;;  %v739_v37 = vld [vmem:[%s15495_s3 + $0x80] sm:$0xff]  ;;  %10875 = vmatprep.subr.bf16.mxu0 %v15502_v35  ;;  %v749_v56 = vld [vmem:[%s15495_s3 + $0xd0] sm:$0xff]  ;;  %v637_v57 = vld [vmem:[%s15491_s5 + $0xc8] sm:$0xff] }
 0x39c   :  { %v560_v1 = vmax.f32 %v550_v59, 0.0  ;;  %v1151_v40 = vpack.c.bf16 %v740_v38, %v739_v37  ;;  %v750_v59 = vld [vmem:[%s15495_s3 + $0xd8] sm:$0xff]  ;;  %v10876_v60 = vpack.c.bf16 %v638_v58, %v637_v57  ;;  %v4340_v38 = vld [vmem:[%s15491_s5 + $0x160] sm:$0xff]  ;;  %v776_v57 = vld [vmem:[%s15495_s3 + $0x1a8] sm:$0xff] }
 0x39d   :  { %v559_v2 = vmax.f32 %v545_v62, 0.0  ;;  %10868 = vmatpush3.bf16.msra.mxu1 %v10867_v61  ;;  %v639_v61 = vld [vmem:[%s15491_s5 + $0xd8] sm:$0xff]  ;;  %v640_v62 = vld [vmem:[%s15491_s5 + $0xe0] sm:$0xff]  ;;  %v812_v50 = vld [vmem:[%s15495_s3 + $0x2c8] sm:$0xff] }
 0x39e   :  { %10869 = vmatprep.subr.bf16.mxu1 %v15502_v35  ;;  %10877 = vmatpush3.bf16.msra.mxu0 %v10876_v60  ;;  %v777_v60 = vld [vmem:[%s15495_s3 + $0x1b0] sm:$0xff] }
 0x39f   :  { %v10870_v6 = vpack.c.bf16 %v560_v1, %v559_v2  ;;  %v10879_v1 = vpack.c.bf16 %v640_v62, %v639_v61  ;;  %v1156_v2 = vpack.c.bf16 %v750_v59, %v749_v56  ;;  %10878 = vmatprep.subr.bf16.mxu0 %v15502_v35  ;;  %v775_v56 = vld [vmem:[%s15495_s3 + $0x1a0] sm:$0xff]  ;;  %v778_v61 = vld [vmem:[%s15495_s3 + $0x1b8] sm:$0xff] }
 0x3a0   :  { %v1169_v59 = vpack.c.bf16 %v776_v57, %v775_v56  ;;  %v779_v62 = vld [vmem:[%s15495_s3 + $0x1c0] sm:$0xff]  ;;  %v816_v56 = vld [vmem:[%s15495_s3 + $0x2e8] sm:$0xff] }
 0x3a1   :  { %10871 = vmatpush3.bf16.msra.mxu1 %v10870_v6  ;;  %v642_v6 = vld [vmem:[%s15491_s5 + $0xf0] sm:$0xff] }
 0x3a2   :  { %9822 = vmatprep.subr.bf16.mxu1 %v1358_v3  ;;  %10880 = vmatpush3.bf16.msra.mxu0 %v10879_v1  ;;  %v10882_v8 = vpack.c.bf16 %v642_v6, %v641_v5  ;;  %v784_v5 = vld [vmem:[%s15495_s3 + $0x1e8] sm:$0xff] }
 0x3a3   :  { %10881 = vmatprep.subr.bf16.mxu0 %v15502_v35  ;;  %v1173_v7 = vpack.c.bf16 %v784_v5, %v783_v4  ;;  %v824_v4 = vld [vmem:[%s15495_s3 + $0x328] sm:$0xff] }
 0x3a4   :  { %9785 = vmatmul.mubr.msk.f32.vlgmr.msra.gmra.mrb[24].mxu1 %vm188_vm2, %v561_v9  ;;  %v643_v9 = vld [vmem:[%s15491_s5 + $0xf8] sm:$0xff] }
 0x3a5   :  { %9823 = vmatpush3.bf16.msra.mxu1 %v1358_v3  ;;  %9828 = vmatprep.mubr.msk.bf16.mxu1 %vm1362_vm4, %v1143_v10  ;;  %v1157_v3 = vpack.c.bf16 %v752_v0, %v751_v63  ;;  %v644_v10 = vld [vmem:[%s15491_s5 + $0x100] sm:$0xff]  ;;  %v780_v63 = vld [vmem:[%s15495_s3 + $0x1c8] sm:$0xff]  ;;  %v1170_v0 = vpack.c.bf16 %v778_v61, %v777_v60  ;;  %v818_v60 = vld [vmem:[%s15495_s3 + $0x2f8] sm:$0xff] }
 0x3a6   :  { %9824 = vmatprep.subr.bf16.mxu1 %v1359_v11  ;;  %10883 = vmatpush3.bf16.msra.mxu0 %v10882_v8  ;;  %v1171_v1 = vpack.c.bf16 %v780_v63, %v779_v62  ;;  %v785_v8 = vld [vmem:[%s15495_s3 + $0x1f0] sm:$0xff]  ;;  %v819_v61 = vld [vmem:[%s15495_s3 + $0x300] sm:$0xff]  ;;  %v820_v62 = vld [vmem:[%s15495_s3 + $0x308] sm:$0xff] }
 0x3a7   :  { %10884 = vmatprep.subr.bf16.mxu0 %v15502_v35 }
 0x3a9   :  { %9825 = vmatpush3.bf16.msra.mxu1 %v1359_v11  ;;  %v755_v11 = vld [vmem:[%s15495_s3 + $0x100] sm:$0xff] }
 0x3aa   :  { %11474 = vmatprep.subr.msk.bf16.mxu1 %vm1993_vm5, %v1360_v13  ;;  %v10885_v13 = vpack.c.bf16 %v644_v10, %v643_v9  ;;  %v1159_v15 = vpack.c.bf16 %v756_v12, %v755_v11  ;;  %v786_v9 = vld [vmem:[%s15495_s3 + $0x1f8] sm:$0xff]  ;;  %v787_v10 = vld [vmem:[%s15495_s3 + $0x200] sm:$0xff]  ;;  %v788_v11 = vld [vmem:[%s15495_s3 + $0x208] sm:$0xff] }
 0x3ab   :  { %v1174_v12 = vpack.c.bf16 %v786_v9, %v785_v8  ;;  %v826_v8 = vld [vmem:[%s15495_s3 + $0x338] sm:$0xff]  ;;  %v827_v9 = vld [vmem:[%s15495_s3 + $0x340] sm:$0xff] }
 0x3ac   :  { %10886 = vmatpush3.bf16.msra.mxu0 %v10885_v13  ;;  %v1175_v13 = vpack.c.bf16 %v788_v11, %v787_v10  ;;  %v828_v10 = vld [vmem:[%s15495_s3 + $0x348] sm:$0xff]  ;;  %v4342_v11 = vld [vmem:[%s15491_s5 + $0x170] sm:$0xff] }
 0x3ad   :  { %9827 = vmatpush3.bf16.msra.mxu1 %v1995_v16  ;;  %v757_v16 = vld [vmem:[%s15495_s3 + $0x110] sm:$0xff]  ;;  %10887 = vmatprep.subr.bf16.mxu0 %v15502_v35 }
 0x3b0   :  { %9829 = vmatmul.mubr.msk.bf16.vlgmr.msra.gmra.mrb[28].mxu1 %vm1362_vm4, %v1144_v19  ;;  %v758_v19 = vld [vmem:[%s15495_s3 + $0x118] sm:$0xff] }
 0x3b1   :  { %9832 = vmatprep.mubr.msk.bf16.mxu1 %vm1362_vm4, %v1145_v20  ;;  %v10888_v20 = vpack.c.bf16 %v646_v18, %v645_v17  ;;  %v792_v17 = vld [vmem:[%s15495_s3 + $0x228] sm:$0xff] }
 0x3b3   :  { %10889 = vmatpush3.bf16.msra.mxu0 %v10888_v20  ;;  %v793_v20 = vld [vmem:[%s15495_s3 + $0x230] sm:$0xff] }
 0x3b4   :  { %10890 = vmatprep.subr.bf16.mxu0 %v15502_v35 }
 0x3b8   :  { %9833 = vmatmul.mubr.msk.bf16.gmra.mrb[32].mxu1 %vm1362_vm4, %v1146_v25  ;;  %v10891_v25 = vpack.c.bf16 %v648_v22, %v647_v21  ;;  %v794_v21 = vld [vmem:[%s15495_s3 + $0x238] sm:$0xff]  ;;  %v795_v22 = vld [vmem:[%s15495_s3 + $0x240] sm:$0xff] }
 0x3b9   :  { %9836 = vmatprep.mubr.msk.bf16.mxu1 %vm1362_vm4, %v1147_v26  ;;  %v1160_v26 = vpack.c.bf16 %v758_v19, %v757_v16  ;;  %v791_v16 = vld [vmem:[%s15495_s3 + $0x220] sm:$0xff]  ;;  %v1178_v24 = vpack.c.bf16 %v794_v21, %v793_v20  ;;  %v829_v20 = vld [vmem:[%s15495_s3 + $0x350] sm:$0xff]  ;;  %v830_v21 = vld [vmem:[%s15495_s3 + $0x358] sm:$0xff] }
 0x3ba   :  { %10892 = vmatpush3.bf16.msra.mxu0 %v10891_v25  ;;  %v1177_v19 = vpack.c.bf16 %v792_v17, %v791_v16  ;;  %v1179_v25 = vpack.c.bf16 %v796_v23, %v795_v22  ;;  %v4344_v17 = vld [vmem:[%s15491_s5 + $0x180] sm:$0xff] }
 0x3bb   :  { %10893 = vmatprep.subr.bf16.mxu0 %v15502_v35  ;;  %v831_v23 = vld [vmem:[%s15495_s3 + $0x360] sm:$0xff] }
 0x3c0   :  { %9837 = vmatmul.mubr.msk.bf16.gmra.mrb[36].mxu1 %vm1362_vm4, %v1148_v31  ;;  %v762_v31 = vld [vmem:[%s15495_s3 + $0x138] sm:$0xff] }
 0x3c1   :  { %9840 = vmatprep.mubr.msk.bf16.mxu1 %vm1362_vm4, %v1149_v32  ;;  %v10894_v32 = vpack.c.bf16 %v650_v29, %v649_v28  ;;  %v1162_v37 = vpack.c.bf16 %v762_v31, %v761_v30  ;;  %v799_v28 = vld [vmem:[%s15495_s3 + $0x260] sm:$0xff]  ;;  %v800_v29 = vld [vmem:[%s15495_s3 + $0x268] sm:$0xff] }
 0x3c2   :  { %v1181_v31 = vpack.c.bf16 %v800_v29, %v799_v28  ;;  %v4348_v29 = vld [vmem:[%s15491_s5 + $0x1a0] sm:$0xff] }
 0x3c3   :  { %10895 = vmatpush3.bf16.msra.mxu0 %v10894_v32  ;;  %v801_v32 = vld [vmem:[%s15495_s3 + $0x270] sm:$0xff] }
 0x3c8   :  { %9841 = vmatmul.mubr.msk.bf16.gmra.mrb[40].mxu1 %vm1362_vm4, %v1150_v39  ;;  %v1163_v39 = vpack.c.bf16 %v764_v34, %v763_v33  ;;  %v802_v33 = vld [vmem:[%s15495_s3 + $0x278] sm:$0xff]  ;;  %v803_v34 = vld [vmem:[%s15495_s3 + $0x280] sm:$0xff] }
 0x3c9   :  { %9844 = vmatprep.mubr.msk.bf16.mxu1 %vm1362_vm4, %v1151_v40  ;;  %v4341_v40 = vld [vmem:[%s15491_s5 + $0x168] sm:$0xff] }
 0x3ca   :  { %v12007_v41 = vpack.c.bf16 %v4341_v40, %v4340_v38  ;;  %v1182_v38 = vpack.c.bf16 %v802_v33, %v801_v32  ;;  %v805_v40 = vld [vmem:[%s15495_s3 + $0x290] sm:$0xff]  ;;  %v834_v33 = vld [vmem:[%s15495_s3 + $0x378] sm:$0xff] }
 0x3cb   :  { %v833_v32 = vld [vmem:[%s15495_s3 + $0x370] sm:$0xff] }
 0x3cc   :  { %10248 = vmatprep.subr.bf16.mxu0 %v12007_v41 }
 0x3d0   :  { %9845 = vmatmul.mubr.msk.bf16.gmra.mrb[44].mxu1 %vm1362_vm4, %v1152_v45  ;;  %v768_v45 = vld [vmem:[%s15495_s3 + $0x168] sm:$0xff] }
 0x3d1   :  { %9848 = vmatprep.mubr.msk.bf16.mxu1 %vm1362_vm4, %v1153_v46  ;;  %v1164_v46 = vpack.c.bf16 %v766_v43, %v765_v42  ;;  %v1165_v47 = vpack.c.bf16 %v768_v45, %v767_v44  ;;  %v806_v42 = vld [vmem:[%s15495_s3 + $0x298] sm:$0xff]  ;;  %v807_v43 = vld [vmem:[%s15495_s3 + $0x2a0] sm:$0xff]  ;;  %v808_v44 = vld [vmem:[%s15495_s3 + $0x2a8] sm:$0xff] }
 0x3d2   :  { %v1184_v45 = vpack.c.bf16 %v806_v42, %v805_v40  ;;  %v4350_v40 = vld [vmem:[%s15491_s5 + $0x1b0] sm:$0xff]  ;;  %v4351_v42 = vld [vmem:[%s15491_s5 + $0x1b8] sm:$0xff] }
 0x3d8   :  { %9849 = vmatmul.mubr.msk.bf16.gmra.mrb[48].mxu1 %vm1362_vm4, %v1154_v54  ;;  %v773_v54 = vld [vmem:[%s15495_s3 + $0x190] sm:$0xff] }
 0x3d9   :  { %9852 = vmatprep.mubr.msk.bf16.mxu1 %vm1362_vm4, %v1155_v55  ;;  %v774_v55 = vld [vmem:[%s15495_s3 + $0x198] sm:$0xff] }
 0x3da   :  { %v1168_v58 = vpack.c.bf16 %v774_v55, %v773_v54  ;;  %v814_v54 = vld [vmem:[%s15495_s3 + $0x2d8] sm:$0xff]  ;;  %v815_v55 = vld [vmem:[%s15495_s3 + $0x2e0] sm:$0xff] }
 0x3e0   :  { %9853 = vmatmul.mubr.msk.bf16.gmra.mrb[52].mxu1 %vm1362_vm4, %v1156_v2  ;;  %v781_v2 = vld [vmem:[%s15495_s3 + $0x1d0] sm:$0xff] }
 0x3e1   :  { %9856 = vmatprep.mubr.msk.bf16.mxu1 %vm1362_vm4, %v1157_v3  ;;  %v782_v3 = vld [vmem:[%s15495_s3 + $0x1d8] sm:$0xff] }
 0x3e2   :  { %v1172_v6 = vpack.c.bf16 %v782_v3, %v781_v2  ;;  %v822_v2 = vld [vmem:[%s15495_s3 + $0x318] sm:$0xff]  ;;  %v823_v3 = vld [vmem:[%s15495_s3 + $0x320] sm:$0xff] }
 0x3e8   :  { %9857 = vmatmul.mubr.msk.bf16.gmra.mrb[56].mxu1 %vm1362_vm4, %v1158_v14  ;;  %v789_v14 = vld [vmem:[%s15495_s3 + $0x210] sm:$0xff] }
 0x3e9   :  { %9860 = vmatprep.mubr.msk.bf16.mxu1 %vm1362_vm4, %v1159_v15  ;;  %v790_v15 = vld [vmem:[%s15495_s3 + $0x218] sm:$0xff] }
 0x3ea   :  { %v1176_v18 = vpack.c.bf16 %v790_v15, %v789_v14  ;;  %v1195_v14 = vpack.c.bf16 %v828_v10, %v827_v9 }
 0x3f0   :  { %9861 = vmatmul.mubr.msk.bf16.gmra.mrb[60].mxu1 %vm1362_vm4, %v1160_v26  ;;  %v797_v26 = vld [vmem:[%s15495_s3 + $0x250] sm:$0xff] }
 0x3f1   :  { %9864 = vmatprep.mubr.msk.bf16.mxu1 %vm1362_vm4, %v1161_v27  ;;  %v798_v27 = vld [vmem:[%s15495_s3 + $0x258] sm:$0xff] }
 0x3f2   :  { %v1180_v30 = vpack.c.bf16 %v798_v27, %v797_v26  ;;  %v1196_v26 = vpack.c.bf16 %v830_v21, %v829_v20  ;;  %v842_v20 = vld [vmem:[%s15495_s3 + $0x3b8] sm:$0xff]  ;;  %v843_v21 = vld [vmem:[%s15495_s3 + $0x3c0] sm:$0xff] }
 0x3f8   :  { %9865 = vmatmul.mubr.msk.bf16.gmra.mrb[64].mxu1 %vm1362_vm4, %v1162_v37  ;;  %v804_v37 = vld [vmem:[%s15495_s3 + $0x288] sm:$0xff] }
 0x3f9   :  { %9868 = vmatprep.mubr.msk.bf16.mxu1 %vm1362_vm4, %v1163_v39  ;;  %v1183_v39 = vpack.c.bf16 %v804_v37, %v803_v34  ;;  %v835_v37 = vld [vmem:[%s15495_s3 + $0x380] sm:$0xff] }
 0x400   :  { %9869 = vmatmul.mubr.msk.bf16.gmra.mrb[68].mxu1 %vm1362_vm4, %v1164_v46  ;;  %v1185_v46 = vpack.c.bf16 %v808_v44, %v807_v43  ;;  %v1198_v43 = vpack.c.bf16 %v834_v33, %v833_v32 }
 0x401   :  { %9872 = vmatprep.mubr.msk.bf16.mxu1 %vm1362_vm4, %v1165_v47  ;;  %v809_v47 = vld [vmem:[%s15495_s3 + $0x2b0] sm:$0xff] }
 0x402   :  { %v1186_v51 = vpack.c.bf16 %v810_v48, %v809_v47 }
 0x408   :  { %9873 = vmatmul.mubr.msk.bf16.gmra.mrb[72].mxu1 %vm1362_vm4, %v1166_v52  ;;  %v1187_v52 = vpack.c.bf16 %v812_v50, %v811_v49 }
 0x409   :  { %9876 = vmatprep.mubr.msk.bf16.mxu1 %vm1362_vm4, %v1167_v53  ;;  %v813_v53 = vld [vmem:[%s15495_s3 + $0x2d0] sm:$0xff] }
 0x40a   :  { %v1188_v57 = vpack.c.bf16 %v814_v54, %v813_v53 }
 0x410   :  { %9877 = vmatmul.mubr.msk.bf16.gmra.mrb[76].mxu1 %vm1362_vm4, %v1168_v58  ;;  %v1189_v58 = vpack.c.bf16 %v816_v56, %v815_v55  ;;  %v4352_v55 = vld [vmem:[%s15491_s5 + $0x1c0] sm:$0xff]  ;;  %v4353_v56 = vld [vmem:[%s15491_s5 + $0x1c8] sm:$0xff] }
 0x411   :  { %9880 = vmatprep.mubr.msk.bf16.mxu1 %vm1362_vm4, %v1169_v59  ;;  %v817_v59 = vld [vmem:[%s15495_s3 + $0x2f0] sm:$0xff] }
 0x412   :  { %v1190_v63 = vpack.c.bf16 %v818_v60, %v817_v59  ;;  %v837_v59 = vld [vmem:[%s15495_s3 + $0x390] sm:$0xff]  ;;  %v838_v60 = vld [vmem:[%s15495_s3 + $0x398] sm:$0xff] }
 0x418   :  { %9881 = vmatmul.mubr.msk.bf16.gmra.mrb[80].mxu1 %vm1362_vm4, %v1170_v0  ;;  %v1191_v0 = vpack.c.bf16 %v820_v62, %v819_v61  ;;  %v4362_v62 = vpack.c.bf16 %v4353_v56, %v4352_v55 }
 0x419   :  { %9884 = vmatprep.mubr.msk.bf16.mxu1 %vm1362_vm4, %v1171_v1  ;;  %v821_v1 = vld [vmem:[%s15495_s3 + $0x310] sm:$0xff] }
 0x41a   :  { %v1192_v5 = vpack.c.bf16 %v822_v2, %v821_v1  ;;  %v4354_v2 = vld [vmem:[%s15491_s5 + $0x1d0] sm:$0xff] }
 0x420   :  { %9885 = vmatmul.mubr.msk.bf16.gmra.mrb[84].mxu1 %vm1362_vm4, %v1172_v6  ;;  %v1193_v6 = vpack.c.bf16 %v824_v4, %v823_v3  ;;  %v4355_v3 = vld [vmem:[%s15491_s5 + $0x1d8] sm:$0xff] }
 0x421   :  { %9888 = vmatprep.mubr.msk.bf16.mxu1 %vm1362_vm4, %v1173_v7  ;;  %v825_v7 = vld [vmem:[%s15495_s3 + $0x330] sm:$0xff] }
 0x428   :  { %9889 = vmatmul.mubr.msk.bf16.gmra.mrb[88].mxu1 %vm1362_vm4, %v1174_v12  ;;  %v4343_v12 = vld [vmem:[%s15491_s5 + $0x178] sm:$0xff] }
 0x429   :  { %9892 = vmatprep.mubr.msk.bf16.mxu1 %vm1362_vm4, %v1175_v13  ;;  %v1194_v13 = vpack.c.bf16 %v826_v8, %v825_v7  ;;  %v4357_v15 = vpack.c.bf16 %v4343_v12, %v4342_v11 }
 0x430   :  { %9893 = vmatmul.mubr.msk.bf16.gmra.mrb[92].mxu1 %vm1362_vm4, %v1176_v18  ;;  %v4345_v18 = vld [vmem:[%s15491_s5 + $0x188] sm:$0xff] }
 0x431   :  { %9896 = vmatprep.mubr.msk.bf16.mxu1 %vm1362_vm4, %v1177_v19  ;;  %v4358_v22 = vpack.c.bf16 %v4345_v18, %v4344_v17 }
 0x438   :  { %9897 = vmatmul.mubr.msk.bf16.gmra.mrb[96].mxu1 %vm1362_vm4, %v1178_v24  ;;  %v4346_v24 = vld [vmem:[%s15491_s5 + $0x190] sm:$0xff] }
 0x439   :  { %9900 = vmatprep.mubr.msk.bf16.mxu1 %vm1362_vm4, %v1179_v25  ;;  %v4347_v25 = vld [vmem:[%s15491_s5 + $0x198] sm:$0xff] }
 0x43a   :  { %v4359_v28 = vpack.c.bf16 %v4347_v25, %v4346_v24 }
 0x440   :  { %9901 = vmatmul.mubr.msk.bf16.gmra.mrb[100].mxu1 %vm1362_vm4, %v1180_v30  ;;  %v4349_v30 = vld [vmem:[%s15491_s5 + $0x1a8] sm:$0xff] }
 0x441   :  { %9904 = vmatprep.mubr.msk.bf16.mxu1 %vm1362_vm4, %v1181_v31  ;;  %v12277_v31 = vld [vmem:[%s15494_s7 + $0x3] ss:$0 sm:$0xff]  ;;  %v4360_v34 = vpack.c.bf16 %v4349_v30, %v4348_v29 }
 0x448   :  { %9905 = vmatmul.mubr.msk.bf16.gmra.mrb[104].mxu1 %vm1362_vm4, %v1182_v38  ;;  %v836_v38 = vld [vmem:[%s15495_s3 + $0x388] sm:$0xff] }
 0x449   :  { %9908 = vmatprep.mubr.msk.bf16.mxu1 %vm1362_vm4, %v1183_v39  ;;  %v1199_v48 = vpack.c.bf16 %v836_v38, %v835_v37 }
 0x450   :  { %9909 = vmatmul.mubr.msk.bf16.gmra.mrb[108].mxu1 %vm1362_vm4, %v1184_v45 }
 0x451   :  { %9912 = vmatprep.mubr.msk.bf16.mxu1 %vm1362_vm4, %v1185_v46 }
 0x458   :  { %9913 = vmatmul.mubr.msk.bf16.gmra.mrb[112].mxu1 %vm1362_vm4, %v1186_v51  ;;  %v4361_v51 = vpack.c.bf16 %v4351_v42, %v4350_v40  ;;  %v845_v42 = vld [vmem:[%s15495_s3 + $0x3d0] sm:$0xff] }
 0x459   :  { %9916 = vmatprep.mubr.msk.bf16.mxu1 %vm1362_vm4, %v1187_v52 }
 0x460   :  { %9917 = vmatmul.mubr.msk.bf16.gmra.mrb[116].mxu1 %vm1362_vm4, %v1188_v57 }
 0x461   :  { %9920 = vmatprep.mubr.msk.bf16.mxu1 %vm1362_vm4, %v1189_v58 }
 0x468   :  { %9921 = vmatmul.mubr.msk.bf16.gmra.mrb[120].mxu1 %vm1362_vm4, %v1190_v63  ;;  %v839_v63 = vld [vmem:[%s15495_s3 + $0x3a0] sm:$0xff] }
 0x469   :  { %9924 = vmatprep.mubr.msk.bf16.mxu1 %vm1362_vm4, %v1191_v0  ;;  %v840_v0 = vld [vmem:[%s15495_s3 + $0x3a8] sm:$0xff] }
 0x46a   :  { %v1201_v10 = vpack.c.bf16 %v840_v0, %v839_v63  ;;  %v850_v63 = vld [vmem:[%s15495_s3 + $0x3f8] sm:$0xff]  ;;  %v851_v0 = vld [vmem:[%s15495_s3 + $0x400] sm:$0xff] }
 0x470   :  { %9925 = vmatmul.mubr.msk.bf16.gmra.mrb[124].mxu1 %vm1362_vm4, %v1192_v5  ;;  %v1200_v5 = vpack.c.bf16 %v838_v60, %v837_v59 }
 0x471   :  { %9928 = vmatprep.mubr.msk.bf16.mxu1 %vm1362_vm4, %v1193_v6 }
 0x477   :  { %v631_v16 = vpop.f32.mrb[24].mxu1 }
 0x478   :  { %v9786_v19 = vpop.f32.mrb[25].mxu1  ;;  %9820 = vmatmul.mubr.f32.vlgmr.msra.gmra.mrb[8].mxu0 %v631_v16  ;;  %9929 = vmatmul.mubr.msk.bf16.gmra.mrb[128].mxu1 %vm1362_vm4, %v1194_v13  ;;  %v4363_v13 = vpack.c.bf16 %v4355_v3, %v4354_v2 }
 0x479   :  { %10249 = vmatpush3.bf16.msra.mxu0 %v12007_v41  ;;  %9932 = vmatprep.mubr.msk.bf16.mxu1 %vm1362_vm4, %v1195_v14  ;;  %v832_v41 = vld [vmem:[%s15495_s3 + $0x368] sm:$0xff]  ;;  %v841_v19 = vld [vmem:[%s15495_s3 + $0x3b0] sm:$0xff] }
 0x47a   :  { %10250 = vmatprep.subr.bf16.mxu0 %v4357_v15  ;;  %v1197_v27 = vpack.c.bf16 %v832_v41, %v831_v23  ;;  %v1202_v25 = vpack.c.bf16 %v842_v20, %v841_v19  ;;  %v854_v19 = vld [vmem:[%s15495_s3 + $0x418] sm:$0xff]  ;;  %v855_v20 = vld [vmem:[%s15495_s3 + $0x420] sm:$0xff] }
 0x47d   :  { %10251 = vmatpush3.bf16.msra.mxu0 %v4357_v15 }
 0x47e   :  { %10252 = vmatprep.subr.bf16.mxu0 %v4358_v22 }
 0x480   :  { %9933 = vmatmul.mubr.msk.bf16.gmra.mrb[132].mxu1 %vm1362_vm4, %v1196_v26 }
 0x481   :  { %10253 = vmatpush3.bf16.msra.mxu0 %v4358_v22  ;;  %9936 = vmatprep.mubr.msk.bf16.mxu1 %vm1362_vm4, %v1197_v27  ;;  %v844_v22 = vld [vmem:[%s15495_s3 + $0x3c8] sm:$0xff] }
 0x482   :  { %10254 = vmatprep.subr.bf16.mxu0 %v4359_v28  ;;  %v1203_v30 = vpack.c.bf16 %v844_v22, %v843_v21  ;;  %v856_v21 = vld [vmem:[%s15495_s3 + $0x428] sm:$0xff] }
 0x483   :  { %v9830_v39 = vpop.f32.mrb[28].mxu1 }
 0x484   :  { %v2040_v44 = vadd.f32 %v9830_v39, %v12277_v31  ;;  %v2031_v45 = vpop.f32.mrb[29].mxu1 }
 0x485   :  { %10255 = vmatpush3.bf16.msra.mxu0 %v4359_v28  ;;  %v2032_v46 = vadd.f32 %v2031_v45, %v12277_v31  ;;  %v9831_v47 = vpop.f32.mrb[30].mxu1  ;;  %v848_v45 = vld [vmem:[%s15495_s3 + $0x3e8] sm:$0xff] }
 0x486   :  { %10256 = vmatprep.subr.bf16.mxu0 %v4360_v34  ;;  %v3712_v49 = vmax.f32 %v2040_v44, 0.0  ;;  %v2043_v50 = vadd.f32 %v9831_v47, %v12277_v31  ;;  %v2034_v52 = vpop.f32.mrb[31].mxu1  ;;  %v847_v44 = vld [vmem:[%s15495_s3 + $0x3e0] sm:$0xff] }
 0x487   :  { %v3710_v53 = vmax.f32 %v2032_v46, 0.0  ;;  %v2035_v54 = vadd.f32 %v2034_v52, %v12277_v31 }
 0x488   :  { %9937 = vmatmul.mubr.msk.bf16.gmra.mrb[136].mxu1 %vm1362_vm4, %v1198_v43  ;;  %v3713_v57 = vmax.f32 %v2043_v50, 0.0  ;;  %v846_v43 = vld [vmem:[%s15495_s3 + $0x3d8] sm:$0xff] }
 0x489   :  { %10257 = vmatpush3.bf16.msra.mxu0 %v4360_v34  ;;  %v3711_v58 = vmax.f32 %v2035_v54, 0.0  ;;  %9940 = vmatprep.mubr.msk.bf16.mxu1 %vm1362_vm4, %v1199_v48  ;;  %v1205_v54 = vpack.c.bf16 %v848_v45, %v847_v44  ;;  %v860_v44 = vld [vmem:[%s15495_s3 + $0x448] sm:$0xff] }
 0x48a   :  { %v4131_v61 = vpack.c.bf16 %v3713_v57, %v3712_v49  ;;  %10258 = vmatprep.subr.bf16.mxu0 %v4361_v51  ;;  %v1204_v49 = vpack.c.bf16 %v846_v43, %v845_v42  ;;  %v858_v42 = vld [vmem:[%s15495_s3 + $0x438] sm:$0xff]  ;;  %v859_v43 = vld [vmem:[%s15495_s3 + $0x440] sm:$0xff] }
 0x48b   :  { %v9834_v1 = vpop.f32.mrb[32].mxu1  ;;  %v4130_v4 = vpack.c.bf16 %v3711_v58, %v3710_v53 }
 0x48c   :  { %v2056_v6 = vadd.f32 %v9834_v1, %v12277_v31  ;;  %v2047_v7 = vpop.f32.mrb[33].mxu1  ;;  %v852_v1 = vld [vmem:[%s15495_s3 + $0x408] sm:$0xff] }
 0x48d   :  { %10259 = vmatpush3.bf16.msra.mxu0 %v4361_v51  ;;  %v2048_v8 = vadd.f32 %v2047_v7, %v12277_v31  ;;  %v9835_v9 = vpop.f32.mrb[34].mxu1  ;;  %10264 = vmatprep.mubr.bf16.mxu0 %v4130_v4 }
 0x48e   :  { %10260 = vmatprep.subr.bf16.mxu0 %v4362_v62  ;;  %v3716_v11 = vmax.f32 %v2056_v6, 0.0  ;;  %v2059_v12 = vadd.f32 %v9835_v9, %v12277_v31  ;;  %v2050_v14 = vpop.f32.mrb[35].mxu1 }
 0x48f   :  { %v3714_v15 = vmax.f32 %v2048_v8, 0.0  ;;  %v2051_v16 = vadd.f32 %v2050_v14, %v12277_v31 }
 0x490   :  { %9941 = vmatmul.mubr.msk.bf16.gmra.mrb[140].mxu1 %vm1362_vm4, %v1200_v5  ;;  %v3717_v17 = vmax.f32 %v2059_v12, 0.0 }
 0x491   :  { %10261 = vmatpush3.bf16.msra.mxu0 %v4362_v62  ;;  %v3715_v18 = vmax.f32 %v2051_v16, 0.0  ;;  %9944 = vmatprep.mubr.msk.bf16.mxu1 %vm1362_vm4, %v1201_v10  ;;  %v849_v62 = vld [vmem:[%s15495_s3 + $0x3f0] sm:$0xff]  ;;  %v1207_v10 = vpack.c.bf16 %v852_v1, %v851_v0  ;;  %v864_v0 = vld [vmem:[%s15495_s3 + $0x468] sm:$0xff] }
 0x492   :  { %10262 = vmatprep.subr.bf16.mxu0 %v4363_v13  ;;  %v4133_v23 = vpack.c.bf16 %v3717_v17, %v3716_v11  ;;  %v1206_v5 = vpack.c.bf16 %v850_v63, %v849_v62  ;;  %v862_v62 = vld [vmem:[%s15495_s3 + $0x458] sm:$0xff]  ;;  %v863_v63 = vld [vmem:[%s15495_s3 + $0x460] sm:$0xff] }
 0x493   :  { %v9838_v41 = vpop.f32.mrb[36].mxu1  ;;  %v4132_v24 = vpack.c.bf16 %v3715_v18, %v3714_v15  ;;  %v853_v18 = vld [vmem:[%s15495_s3 + $0x410] sm:$0xff] }
 0x494   :  { %v2072_v26 = vadd.f32 %v9838_v41, %v12277_v31  ;;  %v2063_v27 = vpop.f32.mrb[37].mxu1 }
 0x495   :  { %10263 = vmatpush3.bf16.msra.mxu0 %v4363_v13  ;;  %v2064_v28 = vadd.f32 %v2063_v27, %v12277_v31  ;;  %v9839_v29 = vpop.f32.mrb[38].mxu1 }
 0x496   :  { %v3720_v32 = vmax.f32 %v2072_v26, 0.0  ;;  %v2075_v33 = vadd.f32 %v9839_v29, %v12277_v31  ;;  %v2066_v34 = vpop.f32.mrb[39].mxu1  ;;  %v1209_v29 = vpack.c.bf16 %v856_v21, %v855_v20  ;;  %v868_v20 = vld [vmem:[%s15495_s3 + $0x488] sm:$0xff] }
 0x497   :  { %v3718_v37 = vmax.f32 %v2064_v28, 0.0  ;;  %v2067_v38 = vadd.f32 %v2066_v34, %v12277_v31 }
 0x498   :  { %10265 = vmatmul.mubr.bf16.vlgmr.msra.gmra.mrb[12].mxu0 %v4131_v61  ;;  %9945 = vmatmul.mubr.msk.bf16.gmra.mrb[144].mxu1 %vm1362_vm4, %v1202_v25  ;;  %v3721_v39 = vmax.f32 %v2075_v33, 0.0 }
 0x499   :  { %10268 = vmatprep.mubr.bf16.mxu0 %v4132_v24  ;;  %v3719_v40 = vmax.f32 %v2067_v38, 0.0  ;;  %9948 = vmatprep.mubr.msk.bf16.mxu1 %vm1362_vm4, %v1203_v30  ;;  %v1208_v24 = vpack.c.bf16 %v854_v19, %v853_v18  ;;  %v866_v18 = vld [vmem:[%s15495_s3 + $0x478] sm:$0xff]  ;;  %v867_v19 = vld [vmem:[%s15495_s3 + $0x480] sm:$0xff] }
 0x49a   :  { %v4135_v46 = vpack.c.bf16 %v3721_v39, %v3720_v32 }
 0x49b   :  { %v9842_v47 = vpop.f32.mrb[40].mxu1  ;;  %v4134_v48 = vpack.c.bf16 %v3719_v40, %v3718_v37  ;;  %v857_v40 = vld [vmem:[%s15495_s3 + $0x430] sm:$0xff] }
 0x49c   :  { %v2088_v50 = vadd.f32 %v9842_v47, %v12277_v31  ;;  %v2079_v51 = vpop.f32.mrb[41].mxu1 }
 0x49d   :  { %v2080_v52 = vadd.f32 %v2079_v51, %v12277_v31  ;;  %v9843_v53 = vpop.f32.mrb[42].mxu1 }
 0x49e   :  { %v3724_v55 = vmax.f32 %v2088_v50, 0.0  ;;  %v2091_v56 = vadd.f32 %v9843_v53, %v12277_v31  ;;  %v2082_v57 = vpop.f32.mrb[43].mxu1  ;;  %v1211_v53 = vpack.c.bf16 %v860_v44, %v859_v43  ;;  %v872_v43 = vld [vmem:[%s15495_s3 + $0x4a8] sm:$0xff] }
 0x49f   :  { %v3722_v58 = vmax.f32 %v2080_v52, 0.0  ;;  %v2083_v59 = vadd.f32 %v2082_v57, %v12277_v31 }
 0x4a0   :  { %10269 = vmatmul.mubr.bf16.gmra.mrb[16].mxu0 %v4133_v23  ;;  %9949 = vmatmul.mubr.msk.bf16.gmra.mrb[148].mxu1 %vm1362_vm4, %v1204_v49  ;;  %v3725_v60 = vmax.f32 %v2091_v56, 0.0 }
 0x4a1   :  { %10272 = vmatprep.mubr.bf16.mxu0 %v4134_v48  ;;  %v3723_v61 = vmax.f32 %v2083_v59, 0.0  ;;  %9952 = vmatprep.mubr.msk.bf16.mxu1 %vm1362_vm4, %v1205_v54  ;;  %v1210_v48 = vpack.c.bf16 %v858_v42, %v857_v40  ;;  %v870_v40 = vld [vmem:[%s15495_s3 + $0x498] sm:$0xff]  ;;  %v871_v42 = vld [vmem:[%s15495_s3 + $0x4a0] sm:$0xff] }
 0x4a2   :  { %v4137_v2 = vpack.c.bf16 %v3725_v60, %v3724_v55 }
 0x4a3   :  { %v9846_v3 = vpop.f32.mrb[44].mxu1  ;;  %v4136_v4 = vpack.c.bf16 %v3723_v61, %v3722_v58  ;;  %v861_v61 = vld [vmem:[%s15495_s3 + $0x450] sm:$0xff] }
 0x4a4   :  { %v2104_v6 = vadd.f32 %v9846_v3, %v12277_v31  ;;  %v2095_v7 = vpop.f32.mrb[45].mxu1 }
 0x4a5   :  { %v2096_v8 = vadd.f32 %v2095_v7, %v12277_v31  ;;  %v9847_v9 = vpop.f32.mrb[46].mxu1 }
 0x4a6   :  { %v3728_v11 = vmax.f32 %v2104_v6, 0.0  ;;  %v2107_v12 = vadd.f32 %v9847_v9, %v12277_v31  ;;  %v2098_v13 = vpop.f32.mrb[47].mxu1  ;;  %v1213_v9 = vpack.c.bf16 %v864_v0, %v863_v63  ;;  %v876_v63 = vld [vmem:[%s15495_s3 + $0x4c8] sm:$0xff] }
 0x4a7   :  { %v3726_v14 = vmax.f32 %v2096_v8, 0.0  ;;  %v2099_v15 = vadd.f32 %v2098_v13, %v12277_v31 }
 0x4a8   :  { %10273 = vmatmul.mubr.bf16.gmra.mrb[20].mxu0 %v4135_v46  ;;  %9953 = vmatmul.mubr.msk.bf16.gmra.mrb[152].mxu1 %vm1362_vm4, %v1206_v5  ;;  %v3729_v16 = vmax.f32 %v2107_v12, 0.0 }
 0x4a9   :  { %10276 = vmatprep.mubr.bf16.mxu0 %v4136_v4  ;;  %v3727_v17 = vmax.f32 %v2099_v15, 0.0  ;;  %9956 = vmatprep.mubr.msk.bf16.mxu1 %vm1362_vm4, %v1207_v10  ;;  %v1212_v4 = vpack.c.bf16 %v862_v62, %v861_v61  ;;  %v874_v61 = vld [vmem:[%s15495_s3 + $0x4b8] sm:$0xff]  ;;  %v875_v62 = vld [vmem:[%s15495_s3 + $0x4c0] sm:$0xff] }
 0x4aa   :  { %v4139_v22 = vpack.c.bf16 %v3729_v16, %v3728_v11 }
 0x4ab   :  { %v9850_v23 = vpop.f32.mrb[48].mxu1  ;;  %v4138_v41 = vpack.c.bf16 %v3727_v17, %v3726_v14  ;;  %v865_v17 = vld [vmem:[%s15495_s3 + $0x470] sm:$0xff] }
 0x4ac   :  { %v2120_v25 = vadd.f32 %v9850_v23, %v12277_v31  ;;  %v2111_v26 = vpop.f32.mrb[49].mxu1 }
 0x4ad   :  { %v2112_v27 = vadd.f32 %v2111_v26, %v12277_v31  ;;  %v9851_v28 = vpop.f32.mrb[50].mxu1 }
 0x4ae   :  { %v3732_v30 = vmax.f32 %v2120_v25, 0.0  ;;  %v2123_v32 = vadd.f32 %v9851_v28, %v12277_v31  ;;  %v2114_v33 = vpop.f32.mrb[51].mxu1  ;;  %v1215_v28 = vpack.c.bf16 %v868_v20, %v867_v19  ;;  %v880_v19 = vld [vmem:[%s15495_s3 + $0x4e8] sm:$0xff] }
 0x4af   :  { %v3730_v34 = vmax.f32 %v2112_v27, 0.0  ;;  %v2115_v37 = vadd.f32 %v2114_v33, %v12277_v31 }
 0x4b0   :  { %10277 = vmatmul.mubr.bf16.gmra.mrb[24].mxu0 %v4137_v2  ;;  %9957 = vmatmul.mubr.msk.bf16.gmra.mrb[156].mxu1 %vm1362_vm4, %v1208_v24  ;;  %v3733_v38 = vmax.f32 %v2123_v32, 0.0 }
 0x4b1   :  { %10280 = vmatprep.mubr.bf16.mxu0 %v4138_v41  ;;  %v3731_v39 = vmax.f32 %v2115_v37, 0.0  ;;  %9960 = vmatprep.mubr.msk.bf16.mxu1 %vm1362_vm4, %v1209_v29  ;;  %v1214_v41 = vpack.c.bf16 %v866_v18, %v865_v17  ;;  %v878_v17 = vld [vmem:[%s15495_s3 + $0x4d8] sm:$0xff]  ;;  %v879_v18 = vld [vmem:[%s15495_s3 + $0x4e0] sm:$0xff] }
 0x4b2   :  { %v4141_v45 = vpack.c.bf16 %v3733_v38, %v3732_v30 }
 0x4b3   :  { %v9854_v46 = vpop.f32.mrb[52].mxu1  ;;  %v4140_v47 = vpack.c.bf16 %v3731_v39, %v3730_v34  ;;  %v869_v39 = vld [vmem:[%s15495_s3 + $0x490] sm:$0xff] }
 0x4b4   :  { %v2136_v49 = vadd.f32 %v9854_v46, %v12277_v31  ;;  %v2127_v50 = vpop.f32.mrb[53].mxu1 }
 0x4b5   :  { %v2128_v51 = vadd.f32 %v2127_v50, %v12277_v31  ;;  %v9855_v52 = vpop.f32.mrb[54].mxu1 }
 0x4b6   :  { %v3736_v54 = vmax.f32 %v2136_v49, 0.0  ;;  %v2139_v55 = vadd.f32 %v9855_v52, %v12277_v31  ;;  %v2130_v56 = vpop.f32.mrb[55].mxu1  ;;  %v1217_v52 = vpack.c.bf16 %v872_v43, %v871_v42  ;;  %v884_v42 = vld [vmem:[%s15495_s3 + $0x508] sm:$0xff] }
 0x4b7   :  { %v3734_v57 = vmax.f32 %v2128_v51, 0.0  ;;  %v2131_v58 = vadd.f32 %v2130_v56, %v12277_v31 }
 0x4b8   :  { %10281 = vmatmul.mubr.bf16.gmra.mrb[28].mxu0 %v4139_v22  ;;  %9961 = vmatmul.mubr.msk.bf16.gmra.mrb[160].mxu1 %vm1362_vm4, %v1210_v48  ;;  %v3737_v59 = vmax.f32 %v2139_v55, 0.0 }
 0x4b9   :  { %10284 = vmatprep.mubr.bf16.mxu0 %v4140_v47  ;;  %v3735_v60 = vmax.f32 %v2131_v58, 0.0  ;;  %9964 = vmatprep.mubr.msk.bf16.mxu1 %vm1362_vm4, %v1211_v53  ;;  %v1216_v47 = vpack.c.bf16 %v870_v40, %v869_v39  ;;  %v882_v39 = vld [vmem:[%s15495_s3 + $0x4f8] sm:$0xff]  ;;  %v883_v40 = vld [vmem:[%s15495_s3 + $0x500] sm:$0xff] }
 0x4ba   :  { %v4143_v1 = vpack.c.bf16 %v3737_v59, %v3736_v54 }
 0x4bb   :  { %v9858_v2 = vpop.f32.mrb[56].mxu1  ;;  %v4142_v3 = vpack.c.bf16 %v3735_v60, %v3734_v57  ;;  %v873_v60 = vld [vmem:[%s15495_s3 + $0x4b0] sm:$0xff] }
 0x4bc   :  { %v2152_v5 = vadd.f32 %v9858_v2, %v12277_v31  ;;  %v2143_v6 = vpop.f32.mrb[57].mxu1 }
 0x4bd   :  { %v2144_v7 = vadd.f32 %v2143_v6, %v12277_v31  ;;  %v9859_v8 = vpop.f32.mrb[58].mxu1 }
 0x4be   :  { %v3740_v10 = vmax.f32 %v2152_v5, 0.0  ;;  %v2155_v11 = vadd.f32 %v9859_v8, %v12277_v31  ;;  %v2146_v12 = vpop.f32.mrb[59].mxu1  ;;  %v1219_v8 = vpack.c.bf16 %v876_v63, %v875_v62  ;;  %v888_v62 = vld [vmem:[%s15495_s3 + $0x528] sm:$0xff] }
 0x4bf   :  { %v3738_v13 = vmax.f32 %v2144_v7, 0.0  ;;  %v2147_v14 = vadd.f32 %v2146_v12, %v12277_v31 }
 0x4c0   :  { %10285 = vmatmul.mubr.bf16.gmra.mrb[32].mxu0 %v4141_v45  ;;  %9965 = vmatmul.mubr.msk.bf16.gmra.mrb[164].mxu1 %vm1362_vm4, %v1212_v4  ;;  %v3741_v15 = vmax.f32 %v2155_v11, 0.0 }
 0x4c1   :  { %10288 = vmatprep.mubr.bf16.mxu0 %v4142_v3  ;;  %v3739_v16 = vmax.f32 %v2147_v14, 0.0  ;;  %9968 = vmatprep.mubr.msk.bf16.mxu1 %vm1362_vm4, %v1213_v9  ;;  %v1218_v3 = vpack.c.bf16 %v874_v61, %v873_v60  ;;  %v886_v60 = vld [vmem:[%s15495_s3 + $0x518] sm:$0xff]  ;;  %v887_v61 = vld [vmem:[%s15495_s3 + $0x520] sm:$0xff] }
 0x4c2   :  { %v4145_v21 = vpack.c.bf16 %v3741_v15, %v3740_v10 }
 0x4c3   :  { %v9862_v22 = vpop.f32.mrb[60].mxu1  ;;  %v4144_v23 = vpack.c.bf16 %v3739_v16, %v3738_v13  ;;  %v877_v16 = vld [vmem:[%s15495_s3 + $0x4d0] sm:$0xff] }
 0x4c4   :  { %v2168_v24 = vadd.f32 %v9862_v22, %v12277_v31  ;;  %v2159_v25 = vpop.f32.mrb[61].mxu1 }
 0x4c5   :  { %v2160_v26 = vadd.f32 %v2159_v25, %v12277_v31  ;;  %v9863_v27 = vpop.f32.mrb[62].mxu1 }
 0x4c6   :  { %v3744_v29 = vmax.f32 %v2168_v24, 0.0  ;;  %v2171_v30 = vadd.f32 %v9863_v27, %v12277_v31  ;;  %v2162_v32 = vpop.f32.mrb[63].mxu1  ;;  %v1221_v27 = vpack.c.bf16 %v880_v19, %v879_v18  ;;  %v892_v18 = vld [vmem:[%s15495_s3 + $0x548] sm:$0xff] }
 0x4c7   :  { %v3742_v33 = vmax.f32 %v2160_v26, 0.0  ;;  %v2163_v34 = vadd.f32 %v2162_v32, %v12277_v31 }
 0x4c8   :  { %10289 = vmatmul.mubr.bf16.gmra.mrb[36].mxu0 %v4143_v1  ;;  %9969 = vmatmul.mubr.msk.bf16.gmra.mrb[168].mxu1 %vm1362_vm4, %v1214_v41  ;;  %v3745_v37 = vmax.f32 %v2171_v30, 0.0 }
 0x4c9   :  { %10292 = vmatprep.mubr.bf16.mxu0 %v4144_v23  ;;  %v3743_v38 = vmax.f32 %v2163_v34, 0.0  ;;  %9972 = vmatprep.mubr.msk.bf16.mxu1 %vm1362_vm4, %v1215_v28  ;;  %v1220_v23 = vpack.c.bf16 %v878_v17, %v877_v16  ;;  %v890_v16 = vld [vmem:[%s15495_s3 + $0x538] sm:$0xff]  ;;  %v891_v17 = vld [vmem:[%s15495_s3 + $0x540] sm:$0xff] }
 0x4ca   :  { %v4147_v44 = vpack.c.bf16 %v3745_v37, %v3744_v29 }
 0x4cb   :  { %v9866_v45 = vpop.f32.mrb[64].mxu1  ;;  %v4146_v46 = vpack.c.bf16 %v3743_v38, %v3742_v33  ;;  %v881_v38 = vld [vmem:[%s15495_s3 + $0x4f0] sm:$0xff] }
 0x4cc   :  { %v2184_v48 = vadd.f32 %v9866_v45, %v12277_v31  ;;  %v2175_v49 = vpop.f32.mrb[65].mxu1 }
 0x4cd   :  { %v2176_v50 = vadd.f32 %v2175_v49, %v12277_v31  ;;  %v9867_v51 = vpop.f32.mrb[66].mxu1 }
 0x4ce   :  { %v3748_v53 = vmax.f32 %v2184_v48, 0.0  ;;  %v2187_v54 = vadd.f32 %v9867_v51, %v12277_v31  ;;  %v2178_v55 = vpop.f32.mrb[67].mxu1  ;;  %v1223_v51 = vpack.c.bf16 %v884_v42, %v883_v40  ;;  %v896_v40 = vld [vmem:[%s15495_s3 + $0x568] sm:$0xff] }
 0x4cf   :  { %v3746_v56 = vmax.f32 %v2176_v50, 0.0  ;;  %v2179_v57 = vadd.f32 %v2178_v55, %v12277_v31 }
 0x4d0   :  { %10293 = vmatmul.mubr.bf16.gmra.mrb[40].mxu0 %v4145_v21  ;;  %9973 = vmatmul.mubr.msk.bf16.gmra.mrb[172].mxu1 %vm1362_vm4, %v1216_v47  ;;  %v3749_v58 = vmax.f32 %v2187_v54, 0.0 }
 0x4d1   :  { %10296 = vmatprep.mubr.bf16.mxu0 %v4146_v46  ;;  %v3747_v59 = vmax.f32 %v2179_v57, 0.0  ;;  %9976 = vmatprep.mubr.msk.bf16.mxu1 %vm1362_vm4, %v1217_v52  ;;  %v1222_v46 = vpack.c.bf16 %v882_v39, %v881_v38  ;;  %v894_v38 = vld [vmem:[%s15495_s3 + $0x558] sm:$0xff]  ;;  %v895_v39 = vld [vmem:[%s15495_s3 + $0x560] sm:$0xff] }
 0x4d2   :  { %v4149_v0 = vpack.c.bf16 %v3749_v58, %v3748_v53 }
 0x4d3   :  { %v9870_v1 = vpop.f32.mrb[68].mxu1  ;;  %v4148_v2 = vpack.c.bf16 %v3747_v59, %v3746_v56  ;;  %v885_v59 = vld [vmem:[%s15495_s3 + $0x510] sm:$0xff] }
 0x4d4   :  { %v2200_v4 = vadd.f32 %v9870_v1, %v12277_v31  ;;  %v2191_v5 = vpop.f32.mrb[69].mxu1 }
 0x4d5   :  { %v2192_v6 = vadd.f32 %v2191_v5, %v12277_v31  ;;  %v9871_v7 = vpop.f32.mrb[70].mxu1 }
 0x4d6   :  { %v3752_v9 = vmax.f32 %v2200_v4, 0.0  ;;  %v2203_v10 = vadd.f32 %v9871_v7, %v12277_v31  ;;  %v2194_v11 = vpop.f32.mrb[71].mxu1  ;;  %v1225_v7 = vpack.c.bf16 %v888_v62, %v887_v61  ;;  %v900_v61 = vld [vmem:[%s15495_s3 + $0x588] sm:$0xff] }
 0x4d7   :  { %v3750_v12 = vmax.f32 %v2192_v6, 0.0  ;;  %v2195_v13 = vadd.f32 %v2194_v11, %v12277_v31 }
 0x4d8   :  { %10297 = vmatmul.mubr.bf16.gmra.mrb[44].mxu0 %v4147_v44  ;;  %9977 = vmatmul.mubr.msk.bf16.gmra.mrb[176].mxu1 %vm1362_vm4, %v1218_v3  ;;  %v3753_v14 = vmax.f32 %v2203_v10, 0.0 }
 0x4d9   :  { %10300 = vmatprep.mubr.bf16.mxu0 %v4148_v2  ;;  %v3751_v15 = vmax.f32 %v2195_v13, 0.0  ;;  %9980 = vmatprep.mubr.msk.bf16.mxu1 %vm1362_vm4, %v1219_v8  ;;  %v1224_v2 = vpack.c.bf16 %v886_v60, %v885_v59  ;;  %v898_v59 = vld [vmem:[%s15495_s3 + $0x578] sm:$0xff]  ;;  %v899_v60 = vld [vmem:[%s15495_s3 + $0x580] sm:$0xff] }
 0x4da   :  { %v4151_v20 = vpack.c.bf16 %v3753_v14, %v3752_v9 }
 0x4db   :  { %v9874_v21 = vpop.f32.mrb[72].mxu1  ;;  %v4150_v22 = vpack.c.bf16 %v3751_v15, %v3750_v12  ;;  %v889_v15 = vld [vmem:[%s15495_s3 + $0x530] sm:$0xff] }
 0x4dc   :  { %v2216_v41 = vadd.f32 %v9874_v21, %v12277_v31  ;;  %v2207_v24 = vpop.f32.mrb[73].mxu1 }
 0x4dd   :  { %v2208_v25 = vadd.f32 %v2207_v24, %v12277_v31  ;;  %v9875_v26 = vpop.f32.mrb[74].mxu1 }
 0x4de   :  { %v3756_v28 = vmax.f32 %v2216_v41, 0.0  ;;  %v2219_v29 = vadd.f32 %v9875_v26, %v12277_v31  ;;  %v2210_v30 = vpop.f32.mrb[75].mxu1  ;;  %v1227_v26 = vpack.c.bf16 %v892_v18, %v891_v17  ;;  %v904_v17 = vld [vmem:[%s15495_s3 + $0x5a8] sm:$0xff] }
 0x4df   :  { %v3754_v32 = vmax.f32 %v2208_v25, 0.0  ;;  %v2211_v33 = vadd.f32 %v2210_v30, %v12277_v31 }
 0x4e0   :  { %10301 = vmatmul.mubr.bf16.gmra.mrb[48].mxu0 %v4149_v0  ;;  %9981 = vmatmul.mubr.msk.bf16.gmra.mrb[180].mxu1 %vm1362_vm4, %v1220_v23  ;;  %v3757_v34 = vmax.f32 %v2219_v29, 0.0 }
 0x4e1   :  { %10304 = vmatprep.mubr.bf16.mxu0 %v4150_v22  ;;  %v3755_v37 = vmax.f32 %v2211_v33, 0.0  ;;  %9984 = vmatprep.mubr.msk.bf16.mxu1 %vm1362_vm4, %v1221_v27  ;;  %v1226_v22 = vpack.c.bf16 %v890_v16, %v889_v15  ;;  %v902_v15 = vld [vmem:[%s15495_s3 + $0x598] sm:$0xff]  ;;  %v903_v16 = vld [vmem:[%s15495_s3 + $0x5a0] sm:$0xff] }
 0x4e2   :  { %v4153_v43 = vpack.c.bf16 %v3757_v34, %v3756_v28 }
 0x4e3   :  { %v9878_v44 = vpop.f32.mrb[76].mxu1  ;;  %v4152_v45 = vpack.c.bf16 %v3755_v37, %v3754_v32  ;;  %v893_v37 = vld [vmem:[%s15495_s3 + $0x550] sm:$0xff] }
 0x4e4   :  { %v2232_v47 = vadd.f32 %v9878_v44, %v12277_v31  ;;  %v2223_v48 = vpop.f32.mrb[77].mxu1 }
 0x4e5   :  { %v2224_v49 = vadd.f32 %v2223_v48, %v12277_v31  ;;  %v9879_v50 = vpop.f32.mrb[78].mxu1 }
 0x4e6   :  { %v3760_v52 = vmax.f32 %v2232_v47, 0.0  ;;  %v2235_v53 = vadd.f32 %v9879_v50, %v12277_v31  ;;  %v2226_v54 = vpop.f32.mrb[79].mxu1  ;;  %v1229_v50 = vpack.c.bf16 %v896_v40, %v895_v39  ;;  %v908_v39 = vld [vmem:[%s15495_s3 + $0x5c8] sm:$0xff] }
 0x4e7   :  { %v3758_v55 = vmax.f32 %v2224_v49, 0.0  ;;  %v2227_v56 = vadd.f32 %v2226_v54, %v12277_v31 }
 0x4e8   :  { %10305 = vmatmul.mubr.bf16.gmra.mrb[52].mxu0 %v4151_v20  ;;  %9985 = vmatmul.mubr.msk.bf16.gmra.mrb[184].mxu1 %vm1362_vm4, %v1222_v46  ;;  %v3761_v57 = vmax.f32 %v2235_v53, 0.0 }
 0x4e9   :  { %10308 = vmatprep.mubr.bf16.mxu0 %v4152_v45  ;;  %v3759_v58 = vmax.f32 %v2227_v56, 0.0  ;;  %9988 = vmatprep.mubr.msk.bf16.mxu1 %vm1362_vm4, %v1223_v51  ;;  %v1228_v45 = vpack.c.bf16 %v894_v38, %v893_v37  ;;  %v906_v37 = vld [vmem:[%s15495_s3 + $0x5b8] sm:$0xff]  ;;  %v907_v38 = vld [vmem:[%s15495_s3 + $0x5c0] sm:$0xff] }
 0x4ea   :  { %v4155_v63 = vpack.c.bf16 %v3761_v57, %v3760_v52 }
 0x4eb   :  { %v9882_v0 = vpop.f32.mrb[80].mxu1  ;;  %v4154_v1 = vpack.c.bf16 %v3759_v58, %v3758_v55  ;;  %v897_v58 = vld [vmem:[%s15495_s3 + $0x570] sm:$0xff] }
 0x4ec   :  { %v2248_v3 = vadd.f32 %v9882_v0, %v12277_v31  ;;  %v2239_v4 = vpop.f32.mrb[81].mxu1 }
 0x4ed   :  { %v2240_v5 = vadd.f32 %v2239_v4, %v12277_v31  ;;  %v9883_v6 = vpop.f32.mrb[82].mxu1 }
 0x4ee   :  { %v3764_v8 = vmax.f32 %v2248_v3, 0.0  ;;  %v2251_v9 = vadd.f32 %v9883_v6, %v12277_v31  ;;  %v2242_v10 = vpop.f32.mrb[83].mxu1  ;;  %v1231_v6 = vpack.c.bf16 %v900_v61, %v899_v60  ;;  %v912_v60 = vld [vmem:[%s15495_s3 + $0x5e8] sm:$0xff] }
 0x4ef   :  { %v3762_v11 = vmax.f32 %v2240_v5, 0.0  ;;  %v2243_v12 = vadd.f32 %v2242_v10, %v12277_v31 }
 0x4f0   :  { %10309 = vmatmul.mubr.bf16.gmra.mrb[56].mxu0 %v4153_v43  ;;  %9989 = vmatmul.mubr.msk.bf16.gmra.mrb[188].mxu1 %vm1362_vm4, %v1224_v2  ;;  %v3765_v13 = vmax.f32 %v2251_v9, 0.0 }
 0x4f1   :  { %10312 = vmatprep.mubr.bf16.mxu0 %v4154_v1  ;;  %v3763_v14 = vmax.f32 %v2243_v12, 0.0  ;;  %9992 = vmatprep.mubr.msk.bf16.mxu1 %vm1362_vm4, %v1225_v7  ;;  %v1230_v1 = vpack.c.bf16 %v898_v59, %v897_v58  ;;  %v910_v58 = vld [vmem:[%s15495_s3 + $0x5d8] sm:$0xff]  ;;  %v911_v59 = vld [vmem:[%s15495_s3 + $0x5e0] sm:$0xff] }
 0x4f2   :  { %v4157_v19 = vpack.c.bf16 %v3765_v13, %v3764_v8 }
 0x4f3   :  { %v9886_v20 = vpop.f32.mrb[84].mxu1  ;;  %v4156_v21 = vpack.c.bf16 %v3763_v14, %v3762_v11  ;;  %v901_v14 = vld [vmem:[%s15495_s3 + $0x590] sm:$0xff] }
 0x4f4   :  { %v2264_v23 = vadd.f32 %v9886_v20, %v12277_v31  ;;  %v2255_v41 = vpop.f32.mrb[85].mxu1 }
 0x4f5   :  { %v2256_v24 = vadd.f32 %v2255_v41, %v12277_v31  ;;  %v9887_v25 = vpop.f32.mrb[86].mxu1 }
 0x4f6   :  { %v3768_v27 = vmax.f32 %v2264_v23, 0.0  ;;  %v2267_v28 = vadd.f32 %v9887_v25, %v12277_v31  ;;  %v2258_v29 = vpop.f32.mrb[87].mxu1  ;;  %v1233_v25 = vpack.c.bf16 %v904_v17, %v903_v16  ;;  %v916_v16 = vld [vmem:[%s15495_s3 + $0x608] sm:$0xff] }
 0x4f7   :  { %v3766_v30 = vmax.f32 %v2256_v24, 0.0  ;;  %v2259_v32 = vadd.f32 %v2258_v29, %v12277_v31 }
 0x4f8   :  { %10313 = vmatmul.mubr.bf16.gmra.mrb[60].mxu0 %v4155_v63  ;;  %9993 = vmatmul.mubr.msk.bf16.gmra.mrb[192].mxu1 %vm1362_vm4, %v1226_v22  ;;  %v3769_v33 = vmax.f32 %v2267_v28, 0.0 }
 0x4f9   :  { %10316 = vmatprep.mubr.bf16.mxu0 %v4156_v21  ;;  %v3767_v34 = vmax.f32 %v2259_v32, 0.0  ;;  %9996 = vmatprep.mubr.msk.bf16.mxu1 %vm1362_vm4, %v1227_v26  ;;  %v1232_v21 = vpack.c.bf16 %v902_v15, %v901_v14  ;;  %v914_v14 = vld [vmem:[%s15495_s3 + $0x5f8] sm:$0xff]  ;;  %v915_v15 = vld [vmem:[%s15495_s3 + $0x600] sm:$0xff] }
 0x4fa   :  { %v4159_v42 = vpack.c.bf16 %v3769_v33, %v3768_v27 }
 0x4fb   :  { %v9890_v43 = vpop.f32.mrb[88].mxu1  ;;  %v4158_v44 = vpack.c.bf16 %v3767_v34, %v3766_v30  ;;  %v905_v34 = vld [vmem:[%s15495_s3 + $0x5b0] sm:$0xff] }
 0x4fc   :  { %v2280_v46 = vadd.f32 %v9890_v43, %v12277_v31  ;;  %v2271_v47 = vpop.f32.mrb[89].mxu1 }
 0x4fd   :  { %v2272_v48 = vadd.f32 %v2271_v47, %v12277_v31  ;;  %v9891_v49 = vpop.f32.mrb[90].mxu1 }
 0x4fe   :  { %v3772_v51 = vmax.f32 %v2280_v46, 0.0  ;;  %v2283_v52 = vadd.f32 %v9891_v49, %v12277_v31  ;;  %v2274_v53 = vpop.f32.mrb[91].mxu1  ;;  %v1235_v49 = vpack.c.bf16 %v908_v39, %v907_v38  ;;  %v920_v38 = vld [vmem:[%s15495_s3 + $0x628] sm:$0xff] }
 0x4ff   :  { %v3770_v54 = vmax.f32 %v2272_v48, 0.0  ;;  %v2275_v55 = vadd.f32 %v2274_v53, %v12277_v31 }
 0x500   :  { %10317 = vmatmul.mubr.bf16.gmra.mrb[64].mxu0 %v4157_v19  ;;  %9997 = vmatmul.mubr.msk.bf16.gmra.mrb[196].mxu1 %vm1362_vm4, %v1228_v45  ;;  %v3773_v56 = vmax.f32 %v2283_v52, 0.0 }
 0x501   :  { %10320 = vmatprep.mubr.bf16.mxu0 %v4158_v44  ;;  %v3771_v57 = vmax.f32 %v2275_v55, 0.0  ;;  %10000 = vmatprep.mubr.msk.bf16.mxu1 %vm1362_vm4, %v1229_v50  ;;  %v1234_v44 = vpack.c.bf16 %v906_v37, %v905_v34  ;;  %v918_v34 = vld [vmem:[%s15495_s3 + $0x618] sm:$0xff]  ;;  %v919_v37 = vld [vmem:[%s15495_s3 + $0x620] sm:$0xff] }
 0x502   :  { %v4161_v62 = vpack.c.bf16 %v3773_v56, %v3772_v51 }
 0x503   :  { %v9894_v63 = vpop.f32.mrb[92].mxu1  ;;  %v4160_v0 = vpack.c.bf16 %v3771_v57, %v3770_v54  ;;  %v909_v57 = vld [vmem:[%s15495_s3 + $0x5d0] sm:$0xff] }
 0x504   :  { %v2296_v2 = vadd.f32 %v9894_v63, %v12277_v31  ;;  %v2287_v3 = vpop.f32.mrb[93].mxu1 }
 0x505   :  { %v2288_v4 = vadd.f32 %v2287_v3, %v12277_v31  ;;  %v9895_v5 = vpop.f32.mrb[94].mxu1 }
 0x506   :  { %v3776_v7 = vmax.f32 %v2296_v2, 0.0  ;;  %v2299_v8 = vadd.f32 %v9895_v5, %v12277_v31  ;;  %v2290_v9 = vpop.f32.mrb[95].mxu1  ;;  %v1237_v5 = vpack.c.bf16 %v912_v60, %v911_v59  ;;  %v924_v59 = vld [vmem:[%s15495_s3 + $0x648] sm:$0xff] }
 0x507   :  { %v3774_v10 = vmax.f32 %v2288_v4, 0.0  ;;  %v2291_v11 = vadd.f32 %v2290_v9, %v12277_v31 }
 0x508   :  { %10321 = vmatmul.mubr.bf16.gmra.mrb[68].mxu0 %v4159_v42  ;;  %10001 = vmatmul.mubr.msk.bf16.gmra.mrb[200].mxu1 %vm1362_vm4, %v1230_v1  ;;  %v3777_v12 = vmax.f32 %v2299_v8, 0.0 }
 0x509   :  { %10324 = vmatprep.mubr.bf16.mxu0 %v4160_v0  ;;  %v3775_v13 = vmax.f32 %v2291_v11, 0.0  ;;  %10004 = vmatprep.mubr.msk.bf16.mxu1 %vm1362_vm4, %v1231_v6  ;;  %v1236_v0 = vpack.c.bf16 %v910_v58, %v909_v57  ;;  %v922_v57 = vld [vmem:[%s15495_s3 + $0x638] sm:$0xff]  ;;  %v923_v58 = vld [vmem:[%s15495_s3 + $0x640] sm:$0xff] }
 0x50a   :  { %v4163_v18 = vpack.c.bf16 %v3777_v12, %v3776_v7 }
 0x50b   :  { %v9898_v19 = vpop.f32.mrb[96].mxu1  ;;  %v4162_v20 = vpack.c.bf16 %v3775_v13, %v3774_v10  ;;  %v913_v13 = vld [vmem:[%s15495_s3 + $0x5f0] sm:$0xff] }
 0x50c   :  { %v2312_v22 = vadd.f32 %v9898_v19, %v12277_v31  ;;  %v2303_v23 = vpop.f32.mrb[97].mxu1 }
 0x50d   :  { %v2304_v41 = vadd.f32 %v2303_v23, %v12277_v31  ;;  %v9899_v24 = vpop.f32.mrb[98].mxu1 }
 0x50e   :  { %v3780_v26 = vmax.f32 %v2312_v22, 0.0  ;;  %v2315_v27 = vadd.f32 %v9899_v24, %v12277_v31  ;;  %v2306_v28 = vpop.f32.mrb[99].mxu1  ;;  %v1239_v24 = vpack.c.bf16 %v916_v16, %v915_v15  ;;  %v928_v15 = vld [vmem:[%s15495_s3 + $0x668] sm:$0xff] }
 0x50f   :  { %v3778_v29 = vmax.f32 %v2304_v41, 0.0  ;;  %v2307_v30 = vadd.f32 %v2306_v28, %v12277_v31 }
 0x510   :  { %10325 = vmatmul.mubr.bf16.gmra.mrb[72].mxu0 %v4161_v62  ;;  %10005 = vmatmul.mubr.msk.bf16.gmra.mrb[204].mxu1 %vm1362_vm4, %v1232_v21  ;;  %v3781_v32 = vmax.f32 %v2315_v27, 0.0 }
 0x511   :  { %10328 = vmatprep.mubr.bf16.mxu0 %v4162_v20  ;;  %v3779_v33 = vmax.f32 %v2307_v30, 0.0  ;;  %10008 = vmatprep.mubr.msk.bf16.mxu1 %vm1362_vm4, %v1233_v25  ;;  %v1238_v20 = vpack.c.bf16 %v914_v14, %v913_v13  ;;  %v926_v13 = vld [vmem:[%s15495_s3 + $0x658] sm:$0xff]  ;;  %v927_v14 = vld [vmem:[%s15495_s3 + $0x660] sm:$0xff] }
 0x512   :  { %v4165_v40 = vpack.c.bf16 %v3781_v32, %v3780_v26  ;;  %v12675_v26 = vld [vmem:[%s15494_s7 + $0x3] ss:$0 sm:$0xff] }
 0x513   :  { %v9902_v42 = vpop.f32.mrb[100].mxu1  ;;  %v4164_v43 = vpack.c.bf16 %v3779_v33, %v3778_v29  ;;  %v917_v33 = vld [vmem:[%s15495_s3 + $0x610] sm:$0xff] }
 0x514   :  { %v2328_v45 = vadd.f32 %v9902_v42, %v12277_v31  ;;  %v2319_v46 = vpop.f32.mrb[101].mxu1 }
 0x515   :  { %v2320_v47 = vadd.f32 %v2319_v46, %v12277_v31  ;;  %v9903_v48 = vpop.f32.mrb[102].mxu1 }
 0x516   :  { %v3784_v50 = vmax.f32 %v2328_v45, 0.0  ;;  %v2331_v51 = vadd.f32 %v9903_v48, %v12277_v31  ;;  %v2322_v52 = vpop.f32.mrb[103].mxu1  ;;  %v1241_v48 = vpack.c.bf16 %v920_v38, %v919_v37  ;;  %v932_v37 = vld [vmem:[%s15495_s3 + $0x688] sm:$0xff] }
 0x517   :  { %v3782_v53 = vmax.f32 %v2320_v47, 0.0  ;;  %v2323_v54 = vadd.f32 %v2322_v52, %v12277_v31 }
 0x518   :  { %10329 = vmatmul.mubr.bf16.gmra.mrb[76].mxu0 %v4163_v18  ;;  %10009 = vmatmul.mubr.msk.bf16.gmra.mrb[208].mxu1 %vm1362_vm4, %v1234_v44  ;;  %v3785_v55 = vmax.f32 %v2331_v51, 0.0 }
 0x519   :  { %10332 = vmatprep.mubr.bf16.mxu0 %v4164_v43  ;;  %v3783_v56 = vmax.f32 %v2323_v54, 0.0  ;;  %10012 = vmatprep.mubr.msk.bf16.mxu1 %vm1362_vm4, %v1235_v49  ;;  %v1240_v43 = vpack.c.bf16 %v918_v34, %v917_v33  ;;  %v930_v33 = vld [vmem:[%s15495_s3 + $0x678] sm:$0xff]  ;;  %v931_v34 = vld [vmem:[%s15495_s3 + $0x680] sm:$0xff] }
 0x51a   :  { %v4167_v61 = vpack.c.bf16 %v3785_v55, %v3784_v50 }
 0x51b   :  { %v9906_v62 = vpop.f32.mrb[104].mxu1  ;;  %v4166_v63 = vpack.c.bf16 %v3783_v56, %v3782_v53  ;;  %v921_v56 = vld [vmem:[%s15495_s3 + $0x630] sm:$0xff] }
 0x51c   :  { %v2344_v1 = vadd.f32 %v9906_v62, %v12277_v31  ;;  %v2335_v2 = vpop.f32.mrb[105].mxu1 }
 0x51d   :  { %v2336_v3 = vadd.f32 %v2335_v2, %v12277_v31  ;;  %v9907_v4 = vpop.f32.mrb[106].mxu1 }
 0x51e   :  { %v3788_v6 = vmax.f32 %v2344_v1, 0.0  ;;  %v2347_v7 = vadd.f32 %v9907_v4, %v12277_v31  ;;  %v2338_v8 = vpop.f32.mrb[107].mxu1  ;;  %v1243_v4 = vpack.c.bf16 %v924_v59, %v923_v58  ;;  %v936_v58 = vld [vmem:[%s15495_s3 + $0x6a8] sm:$0xff] }
 0x51f   :  { %v3786_v9 = vmax.f32 %v2336_v3, 0.0  ;;  %v2339_v10 = vadd.f32 %v2338_v8, %v12277_v31 }
 0x520   :  { %10333 = vmatmul.mubr.bf16.gmra.mrb[80].mxu0 %v4165_v40  ;;  %10013 = vmatmul.mubr.msk.bf16.gmra.mrb[212].mxu1 %vm1362_vm4, %v1236_v0  ;;  %v3789_v11 = vmax.f32 %v2347_v7, 0.0 }
 0x521   :  { %10336 = vmatprep.mubr.bf16.mxu0 %v4166_v63  ;;  %v3787_v12 = vmax.f32 %v2339_v10, 0.0  ;;  %10016 = vmatprep.mubr.msk.bf16.mxu1 %vm1362_vm4, %v1237_v5  ;;  %v1242_v63 = vpack.c.bf16 %v922_v57, %v921_v56  ;;  %v934_v56 = vld [vmem:[%s15495_s3 + $0x698] sm:$0xff]  ;;  %v935_v57 = vld [vmem:[%s15495_s3 + $0x6a0] sm:$0xff] }
 0x522   :  { %v4169_v17 = vpack.c.bf16 %v3789_v11, %v3788_v6 }
 0x523   :  { %v9910_v18 = vpop.f32.mrb[108].mxu1  ;;  %v4168_v19 = vpack.c.bf16 %v3787_v12, %v3786_v9  ;;  %v925_v12 = vld [vmem:[%s15495_s3 + $0x650] sm:$0xff] }
 0x524   :  { %v2360_v21 = vadd.f32 %v9910_v18, %v12277_v31  ;;  %v2351_v22 = vpop.f32.mrb[109].mxu1 }
 0x525   :  { %v2352_v23 = vadd.f32 %v2351_v22, %v12277_v31  ;;  %v9911_v41 = vpop.f32.mrb[110].mxu1 }
 0x526   :  { %v3792_v25 = vmax.f32 %v2360_v21, 0.0  ;;  %v2363_v27 = vadd.f32 %v12675_v26, %v9911_v41  ;;  %v2354_v28 = vpop.f32.mrb[111].mxu1  ;;  %v1245_v41 = vpack.c.bf16 %v928_v15, %v927_v14  ;;  %v938_v14 = vld [vmem:[%s15495_s3 + $0x6b8] sm:$0xff]  ;;  %v939_v15 = vld [vmem:[%s15495_s3 + $0x6c0] sm:$0xff] }
 0x527   :  { %v3790_v29 = vmax.f32 %v2352_v23, 0.0  ;;  %v2355_v30 = vadd.f32 %v12675_v26, %v2354_v28 }
 0x528   :  { %10337 = vmatmul.mubr.bf16.gmra.mrb[84].mxu0 %v4167_v61  ;;  %10017 = vmatmul.mubr.msk.bf16.gmra.mrb[216].mxu1 %vm1362_vm4, %v1238_v20  ;;  %v3793_v32 = vmax.f32 %v2363_v27, 0.0 }
 0x529   :  { %10340 = vmatprep.mubr.bf16.mxu0 %v4168_v19  ;;  %v3791_v31 = vmax.f32 %v2355_v30, 0.0  ;;  %10020 = vmatprep.mubr.msk.bf16.mxu1 %vm1362_vm4, %v1239_v24  ;;  %v1244_v19 = vpack.c.bf16 %v926_v13, %v925_v12  ;;  %v937_v13 = vld [vmem:[%s15495_s3 + $0x6b0] sm:$0xff] }
 0x52a   :  { %v4171_v39 = vpack.c.bf16 %v3793_v32, %v3792_v25 }
 0x52b   :  { %v4170_v40 = vpack.c.bf16 %v3791_v31, %v3790_v29  ;;  %v9914_v42 = vpop.f32.mrb[112].mxu1  ;;  %v929_v31 = vld [vmem:[%s15495_s3 + $0x670] sm:$0xff] }
 0x52c   :  { %v2376_v44 = vadd.f32 %v12675_v26, %v9914_v42  ;;  %v2367_v45 = vpop.f32.mrb[113].mxu1  ;;  %v1246_v42 = vpack.c.bf16 %v930_v33, %v929_v31  ;;  %v941_v33 = vld [vmem:[%s15495_s3 + $0x6d0] sm:$0xff] }
 0x52d   :  { %v2368_v46 = vadd.f32 %v12675_v26, %v2367_v45  ;;  %v9915_v47 = vpop.f32.mrb[114].mxu1 }
 0x52e   :  { %v3796_v49 = vmax.f32 %v2376_v44, 0.0  ;;  %v2379_v50 = vadd.f32 %v12675_v26, %v9915_v47  ;;  %v2370_v51 = vpop.f32.mrb[115].mxu1  ;;  %v1247_v47 = vpack.c.bf16 %v932_v37, %v931_v34  ;;  %v942_v34 = vld [vmem:[%s15495_s3 + $0x6d8] sm:$0xff]  ;;  %v943_v37 = vld [vmem:[%s15495_s3 + $0x6e0] sm:$0xff] }
 0x52f   :  { %v3794_v52 = vmax.f32 %v2368_v46, 0.0  ;;  %v2371_v53 = vadd.f32 %v12675_v26, %v2370_v51 }
 0x530   :  { %10341 = vmatmul.mubr.bf16.gmra.mrb[88].mxu0 %v4169_v17  ;;  %10021 = vmatmul.mubr.msk.bf16.gmra.mrb[220].mxu1 %vm1362_vm4, %v1240_v43  ;;  %v3797_v54 = vmax.f32 %v2379_v50, 0.0 }
 0x531   :  { %10344 = vmatprep.mubr.bf16.mxu0 %v4170_v40  ;;  %v3795_v55 = vmax.f32 %v2371_v53, 0.0  ;;  %10024 = vmatprep.mubr.msk.bf16.mxu1 %vm1362_vm4, %v1241_v48 }
 0x532   :  { %v4173_v60 = vpack.c.bf16 %v3797_v54, %v3796_v49 }
 0x533   :  { %v9918_v61 = vpop.f32.mrb[116].mxu1  ;;  %v4172_v62 = vpack.c.bf16 %v3795_v55, %v3794_v52  ;;  %v933_v55 = vld [vmem:[%s15495_s3 + $0x690] sm:$0xff] }
 0x534   :  { %v2392_v0 = vadd.f32 %v12675_v26, %v9918_v61  ;;  %v2383_v1 = vpop.f32.mrb[117].mxu1 }
 0x535   :  { %v2384_v2 = vadd.f32 %v12675_v26, %v2383_v1  ;;  %v9919_v3 = vpop.f32.mrb[118].mxu1 }
 0x536   :  { %v3800_v5 = vmax.f32 %v2392_v0, 0.0  ;;  %v2395_v6 = vadd.f32 %v12675_v26, %v9919_v3  ;;  %v2386_v7 = vpop.f32.mrb[119].mxu1  ;;  %v1248_v0 = vpack.c.bf16 %v934_v56, %v933_v55  ;;  %v945_v56 = vld [vmem:[%s15495_s3 + $0x6f0] sm:$0xff] }
 0x537   :  { %v3798_v8 = vmax.f32 %v2384_v2, 0.0  ;;  %v2387_v9 = vadd.f32 %v12675_v26, %v2386_v7 }
 0x538   :  { %10345 = vmatmul.mubr.bf16.gmra.mrb[92].mxu0 %v4171_v39  ;;  %10025 = vmatmul.mubr.msk.bf16.gmra.mrb[224].mxu1 %vm1362_vm4, %v1242_v63  ;;  %v3801_v10 = vmax.f32 %v2395_v6, 0.0 }
 0x539   :  { %10348 = vmatprep.mubr.bf16.mxu0 %v4172_v62  ;;  %v3799_v11 = vmax.f32 %v2387_v9, 0.0  ;;  %10028 = vmatprep.mubr.msk.bf16.mxu1 %vm1362_vm4, %v1243_v4 }
 0x53a   :  { %v4175_v16 = vpack.c.bf16 %v3801_v10, %v3800_v5  ;;  %v1249_v5 = vpack.c.bf16 %v936_v58, %v935_v57  ;;  %v946_v57 = vld [vmem:[%s15495_s3 + $0x6f8] sm:$0xff]  ;;  %v947_v58 = vld [vmem:[%s15495_s3 + $0x700] sm:$0xff] }
 0x53b   :  { %v9922_v17 = vpop.f32.mrb[120].mxu1  ;;  %v4174_v18 = vpack.c.bf16 %v3799_v11, %v3798_v8 }
 0x53c   :  { %v2408_v20 = vadd.f32 %v12675_v26, %v9922_v17  ;;  %v2399_v21 = vpop.f32.mrb[121].mxu1 }
 0x53d   :  { %v2400_v22 = vadd.f32 %v12675_v26, %v2399_v21  ;;  %v9923_v23 = vpop.f32.mrb[122].mxu1 }
 0x53e   :  { %v3804_v24 = vmax.f32 %v2408_v20, 0.0  ;;  %v2411_v25 = vadd.f32 %v12675_v26, %v9923_v23  ;;  %v2402_v27 = vpop.f32.mrb[123].mxu1  ;;  %v1250_v20 = vpack.c.bf16 %v938_v14, %v937_v13  ;;  %v949_v14 = vld [vmem:[%s15495_s3 + $0x710] sm:$0xff] }
 0x53f   :  { %v3802_v28 = vmax.f32 %v2400_v22, 0.0  ;;  %v2403_v29 = vadd.f32 %v12675_v26, %v2402_v27 }
 0x540   :  { %10349 = vmatmul.mubr.bf16.gmra.mrb[96].mxu0 %v4173_v60  ;;  %10029 = vmatmul.mubr.msk.bf16.gmra.mrb[228].mxu1 %vm1362_vm4, %v1244_v19  ;;  %v3805_v30 = vmax.f32 %v2411_v25, 0.0 }
 0x541   :  { %10352 = vmatprep.mubr.bf16.mxu0 %v4174_v18  ;;  %v3803_v32 = vmax.f32 %v2403_v29, 0.0  ;;  %10032 = vmatprep.mubr.msk.bf16.mxu1 %vm1362_vm4, %v1245_v41 }
 0x542   :  { %v4177_v38 = vpack.c.bf16 %v3805_v30, %v3804_v24 }
 0x543   :  { %v9926_v39 = vpop.f32.mrb[124].mxu1  ;;  %v4176_v40 = vpack.c.bf16 %v3803_v32, %v3802_v28 }
 0x544   :  { %v2424_v43 = vadd.f32 %v12675_v26, %v9926_v39  ;;  %v2415_v44 = vpop.f32.mrb[125].mxu1 }
 0x545   :  { %v2416_v45 = vadd.f32 %v12675_v26, %v2415_v44  ;;  %v9927_v46 = vpop.f32.mrb[126].mxu1 }
 0x546   :  { %v3808_v48 = vmax.f32 %v2424_v43, 0.0  ;;  %v2427_v49 = vadd.f32 %v12675_v26, %v9927_v46  ;;  %v2418_v50 = vpop.f32.mrb[127].mxu1  ;;  %v1252_v43 = vpack.c.bf16 %v942_v34, %v941_v33 }
 0x547   :  { %v3806_v51 = vmax.f32 %v2416_v45, 0.0  ;;  %v2419_v52 = vadd.f32 %v12675_v26, %v2418_v50 }
 0x548   :  { %10353 = vmatmul.mubr.bf16.gmra.mrb[100].mxu0 %v4175_v16  ;;  %10033 = vmatmul.mubr.msk.bf16.gmra.mrb[232].mxu1 %vm1362_vm4, %v1246_v42  ;;  %v3809_v53 = vmax.f32 %v2427_v49, 0.0  ;;  %v940_v16 = vld [vmem:[%s15495_s3 + $0x6c8] sm:$0xff] }
 0x549   :  { %10356 = vmatprep.mubr.bf16.mxu0 %v4176_v40  ;;  %v3807_v54 = vmax.f32 %v2419_v52, 0.0  ;;  %10036 = vmatprep.mubr.msk.bf16.mxu1 %vm1362_vm4, %v1247_v47  ;;  %v1251_v24 = vpack.c.bf16 %v940_v16, %v939_v15  ;;  %v950_v15 = vld [vmem:[%s15495_s3 + $0x718] sm:$0xff]  ;;  %v951_v16 = vld [vmem:[%s15495_s3 + $0x720] sm:$0xff] }
 0x54a   :  { %v4179_v59 = vpack.c.bf16 %v3809_v53, %v3808_v48 }
 0x54b   :  { %v12765_v60 = vpop.f32.mrb[8].mxu0  ;;  %v9930_v61 = vpop.f32.mrb[128].mxu1  ;;  %v4178_v62 = vpack.c.bf16 %v3807_v54, %v3806_v51 }
 0x54c   :  { %15504 = vst [vmem:[#allocation2_spill] sm:$0xff] %v12765_v60  ;;  %v9821_v63 = vpop.f32.mrb[9].mxu0  ;;  %v2440_v1 = vadd.f32 %v12675_v26, %v9930_v61  ;;  %v2431_v2 = vpop.f32.mrb[129].mxu1 }
 0x54d   :  { %v2432_v3 = vadd.f32 %v12675_v26, %v2431_v2  ;;  %v9931_v4 = vpop.f32.mrb[130].mxu1 }
 0x54e   :  { %v3812_v6 = vmax.f32 %v2440_v1, 0.0  ;;  %v2443_v7 = vadd.f32 %v12675_v26, %v9931_v4  ;;  %v2434_v8 = vpop.f32.mrb[131].mxu1 }
 0x54f   :  { %v3810_v9 = vmax.f32 %v2432_v3, 0.0  ;;  %v2435_v10 = vadd.f32 %v12675_v26, %v2434_v8 }
 0x550   :  { %10357 = vmatmul.mubr.bf16.gmra.mrb[104].mxu0 %v4177_v38  ;;  %10037 = vmatmul.mubr.msk.bf16.gmra.mrb[236].mxu1 %vm1362_vm4, %v1248_v0  ;;  %v3813_v11 = vmax.f32 %v2443_v7, 0.0  ;;  %v944_v38 = vld [vmem:[%s15495_s3 + $0x6e8] sm:$0xff]  ;;  %v1254_v0 = vpack.c.bf16 %v946_v57, %v945_v56 }
 0x551   :  { %10360 = vmatprep.mubr.bf16.mxu0 %v4178_v62  ;;  %v3811_v12 = vmax.f32 %v2435_v10, 0.0  ;;  %10040 = vmatprep.mubr.msk.bf16.mxu1 %vm1362_vm4, %v1249_v5  ;;  %v1253_v48 = vpack.c.bf16 %v944_v38, %v943_v37 }
 0x552   :  { %v4181_v17 = vpack.c.bf16 %v3813_v11, %v3812_v6 }
 0x553   :  { %v9934_v18 = vpop.f32.mrb[132].mxu1  ;;  %v4180_v19 = vpack.c.bf16 %v3811_v12, %v3810_v9  ;;  %v12829_v12 = vld [vmem:[%s15494_s7 + $0x4] ss:$0 sm:$0xff] }
 0x554   :  { %v2456_v21 = vadd.f32 %v12675_v26, %v9934_v18  ;;  %v2447_v22 = vpop.f32.mrb[133].mxu1 }
 0x555   :  { %v2448_v23 = vadd.f32 %v12675_v26, %v2447_v22  ;;  %v9935_v41 = vpop.f32.mrb[134].mxu1 }
 0x556   :  { %v3816_v25 = vmax.f32 %v2456_v21, 0.0  ;;  %v2459_v27 = vadd.f32 %v12675_v26, %v9935_v41  ;;  %v2450_v28 = vpop.f32.mrb[135].mxu1  ;;  %v1256_v41 = vpack.c.bf16 %v950_v15, %v949_v14 }
 0x557   :  { %v3814_v29 = vmax.f32 %v2448_v23, 0.0  ;;  %v2451_v30 = vadd.f32 %v12675_v26, %v2450_v28 }
 0x558   :  { %10361 = vmatmul.mubr.bf16.gmra.mrb[108].mxu0 %v4179_v59  ;;  %10041 = vmatmul.mubr.msk.bf16.gmra.mrb[240].mxu1 %vm1362_vm4, %v1250_v20  ;;  %v3817_v32 = vmax.f32 %v2459_v27, 0.0  ;;  %v948_v59 = vld [vmem:[%s15495_s3 + $0x708] sm:$0xff] }
 0x559   :  { %10364 = vmatprep.mubr.bf16.mxu0 %v4180_v19  ;;  %v3815_v31 = vmax.f32 %v2451_v30, 0.0  ;;  %10044 = vmatprep.mubr.msk.bf16.mxu1 %vm1362_vm4, %v1251_v24  ;;  %v1255_v5 = vpack.c.bf16 %v948_v59, %v947_v58 }
 0x55a   :  { %v4183_v39 = vpack.c.bf16 %v3817_v32, %v3816_v25 }
 0x55b   :  { %v9938_v40 = vpop.f32.mrb[136].mxu1  ;;  %v4182_v42 = vpack.c.bf16 %v3815_v31, %v3814_v29 }
 0x55c   :  { %v2472_v44 = vadd.f32 %v12675_v26, %v9938_v40  ;;  %v2463_v45 = vpop.f32.mrb[137].mxu1 }
 0x55d   :  { %v2464_v46 = vadd.f32 %v12675_v26, %v2463_v45  ;;  %v9939_v47 = vpop.f32.mrb[138].mxu1 }
 0x55e   :  { %v3820_v49 = vmax.f32 %v2472_v44, 0.0  ;;  %v2475_v50 = vadd.f32 %v12675_v26, %v9939_v47  ;;  %v2466_v51 = vpop.f32.mrb[139].mxu1 }
 0x55f   :  { %v3818_v52 = vmax.f32 %v2464_v46, 0.0  ;;  %v2467_v53 = vadd.f32 %v12675_v26, %v2466_v51 }
 0x560   :  { %10365 = vmatmul.mubr.bf16.gmra.mrb[112].mxu0 %v4181_v17  ;;  %10045 = vmatmul.mubr.msk.bf16.gmra.mrb[244].mxu1 %vm1362_vm4, %v1252_v43  ;;  %v3821_v54 = vmax.f32 %v2475_v50, 0.0  ;;  %v952_v17 = vld [vmem:[%s15495_s3 + $0x728] sm:$0xff]  ;;  %v954_v50 = vld [vmem:[%s15495_s3 + $0x738] sm:$0xff] }
 0x561   :  { %10368 = vmatprep.mubr.bf16.mxu0 %v4182_v42  ;;  %v3819_v55 = vmax.f32 %v2467_v53, 0.0  ;;  %10048 = vmatprep.mubr.msk.bf16.mxu1 %vm1362_vm4, %v1253_v48  ;;  %v1257_v32 = vpack.c.bf16 %v952_v17, %v951_v16  ;;  %v956_v53 = vld [vmem:[%s15495_s3 + $0x748] sm:$0xff] }
 0x562   :  { %v4185_v61 = vpack.c.bf16 %v3821_v54, %v3820_v49  ;;  %v953_v49 = vld [vmem:[%s15495_s3 + $0x730] sm:$0xff] }
 0x563   :  { %v9942_v62 = vpop.f32.mrb[140].mxu1  ;;  %v4184_v63 = vpack.c.bf16 %v3819_v55, %v3818_v52  ;;  %v955_v52 = vld [vmem:[%s15495_s3 + $0x740] sm:$0xff] }
 0x564   :  { %v2488_v1 = vadd.f32 %v12675_v26, %v9942_v62  ;;  %v2479_v2 = vpop.f32.mrb[141].mxu1  ;;  %v1258_v62 = vpack.c.bf16 %v954_v50, %v953_v49 }
 0x565   :  { %v2480_v3 = vadd.f32 %v12675_v26, %v2479_v2  ;;  %v9943_v4 = vpop.f32.mrb[142].mxu1 }
 0x566   :  { %v3824_v6 = vmax.f32 %v2488_v1, 0.0  ;;  %v2491_v7 = vadd.f32 %v12675_v26, %v9943_v4  ;;  %v2482_v8 = vpop.f32.mrb[143].mxu1 }
 0x567   :  { %v3822_v9 = vmax.f32 %v2480_v3, 0.0  ;;  %v2483_v10 = vadd.f32 %v12675_v26, %v2482_v8 }
 0x568   :  { %10369 = vmatmul.mubr.bf16.gmra.mrb[116].mxu0 %v4183_v39  ;;  %10049 = vmatmul.mubr.msk.bf16.gmra.mrb[248].mxu1 %vm1362_vm4, %v1254_v0  ;;  %v3825_v11 = vmax.f32 %v2491_v7, 0.0 }
 0x569   :  { %10372 = vmatprep.mubr.bf16.mxu0 %v4184_v63  ;;  %v3823_v13 = vmax.f32 %v2483_v10, 0.0  ;;  %10052 = vmatprep.mubr.msk.bf16.mxu1 %vm1362_vm4, %v1255_v5  ;;  %v1259_v5 = vpack.c.bf16 %v956_v53, %v955_v52 }
 0x56a   :  { %v4187_v18 = vpack.c.bf16 %v3825_v11, %v3824_v6 }
 0x56b   :  { %v10266_v19 = vpop.f32.mrb[12].mxu0  ;;  %v9946_v20 = vpop.f32.mrb[144].mxu1  ;;  %v4186_v21 = vpack.c.bf16 %v3823_v13, %v3822_v9 }
 0x56c   :  { %v4408_v22 = vadd.f32 %v10266_v19, %v12829_v12  ;;  %v4399_v23 = vpop.f32.mrb[13].mxu0  ;;  %v2504_v24 = vadd.f32 %v12675_v26, %v9946_v20  ;;  %v2495_v25 = vpop.f32.mrb[145].mxu1 }
 0x56d   :  { %v4400_v27 = vadd.f32 %v4399_v23, %v12829_v12  ;;  %v10267_v28 = vpop.f32.mrb[14].mxu0  ;;  %v2496_v29 = vadd.f32 %v12675_v26, %v2495_v25  ;;  %v9947_v30 = vpop.f32.mrb[146].mxu1  ;;  %v958_v23 = vld [vmem:[%s15495_s3 + $0x758] sm:$0xff] }
 0x56e   :  { %v4411_v31 = vadd.f32 %v10267_v28, %v12829_v12  ;;  %v4402_v33 = vpop.f32.mrb[15].mxu0  ;;  %v3828_v34 = vmax.f32 %v2504_v24, 0.0  ;;  %v2507_v37 = vadd.f32 %v12675_v26, %v9947_v30  ;;  %v2498_v38 = vpop.f32.mrb[147].mxu1  ;;  %v6080_v43 = vmax.f32 %v4408_v22, 0.0  ;;  %v957_v22 = vld [vmem:[%s15495_s3 + $0x750] sm:$0xff]  ;;  %v960_v24 = vld [vmem:[%s15495_s3 + $0x768] sm:$0xff] }
 0x56f   :  { %v4403_v39 = vadd.f32 %v4402_v33, %v12829_v12  ;;  %v3826_v40 = vmax.f32 %v2496_v29, 0.0  ;;  %v2499_v42 = vadd.f32 %v12675_v26, %v2498_v38  ;;  %v6078_v46 = vmax.f32 %v4400_v27, 0.0 }
 0x570   :  { %v6081_v44 = vmax.f32 %v4411_v31, 0.0  ;;  %10373 = vmatmul.mubr.bf16.gmra.mrb[120].mxu0 %v4185_v61  ;;  %10053 = vmatmul.mubr.msk.bf16.gmra.mrb[252].mxu1 %vm1362_vm4, %v1256_v41  ;;  %v3829_v45 = vmax.f32 %v2507_v37, 0.0  ;;  %v1260_v33 = vpack.c.bf16 %v958_v23, %v957_v22 }
 0x571   :  { %v6079_v47 = vmax.f32 %v4403_v39, 0.0  ;;  %10376 = vmatprep.mubr.bf16.mxu0 %v4186_v21  ;;  %v3827_v48 = vmax.f32 %v2499_v42, 0.0  ;;  %10056 = vmatprep.mubr.msk.bf16.mxu1 %vm1362_vm4, %v1257_v32 }
 0x572   :  { %v12860_v51 = vpack.c.bf16 %v6081_v44, %v6080_v43  ;;  %v4189_v54 = vpack.c.bf16 %v3829_v45, %v3828_v34 }
 0x573   :  { %v12868_v55 = vpack.c.bf16 %v6079_v47, %v6078_v46  ;;  %v10270_v56 = vpop.f32.mrb[16].mxu0  ;;  %v9950_v57 = vpop.f32.mrb[148].mxu1  ;;  %v4188_v58 = vpack.c.bf16 %v3827_v48, %v3826_v40 }
 0x574   :  { %v4424_v59 = vadd.f32 %v10270_v56, %v12829_v12  ;;  %v4415_v61 = vpop.f32.mrb[17].mxu0  ;;  %v2520_v63 = vadd.f32 %v12675_v26, %v9950_v57  ;;  %v2511_v0 = vpop.f32.mrb[149].mxu1 }
 0x575   :  { %v4416_v1 = vadd.f32 %v4415_v61, %v12829_v12  ;;  %v10271_v2 = vpop.f32.mrb[18].mxu0  ;;  %v2512_v3 = vadd.f32 %v12675_v26, %v2511_v0  ;;  %v9951_v4 = vpop.f32.mrb[150].mxu1 }
 0x576   :  { %v4427_v6 = vadd.f32 %v10271_v2, %v12829_v12  ;;  %v4418_v7 = vpop.f32.mrb[19].mxu0  ;;  %v3832_v8 = vmax.f32 %v2520_v63, 0.0  ;;  %v2523_v9 = vadd.f32 %v12675_v26, %v9951_v4  ;;  %v2514_v10 = vpop.f32.mrb[151].mxu1  ;;  %v6084_v15 = vmax.f32 %v4424_v59, 0.0  ;;  %v962_v63 = vld [vmem:[%s15495_s3 + $0x778] sm:$0xff] }
 0x577   :  { %v4419_v11 = vadd.f32 %v4418_v7, %v12829_v12  ;;  %v3830_v13 = vmax.f32 %v2512_v3, 0.0  ;;  %v2515_v14 = vadd.f32 %v12675_v26, %v2514_v10  ;;  %v6082_v19 = vmax.f32 %v4416_v1, 0.0  ;;  %v964_v1 = vld [vmem:[%s15495_s3 + $0x788] sm:$0xff] }
 0x578   :  { %v6085_v16 = vmax.f32 %v4427_v6, 0.0  ;;  %10377 = vmatmul.mubr.bf16.gmra.mrb[124].mxu0 %v4187_v18  ;;  %10057 = vmatmul.mubr.msk.bf16.gmra.mrb[0].mxu1 %vm1362_vm4, %v1258_v62  ;;  %v3833_v17 = vmax.f32 %v2523_v9, 0.0  ;;  %v959_v18 = vld [vmem:[%s15495_s3 + $0x760] sm:$0xff]  ;;  %v961_v62 = vld [vmem:[%s15495_s3 + $0x770] sm:$0xff] }
 0x579   :  { %v6083_v20 = vmax.f32 %v4419_v11, 0.0  ;;  %10380 = vmatprep.mubr.bf16.mxu0 %v4188_v58  ;;  %v3831_v21 = vmax.f32 %v2515_v14, 0.0  ;;  %10060 = vmatprep.mubr.msk.bf16.mxu1 %vm1362_vm4, %v1259_v5  ;;  %v1261_v43 = vpack.c.bf16 %v960_v24, %v959_v18  ;;  %v1262_v9 = vpack.c.bf16 %v962_v63, %v961_v62 }
 0x57a   :  { %v12886_v41 = vpack.c.bf16 %v6085_v16, %v6084_v15  ;;  %v4191_v25 = vpack.c.bf16 %v3833_v17, %v3832_v8 }
 0x57b   :  { %v12894_v27 = vpack.c.bf16 %v6083_v20, %v6082_v19  ;;  %v10274_v28 = vpop.f32.mrb[20].mxu0  ;;  %v9954_v29 = vpop.f32.mrb[152].mxu1  ;;  %v4190_v30 = vpack.c.bf16 %v3831_v21, %v3830_v13 }
 0x57c   :  { %v4440_v32 = vadd.f32 %v10274_v28, %v12829_v12  ;;  %v4431_v31 = vpop.f32.mrb[21].mxu0  ;;  %v2536_v34 = vadd.f32 %v12675_v26, %v9954_v29  ;;  %v2527_v37 = vpop.f32.mrb[153].mxu1 }
 0x57d   :  { %v4432_v38 = vadd.f32 %v4431_v31, %v12829_v12  ;;  %v10275_v39 = vpop.f32.mrb[22].mxu0  ;;  %v2528_v40 = vadd.f32 %v12675_v26, %v2527_v37  ;;  %v9955_v42 = vpop.f32.mrb[154].mxu1  ;;  %v965_v37 = vld [vmem:[%s15495_s3 + $0x790] sm:$0xff] }
 0x57e   :  { %v4443_v44 = vadd.f32 %v10275_v39, %v12829_v12  ;;  %v4434_v45 = vpop.f32.mrb[23].mxu0  ;;  %v3836_v46 = vmax.f32 %v2536_v34, 0.0  ;;  %v2539_v47 = vadd.f32 %v12675_v26, %v9955_v42  ;;  %v2530_v48 = vpop.f32.mrb[155].mxu1  ;;  %v6088_v53 = vmax.f32 %v4440_v32, 0.0 }
 0x57f   :  { %v4435_v49 = vadd.f32 %v4434_v45, %v12829_v12  ;;  %v3834_v50 = vmax.f32 %v2528_v40, 0.0  ;;  %v2531_v52 = vadd.f32 %v12675_v26, %v2530_v48  ;;  %v6086_v58 = vmax.f32 %v4432_v38, 0.0  ;;  %v966_v38 = vld [vmem:[%s15495_s3 + $0x798] sm:$0xff]  ;;  %v968_v40 = vld [vmem:[%s15495_s3 + $0x7a8] sm:$0xff] }
 0x580   :  { %v6089_v56 = vmax.f32 %v4443_v44, 0.0  ;;  %10381 = vmatmul.mubr.bf16.gmra.mrb[128].mxu0 %v4189_v54  ;;  %10061 = vmatmul.mubr.msk.bf16.gmra.mrb[4].mxu1 %vm1362_vm4, %v1260_v33  ;;  %v3837_v57 = vmax.f32 %v2539_v47, 0.0  ;;  %v963_v54 = vld [vmem:[%s15495_s3 + $0x780] sm:$0xff] }
 0x581   :  { %v6087_v59 = vmax.f32 %v4435_v49, 0.0  ;;  %10384 = vmatprep.mubr.bf16.mxu0 %v4190_v30  ;;  %v3835_v61 = vmax.f32 %v2531_v52, 0.0  ;;  %10064 = vmatprep.mubr.msk.bf16.mxu1 %vm1362_vm4, %v1261_v43  ;;  %v1263_v17 = vpack.c.bf16 %v964_v1, %v963_v54  ;;  %v1264_v49 = vpack.c.bf16 %v966_v38, %v965_v37 }
 0x582   :  { %v12912_v0 = vpack.c.bf16 %v6089_v56, %v6088_v53  ;;  %v4193_v2 = vpack.c.bf16 %v3837_v57, %v3836_v46 }
 0x583   :  { %v12920_v3 = vpack.c.bf16 %v6087_v59, %v6086_v58  ;;  %v10278_v4 = vpop.f32.mrb[24].mxu0  ;;  %v9958_v5 = vpop.f32.mrb[156].mxu1  ;;  %v4192_v6 = vpack.c.bf16 %v3835_v61, %v3834_v50 }
 0x584   :  { %v4456_v7 = vadd.f32 %v10278_v4, %v12829_v12  ;;  %v4447_v8 = vpop.f32.mrb[25].mxu0  ;;  %v2552_v10 = vadd.f32 %v12675_v26, %v9958_v5  ;;  %v2543_v11 = vpop.f32.mrb[157].mxu1 }
 0x585   :  { %v4448_v13 = vadd.f32 %v4447_v8, %v12829_v12  ;;  %v10279_v14 = vpop.f32.mrb[26].mxu0  ;;  %v2544_v15 = vadd.f32 %v12675_v26, %v2543_v11  ;;  %v9959_v16 = vpop.f32.mrb[158].mxu1 }
 0x586   :  { %v4459_v19 = vadd.f32 %v10279_v14, %v12829_v12  ;;  %v4450_v20 = vpop.f32.mrb[27].mxu0  ;;  %v3840_v21 = vmax.f32 %v2552_v10, 0.0  ;;  %v2555_v22 = vadd.f32 %v12675_v26, %v9959_v16  ;;  %v2546_v23 = vpop.f32.mrb[159].mxu1  ;;  %v6092_v29 = vmax.f32 %v4456_v7, 0.0  ;;  %v969_v14 = vld [vmem:[%s15495_s3 + $0x7b0] sm:$0xff] }
 0x587   :  { %v4451_v18 = vadd.f32 %v4450_v20, %v12829_v12  ;;  %v3838_v24 = vmax.f32 %v2544_v15, 0.0  ;;  %v2547_v28 = vadd.f32 %v12675_v26, %v2546_v23  ;;  %v6090_v31 = vmax.f32 %v4448_v13, 0.0  ;;  %v970_v15 = vld [vmem:[%s15495_s3 + $0x7b8] sm:$0xff] }
 0x588   :  { %v6093_v30 = vmax.f32 %v4459_v19, 0.0  ;;  %10385 = vmatmul.mubr.bf16.gmra.mrb[132].mxu0 %v4191_v25  ;;  %10065 = vmatmul.mubr.msk.bf16.gmra.mrb[8].mxu1 %vm1362_vm4, %v1262_v9  ;;  %v3841_v32 = vmax.f32 %v2555_v22, 0.0  ;;  %v967_v25 = vld [vmem:[%s15495_s3 + $0x7a0] sm:$0xff] }
 0x589   :  { %v6091_v33 = vmax.f32 %v4451_v18, 0.0  ;;  %10388 = vmatprep.mubr.bf16.mxu0 %v4192_v6  ;;  %v3839_v34 = vmax.f32 %v2547_v28, 0.0  ;;  %10068 = vmatprep.mubr.msk.bf16.mxu1 %vm1362_vm4, %v1263_v17  ;;  %v1265_v59 = vpack.c.bf16 %v968_v40, %v967_v25  ;;  %v972_v17 = vld [vmem:[%s15495_s3 + $0x7c8] sm:$0xff]  ;;  %v1266_v28 = vpack.c.bf16 %v970_v15, %v969_v14 }
 0x58a   :  { %v12938_v39 = vpack.c.bf16 %v6093_v30, %v6092_v29  ;;  %v12946_v42 = vpack.c.bf16 %v3841_v32, %v3840_v21 }
 0x58b   :  { %v12948_v43 = vpack.c.bf16 %v6091_v33, %v6090_v31  ;;  %v10282_v44 = vpop.f32.mrb[28].mxu0  ;;  %v9962_v45 = vpop.f32.mrb[160].mxu1  ;;  %v4194_v46 = vpack.c.bf16 %v3839_v34, %v3838_v24 }
 0x58c   :  { %v4472_v47 = vadd.f32 %v10282_v44, %v12829_v12  ;;  %v4463_v48 = vpop.f32.mrb[29].mxu0  ;;  %v2568_v50 = vadd.f32 %v12675_v26, %v9962_v45  ;;  %v2559_v52 = vpop.f32.mrb[161].mxu1 }
 0x58d   :  { %v4464_v53 = vadd.f32 %v4463_v48, %v12829_v12  ;;  %v10283_v56 = vpop.f32.mrb[30].mxu0  ;;  %v2560_v57 = vadd.f32 %v12675_v26, %v2559_v52  ;;  %v9963_v58 = vpop.f32.mrb[162].mxu1 }
 0x58e   :  { %v4475_v61 = vadd.f32 %v10283_v56, %v12829_v12  ;;  %v4466_v62 = vpop.f32.mrb[31].mxu0  ;;  %v3844_v63 = vmax.f32 %v2568_v50, 0.0  ;;  %v2571_v54 = vadd.f32 %v12675_v26, %v9963_v58  ;;  %v2562_v1 = vpop.f32.mrb[163].mxu1  ;;  %v6096_v7 = vmax.f32 %v4472_v47, 0.0  ;;  %v974_v58 = vld [vmem:[%s15495_s3 + $0x7d8] sm:$0xff] }
 0x58f   :  { %v4467_v4 = vadd.f32 %v4466_v62, %v12829_v12  ;;  %v3842_v5 = vmax.f32 %v2560_v57, 0.0  ;;  %v2563_v6 = vadd.f32 %v12675_v26, %v2562_v1  ;;  %v6094_v10 = vmax.f32 %v4464_v53, 0.0  ;;  %v973_v57 = vld [vmem:[%s15495_s3 + $0x7d0] sm:$0xff] }
 0x590   :  { %v6097_v8 = vmax.f32 %v4475_v61, 0.0  ;;  %10389 = vmatmul.mubr.bf16.gmra.mrb[136].mxu0 %v4193_v2  ;;  %10069 = vmatmul.mubr.msk.bf16.gmra.mrb[12].mxu1 %vm1362_vm4, %v1264_v49  ;;  %v3845_v9 = vmax.f32 %v2571_v54, 0.0  ;;  %v971_v2 = vld [vmem:[%s15495_s3 + $0x7c0] sm:$0xff]  ;;  %v976_v61 = vld [vmem:[%s15495_s3 + $0x7e8] sm:$0xff] }
 0x591   :  { %v6095_v11 = vmax.f32 %v4467_v4, 0.0  ;;  %10392 = vmatprep.mubr.bf16.mxu0 %v4194_v46  ;;  %v3843_v13 = vmax.f32 %v2563_v6, 0.0  ;;  %10072 = vmatprep.mubr.msk.bf16.mxu1 %vm1362_vm4, %v1265_v59  ;;  %v1267_v37 = vpack.c.bf16 %v972_v17, %v971_v2  ;;  %v975_v59 = vld [vmem:[%s15495_s3 + $0x7e0] sm:$0xff] }
 0x592   :  { %v10900_v16 = vpack.c.bf16 %v6097_v8, %v6096_v7  ;;  %v12972_v19 = vpack.c.bf16 %v3845_v9, %v3844_v63  ;;  %v1268_v7 = vpack.c.bf16 %v974_v58, %v973_v57  ;;  %v1269_v14 = vpack.c.bf16 %v976_v61, %v975_v59 }
 0x593   :  { %v10286_v20 = vpop.f32.mrb[32].mxu0  ;;  %v10896_v21 = vpack.c.bf16 %v6095_v11, %v6094_v10  ;;  %v9966_v22 = vpop.f32.mrb[164].mxu1  ;;  %v4196_v23 = vpack.c.bf16 %v3843_v13, %v3842_v5 }
 0x594   :  { %v4488_v18 = vadd.f32 %v10286_v20, %v12829_v12  ;;  %v4479_v24 = vpop.f32.mrb[33].mxu0  ;;  %v2584_v29 = vadd.f32 %v12675_v26, %v9966_v22  ;;  %v2575_v30 = vpop.f32.mrb[165].mxu1 }
 0x595   :  { %v4480_v32 = vadd.f32 %v4479_v24, %v12829_v12  ;;  %v10287_v31 = vpop.f32.mrb[34].mxu0  ;;  %10897 = vmatprep.subr.bf16.mxu1 %v10896_v21  ;;  %v2576_v33 = vadd.f32 %v12675_v26, %v2575_v30  ;;  %v9967_v34 = vpop.f32.mrb[166].mxu1 }
 0x596   :  { %v4491_v38 = vadd.f32 %v10287_v31, %v12829_v12  ;;  %v4482_v25 = vpop.f32.mrb[35].mxu0  ;;  %10899 = vmatpush3.bf16.msra.mxu1 %v12868_v55  ;;  %v3848_v40 = vmax.f32 %v2584_v29, 0.0  ;;  %v2587_v44 = vadd.f32 %v12675_v26, %v9967_v34  ;;  %v2578_v45 = vpop.f32.mrb[167].mxu1  ;;  %v6100_v49 = vmax.f32 %v4488_v18, 0.0  ;;  %v978_v31 = vld [vmem:[%s15495_s3 + $0x7f8] sm:$0xff]  ;;  %v980_v34 = vld [vmem:[%s15495_s3 + $0x808] sm:$0xff] }
 0x597   :  { %v4483_v46 = vadd.f32 %v4482_v25, %v12829_v12  ;;  %10901 = vmatprep.subr.bf16.mxu1 %v10900_v16  ;;  %v3846_v47 = vmax.f32 %v2576_v33, 0.0  ;;  %v2579_v48 = vadd.f32 %v12675_v26, %v2578_v45  ;;  %v6098_v53 = vmax.f32 %v4480_v32, 0.0  ;;  %v977_v32 = vld [vmem:[%s15495_s3 + $0x7f0] sm:$0xff]  ;;  %v979_v33 = vld [vmem:[%s15495_s3 + $0x800] sm:$0xff] }
 0x598   :  { %v6101_v50 = vmax.f32 %v4491_v38, 0.0  ;;  %10393 = vmatmul.mubr.bf16.gmra.mrb[140].mxu0 %v12946_v42  ;;  %10073 = vmatmul.mubr.msk.bf16.gmra.mrb[16].mxu1 %vm1362_vm4, %v1266_v28  ;;  %v3849_v52 = vmax.f32 %v2587_v44, 0.0 }
 0x599   :  { %v6099_v56 = vmax.f32 %v4483_v46, 0.0  ;;  %10396 = vmatprep.mubr.bf16.mxu0 %v4196_v23  ;;  %v3847_v55 = vmax.f32 %v2579_v48, 0.0  ;;  %10076 = vmatprep.mubr.msk.bf16.mxu1 %vm1362_vm4, %v1267_v37 }
 0x59a   :  { %10903 = vmatpush3.bf16.msra.mxu1 %v12860_v51  ;;  %v10908_v42 = vpack.c.bf16 %v6101_v50, %v6100_v49  ;;  %v12999_v62 = vpack.c.bf16 %v3849_v52, %v3848_v40 }
 0x59b   :  { %v10290_v63 = vpop.f32.mrb[36].mxu0  ;;  %v10904_v54 = vpack.c.bf16 %v6099_v56, %v6098_v53  ;;  %v9970_v1 = vpop.f32.mrb[168].mxu1  ;;  %v4198_v4 = vpack.c.bf16 %v3847_v55, %v3846_v47  ;;  %v1270_v47 = vpack.c.bf16 %v978_v31, %v977_v32  ;;  %v1271_v56 = vpack.c.bf16 %v980_v34, %v979_v33 }
 0x59c   :  { %v4504_v5 = vadd.f32 %v10290_v63, %v12829_v12  ;;  %v4495_v6 = vpop.f32.mrb[37].mxu0  ;;  %v2600_v51 = vadd.f32 %v12675_v26, %v9970_v1  ;;  %v2591_v8 = vpop.f32.mrb[169].mxu1 }
 0x59d   :  { %v4496_v9 = vadd.f32 %v4495_v6, %v12829_v12  ;;  %v10291_v10 = vpop.f32.mrb[38].mxu0  ;;  %10905 = vmatprep.subr.bf16.mxu1 %v10904_v54  ;;  %v2592_v11 = vadd.f32 %v12675_v26, %v2591_v8  ;;  %v9971_v13 = vpop.f32.mrb[170].mxu1  ;;  %v983_v8 = vld [vmem:[%s15495_s3 + $0x820] sm:$0xff] }
 0x59e   :  { %v4507_v15 = vadd.f32 %v10291_v10, %v12829_v12  ;;  %v4498_v16 = vpop.f32.mrb[39].mxu0  ;;  %10907 = vmatpush3.bf16.msra.mxu1 %v12894_v27  ;;  %v3852_v2 = vmax.f32 %v2600_v51, 0.0  ;;  %v2603_v17 = vadd.f32 %v12675_v26, %v9971_v13  ;;  %v2594_v20 = vpop.f32.mrb[171].mxu1  ;;  %v6104_v18 = vmax.f32 %v4504_v5, 0.0  ;;  %v981_v51 = vld [vmem:[%s15495_s3 + $0x810] sm:$0xff] }
 0x59f   :  { %v4499_v21 = vadd.f32 %v4498_v16, %v12829_v12  ;;  %10909 = vmatprep.subr.bf16.mxu1 %v10908_v42  ;;  %v3850_v22 = vmax.f32 %v2592_v11, 0.0  ;;  %v2595_v23 = vadd.f32 %v12675_v26, %v2594_v20  ;;  %v6102_v29 = vmax.f32 %v4496_v9, 0.0  ;;  %v984_v9 = vld [vmem:[%s15495_s3 + $0x828] sm:$0xff] }
 0x5a0   :  { %v6105_v24 = vmax.f32 %v4507_v15, 0.0  ;;  %10397 = vmatmul.mubr.bf16.gmra.mrb[144].mxu0 %v12972_v19  ;;  %10077 = vmatmul.mubr.msk.bf16.gmra.mrb[20].mxu1 %vm1362_vm4, %v1268_v7  ;;  %v3853_v28 = vmax.f32 %v2603_v17, 0.0 }
 0x5a1   :  { %v6103_v30 = vmax.f32 %v4499_v21, 0.0  ;;  %10400 = vmatprep.mubr.bf16.mxu0 %v4198_v4  ;;  %v3851_v27 = vmax.f32 %v2595_v23, 0.0  ;;  %10080 = vmatprep.mubr.msk.bf16.mxu1 %vm1362_vm4, %v1269_v14 }
 0x5a2   :  { %10911 = vmatpush3.bf16.msra.mxu1 %v12886_v41  ;;  %v10916_v19 = vpack.c.bf16 %v6105_v24, %v6104_v18  ;;  %v13026_v37 = vpack.c.bf16 %v3853_v28, %v3852_v2  ;;  %v1273_v28 = vpack.c.bf16 %v984_v9, %v983_v8 }
 0x5a3   :  { %v10294_v38 = vpop.f32.mrb[40].mxu0  ;;  %v10912_v25 = vpack.c.bf16 %v6103_v30, %v6102_v29  ;;  %v9974_v40 = vpop.f32.mrb[172].mxu1  ;;  %v4200_v44 = vpack.c.bf16 %v3851_v27, %v3850_v22 }
 0x5a4   :  { %v4520_v45 = vadd.f32 %v10294_v38, %v12829_v12  ;;  %v4511_v46 = vpop.f32.mrb[41].mxu0  ;;  %v2616_v41 = vadd.f32 %v12675_v26, %v9974_v40  ;;  %v2607_v48 = vpop.f32.mrb[173].mxu1 }
 0x5a5   :  { %v4512_v49 = vadd.f32 %v4511_v46, %v12829_v12  ;;  %v10295_v50 = vpop.f32.mrb[42].mxu0  ;;  %10913 = vmatprep.subr.bf16.mxu1 %v10912_v25  ;;  %v2608_v52 = vadd.f32 %v12675_v26, %v2607_v48  ;;  %v9975_v53 = vpop.f32.mrb[174].mxu1  ;;  %v985_v46 = vld [vmem:[%s15495_s3 + $0x830] sm:$0xff]  ;;  %v988_v48 = vld [vmem:[%s15495_s3 + $0x848] sm:$0xff] }
 0x5a6   :  { %v4523_v55 = vadd.f32 %v10295_v50, %v12829_v12  ;;  %v4514_v57 = vpop.f32.mrb[43].mxu0  ;;  %10915 = vmatpush3.bf16.msra.mxu1 %v12920_v3  ;;  %v3856_v58 = vmax.f32 %v2616_v41, 0.0  ;;  %v2619_v42 = vadd.f32 %v12675_v26, %v9975_v53  ;;  %v2610_v59 = vpop.f32.mrb[175].mxu1  ;;  %v6108_v1 = vmax.f32 %v4520_v45, 0.0 }
 0x5a7   :  { %v4515_v61 = vadd.f32 %v4514_v57, %v12829_v12  ;;  %10917 = vmatprep.subr.bf16.mxu1 %v10916_v19  ;;  %v3854_v63 = vmax.f32 %v2608_v52, 0.0  ;;  %v2611_v54 = vadd.f32 %v12675_v26, %v2610_v59  ;;  %v6106_v6 = vmax.f32 %v4512_v49, 0.0  ;;  %v982_v26 = vld [vmem:[%s15495_s3 + $0x818] sm:$0xff] }
 0x5a8   :  { %v6109_v4 = vmax.f32 %v4523_v55, 0.0  ;;  %10401 = vmatmul.mubr.bf16.gmra.mrb[148].mxu0 %v12999_v62  ;;  %10081 = vmatmul.mubr.msk.bf16.gmra.mrb[24].mxu1 %vm1362_vm4, %v1270_v47  ;;  %v3857_v5 = vmax.f32 %v2619_v42, 0.0  ;;  %v1272_v17 = vpack.c.bf16 %v982_v26, %v981_v51  ;;  %v986_v47 = vld [vmem:[%s15495_s3 + $0x838] sm:$0xff] }
 0x5a9   :  { %v6107_v7 = vmax.f32 %v4515_v61, 0.0  ;;  %10404 = vmatprep.mubr.bf16.mxu0 %v4200_v44  ;;  %v3855_v3 = vmax.f32 %v2611_v54, 0.0  ;;  %10084 = vmatprep.mubr.msk.bf16.mxu1 %vm1362_vm4, %v1271_v56 }
 0x5aa   :  { %10919 = vmatpush3.bf16.msra.mxu1 %v12912_v0  ;;  %v10924_v62 = vpack.c.bf16 %v6109_v4, %v6108_v1  ;;  %v13053_v10 = vpack.c.bf16 %v3857_v5, %v3856_v58  ;;  %v13059_v0 = vld [vmem:[%s15494_s7 + $0x3] ss:$0 sm:$0xff]  ;;  %v1274_v58 = vpack.c.bf16 %v986_v47, %v985_v46 }
 0x5ab   :  { %v10298_v11 = vpop.f32.mrb[44].mxu0  ;;  %v10920_v13 = vpack.c.bf16 %v6107_v7, %v6106_v6  ;;  %v9978_v14 = vpop.f32.mrb[176].mxu1  ;;  %v4202_v15 = vpack.c.bf16 %v3855_v3, %v3854_v63 }
 0x5ac   :  { %v4536_v16 = vadd.f32 %v10298_v11, %v12829_v12  ;;  %v4527_v2 = vpop.f32.mrb[45].mxu0  ;;  %v2632_v20 = vadd.f32 %v13059_v0, %v9978_v14  ;;  %v2623_v21 = vpop.f32.mrb[177].mxu1 }
 0x5ad   :  { %v4528_v22 = vadd.f32 %v4527_v2, %v12829_v12  ;;  %v10299_v23 = vpop.f32.mrb[46].mxu0  ;;  %10921 = vmatprep.subr.bf16.mxu1 %v10920_v13  ;;  %v2624_v18 = vadd.f32 %v13059_v0, %v2623_v21  ;;  %v9979_v24 = vpop.f32.mrb[178].mxu1  ;;  %v990_v2 = vld [vmem:[%s15495_s3 + $0x858] sm:$0xff] }
 0x5ae   :  { %v4539_v29 = vadd.f32 %v10299_v23, %v12829_v12  ;;  %v4530_v30 = vpop.f32.mrb[47].mxu0  ;;  %10923 = vmatpush3.bf16.msra.mxu1 %v12948_v43  ;;  %v3860_v27 = vmax.f32 %v2632_v20, 0.0  ;;  %v2635_v32 = vadd.f32 %v13059_v0, %v9979_v24  ;;  %v2626_v31 = vpop.f32.mrb[179].mxu1  ;;  %v6112_v38 = vmax.f32 %v4536_v16, 0.0  ;;  %v989_v16 = vld [vmem:[%s15495_s3 + $0x850] sm:$0xff]  ;;  %v992_v20 = vld [vmem:[%s15495_s3 + $0x868] sm:$0xff] }
 0x5af   :  { %v4531_v19 = vadd.f32 %v4530_v30, %v12829_v12  ;;  %10925 = vmatprep.subr.bf16.mxu1 %v10924_v62  ;;  %v3858_v33 = vmax.f32 %v2624_v18, 0.0  ;;  %v2627_v34 = vadd.f32 %v13059_v0, %v2626_v31  ;;  %v6110_v44 = vmax.f32 %v4528_v22, 0.0 }
 0x5b0   :  { %v6113_v25 = vmax.f32 %v4539_v29, 0.0  ;;  %10405 = vmatmul.mubr.bf16.gmra.mrb[152].mxu0 %v13026_v37  ;;  %10085 = vmatmul.mubr.msk.bf16.gmra.mrb[28].mxu1 %vm1362_vm4, %v1272_v17  ;;  %v3861_v40 = vmax.f32 %v2635_v32, 0.0  ;;  %v987_v37 = vld [vmem:[%s15495_s3 + $0x840] sm:$0xff]  ;;  %v1276_v30 = vpack.c.bf16 %v990_v2, %v989_v16 }
 0x5b1   :  { %v6111_v45 = vmax.f32 %v4531_v19, 0.0  ;;  %10408 = vmatprep.mubr.bf16.mxu0 %v4202_v15  ;;  %v3859_v43 = vmax.f32 %v2627_v34, 0.0  ;;  %10088 = vmatprep.mubr.msk.bf16.mxu1 %vm1362_vm4, %v1273_v28  ;;  %v1275_v1 = vpack.c.bf16 %v988_v48, %v987_v37 }
 0x5b2   :  { %v13078_v41 = vpack.c.bf16 %v6113_v25, %v6112_v38  ;;  %10927 = vmatpush3.bf16.msra.mxu1 %v12938_v39  ;;  %v4205_v49 = vpack.c.bf16 %v3861_v40, %v3860_v27 }
 0x5b3   :  { %v13087_v50 = vpack.c.bf16 %v6111_v45, %v6110_v44  ;;  %v10302_v52 = vpop.f32.mrb[48].mxu0  ;;  %v9982_v53 = vpop.f32.mrb[180].mxu1  ;;  %v4204_v56 = vpack.c.bf16 %v3859_v43, %v3858_v33 }
 0x5b4   :  { %v4552_v55 = vadd.f32 %v10302_v52, %v12829_v12  ;;  %v4543_v57 = vpop.f32.mrb[49].mxu0  ;;  %v2648_v39 = vadd.f32 %v13059_v0, %v9982_v53  ;;  %v2639_v42 = vpop.f32.mrb[181].mxu1 }
 0x5b5   :  { %v4544_v59 = vadd.f32 %v4543_v57, %v12829_v12  ;;  %v10303_v61 = vpop.f32.mrb[50].mxu0  ;;  %v2640_v63 = vadd.f32 %v13059_v0, %v2639_v42  ;;  %v9983_v54 = vpop.f32.mrb[182].mxu1 }
 0x5b6   :  { %v4555_v4 = vadd.f32 %v10303_v61, %v12829_v12  ;;  %v4546_v5 = vpop.f32.mrb[51].mxu0  ;;  %v3864_v6 = vmax.f32 %v2648_v39, 0.0  ;;  %v2651_v7 = vadd.f32 %v13059_v0, %v9983_v54  ;;  %v2642_v3 = vpop.f32.mrb[183].mxu1  ;;  %v6116_v8 = vmax.f32 %v4552_v55, 0.0  ;;  %v994_v39 = vld [vmem:[%s15495_s3 + $0x878] sm:$0xff] }
 0x5b7   :  { %v4547_v51 = vadd.f32 %v4546_v5, %v12829_v12  ;;  %v3862_v26 = vmax.f32 %v2640_v63, 0.0  ;;  %v2643_v62 = vadd.f32 %v13059_v0, %v2642_v3  ;;  %v6114_v13 = vmax.f32 %v4544_v59, 0.0  ;;  %v996_v59 = vld [vmem:[%s15495_s3 + $0x888] sm:$0xff] }
 0x5b8   :  { %v6117_v9 = vmax.f32 %v4555_v4, 0.0  ;;  %10409 = vmatmul.mubr.bf16.gmra.mrb[156].mxu0 %v13053_v10  ;;  %10089 = vmatmul.mubr.msk.bf16.gmra.mrb[32].mxu1 %vm1362_vm4, %v1274_v58  ;;  %v3865_v11 = vmax.f32 %v2651_v7, 0.0  ;;  %v991_v10 = vld [vmem:[%s15495_s3 + $0x860] sm:$0xff]  ;;  %v993_v58 = vld [vmem:[%s15495_s3 + $0x870] sm:$0xff] }
 0x5b9   :  { %v6115_v14 = vmax.f32 %v4547_v51, 0.0  ;;  %10412 = vmatprep.mubr.bf16.mxu0 %v4204_v56  ;;  %v3863_v15 = vmax.f32 %v2643_v62, 0.0  ;;  %10092 = vmatprep.mubr.msk.bf16.mxu1 %vm1362_vm4, %v1275_v1  ;;  %v1277_v38 = vpack.c.bf16 %v992_v20, %v991_v10  ;;  %v1278_v7 = vpack.c.bf16 %v994_v39, %v993_v58 }
 0x5ba   :  { %v13106_v17 = vpack.c.bf16 %v6117_v9, %v6116_v8  ;;  %v4207_v21 = vpack.c.bf16 %v3865_v11, %v3864_v6 }
 0x5bb   :  { %v13114_v22 = vpack.c.bf16 %v6115_v14, %v6114_v13  ;;  %v10306_v23 = vpop.f32.mrb[52].mxu0  ;;  %v9986_v18 = vpop.f32.mrb[184].mxu1  ;;  %v4206_v24 = vpack.c.bf16 %v3863_v15, %v3862_v26 }
 0x5bc   :  { %v4568_v28 = vadd.f32 %v10306_v23, %v12829_v12  ;;  %v4559_v29 = vpop.f32.mrb[53].mxu0  ;;  %v2664_v27 = vadd.f32 %v13059_v0, %v9986_v18  ;;  %v2655_v32 = vpop.f32.mrb[185].mxu1 }
 0x5bd   :  { %v4560_v31 = vadd.f32 %v4559_v29, %v12829_v12  ;;  %v10307_v19 = vpop.f32.mrb[54].mxu0  ;;  %v2656_v33 = vadd.f32 %v13059_v0, %v2655_v32  ;;  %v9987_v34 = vpop.f32.mrb[186].mxu1  ;;  %v997_v32 = vld [vmem:[%s15495_s3 + $0x890] sm:$0xff] }
 0x5be   :  { %v4571_v25 = vadd.f32 %v10307_v19, %v12829_v12  ;;  %v4562_v40 = vpop.f32.mrb[55].mxu0  ;;  %v3868_v44 = vmax.f32 %v2664_v27, 0.0  ;;  %v2667_v45 = vadd.f32 %v13059_v0, %v9987_v34  ;;  %v2658_v43 = vpop.f32.mrb[187].mxu1  ;;  %v6120_v48 = vmax.f32 %v4568_v28, 0.0 }
 0x5bf   :  { %v4563_v46 = vadd.f32 %v4562_v40, %v12829_v12  ;;  %v3866_v47 = vmax.f32 %v2656_v33, 0.0  ;;  %v2659_v37 = vadd.f32 %v13059_v0, %v2658_v43  ;;  %v6118_v56 = vmax.f32 %v4560_v31, 0.0  ;;  %v998_v31 = vld [vmem:[%s15495_s3 + $0x898] sm:$0xff]  ;;  %v1000_v33 = vld [vmem:[%s15495_s3 + $0x8a8] sm:$0xff] }
 0x5c0   :  { %v6121_v52 = vmax.f32 %v4571_v25, 0.0  ;;  %10413 = vmatmul.mubr.bf16.gmra.mrb[160].mxu0 %v4205_v49  ;;  %10093 = vmatmul.mubr.msk.bf16.gmra.mrb[36].mxu1 %vm1362_vm4, %v1276_v30  ;;  %v3869_v53 = vmax.f32 %v2667_v45, 0.0  ;;  %v995_v49 = vld [vmem:[%s15495_s3 + $0x880] sm:$0xff] }
 0x5c1   :  { %v6119_v55 = vmax.f32 %v4563_v46, 0.0  ;;  %10416 = vmatprep.mubr.bf16.mxu0 %v4206_v24  ;;  %v3867_v57 = vmax.f32 %v2659_v37, 0.0  ;;  %10096 = vmatprep.mubr.msk.bf16.mxu1 %vm1362_vm4, %v1277_v38  ;;  %v1279_v11 = vpack.c.bf16 %v996_v59, %v995_v49  ;;  %v1280_v46 = vpack.c.bf16 %v998_v31, %v997_v32 }
 0x5c2   :  { %v13132_v42 = vpack.c.bf16 %v6121_v52, %v6120_v48  ;;  %v4209_v61 = vpack.c.bf16 %v3869_v53, %v3868_v44 }
 0x5c3   :  { %v13140_v63 = vpack.c.bf16 %v6119_v55, %v6118_v56  ;;  %v10310_v54 = vpop.f32.mrb[56].mxu0  ;;  %v9990_v1 = vpop.f32.mrb[188].mxu1  ;;  %v4208_v4 = vpack.c.bf16 %v3867_v57, %v3866_v47 }
 0x5c4   :  { %v4584_v5 = vadd.f32 %v10310_v54, %v12829_v12  ;;  %v4575_v6 = vpop.f32.mrb[57].mxu0  ;;  %v2680_v3 = vadd.f32 %v13059_v0, %v9990_v1  ;;  %v2671_v51 = vpop.f32.mrb[189].mxu1 }
 0x5c5   :  { %v4576_v26 = vadd.f32 %v4575_v6, %v12829_v12  ;;  %v10311_v62 = vpop.f32.mrb[58].mxu0  ;;  %v2672_v8 = vadd.f32 %v13059_v0, %v2671_v51  ;;  %v9991_v9 = vpop.f32.mrb[190].mxu1 }
 0x5c6   :  { %v4587_v13 = vadd.f32 %v10311_v62, %v12829_v12  ;;  %v4578_v14 = vpop.f32.mrb[59].mxu0  ;;  %v3872_v15 = vmax.f32 %v2680_v3, 0.0  ;;  %v2683_v16 = vadd.f32 %v13059_v0, %v9991_v9  ;;  %v2674_v2 = vpop.f32.mrb[191].mxu1  ;;  %v6124_v18 = vmax.f32 %v4584_v5, 0.0  ;;  %v1001_v62 = vld [vmem:[%s15495_s3 + $0x8b0] sm:$0xff] }
 0x5c7   :  { %v4579_v10 = vadd.f32 %v4578_v14, %v12829_v12  ;;  %v3870_v20 = vmax.f32 %v2672_v8, 0.0  ;;  %v2675_v23 = vadd.f32 %v13059_v0, %v2674_v2  ;;  %v6122_v29 = vmax.f32 %v4576_v26, 0.0  ;;  %v1004_v8 = vld [vmem:[%s15495_s3 + $0x8c8] sm:$0xff]  ;;  %v13199_v2 = vld [vmem:[%s15494_s7 + $0x4] ss:$0 sm:$0xff] }
 0x5c8   :  { %v6125_v24 = vmax.f32 %v4587_v13, 0.0  ;;  %10417 = vmatmul.mubr.bf16.gmra.mrb[164].mxu0 %v4207_v21  ;;  %10097 = vmatmul.mubr.msk.bf16.gmra.mrb[40].mxu1 %vm1362_vm4, %v1278_v7  ;;  %v3873_v28 = vmax.f32 %v2683_v16, 0.0  ;;  %v999_v21 = vld [vmem:[%s15495_s3 + $0x8a0] sm:$0xff] }
 0x5c9   :  { %v6123_v30 = vmax.f32 %v4579_v10, 0.0  ;;  %10420 = vmatprep.mubr.bf16.mxu0 %v4208_v4  ;;  %v3871_v27 = vmax.f32 %v2675_v23, 0.0  ;;  %10100 = vmatprep.mubr.msk.bf16.mxu1 %vm1362_vm4, %v1279_v11  ;;  %v1281_v55 = vpack.c.bf16 %v1000_v33, %v999_v21 }
 0x5ca   :  { %v13158_v19 = vpack.c.bf16 %v6125_v24, %v6124_v18  ;;  %v13166_v34 = vpack.c.bf16 %v3873_v28, %v3872_v15 }
 0x5cb   :  { %v13168_v38 = vpack.c.bf16 %v6123_v30, %v6122_v29  ;;  %v10314_v25 = vpop.f32.mrb[60].mxu0  ;;  %v9994_v40 = vpop.f32.mrb[192].mxu1  ;;  %v4210_v44 = vpack.c.bf16 %v3871_v27, %v3870_v20 }
 0x5cc   :  { %v4600_v45 = vadd.f32 %v10314_v25, %v12829_v12  ;;  %v4591_v43 = vpop.f32.mrb[61].mxu0  ;;  %v2696_v47 = vadd.f32 %v13059_v0, %v9994_v40  ;;  %v2687_v37 = vpop.f32.mrb[193].mxu1 }
 0x5cd   :  { %v4592_v48 = vadd.f32 %v4591_v43, %v12829_v12  ;;  %v10315_v52 = vpop.f32.mrb[62].mxu0  ;;  %v2688_v53 = vadd.f32 %v13059_v0, %v2687_v37  ;;  %v9995_v56 = vpop.f32.mrb[194].mxu1 }
 0x5ce   :  { %v4603_v57 = vadd.f32 %v10315_v52, %v12829_v12  ;;  %v4594_v58 = vpop.f32.mrb[63].mxu0  ;;  %v3876_v39 = vmax.f32 %v2696_v47, 0.0  ;;  %v2699_v49 = vadd.f32 %v13059_v0, %v9995_v56  ;;  %v2690_v59 = vpop.f32.mrb[195].mxu1  ;;  %v6128_v5 = vmax.f32 %v4600_v45, 0.0  ;;  %v1005_v56 = vld [vmem:[%s15495_s3 + $0x8d0] sm:$0xff] }
 0x5cf   :  { %v4595_v54 = vadd.f32 %v4594_v58, %v12829_v12  ;;  %v3874_v1 = vmax.f32 %v2688_v53, 0.0  ;;  %v2691_v4 = vadd.f32 %v13059_v0, %v2690_v59  ;;  %v6126_v3 = vmax.f32 %v4592_v48, 0.0  ;;  %v1002_v12 = vld [vmem:[%s15495_s3 + $0x8b8] sm:$0xff] }
 0x5d0   :  { %v6129_v6 = vmax.f32 %v4603_v57, 0.0  ;;  %10421 = vmatmul.mubr.bf16.gmra.mrb[168].mxu0 %v4209_v61  ;;  %10101 = vmatmul.mubr.msk.bf16.gmra.mrb[44].mxu1 %vm1362_vm4, %v1280_v46  ;;  %v3877_v7 = vmax.f32 %v2699_v49, 0.0  ;;  %v1003_v61 = vld [vmem:[%s15495_s3 + $0x8c0] sm:$0xff]  ;;  %v1282_v23 = vpack.c.bf16 %v1002_v12, %v1001_v62  ;;  %v1008_v57 = vld [vmem:[%s15495_s3 + $0x8e8] sm:$0xff] }
 0x5d1   :  { %v6127_v51 = vmax.f32 %v4595_v54, 0.0  ;;  %10424 = vmatprep.mubr.bf16.mxu0 %v4210_v44  ;;  %v3875_v26 = vmax.f32 %v2691_v4, 0.0  ;;  %10104 = vmatprep.mubr.msk.bf16.mxu1 %vm1362_vm4, %v1281_v55  ;;  %v1283_v32 = vpack.c.bf16 %v1004_v8, %v1003_v61  ;;  %v1006_v55 = vld [vmem:[%s15495_s3 + $0x8d8] sm:$0xff] }
 0x5d2   :  { %v13192_v9 = vpack.c.bf16 %v3877_v7, %v3876_v39  ;;  %v13194_v11 = vpack.c.bf16 %v6129_v6, %v6128_v5  ;;  %v1284_v6 = vpack.c.bf16 %v1006_v55, %v1005_v56 }
 0x5d3   :  { %v10318_v13 = vpop.f32.mrb[64].mxu0  ;;  %v10928_v14 = vpack.c.bf16 %v6127_v51, %v6126_v3  ;;  %v9998_v15 = vpop.f32.mrb[196].mxu1  ;;  %v4212_v16 = vpack.c.bf16 %v3875_v26, %v3874_v1 }
 0x5d4   :  { %v4616_v10 = vadd.f32 %v13199_v2, %v10318_v13  ;;  %v4607_v20 = vpop.f32.mrb[65].mxu0  ;;  %v2712_v18 = vadd.f32 %v13059_v0, %v9998_v15  ;;  %v2703_v24 = vpop.f32.mrb[197].mxu1 }
 0x5d5   :  { %v4608_v28 = vadd.f32 %v13199_v2, %v4607_v20  ;;  %v10319_v29 = vpop.f32.mrb[66].mxu0  ;;  %10929 = vmatprep.subr.bf16.mxu1 %v10928_v14  ;;  %v2704_v30 = vadd.f32 %v13059_v0, %v2703_v24  ;;  %v9999_v27 = vpop.f32.mrb[198].mxu1 }
 0x5d6   :  { %v4619_v31 = vadd.f32 %v13199_v2, %v10319_v29  ;;  %v4610_v21 = vpop.f32.mrb[67].mxu0  ;;  %v3880_v33 = vmax.f32 %v2712_v18, 0.0  ;;  %v2715_v25 = vadd.f32 %v13059_v0, %v9999_v27  ;;  %v2706_v40 = vpop.f32.mrb[199].mxu1  ;;  %v6132_v46 = vmax.f32 %v4616_v10, 0.0 }
 0x5d7   :  { %v4611_v44 = vadd.f32 %v13199_v2, %v4610_v21  ;;  %v3878_v45 = vmax.f32 %v2704_v30, 0.0  ;;  %v2707_v43 = vadd.f32 %v13059_v0, %v2706_v40  ;;  %v6130_v48 = vmax.f32 %v4608_v28, 0.0  ;;  %v1012_v21 = vld [vmem:[%s15495_s3 + $0x908] sm:$0xff] }
 0x5d8   :  { %v6133_v47 = vmax.f32 %v4619_v31, 0.0  ;;  %10425 = vmatmul.mubr.bf16.gmra.mrb[172].mxu0 %v13166_v34  ;;  %10105 = vmatmul.mubr.msk.bf16.gmra.mrb[48].mxu1 %vm1362_vm4, %v1282_v23  ;;  %v3881_v37 = vmax.f32 %v2715_v25, 0.0  ;;  %v1007_v34 = vld [vmem:[%s15495_s3 + $0x8e0] sm:$0xff]  ;;  %v1010_v31 = vld [vmem:[%s15495_s3 + $0x8f8] sm:$0xff] }
 0x5d9   :  { %v6131_v52 = vmax.f32 %v4611_v44, 0.0  ;;  %10428 = vmatprep.mubr.bf16.mxu0 %v4212_v16  ;;  %v3879_v53 = vmax.f32 %v2707_v43, 0.0  ;;  %10108 = vmatprep.mubr.msk.bf16.mxu1 %vm1362_vm4, %v1283_v32  ;;  %v1285_v61 = vpack.c.bf16 %v1008_v57, %v1007_v34  ;;  %v1009_v32 = vld [vmem:[%s15495_s3 + $0x8f0] sm:$0xff] }
 0x5da   :  { %v13224_v58 = vpack.c.bf16 %v3881_v37, %v3880_v33  ;;  %v13226_v39 = vpack.c.bf16 %v6133_v47, %v6132_v46  ;;  %v1286_v37 = vpack.c.bf16 %v1010_v31, %v1009_v32 }
 0x5db   :  { %v10322_v49 = vpop.f32.mrb[68].mxu0  ;;  %v10002_v59 = vpop.f32.mrb[200].mxu1  ;;  %v4214_v54 = vpack.c.bf16 %v3879_v53, %v3878_v45  ;;  %v13228_v1 = vpack.c.bf16 %v6131_v52, %v6130_v48 }
 0x5dc   :  { %v4632_v4 = vadd.f32 %v13199_v2, %v10322_v49  ;;  %v4623_v5 = vpop.f32.mrb[69].mxu0  ;;  %v2728_v7 = vadd.f32 %v13059_v0, %v10002_v59  ;;  %v2719_v3 = vpop.f32.mrb[201].mxu1 }
 0x5dd   :  { %v4624_v51 = vadd.f32 %v13199_v2, %v4623_v5  ;;  %v10323_v26 = vpop.f32.mrb[70].mxu0  ;;  %v2720_v62 = vadd.f32 %v13059_v0, %v2719_v3  ;;  %v10003_v12 = vpop.f32.mrb[202].mxu1 }
 0x5de   :  { %v4635_v8 = vadd.f32 %v13199_v2, %v10323_v26  ;;  %v4626_v13 = vpop.f32.mrb[71].mxu0  ;;  %v3884_v14 = vmax.f32 %v2728_v7, 0.0  ;;  %v2731_v15 = vadd.f32 %v13059_v0, %v10003_v12  ;;  %v2722_v16 = vpop.f32.mrb[203].mxu1  ;;  %v6136_v18 = vmax.f32 %v4632_v4, 0.0 }
 0x5df   :  { %v4627_v10 = vadd.f32 %v13199_v2, %v4626_v13  ;;  %v3882_v20 = vmax.f32 %v2720_v62, 0.0  ;;  %v2723_v23 = vadd.f32 %v13059_v0, %v2722_v16  ;;  %v6134_v29 = vmax.f32 %v4624_v51, 0.0  ;;  %v1013_v13 = vld [vmem:[%s15495_s3 + $0x910] sm:$0xff] }
 0x5e0   :  { %v6137_v24 = vmax.f32 %v4635_v8, 0.0  ;;  %10429 = vmatmul.mubr.bf16.gmra.mrb[176].mxu0 %v13192_v9  ;;  %10109 = vmatmul.mubr.msk.bf16.gmra.mrb[52].mxu1 %vm1362_vm4, %v1284_v6  ;;  %v3885_v28 = vmax.f32 %v2731_v15, 0.0  ;;  %v1011_v9 = vld [vmem:[%s15495_s3 + $0x900] sm:$0xff]  ;;  %v1016_v15 = vld [vmem:[%s15495_s3 + $0x928] sm:$0xff] }
 0x5e1   :  { %v6135_v30 = vmax.f32 %v4627_v10, 0.0  ;;  %10432 = vmatprep.mubr.bf16.mxu0 %v4214_v54  ;;  %v3883_v27 = vmax.f32 %v2723_v23, 0.0  ;;  %10112 = vmatprep.mubr.msk.bf16.mxu1 %vm1362_vm4, %v1285_v61  ;;  %v1287_v57 = vpack.c.bf16 %v1012_v21, %v1011_v9 }
 0x5e2   :  { %v13253_v33 = vpack.c.bf16 %v3885_v28, %v3884_v14  ;;  %v13255_v25 = vpack.c.bf16 %v6137_v24, %v6136_v18  ;;  %v1014_v14 = vld [vmem:[%s15495_s3 + $0x918] sm:$0xff] }
 0x5e3   :  { %v10326_v40 = vpop.f32.mrb[72].mxu0  ;;  %v10006_v44 = vpop.f32.mrb[204].mxu1  ;;  %v4216_v45 = vpack.c.bf16 %v3883_v27, %v3882_v20  ;;  %v13257_v43 = vpack.c.bf16 %v6135_v30, %v6134_v29  ;;  %v1288_v30 = vpack.c.bf16 %v1014_v14, %v1013_v13 }
 0x5e4   :  { %v4648_v46 = vadd.f32 %v13199_v2, %v10326_v40  ;;  %v4639_v47 = vpop.f32.mrb[73].mxu0  ;;  %v2744_v48 = vadd.f32 %v13059_v0, %v10006_v44  ;;  %v2735_v52 = vpop.f32.mrb[205].mxu1 }
 0x5e5   :  { %v4640_v53 = vadd.f32 %v13199_v2, %v4639_v47  ;;  %v10327_v56 = vpop.f32.mrb[74].mxu0  ;;  %v2736_v55 = vadd.f32 %v13059_v0, %v2735_v52  ;;  %v10007_v34 = vpop.f32.mrb[206].mxu1 }
 0x5e6   :  { %v4651_v49 = vadd.f32 %v13199_v2, %v10327_v56  ;;  %v4642_v59 = vpop.f32.mrb[75].mxu0  ;;  %v3888_v54 = vmax.f32 %v2744_v48, 0.0  ;;  %v2747_v4 = vadd.f32 %v13059_v0, %v10007_v34  ;;  %v2738_v5 = vpop.f32.mrb[207].mxu1  ;;  %v6140_v51 = vmax.f32 %v4648_v46, 0.0 }
 0x5e7   :  { %v4643_v6 = vadd.f32 %v13199_v2, %v4642_v59  ;;  %v3886_v7 = vmax.f32 %v2736_v55, 0.0  ;;  %v2739_v3 = vadd.f32 %v13059_v0, %v2738_v5  ;;  %v6138_v12 = vmax.f32 %v4640_v53, 0.0  ;;  %v1018_v5 = vld [vmem:[%s15495_s3 + $0x938] sm:$0xff] }
 0x5e8   :  { %v6141_v26 = vmax.f32 %v4651_v49, 0.0  ;;  %10433 = vmatmul.mubr.bf16.gmra.mrb[180].mxu0 %v13224_v58  ;;  %10113 = vmatmul.mubr.msk.bf16.gmra.mrb[56].mxu1 %vm1362_vm4, %v1286_v37  ;;  %v3889_v62 = vmax.f32 %v2747_v4, 0.0  ;;  %v1015_v58 = vld [vmem:[%s15495_s3 + $0x920] sm:$0xff]  ;;  %v1017_v4 = vld [vmem:[%s15495_s3 + $0x930] sm:$0xff] }
 0x5e9   :  { %v6139_v61 = vmax.f32 %v4643_v6, 0.0  ;;  %10436 = vmatprep.mubr.bf16.mxu0 %v4216_v45  ;;  %v3887_v8 = vmax.f32 %v2739_v3, 0.0  ;;  %10116 = vmatprep.mubr.msk.bf16.mxu1 %vm1362_vm4, %v1287_v57  ;;  %v1289_v44 = vpack.c.bf16 %v1016_v15, %v1015_v58  ;;  %v1290_v13 = vpack.c.bf16 %v1018_v5, %v1017_v4 }
 0x5ea   :  { %v13282_v16 = vpack.c.bf16 %v3889_v62, %v3888_v54  ;;  %v13284_v10 = vpack.c.bf16 %v6141_v26, %v6140_v51 }
 0x5eb   :  { %v10330_v20 = vpop.f32.mrb[76].mxu0  ;;  %v10010_v23 = vpop.f32.mrb[208].mxu1  ;;  %v4218_v18 = vpack.c.bf16 %v3887_v8, %v3886_v7  ;;  %v13286_v24 = vpack.c.bf16 %v6139_v61, %v6138_v12  ;;  %v1020_v7 = vld [vmem:[%s15495_s3 + $0x948] sm:$0xff] }
 0x5ec   :  { %v4664_v28 = vadd.f32 %v13199_v2, %v10330_v20  ;;  %v4655_v29 = vpop.f32.mrb[77].mxu0  ;;  %v2760_v27 = vadd.f32 %v13059_v0, %v10010_v23  ;;  %v2751_v32 = vpop.f32.mrb[209].mxu1 }
 0x5ed   :  { %v4656_v31 = vadd.f32 %v13199_v2, %v4655_v29  ;;  %v10331_v9 = vpop.f32.mrb[78].mxu0  ;;  %v2752_v21 = vadd.f32 %v13059_v0, %v2751_v32  ;;  %v10011_v40 = vpop.f32.mrb[210].mxu1 }
 0x5ee   :  { %v4667_v45 = vadd.f32 %v13199_v2, %v10331_v9  ;;  %v4658_v46 = vpop.f32.mrb[79].mxu0  ;;  %v3892_v47 = vmax.f32 %v2760_v27, 0.0  ;;  %v2763_v37 = vadd.f32 %v13059_v0, %v10011_v40  ;;  %v2754_v48 = vpop.f32.mrb[211].mxu1  ;;  %v6144_v55 = vmax.f32 %v4664_v28, 0.0 }
 0x5ef   :  { %v4659_v52 = vadd.f32 %v13199_v2, %v4658_v46  ;;  %v3890_v53 = vmax.f32 %v2752_v21, 0.0  ;;  %v2755_v56 = vadd.f32 %v13059_v0, %v2754_v48  ;;  %v6142_v49 = vmax.f32 %v4656_v31, 0.0 }
 0x5f0   :  { %v6145_v34 = vmax.f32 %v4667_v45, 0.0  ;;  %10437 = vmatmul.mubr.bf16.gmra.mrb[184].mxu0 %v13253_v33  ;;  %10117 = vmatmul.mubr.msk.bf16.gmra.mrb[60].mxu1 %vm1362_vm4, %v1288_v30  ;;  %v3893_v57 = vmax.f32 %v2763_v37, 0.0  ;;  %v1019_v33 = vld [vmem:[%s15495_s3 + $0x940] sm:$0xff] }
 0x5f1   :  { %v6143_v59 = vmax.f32 %v4659_v52, 0.0  ;;  %10440 = vmatprep.mubr.bf16.mxu0 %v4218_v18  ;;  %v3891_v54 = vmax.f32 %v2755_v56, 0.0  ;;  %10120 = vmatprep.mubr.msk.bf16.mxu1 %vm1362_vm4, %v1289_v44  ;;  %v1291_v28 = vpack.c.bf16 %v1020_v7, %v1019_v33  ;;  %v1021_v52 = vld [vmem:[%s15495_s3 + $0x950] sm:$0xff] }
 0x5f2   :  { %v13305_v6 = vpack.c.bf16 %v6145_v34, %v6144_v55  ;;  %v4221_v3 = vpack.c.bf16 %v3893_v57, %v3892_v47  ;;  %v1023_v55 = vld [vmem:[%s15495_s3 + $0x960] sm:$0xff]  ;;  %v1024_v34 = vld [vmem:[%s15495_s3 + $0x968] sm:$0xff] }
 0x5f3   :  { %v13313_v51 = vpack.c.bf16 %v6143_v59, %v6142_v49  ;;  %v10334_v26 = vpop.f32.mrb[80].mxu0  ;;  %v10014_v62 = vpop.f32.mrb[212].mxu1  ;;  %v4220_v12 = vpack.c.bf16 %v3891_v54, %v3890_v53  ;;  %v1022_v53 = vld [vmem:[%s15495_s3 + $0x958] sm:$0xff] }
 0x5f4   :  { %v4680_v61 = vadd.f32 %v13199_v2, %v10334_v26  ;;  %v4671_v8 = vpop.f32.mrb[81].mxu0  ;;  %v2776_v14 = vadd.f32 %v13059_v0, %v10014_v62  ;;  %v2767_v58 = vpop.f32.mrb[213].mxu1  ;;  %v1292_v33 = vpack.c.bf16 %v1022_v53, %v1021_v52 }
 0x5f5   :  { %v4672_v15 = vadd.f32 %v13199_v2, %v4671_v8  ;;  %v10335_v20 = vpop.f32.mrb[82].mxu0  ;;  %v2768_v23 = vadd.f32 %v13059_v0, %v2767_v58  ;;  %v10015_v18 = vpop.f32.mrb[214].mxu1 }
 0x5f6   :  { %v4683_v29 = vadd.f32 %v13199_v2, %v10335_v20  ;;  %v4674_v30 = vpop.f32.mrb[83].mxu0  ;;  %v3896_v27 = vmax.f32 %v2776_v14, 0.0  ;;  %v2779_v32 = vadd.f32 %v13059_v0, %v10015_v18  ;;  %v2770_v31 = vpop.f32.mrb[215].mxu1  ;;  %v6148_v44 = vmax.f32 %v4680_v61, 0.0 }
 0x5f7   :  { %v4675_v9 = vadd.f32 %v13199_v2, %v4674_v30  ;;  %v3894_v21 = vmax.f32 %v2768_v23, 0.0  ;;  %v2771_v40 = vadd.f32 %v13059_v0, %v2770_v31  ;;  %v6146_v47 = vmax.f32 %v4672_v15, 0.0 }
 0x5f8   :  { %v6149_v45 = vmax.f32 %v4683_v29, 0.0  ;;  %10441 = vmatmul.mubr.bf16.gmra.mrb[188].mxu0 %v13282_v16  ;;  %10121 = vmatmul.mubr.msk.bf16.gmra.mrb[64].mxu1 %vm1362_vm4, %v1290_v13  ;;  %v3897_v46 = vmax.f32 %v2779_v32, 0.0  ;;  %v1293_v13 = vpack.c.bf16 %v1024_v34, %v1023_v55 }
 0x5f9   :  { %v6147_v37 = vmax.f32 %v4675_v9, 0.0  ;;  %10444 = vmatprep.mubr.bf16.mxu0 %v4220_v12  ;;  %v3895_v48 = vmax.f32 %v2771_v40, 0.0  ;;  %10124 = vmatprep.mubr.msk.bf16.mxu1 %vm1362_vm4, %v1291_v28  ;;  %v1025_v40 = vld [vmem:[%s15495_s3 + $0x970] sm:$0xff] }
 0x5fa   :  { %v13332_v56 = vpack.c.bf16 %v6149_v45, %v6148_v44  ;;  %v13334_v16 = vpack.c.bf16 %v3897_v46, %v3896_v27  ;;  %v1026_v44 = vld [vmem:[%s15495_s3 + $0x978] sm:$0xff]  ;;  %v1027_v46 = vld [vmem:[%s15495_s3 + $0x980] sm:$0xff] }
 0x5fb   :  { %v13342_v57 = vpack.c.bf16 %v6147_v37, %v6146_v47  ;;  %v10338_v49 = vpop.f32.mrb[84].mxu0  ;;  %v4222_v59 = vpack.c.bf16 %v3895_v48, %v3894_v21  ;;  %v10018_v54 = vpop.f32.mrb[216].mxu1  ;;  %v1028_v47 = vld [vmem:[%s15495_s3 + $0x988] sm:$0xff] }
 0x5fc   :  { %v4696_v4 = vadd.f32 %v13199_v2, %v10338_v49  ;;  %v4687_v5 = vpop.f32.mrb[85].mxu0  ;;  %v2792_v7 = vadd.f32 %v13059_v0, %v10018_v54  ;;  %v2783_v26 = vpop.f32.mrb[217].mxu1  ;;  %v1294_v49 = vpack.c.bf16 %v1026_v44, %v1025_v40 }
 0x5fd   :  { %v4688_v62 = vadd.f32 %v13199_v2, %v4687_v5  ;;  %v10339_v12 = vpop.f32.mrb[86].mxu0  ;;  %v2784_v61 = vadd.f32 %v13059_v0, %v2783_v26  ;;  %v10019_v8 = vpop.f32.mrb[218].mxu1  ;;  %v1295_v26 = vpack.c.bf16 %v1028_v47, %v1027_v46 }
 0x5fe   :  { %v4699_v14 = vadd.f32 %v13199_v2, %v10339_v12  ;;  %v4690_v58 = vpop.f32.mrb[87].mxu0  ;;  %v3900_v15 = vmax.f32 %v2792_v7, 0.0  ;;  %v2795_v20 = vadd.f32 %v13059_v0, %v10019_v8  ;;  %v2786_v23 = vpop.f32.mrb[219].mxu1  ;;  %v6152_v30 = vmax.f32 %v4696_v4, 0.0 }
 0x5ff   :  { %v4691_v18 = vadd.f32 %v13199_v2, %v4690_v58  ;;  %v3898_v28 = vmax.f32 %v2784_v61, 0.0  ;;  %v2787_v29 = vadd.f32 %v13059_v0, %v2786_v23  ;;  %v6150_v31 = vmax.f32 %v4688_v62, 0.0 }
 0x600   :  { %v6153_v27 = vmax.f32 %v4699_v14, 0.0  ;;  %10445 = vmatmul.mubr.bf16.gmra.mrb[192].mxu0 %v4221_v3  ;;  %10125 = vmatmul.mubr.msk.bf16.gmra.mrb[68].mxu1 %vm1362_vm4, %v1292_v33  ;;  %v3901_v32 = vmax.f32 %v2795_v20, 0.0 }
 0x601   :  { %v6151_v9 = vmax.f32 %v4691_v18, 0.0  ;;  %10448 = vmatprep.mubr.bf16.mxu0 %v4222_v59  ;;  %v3899_v21 = vmax.f32 %v2787_v29, 0.0  ;;  %10128 = vmatprep.mubr.msk.bf16.mxu1 %vm1362_vm4, %v1293_v13 }
 0x602   :  { %v13360_v45 = vpack.c.bf16 %v6153_v27, %v6152_v30  ;;  %v13362_v3 = vpack.c.bf16 %v3901_v32, %v3900_v15  ;;  %v1029_v27 = vld [vmem:[%s15495_s3 + $0x990] sm:$0xff]  ;;  %v1030_v32 = vld [vmem:[%s15495_s3 + $0x998] sm:$0xff] }
 0x603   :  { %v13370_v37 = vpack.c.bf16 %v6151_v9, %v6150_v31  ;;  %v10342_v48 = vpop.f32.mrb[88].mxu0  ;;  %v4224_v52 = vpack.c.bf16 %v3899_v21, %v3898_v28  ;;  %v10022_v53 = vpop.f32.mrb[220].mxu1  ;;  %v1031_v9 = vld [vmem:[%s15495_s3 + $0x9a0] sm:$0xff]  ;;  %v1032_v21 = vld [vmem:[%s15495_s3 + $0x9a8] sm:$0xff] }
 0x604   :  { %v4712_v55 = vadd.f32 %v13199_v2, %v10342_v48  ;;  %v4703_v34 = vpop.f32.mrb[89].mxu0  ;;  %v2808_v59 = vadd.f32 %v13059_v0, %v10022_v53  ;;  %v2799_v54 = vpop.f32.mrb[221].mxu1  ;;  %v1296_v53 = vpack.c.bf16 %v1030_v32, %v1029_v27  ;;  %v1035_v27 = vld [vmem:[%s15495_s3 + $0x9c0] sm:$0xff]  ;;  %v1036_v32 = vld [vmem:[%s15495_s3 + $0x9c8] sm:$0xff] }
 0x605   :  { %v4704_v4 = vadd.f32 %v13199_v2, %v4703_v34  ;;  %v10343_v5 = vpop.f32.mrb[90].mxu0  ;;  %v2800_v33 = vadd.f32 %v13059_v0, %v2799_v54  ;;  %v10023_v7 = vpop.f32.mrb[222].mxu1 }
 0x606   :  { %v4715_v62 = vadd.f32 %v13199_v2, %v10343_v5  ;;  %v4706_v12 = vpop.f32.mrb[91].mxu0  ;;  %v3904_v61 = vmax.f32 %v2808_v59, 0.0  ;;  %v2811_v8 = vadd.f32 %v13059_v0, %v10023_v7  ;;  %v2802_v13 = vpop.f32.mrb[223].mxu1  ;;  %v6156_v20 = vmax.f32 %v4712_v55, 0.0 }
 0x607   :  { %v4707_v14 = vadd.f32 %v13199_v2, %v4706_v12  ;;  %v3902_v58 = vmax.f32 %v2800_v33, 0.0  ;;  %v2803_v15 = vadd.f32 %v13059_v0, %v2802_v13  ;;  %v6154_v28 = vmax.f32 %v4704_v4, 0.0 }
 0x608   :  { %v6157_v23 = vmax.f32 %v4715_v62, 0.0  ;;  %10449 = vmatmul.mubr.bf16.gmra.mrb[196].mxu0 %v13334_v16  ;;  %10129 = vmatmul.mubr.msk.bf16.gmra.mrb[72].mxu1 %vm1362_vm4, %v1294_v49  ;;  %v3905_v18 = vmax.f32 %v2811_v8, 0.0  ;;  %v1297_v5 = vpack.c.bf16 %v1032_v21, %v1031_v9 }
 0x609   :  { %v6155_v29 = vmax.f32 %v4707_v14, 0.0  ;;  %10452 = vmatprep.mubr.bf16.mxu0 %v4224_v52  ;;  %v3903_v30 = vmax.f32 %v2803_v15, 0.0  ;;  %10132 = vmatprep.mubr.msk.bf16.mxu1 %vm1362_vm4, %v1295_v26 }
 0x60a   :  { %v13389_v31 = vpack.c.bf16 %v6157_v23, %v6156_v20  ;;  %v13391_v16 = vpack.c.bf16 %v3905_v18, %v3904_v61 }
 0x60b   :  { %v13399_v40 = vpack.c.bf16 %v6155_v29, %v6154_v28  ;;  %v10346_v44 = vpop.f32.mrb[92].mxu0  ;;  %v4226_v46 = vpack.c.bf16 %v3903_v30, %v3902_v58  ;;  %v10026_v47 = vpop.f32.mrb[224].mxu1  ;;  %v1033_v28 = vld [vmem:[%s15495_s3 + $0x9b0] sm:$0xff]  ;;  %v1034_v29 = vld [vmem:[%s15495_s3 + $0x9b8] sm:$0xff] }
 0x60c   :  { %v4728_v48 = vadd.f32 %v13199_v2, %v10346_v44  ;;  %v4719_v52 = vpop.f32.mrb[93].mxu0  ;;  %v2824_v55 = vadd.f32 %v13059_v0, %v10026_v47  ;;  %v2815_v34 = vpop.f32.mrb[225].mxu1 }
 0x60d   :  { %v4720_v49 = vadd.f32 %v13199_v2, %v4719_v52  ;;  %v10347_v59 = vpop.f32.mrb[94].mxu0  ;;  %v2816_v54 = vadd.f32 %v13059_v0, %v2815_v34  ;;  %v10027_v4 = vpop.f32.mrb[226].mxu1  ;;  %v1298_v52 = vpack.c.bf16 %v1034_v29, %v1033_v28  ;;  %v1039_v29 = vld [vmem:[%s15495_s3 + $0x9e0] sm:$0xff] }
 0x60e   :  { %v4731_v33 = vadd.f32 %v13199_v2, %v10347_v59  ;;  %v4722_v7 = vpop.f32.mrb[95].mxu0  ;;  %v3908_v26 = vmax.f32 %v2824_v55, 0.0  ;;  %v2827_v62 = vadd.f32 %v13059_v0, %v10027_v4  ;;  %v2818_v12 = vpop.f32.mrb[227].mxu1  ;;  %v6160_v14 = vmax.f32 %v4728_v48, 0.0 }
 0x60f   :  { %v4723_v61 = vadd.f32 %v13199_v2, %v4722_v7  ;;  %v3906_v8 = vmax.f32 %v2816_v54, 0.0  ;;  %v2819_v13 = vadd.f32 %v13059_v0, %v2818_v12  ;;  %v6158_v20 = vmax.f32 %v4720_v49, 0.0 }
 0x610   :  { %v6161_v58 = vmax.f32 %v4731_v33, 0.0  ;;  %10453 = vmatmul.mubr.bf16.gmra.mrb[200].mxu0 %v13362_v3  ;;  %10133 = vmatmul.mubr.msk.bf16.gmra.mrb[76].mxu1 %vm1362_vm4, %v1296_v53  ;;  %v3909_v15 = vmax.f32 %v2827_v62, 0.0  ;;  %v1299_v4 = vpack.c.bf16 %v1036_v32, %v1035_v27 }
 0x611   :  { %v6159_v23 = vmax.f32 %v4723_v61, 0.0  ;;  %10456 = vmatprep.mubr.bf16.mxu0 %v4226_v46  ;;  %v3907_v18 = vmax.f32 %v2819_v13, 0.0  ;;  %10136 = vmatprep.mubr.msk.bf16.mxu1 %vm1362_vm4, %v1297_v5 }
 0x612   :  { %v13418_v30 = vpack.c.bf16 %v3909_v15, %v3908_v26  ;;  %v10964_v3 = vpack.c.bf16 %v6161_v58, %v6160_v14 }
 0x613   :  { %v10350_v9 = vpop.f32.mrb[96].mxu0  ;;  %v10960_v21 = vpack.c.bf16 %v6159_v23, %v6158_v20  ;;  %v4228_v44 = vpack.c.bf16 %v3907_v18, %v3906_v8  ;;  %v10030_v46 = vpop.f32.mrb[228].mxu1  ;;  %v13437_v8 = vld [vmem:[%s15494_s7 + $0x3] ss:$0 sm:$0xff]  ;;  %v1037_v23 = vld [vmem:[%s15495_s3 + $0x9d0] sm:$0xff]  ;;  %v1038_v18 = vld [vmem:[%s15495_s3 + $0x9d8] sm:$0xff] }
 0x614   :  { %v4744_v47 = vadd.f32 %v13199_v2, %v10350_v9  ;;  %v4735_v48 = vpop.f32.mrb[97].mxu0  ;;  %v2840_v53 = vadd.f32 %v13059_v0, %v10030_v46  ;;  %v2831_v55 = vpop.f32.mrb[229].mxu1 }
 0x615   :  { %v4736_v34 = vadd.f32 %v13199_v2, %v4735_v48  ;;  %v10351_v49 = vpop.f32.mrb[98].mxu0  ;;  %10961 = vmatprep.subr.bf16.mxu0 %v10960_v21  ;;  %v2832_v59 = vadd.f32 %v13059_v0, %v2831_v55  ;;  %v10031_v54 = vpop.f32.mrb[230].mxu1 }
 0x616   :  { %v4747_v5 = vadd.f32 %v13199_v2, %v10351_v49  ;;  %v4738_v33 = vpop.f32.mrb[99].mxu0  ;;  %10963 = vmatpush3.bf16.msra.mxu0 %v13313_v51  ;;  %v3912_v7 = vmax.f32 %v2840_v53, 0.0  ;;  %v2843_v26 = vadd.f32 %v13059_v0, %v10031_v54  ;;  %v2834_v62 = vpop.f32.mrb[231].mxu1  ;;  %v6164_v14 = vmax.f32 %v4744_v47, 0.0 }
 0x617   :  { %v4739_v12 = vadd.f32 %v13199_v2, %v4738_v33  ;;  %10965 = vmatprep.subr.bf16.mxu0 %v10964_v3  ;;  %v3910_v61 = vmax.f32 %v2832_v59, 0.0  ;;  %v2835_v13 = vadd.f32 %v13437_v8, %v2834_v62  ;;  %v6162_v0 = vmax.f32 %v4736_v34, 0.0  ;;  %v1040_v3 = vld [vmem:[%s15495_s3 + $0x9e8] sm:$0xff] }
 0x618   :  { %v6165_v58 = vmax.f32 %v4747_v5, 0.0  ;;  %10457 = vmatmul.mubr.bf16.gmra.mrb[204].mxu0 %v13391_v16  ;;  %10137 = vmatmul.mubr.msk.bf16.gmra.mrb[80].mxu1 %vm1362_vm4, %v1298_v52  ;;  %v3913_v51 = vmax.f32 %v2843_v26, 0.0  ;;  %v1300_v47 = vpack.c.bf16 %v1038_v18, %v1037_v23  ;;  %v1301_v49 = vpack.c.bf16 %v1040_v3, %v1039_v29  ;;  %v1044_v23 = vld [vmem:[%s15495_s3 + $0xa08] sm:$0xff] }
 0x619   :  { %v6163_v15 = vmax.f32 %v4739_v12, 0.0  ;;  %10460 = vmatprep.mubr.bf16.mxu0 %v4228_v44  ;;  %v3911_v20 = vmax.f32 %v2835_v13, 0.0  ;;  %10140 = vmatprep.mubr.msk.bf16.mxu1 %vm1362_vm4, %v1299_v4 }
 0x61a   :  { %10967 = vmatpush3.bf16.msra.mxu0 %v13305_v6  ;;  %v13450_v16 = vpack.c.bf16 %v3913_v51, %v3912_v7  ;;  %v10972_v28 = vpack.c.bf16 %v6165_v58, %v6164_v14  ;;  %v1041_v51 = vld [vmem:[%s15495_s3 + $0x9f0] sm:$0xff] }
 0x61b   :  { %v10354_v27 = vpop.f32.mrb[100].mxu0  ;;  %v10968_v32 = vpack.c.bf16 %v6163_v15, %v6162_v0  ;;  %v4230_v9 = vpack.c.bf16 %v3911_v20, %v3910_v61  ;;  %v10034_v21 = vpop.f32.mrb[232].mxu1  ;;  %v1042_v0 = vld [vmem:[%s15495_s3 + $0x9f8] sm:$0xff]  ;;  %v1043_v20 = vld [vmem:[%s15495_s3 + $0xa00] sm:$0xff] }
 0x61c   :  { %v4760_v44 = vadd.f32 %v13199_v2, %v10354_v27  ;;  %v4751_v46 = vpop.f32.mrb[101].mxu0  ;;  %v2856_v6 = vadd.f32 %v13437_v8, %v10034_v21  ;;  %v2847_v48 = vpop.f32.mrb[233].mxu1 }
 0x61d   :  { %v4752_v52 = vadd.f32 %v13199_v2, %v4751_v46  ;;  %v10355_v53 = vpop.f32.mrb[102].mxu0  ;;  %10969 = vmatprep.subr.bf16.mxu0 %v10968_v32  ;;  %v2848_v55 = vadd.f32 %v13437_v8, %v2847_v48  ;;  %v10035_v34 = vpop.f32.mrb[234].mxu1  ;;  %v1303_v48 = vpack.c.bf16 %v1044_v23, %v1043_v20 }
 0x61e   :  { %v4763_v59 = vadd.f32 %v13199_v2, %v10355_v53  ;;  %v4754_v54 = vpop.f32.mrb[103].mxu0  ;;  %10971 = vmatpush3.bf16.msra.mxu0 %v13342_v57  ;;  %v3916_v4 = vmax.f32 %v2856_v6, 0.0  ;;  %v2859_v5 = vadd.f32 %v13437_v8, %v10035_v34  ;;  %v2850_v33 = vpop.f32.mrb[235].mxu1  ;;  %v6168_v12 = vmax.f32 %v4760_v44, 0.0 }
 0x61f   :  { %v4755_v7 = vadd.f32 %v13199_v2, %v4754_v54  ;;  %10973 = vmatprep.subr.bf16.mxu0 %v10972_v28  ;;  %v3914_v26 = vmax.f32 %v2848_v55, 0.0  ;;  %v2851_v62 = vadd.f32 %v13437_v8, %v2850_v33  ;;  %v6166_v14 = vmax.f32 %v4752_v52, 0.0 }
 0x620   :  { %v6169_v61 = vmax.f32 %v4763_v59, 0.0  ;;  %10461 = vmatmul.mubr.bf16.gmra.mrb[208].mxu0 %v13418_v30  ;;  %10141 = vmatmul.mubr.msk.bf16.gmra.mrb[84].mxu1 %vm1362_vm4, %v1300_v47  ;;  %v3917_v13 = vmax.f32 %v2859_v5, 0.0 }
 0x621   :  { %v6167_v58 = vmax.f32 %v4755_v7, 0.0  ;;  %10464 = vmatprep.mubr.bf16.mxu0 %v4230_v9  ;;  %v3915_v57 = vmax.f32 %v2851_v62, 0.0  ;;  %10144 = vmatprep.mubr.msk.bf16.mxu1 %vm1362_vm4, %v1301_v49  ;;  %v1302_v9 = vpack.c.bf16 %v1042_v0, %v1041_v51 }
 0x622   :  { %10975 = vmatpush3.bf16.msra.mxu0 %v13332_v56  ;;  %v13477_v30 = vpack.c.bf16 %v3917_v13, %v3916_v4  ;;  %v10980_v15 = vpack.c.bf16 %v6169_v61, %v6168_v12  ;;  %v1045_v12 = vld [vmem:[%s15495_s3 + $0xa10] sm:$0xff]  ;;  %v1046_v61 = vld [vmem:[%s15495_s3 + $0xa18] sm:$0xff] }
 0x623   :  { %v10358_v18 = vpop.f32.mrb[104].mxu0  ;;  %v10976_v28 = vpack.c.bf16 %v6167_v58, %v6166_v14  ;;  %v4232_v29 = vpack.c.bf16 %v3915_v57, %v3914_v26  ;;  %v10038_v3 = vpop.f32.mrb[236].mxu1  ;;  %v1047_v14 = vld [vmem:[%s15495_s3 + $0xa20] sm:$0xff]  ;;  %v1048_v58 = vld [vmem:[%s15495_s3 + $0xa28] sm:$0xff]  ;;  %v1304_v20 = vpack.c.bf16 %v1046_v61, %v1045_v12 }
 0x624   :  { %v4776_v27 = vadd.f32 %v13199_v2, %v10358_v18  ;;  %v4767_v32 = vpop.f32.mrb[105].mxu0  ;;  %v2872_v56 = vadd.f32 %v13437_v8, %v10038_v3  ;;  %v2863_v21 = vpop.f32.mrb[237].mxu1 }
 0x625   :  { %v4768_v44 = vadd.f32 %v13199_v2, %v4767_v32  ;;  %v10359_v46 = vpop.f32.mrb[106].mxu0  ;;  %10977 = vmatprep.subr.bf16.mxu0 %v10976_v28  ;;  %v2864_v47 = vadd.f32 %v13437_v8, %v2863_v21  ;;  %v10039_v6 = vpop.f32.mrb[238].mxu1 }
 0x626   :  { %v4779_v52 = vadd.f32 %v13199_v2, %v10359_v46  ;;  %v4770_v53 = vpop.f32.mrb[107].mxu0  ;;  %10979 = vmatpush3.bf16.msra.mxu0 %v13370_v37  ;;  %v3920_v55 = vmax.f32 %v2872_v56, 0.0  ;;  %v2875_v34 = vadd.f32 %v13437_v8, %v10039_v6  ;;  %v2866_v49 = vpop.f32.mrb[239].mxu1  ;;  %v6172_v5 = vmax.f32 %v4776_v27, 0.0 }
 0x627   :  { %v4771_v59 = vadd.f32 %v13199_v2, %v4770_v53  ;;  %10981 = vmatprep.subr.bf16.mxu0 %v10980_v15  ;;  %v3918_v54 = vmax.f32 %v2864_v47, 0.0  ;;  %v2867_v4 = vadd.f32 %v13437_v8, %v2866_v49  ;;  %v6170_v26 = vmax.f32 %v4768_v44, 0.0  ;;  %v1049_v49 = vld [vmem:[%s15495_s3 + $0xa30] sm:$0xff] }
 0x628   :  { %v6173_v33 = vmax.f32 %v4779_v52, 0.0  ;;  %10465 = vmatmul.mubr.bf16.gmra.mrb[212].mxu0 %v13450_v16  ;;  %10145 = vmatmul.mubr.msk.bf16.gmra.mrb[88].mxu1 %vm1362_vm4, %v1302_v9  ;;  %v3921_v7 = vmax.f32 %v2875_v34, 0.0  ;;  %v1305_v27 = vpack.c.bf16 %v1048_v58, %v1047_v14 }
 0x629   :  { %v6171_v62 = vmax.f32 %v4771_v59, 0.0  ;;  %10468 = vmatprep.mubr.bf16.mxu0 %v4232_v29  ;;  %v3919_v37 = vmax.f32 %v2867_v4, 0.0  ;;  %10148 = vmatprep.mubr.msk.bf16.mxu1 %vm1362_vm4, %v1303_v48  ;;  %v1050_v59 = vld [vmem:[%s15495_s3 + $0xa38] sm:$0xff]  ;;  %v1052_v4 = vld [vmem:[%s15495_s3 + $0xa48] sm:$0xff] }
 0x62a   :  { %10983 = vmatpush3.bf16.msra.mxu0 %v13360_v45  ;;  %v13504_v16 = vpack.c.bf16 %v3921_v7, %v3920_v55  ;;  %v10988_v13 = vpack.c.bf16 %v6173_v33, %v6172_v5  ;;  %v1306_v12 = vpack.c.bf16 %v1050_v59, %v1049_v49 }
 0x62b   :  { %v10984_v57 = vpack.c.bf16 %v6171_v62, %v6170_v26  ;;  %v4234_v51 = vpack.c.bf16 %v3919_v37, %v3918_v54  ;;  %v10042_v0 = vpop.f32.mrb[240].mxu1  ;;  %v10362_v15 = vpop.f32.mrb[108].mxu0  ;;  %v1051_v54 = vld [vmem:[%s15495_s3 + $0xa40] sm:$0xff] }
 0x62c   :  { %v2888_v23 = vadd.f32 %v13437_v8, %v10042_v0  ;;  %v2879_v18 = vpop.f32.mrb[241].mxu1  ;;  %v4792_v45 = vadd.f32 %v13199_v2, %v10362_v15  ;;  %v4783_v28 = vpop.f32.mrb[109].mxu0  ;;  %v1307_v0 = vpack.c.bf16 %v1052_v4, %v1051_v54 }
 0x62d   :  { %10985 = vmatprep.subr.bf16.mxu0 %v10984_v57  ;;  %v2880_v29 = vadd.f32 %v13437_v8, %v2879_v18  ;;  %v10043_v3 = vpop.f32.mrb[242].mxu1  ;;  %v10363_v32 = vpop.f32.mrb[110].mxu0  ;;  %v4784_v44 = vadd.f32 %v13199_v2, %v4783_v28 }
 0x62e   :  { %10987 = vmatpush3.bf16.msra.mxu0 %v13399_v40  ;;  %v3924_v9 = vmax.f32 %v2888_v23, 0.0  ;;  %v2891_v56 = vadd.f32 %v13437_v8, %v10043_v3  ;;  %v2882_v21 = vpop.f32.mrb[243].mxu1  ;;  %v4795_v46 = vadd.f32 %v13199_v2, %v10363_v32  ;;  %v4786_v47 = vpop.f32.mrb[111].mxu0  ;;  %v6176_v53 = vmax.f32 %v4792_v45, 0.0 }
 0x62f   :  { %10989 = vmatprep.subr.bf16.mxu0 %v10988_v13  ;;  %v3922_v6 = vmax.f32 %v2880_v29, 0.0  ;;  %v2883_v48 = vadd.f32 %v13437_v8, %v2882_v21  ;;  %v4787_v55 = vadd.f32 %v13199_v2, %v4786_v47  ;;  %v6174_v5 = vmax.f32 %v4784_v44, 0.0  ;;  %v1054_v47 = vld [vmem:[%s15495_s3 + $0xa58] sm:$0xff] }
 0x630   :  { %10469 = vmatmul.mubr.bf16.gmra.mrb[216].mxu0 %v13477_v30  ;;  %10149 = vmatmul.mubr.msk.bf16.gmra.mrb[92].mxu1 %vm1362_vm4, %v1304_v20  ;;  %v3925_v52 = vmax.f32 %v2891_v56, 0.0  ;;  %v6177_v40 = vmax.f32 %v4795_v46, 0.0  ;;  %v1053_v46 = vld [vmem:[%s15495_s3 + $0xa50] sm:$0xff] }
 0x631   :  { %10472 = vmatprep.mubr.bf16.mxu0 %v4234_v51  ;;  %v3923_v34 = vmax.f32 %v2883_v48, 0.0  ;;  %10152 = vmatprep.mubr.msk.bf16.mxu1 %vm1362_vm4, %v1305_v27  ;;  %v6175_v7 = vmax.f32 %v4787_v55, 0.0  ;;  %v1308_v49 = vpack.c.bf16 %v1054_v47, %v1053_v46 }
 0x632   :  { %10991 = vmatpush3.bf16.msra.mxu0 %v13389_v31  ;;  %v13531_v30 = vpack.c.bf16 %v3925_v52, %v3924_v9  ;;  %v13539_v33 = vpack.c.bf16 %v6177_v40, %v6176_v53 }
 0x633   :  { %v4236_v26 = vpack.c.bf16 %v3923_v34, %v3922_v6  ;;  %v10046_v62 = vpop.f32.mrb[244].mxu1  ;;  %v10366_v37 = vpop.f32.mrb[112].mxu0  ;;  %v13542_v13 = vpack.c.bf16 %v6175_v7, %v6174_v5  ;;  %v1055_v6 = vld [vmem:[%s15495_s3 + $0xa60] sm:$0xff] }
 0x634   :  { %v2904_v31 = vadd.f32 %v13437_v8, %v10046_v62  ;;  %v2895_v61 = vpop.f32.mrb[245].mxu1  ;;  %v4808_v14 = vadd.f32 %v13199_v2, %v10366_v37  ;;  %v4799_v58 = vpop.f32.mrb[113].mxu0  ;;  %v13576_v5 = vld [vmem:[%s15494_s7 + $0x4] ss:$0 sm:$0xff] }
 0x635   :  { %v2896_v57 = vadd.f32 %v13437_v8, %v2895_v61  ;;  %v10047_v51 = vpop.f32.mrb[246].mxu1  ;;  %v10367_v15 = vpop.f32.mrb[114].mxu0  ;;  %v4800_v45 = vadd.f32 %v13199_v2, %v4799_v58 }
 0x636   :  { %v3928_v20 = vmax.f32 %v2904_v31, 0.0  ;;  %v2907_v23 = vadd.f32 %v13437_v8, %v10047_v51  ;;  %v2898_v18 = vpop.f32.mrb[247].mxu1  ;;  %v4811_v28 = vadd.f32 %v13199_v2, %v10367_v15  ;;  %v4802_v29 = vpop.f32.mrb[115].mxu0  ;;  %v6180_v9 = vmax.f32 %v4808_v14, 0.0 }
 0x637   :  { %v3926_v3 = vmax.f32 %v2896_v57, 0.0  ;;  %v2899_v27 = vadd.f32 %v13437_v8, %v2898_v18  ;;  %v4803_v21 = vadd.f32 %v13199_v2, %v4802_v29  ;;  %v1056_v2 = vld [vmem:[%s15495_s3 + $0xa68] sm:$0xff]  ;;  %v6178_v48 = vmax.f32 %v4800_v45, 0.0 }
 0x638   :  { %10473 = vmatmul.mubr.bf16.gmra.mrb[220].mxu0 %v13504_v16  ;;  %10153 = vmatmul.mubr.msk.bf16.gmra.mrb[96].mxu1 %vm1362_vm4, %v1306_v12  ;;  %v3929_v32 = vmax.f32 %v2907_v23, 0.0  ;;  %v6181_v56 = vmax.f32 %v4811_v28, 0.0  ;;  %v1309_v12 = vpack.c.bf16 %v1056_v2, %v1055_v6 }
 0x639   :  { %10476 = vmatprep.mubr.bf16.mxu0 %v4236_v26  ;;  %v3927_v44 = vmax.f32 %v2899_v27, 0.0  ;;  %10156 = vmatprep.mubr.msk.bf16.mxu1 %vm1362_vm4, %v1307_v0  ;;  %v6179_v53 = vmax.f32 %v4803_v21, 0.0  ;;  %v1058_v27 = vld [vmem:[%s15495_s3 + $0xa78] sm:$0xff] }
 0x63a   :  { %v13560_v16 = vpack.c.bf16 %v3929_v32, %v3928_v20  ;;  %v13568_v52 = vpack.c.bf16 %v6181_v56, %v6180_v9  ;;  %v1059_v32 = vld [vmem:[%s15495_s3 + $0xa80] sm:$0xff]  ;;  %v1060_v9 = vld [vmem:[%s15495_s3 + $0xa88] sm:$0xff] }
 0x63b   :  { %v4238_v40 = vpack.c.bf16 %v3927_v44, %v3926_v3  ;;  %v10050_v55 = vpop.f32.mrb[248].mxu1  ;;  %v10370_v34 = vpop.f32.mrb[116].mxu0  ;;  %v13571_v4 = vpack.c.bf16 %v6179_v53, %v6178_v48  ;;  %v1057_v3 = vld [vmem:[%s15495_s3 + $0xa70] sm:$0xff] }
 0x63c   :  { %v2920_v59 = vadd.f32 %v13437_v8, %v10050_v55  ;;  %v2911_v54 = vpop.f32.mrb[249].mxu1  ;;  %v4824_v7 = vadd.f32 %v13576_v5, %v10370_v34  ;;  %v4815_v26 = vpop.f32.mrb[117].mxu0  ;;  %v1310_v2 = vpack.c.bf16 %v1058_v27, %v1057_v3 }
 0x63d   :  { %v2912_v62 = vadd.f32 %v13437_v8, %v2911_v54  ;;  %v10051_v37 = vpop.f32.mrb[250].mxu1  ;;  %v10371_v31 = vpop.f32.mrb[118].mxu0  ;;  %v4816_v57 = vadd.f32 %v13576_v5, %v4815_v26  ;;  %v1311_v54 = vpack.c.bf16 %v1060_v9, %v1059_v32 }
 0x63e   :  { %v3932_v61 = vmax.f32 %v2920_v59, 0.0  ;;  %v2923_v14 = vadd.f32 %v13437_v8, %v10051_v37  ;;  %v2914_v58 = vpop.f32.mrb[251].mxu1  ;;  %v4827_v51 = vadd.f32 %v13576_v5, %v10371_v31  ;;  %v4818_v0 = vpop.f32.mrb[119].mxu0  ;;  %v6184_v18 = vmax.f32 %v4824_v7, 0.0 }
 0x63f   :  { %v3930_v15 = vmax.f32 %v2912_v62, 0.0  ;;  %v2915_v20 = vadd.f32 %v13437_v8, %v2914_v58  ;;  %v4819_v28 = vadd.f32 %v13576_v5, %v4818_v0  ;;  %v6182_v56 = vmax.f32 %v4816_v57, 0.0 }
 0x640   :  { %10477 = vmatmul.mubr.bf16.gmra.mrb[224].mxu0 %v13531_v30  ;;  %10157 = vmatmul.mubr.msk.bf16.gmra.mrb[100].mxu1 %vm1362_vm4, %v1308_v49  ;;  %v3933_v23 = vmax.f32 %v2923_v14, 0.0  ;;  %v6185_v45 = vmax.f32 %v4827_v51, 0.0 }
 0x641   :  { %10480 = vmatprep.mubr.bf16.mxu0 %v4238_v40  ;;  %v3931_v29 = vmax.f32 %v2915_v20, 0.0  ;;  %10160 = vmatprep.mubr.msk.bf16.mxu1 %vm1362_vm4, %v1309_v12  ;;  %v6183_v44 = vmax.f32 %v4819_v28, 0.0  ;;  %v1064_v28 = vld [vmem:[%s15495_s3 + $0xaa8] sm:$0xff] }
 0x642   :  { %v13594_v30 = vpack.c.bf16 %v3933_v23, %v3932_v61  ;;  %v13602_v21 = vpack.c.bf16 %v6185_v45, %v6184_v18  ;;  %v1061_v23 = vld [vmem:[%s15495_s3 + $0xa90] sm:$0xff]  ;;  %v1062_v18 = vld [vmem:[%s15495_s3 + $0xa98] sm:$0xff]  ;;  %v1063_v45 = vld [vmem:[%s15495_s3 + $0xaa0] sm:$0xff] }
 0x643   :  { %v4240_v46 = vpack.c.bf16 %v3931_v29, %v3930_v15  ;;  %v10054_v47 = vpop.f32.mrb[252].mxu1  ;;  %v10374_v6 = vpop.f32.mrb[120].mxu0  ;;  %v13605_v40 = vpack.c.bf16 %v6183_v44, %v6182_v56  ;;  %v1312_v44 = vpack.c.bf16 %v1062_v18, %v1061_v23  ;;  %v1068_v23 = vld [vmem:[%s15495_s3 + $0xac8] sm:$0xff] }
 0x644   :  { %v2936_v48 = vadd.f32 %v13437_v8, %v10054_v47  ;;  %v2927_v53 = vpop.f32.mrb[253].mxu1  ;;  %v4840_v55 = vadd.f32 %v13576_v5, %v10374_v6  ;;  %v4831_v34 = vpop.f32.mrb[121].mxu0 }
 0x645   :  { %v2928_v49 = vadd.f32 %v13437_v8, %v2927_v53  ;;  %v10055_v59 = vpop.f32.mrb[254].mxu1  ;;  %v10375_v7 = vpop.f32.mrb[122].mxu0  ;;  %v4832_v12 = vadd.f32 %v13576_v5, %v4831_v34  ;;  %v1313_v34 = vpack.c.bf16 %v1064_v28, %v1063_v45 }
 0x646   :  { %v3936_v26 = vmax.f32 %v2936_v48, 0.0  ;;  %v2939_v62 = vadd.f32 %v13437_v8, %v10055_v59  ;;  %v2930_v37 = vpop.f32.mrb[255].mxu1  ;;  %v4843_v31 = vadd.f32 %v13576_v5, %v10375_v7  ;;  %v4834_v61 = vpop.f32.mrb[123].mxu0  ;;  %v6188_v51 = vmax.f32 %v4840_v55, 0.0 }
 0x647   :  { %v3934_v14 = vmax.f32 %v2928_v49, 0.0  ;;  %v2931_v58 = vadd.f32 %v13437_v8, %v2930_v37  ;;  %v4835_v15 = vadd.f32 %v13576_v5, %v4834_v61  ;;  %v6186_v29 = vmax.f32 %v4832_v12, 0.0 }
 0x648   :  { %10481 = vmatmul.mubr.bf16.gmra.mrb[228].mxu0 %v13560_v16  ;;  %10161 = vmatmul.mubr.msk.bf16.gmra.mrb[104].mxu1 %vm1362_vm4, %v1310_v2  ;;  %v3937_v57 = vmax.f32 %v2939_v62, 0.0  ;;  %v6189_v0 = vmax.f32 %v4843_v31, 0.0 }
 0x649   :  { %10484 = vmatprep.mubr.bf16.mxu0 %v4240_v46  ;;  %v3935_v20 = vmax.f32 %v2931_v58, 0.0  ;;  %10164 = vmatprep.mubr.msk.bf16.mxu1 %vm1362_vm4, %v1311_v54  ;;  %v6187_v27 = vmax.f32 %v4835_v15, 0.0  ;;  %v1066_v15 = vld [vmem:[%s15495_s3 + $0xab8] sm:$0xff] }
 0x64a   :  { %v13623_v16 = vpack.c.bf16 %v3937_v57, %v3936_v26  ;;  %v13631_v3 = vpack.c.bf16 %v6189_v0, %v6188_v51  ;;  %v1065_v0 = vld [vmem:[%s15495_s3 + $0xab0] sm:$0xff] }
 0x64b   :  { %v4242_v32 = vpack.c.bf16 %v3935_v20, %v3934_v14  ;;  %v10058_v9 = vpop.f32.mrb[0].mxu1  ;;  %v10378_v56 = vpop.f32.mrb[124].mxu0  ;;  %v13634_v6 = vpack.c.bf16 %v6187_v27, %v6186_v29  ;;  %v1067_v20 = vld [vmem:[%s15495_s3 + $0xac0] sm:$0xff] }
 0x64c   :  { %v2952_v46 = vadd.f32 %v13437_v8, %v10058_v9  ;;  %v2943_v47 = vpop.f32.mrb[1].mxu1  ;;  %v4856_v2 = vadd.f32 %v13576_v5, %v10378_v56  ;;  %v4847_v48 = vpop.f32.mrb[125].mxu0  ;;  %v1314_v9 = vpack.c.bf16 %v1066_v15, %v1065_v0  ;;  %v1070_v0 = vld [vmem:[%s15495_s3 + $0xad8] sm:$0xff]  ;;  %v1071_v15 = vld [vmem:[%s15495_s3 + $0xae0] sm:$0xff] }
 0x64d   :  { %v2944_v53 = vadd.f32 %v13437_v8, %v2943_v47  ;;  %v10059_v55 = vpop.f32.mrb[2].mxu1  ;;  %v10379_v49 = vpop.f32.mrb[126].mxu0  ;;  %v4848_v26 = vadd.f32 %v13576_v5, %v4847_v48 }
 0x64e   :  { %v3940_v59 = vmax.f32 %v2952_v46, 0.0  ;;  %v2955_v54 = vadd.f32 %v13437_v8, %v10059_v55  ;;  %v2946_v7 = vpop.f32.mrb[3].mxu1  ;;  %v4859_v62 = vadd.f32 %v13576_v5, %v10379_v49  ;;  %v4850_v37 = vpop.f32.mrb[127].mxu0  ;;  %v6192_v14 = vmax.f32 %v4856_v2, 0.0 }
 0x64f   :  { %v3938_v12 = vmax.f32 %v2944_v53, 0.0  ;;  %v2947_v31 = vadd.f32 %v13437_v8, %v2946_v7  ;;  %v4851_v57 = vadd.f32 %v13576_v5, %v4850_v37  ;;  %v6190_v18 = vmax.f32 %v4848_v26, 0.0 }
 0x650   :  { %10485 = vmatmul.mubr.bf16.gmra.mrb[232].mxu0 %v13594_v30  ;;  %10165 = vmatmul.mubr.msk.bf16.gmra.mrb[108].mxu1 %vm1362_vm4, %v1312_v44  ;;  %v3941_v61 = vmax.f32 %v2955_v54, 0.0  ;;  %v6193_v58 = vmax.f32 %v4859_v62, 0.0  ;;  %v1315_v55 = vpack.c.bf16 %v1068_v23, %v1067_v20  ;;  %v1072_v20 = vld [vmem:[%s15495_s3 + $0xae8] sm:$0xff] }
 0x651   :  { %10488 = vmatprep.mubr.bf16.mxu0 %v4242_v32  ;;  %v3939_v51 = vmax.f32 %v2947_v31, 0.0  ;;  %10168 = vmatprep.mubr.msk.bf16.mxu1 %vm1362_vm4, %v1313_v34  ;;  %v6191_v45 = vmax.f32 %v4851_v57, 0.0 }
 0x652   :  { %v13652_v30 = vpack.c.bf16 %v3941_v61, %v3940_v59  ;;  %v13660_v28 = vpack.c.bf16 %v6193_v58, %v6192_v14 }
 0x653   :  { %v4244_v29 = vpack.c.bf16 %v3939_v51, %v3938_v12  ;;  %v10062_v27 = vpop.f32.mrb[4].mxu1  ;;  %v10382_v32 = vpop.f32.mrb[128].mxu0  ;;  %v13664_v2 = vpack.c.bf16 %v6191_v45, %v6190_v18  ;;  %v1069_v51 = vld [vmem:[%s15495_s3 + $0xad0] sm:$0xff] }
 0x654   :  { %v2968_v56 = vadd.f32 %v13437_v8, %v10062_v27  ;;  %v2959_v44 = vpop.f32.mrb[5].mxu1  ;;  %v4872_v46 = vadd.f32 %v13576_v5, %v10382_v32  ;;  %v4863_v47 = vpop.f32.mrb[129].mxu0 }
 0x655   :  { %v2960_v48 = vadd.f32 %v13437_v8, %v2959_v44  ;;  %v10063_v53 = vpop.f32.mrb[6].mxu1  ;;  %v10383_v34 = vpop.f32.mrb[130].mxu0  ;;  %v4864_v7 = vadd.f32 %v13576_v5, %v4863_v47 }
 0x656   :  { %v3944_v49 = vmax.f32 %v2968_v56, 0.0  ;;  %v2971_v59 = vadd.f32 %v13437_v8, %v10063_v53  ;;  %v2962_v54 = vpop.f32.mrb[7].mxu1  ;;  %v4875_v26 = vadd.f32 %v13576_v5, %v10383_v34  ;;  %v4866_v62 = vpop.f32.mrb[131].mxu0  ;;  %v6196_v61 = vmax.f32 %v4872_v46, 0.0 }
 0x657   :  { %v3942_v37 = vmax.f32 %v2960_v48, 0.0  ;;  %v2963_v12 = vadd.f32 %v13437_v8, %v2962_v54  ;;  %v4867_v58 = vadd.f32 %v13576_v5, %v4866_v62  ;;  %v6194_v23 = vmax.f32 %v4864_v7, 0.0 }
 0x658   :  { %10489 = vmatmul.mubr.bf16.gmra.mrb[236].mxu0 %v13623_v16  ;;  %10169 = vmatmul.mubr.msk.bf16.gmra.mrb[112].mxu1 %vm1362_vm4, %v1314_v9  ;;  %v3945_v31 = vmax.f32 %v2971_v59, 0.0  ;;  %v6197_v14 = vmax.f32 %v4875_v26, 0.0  ;;  %v1316_v9 = vpack.c.bf16 %v1070_v0, %v1069_v51  ;;  %v1317_v34 = vpack.c.bf16 %v1072_v20, %v1071_v15  ;;  %v1073_v0 = vld [vmem:[%s15495_s3 + $0xaf0] sm:$0xff]  ;;  %v1074_v15 = vld [vmem:[%s15495_s3 + $0xaf8] sm:$0xff]  ;;  %v1075_v20 = vld [vmem:[%s15495_s3 + $0xb00] sm:$0xff] }
 0x659   :  { %10492 = vmatprep.mubr.bf16.mxu0 %v4244_v29  ;;  %v3943_v57 = vmax.f32 %v2963_v12, 0.0  ;;  %10172 = vmatprep.mubr.msk.bf16.mxu1 %vm1362_vm4, %v1315_v55  ;;  %v6195_v18 = vmax.f32 %v4867_v58, 0.0 }
 0x65a   :  { %v13681_v16 = vpack.c.bf16 %v3945_v31, %v3944_v49  ;;  %v13689_v45 = vpack.c.bf16 %v6197_v14, %v6196_v61 }
 0x65b   :  { %v4246_v29 = vpack.c.bf16 %v3943_v57, %v3942_v37  ;;  %v10066_v27 = vpop.f32.mrb[8].mxu1  ;;  %v10386_v32 = vpop.f32.mrb[132].mxu0  ;;  %v13693_v48 = vpack.c.bf16 %v6195_v18, %v6194_v23  ;;  %v1076_v23 = vld [vmem:[%s15495_s3 + $0xb08] sm:$0xff] }
 0x65c   :  { %v2984_v56 = vadd.f32 %v13437_v8, %v10066_v27  ;;  %v2975_v44 = vpop.f32.mrb[9].mxu1  ;;  %v4888_v46 = vadd.f32 %v13576_v5, %v10386_v32  ;;  %v4879_v47 = vpop.f32.mrb[133].mxu0 }
 0x65d   :  { %v2976_v53 = vadd.f32 %v13437_v8, %v2975_v44  ;;  %v10067_v55 = vpop.f32.mrb[10].mxu1  ;;  %v10387_v49 = vpop.f32.mrb[134].mxu0  ;;  %v4880_v26 = vadd.f32 %v13576_v5, %v4879_v47  ;;  %v1318_v44 = vpack.c.bf16 %v1074_v15, %v1073_v0 }
 0x65e   :  { %v3948_v59 = vmax.f32 %v2984_v56, 0.0  ;;  %v2987_v54 = vadd.f32 %v13437_v8, %v10067_v55  ;;  %v2978_v7 = vpop.f32.mrb[11].mxu1  ;;  %v4891_v62 = vadd.f32 %v13576_v5, %v10387_v49  ;;  %v4882_v37 = vpop.f32.mrb[135].mxu0  ;;  %v6200_v14 = vmax.f32 %v4888_v46, 0.0 }
 0x65f   :  { %v3946_v12 = vmax.f32 %v2976_v53, 0.0  ;;  %v2979_v31 = vadd.f32 %v13437_v8, %v2978_v7  ;;  %v4883_v57 = vadd.f32 %v13576_v5, %v4882_v37  ;;  %v6198_v18 = vmax.f32 %v4880_v26, 0.0 }
 0x660   :  { %10493 = vmatmul.mubr.bf16.gmra.mrb[240].mxu0 %v13652_v30  ;;  %10173 = vmatmul.mubr.msk.bf16.gmra.mrb[116].mxu1 %vm1362_vm4, %v1316_v9  ;;  %v3949_v61 = vmax.f32 %v2987_v54, 0.0  ;;  %v6201_v58 = vmax.f32 %v4891_v62, 0.0  ;;  %v1319_v54 = vpack.c.bf16 %v1076_v23, %v1075_v20  ;;  %v1077_v23 = vld [vmem:[%s15495_s3 + $0xb10] sm:$0xff] }
 0x661   :  { %10496 = vmatprep.mubr.bf16.mxu0 %v4246_v29  ;;  %v3947_v51 = vmax.f32 %v2979_v31, 0.0  ;;  %10176 = vmatprep.mubr.msk.bf16.mxu1 %vm1362_vm4, %v1317_v34  ;;  %v6199_v29 = vmax.f32 %v4883_v57, 0.0 }
 0x662   :  { %v13710_v30 = vpack.c.bf16 %v3949_v61, %v3948_v59  ;;  %v13718_v27 = vpack.c.bf16 %v6201_v58, %v6200_v14 }
 0x663   :  { %v4248_v32 = vpack.c.bf16 %v3947_v51, %v3946_v12  ;;  %v10070_v9 = vpop.f32.mrb[12].mxu1  ;;  %v10390_v56 = vpop.f32.mrb[136].mxu0  ;;  %v13722_v34 = vpack.c.bf16 %v6199_v29, %v6198_v18  ;;  %v1078_v18 = vld [vmem:[%s15495_s3 + $0xb18] sm:$0xff]  ;;  %v1079_v29 = vld [vmem:[%s15495_s3 + $0xb20] sm:$0xff] }
 0x664   :  { %v3000_v46 = vadd.f32 %v13437_v8, %v10070_v9  ;;  %v2991_v47 = vpop.f32.mrb[13].mxu1  ;;  %v4904_v53 = vadd.f32 %v13576_v5, %v10390_v56  ;;  %v4895_v55 = vpop.f32.mrb[137].mxu0 }
 0x665   :  { %v2992_v49 = vadd.f32 %v13437_v8, %v2991_v47  ;;  %v10071_v59 = vpop.f32.mrb[14].mxu1  ;;  %v10391_v7 = vpop.f32.mrb[138].mxu0  ;;  %v4896_v12 = vadd.f32 %v13576_v5, %v4895_v55  ;;  %v1320_v55 = vpack.c.bf16 %v1078_v18, %v1077_v23 }
 0x666   :  { %v3952_v26 = vmax.f32 %v3000_v46, 0.0  ;;  %v3003_v62 = vadd.f32 %v13437_v8, %v10071_v59  ;;  %v2994_v37 = vpop.f32.mrb[15].mxu1  ;;  %v4907_v31 = vadd.f32 %v13576_v5, %v10391_v7  ;;  %v4898_v61 = vpop.f32.mrb[139].mxu0  ;;  %v6204_v51 = vmax.f32 %v4904_v53, 0.0 }
 0x667   :  { %v3950_v14 = vmax.f32 %v2992_v49, 0.0  ;;  %v2995_v58 = vadd.f32 %v13437_v8, %v2994_v37  ;;  %v4899_v15 = vadd.f32 %v13576_v5, %v4898_v61  ;;  %v6202_v9 = vmax.f32 %v4896_v12, 0.0 }
 0x668   :  { %10497 = vmatmul.mubr.bf16.gmra.mrb[244].mxu0 %v13681_v16  ;;  %10177 = vmatmul.mubr.msk.bf16.gmra.mrb[120].mxu1 %vm1362_vm4, %v1318_v44  ;;  %v3953_v57 = vmax.f32 %v3003_v62, 0.0  ;;  %v6205_v0 = vmax.f32 %v4907_v31, 0.0 }
 0x669   :  { %10500 = vmatprep.mubr.bf16.mxu0 %v4248_v32  ;;  %v3951_v20 = vmax.f32 %v2995_v58, 0.0  ;;  %10180 = vmatprep.mubr.msk.bf16.mxu1 %vm1362_vm4, %v1319_v54  ;;  %v1080_v32 = vld [vmem:[%s15495_s3 + $0xb28] sm:$0xff]  ;;  %v6203_v56 = vmax.f32 %v4899_v15, 0.0 }
 0x66a   :  { %v13739_v16 = vpack.c.bf16 %v3953_v57, %v3952_v26  ;;  %v13747_v44 = vpack.c.bf16 %v6205_v0, %v6204_v51  ;;  %v1321_v31 = vpack.c.bf16 %v1080_v32, %v1079_v29 }
 0x66b   :  { %v4250_v46 = vpack.c.bf16 %v3951_v20, %v3950_v14  ;;  %v10074_v47 = vpop.f32.mrb[16].mxu1  ;;  %v10394_v53 = vpop.f32.mrb[140].mxu0  ;;  %v13751_v26 = vpack.c.bf16 %v6203_v56, %v6202_v9  ;;  %v1081_v56 = vld [vmem:[%s15495_s3 + $0xb30] sm:$0xff] }
 0x66c   :  { %v3016_v49 = vadd.f32 %v13437_v8, %v10074_v47  ;;  %v3007_v59 = vpop.f32.mrb[17].mxu1  ;;  %v4920_v54 = vadd.f32 %v13576_v5, %v10394_v53  ;;  %v4911_v7 = vpop.f32.mrb[141].mxu0  ;;  %v1082_v47 = vld [vmem:[%s15495_s3 + $0xb38] sm:$0xff]  ;;  %v1083_v53 = vld [vmem:[%s15495_s3 + $0xb40] sm:$0xff] }
 0x66d   :  { %v3008_v62 = vadd.f32 %v13437_v8, %v3007_v59  ;;  %v10075_v37 = vpop.f32.mrb[18].mxu1  ;;  %v10395_v12 = vpop.f32.mrb[142].mxu0  ;;  %v4912_v57 = vadd.f32 %v13576_v5, %v4911_v7 }
 0x66e   :  { %v3956_v61 = vmax.f32 %v3016_v49, 0.0  ;;  %v3019_v58 = vadd.f32 %v13437_v8, %v10075_v37  ;;  %v3010_v14 = vpop.f32.mrb[19].mxu1  ;;  %v4923_v51 = vadd.f32 %v13576_v5, %v10395_v12  ;;  %v4914_v0 = vpop.f32.mrb[143].mxu0  ;;  %v6208_v18 = vmax.f32 %v4920_v54, 0.0 }
 0x66f   :  { %v3954_v15 = vmax.f32 %v3008_v62, 0.0  ;;  %v3011_v20 = vadd.f32 %v13437_v8, %v3010_v14  ;;  %v4915_v32 = vadd.f32 %v13576_v5, %v4914_v0  ;;  %v1322_v37 = vpack.c.bf16 %v1082_v47, %v1081_v56 }
 0x670   :  { %10501 = vmatmul.mubr.bf16.gmra.mrb[248].mxu0 %v13710_v30  ;;  %10181 = vmatmul.mubr.msk.bf16.gmra.mrb[124].mxu1 %vm1362_vm4, %v1320_v55  ;;  %v3957_v23 = vmax.f32 %v3019_v58, 0.0  ;;  %v6209_v29 = vmax.f32 %v4923_v51, 0.0  ;;  %v6206_v55 = vmax.f32 %v4912_v57, 0.0 }
 0x671   :  { %10504 = vmatprep.mubr.bf16.mxu0 %v4250_v46  ;;  %v3955_v9 = vmax.f32 %v3011_v20, 0.0  ;;  %10184 = vmatprep.mubr.msk.bf16.mxu1 %vm1362_vm4, %v1321_v31  ;;  %v1084_v46 = vld [vmem:[%s15495_s3 + $0xb48] sm:$0xff]  ;;  %v6207_v59 = vmax.f32 %v4915_v32, 0.0 }
 0x672   :  { %v13768_v30 = vpack.c.bf16 %v3957_v23, %v3956_v61  ;;  %v13776_v49 = vpack.c.bf16 %v6209_v29, %v6208_v18  ;;  %v1323_v20 = vpack.c.bf16 %v1084_v46, %v1083_v53 }
 0x673   :  { %v4252_v54 = vpack.c.bf16 %v3955_v9, %v3954_v15  ;;  %v10078_v7 = vpop.f32.mrb[20].mxu1  ;;  %v10398_v62 = vpop.f32.mrb[144].mxu0  ;;  %v13779_v61 = vpack.c.bf16 %v6207_v59, %v6206_v55 }
 0x674   :  { %15505 = vst [vmem:[#allocation3_spill] sm:$0xff] %v13776_v49  ;;  %v3032_v31 = vadd.f32 %v13437_v8, %v10078_v7  ;;  %v3023_v12 = vpop.f32.mrb[21].mxu1  ;;  %v4936_v58 = vadd.f32 %v13576_v5, %v10398_v62  ;;  %v4927_v14 = vpop.f32.mrb[145].mxu0  ;;  %v1085_v62 = vld [vmem:[%s15495_s3 + $0xb50] sm:$0xff] }
 0x675   :  { %15506 = vst [vmem:[#allocation4_spill] sm:$0xff] %v13779_v61  ;;  %v3024_v51 = vadd.f32 %v13437_v8, %v3023_v12  ;;  %v10079_v0 = vpop.f32.mrb[22].mxu1  ;;  %v4928_v57 = vadd.f32 %v13576_v5, %v4927_v14  ;;  %v10399_v23 = vpop.f32.mrb[146].mxu0 }
 0x676   :  { %v3960_v18 = vmax.f32 %v3032_v31, 0.0  ;;  %v3035_v15 = vadd.f32 %v13437_v8, %v10079_v0  ;;  %v3026_v29 = vpop.f32.mrb[23].mxu1  ;;  %v4939_v32 = vadd.f32 %v13576_v5, %v10399_v23  ;;  %v4930_v9 = vpop.f32.mrb[147].mxu0  ;;  %v6212_v46 = vmax.f32 %v4936_v58, 0.0  ;;  %v1086_v31 = vld [vmem:[%s15495_s3 + $0xb58] sm:$0xff] }
 0x677   :  { %v3958_v56 = vmax.f32 %v3024_v51, 0.0  ;;  %v3027_v47 = vadd.f32 %v13437_v8, %v3026_v29  ;;  %v4931_v55 = vadd.f32 %v13576_v5, %v4930_v9  ;;  %v6210_v12 = vmax.f32 %v4928_v57, 0.0 }
 0x678   :  { %10505 = vmatmul.mubr.bf16.gmra.mrb[252].mxu0 %v13739_v16  ;;  %10185 = vmatmul.mubr.msk.bf16.gmra.mrb[128].mxu1 %vm1362_vm4, %v1322_v37  ;;  %v3961_v53 = vmax.f32 %v3035_v15, 0.0  ;;  %v6213_v59 = vmax.f32 %v4939_v32, 0.0  ;;  %v1087_v37 = vld [vmem:[%s15495_s3 + $0xb60] sm:$0xff]  ;;  %v1324_v15 = vpack.c.bf16 %v1086_v31, %v1085_v62 }
 0x679   :  { %10508 = vmatprep.mubr.bf16.mxu0 %v4252_v54  ;;  %v3959_v7 = vmax.f32 %v3027_v47, 0.0  ;;  %10188 = vmatprep.mubr.msk.bf16.mxu1 %vm1362_vm4, %v1323_v20  ;;  %v6211_v14 = vmax.f32 %v4931_v55, 0.0  ;;  %v1088_v54 = vld [vmem:[%s15495_s3 + $0xb68] sm:$0xff] }
 0x67a   :  { %v13797_v16 = vpack.c.bf16 %v3961_v53, %v3960_v18  ;;  %v13805_v58 = vpack.c.bf16 %v6213_v59, %v6212_v46  ;;  %v1325_v55 = vpack.c.bf16 %v1088_v54, %v1087_v37 }
 0x67b   :  { %v4254_v51 = vpack.c.bf16 %v3959_v7, %v3958_v56  ;;  %v10082_v0 = vpop.f32.mrb[24].mxu1  ;;  %v13807_v20 = vpack.c.bf16 %v6211_v14, %v6210_v12  ;;  %v10402_v23 = vpop.f32.mrb[148].mxu0 }
 0x67c   :  { %15507 = vst [vmem:[#allocation5_spill] sm:$0xff] %v13805_v58  ;;  %v3048_v57 = vadd.f32 %v13437_v8, %v10082_v0  ;;  %v3039_v18 = vpop.f32.mrb[25].mxu1  ;;  %v4952_v29 = vadd.f32 %v13576_v5, %v10402_v23  ;;  %v4943_v32 = vpop.f32.mrb[149].mxu0 }
 0x67d   :  { %15508 = vst [vmem:[#allocation6_spill] sm:$0xff] %v13807_v20  ;;  %v3040_v9 = vadd.f32 %v13437_v8, %v3039_v18  ;;  %v10083_v47 = vpop.f32.mrb[26].mxu1  ;;  %v4944_v53 = vadd.f32 %v13576_v5, %v4943_v32  ;;  %v10403_v46 = vpop.f32.mrb[150].mxu0  ;;  %v1089_v18 = vld [vmem:[%s15495_s3 + $0xb70] sm:$0xff] }
 0x67e   :  { %v3964_v59 = vmax.f32 %v3048_v57, 0.0  ;;  %v3051_v56 = vadd.f32 %v13437_v8, %v10083_v47  ;;  %v3042_v7 = vpop.f32.mrb[27].mxu1  ;;  %v4955_v12 = vadd.f32 %v13576_v5, %v10403_v46  ;;  %v4946_v62 = vpop.f32.mrb[151].mxu0  ;;  %v6216_v54 = vmax.f32 %v4952_v29, 0.0 }
 0x67f   :  { %v3962_v31 = vmax.f32 %v3040_v9, 0.0  ;;  %v3043_v14 = vadd.f32 %v13437_v8, %v3042_v7  ;;  %v4947_v0 = vadd.f32 %v13576_v5, %v4946_v62  ;;  %v1090_v8 = vld [vmem:[%s15495_s3 + $0xb78] sm:$0xff]  ;;  %v6214_v32 = vmax.f32 %v4944_v53, 0.0  ;;  %v13841_v53 = vld [vmem:[%s15494_s7 + $0x3] ss:$0 sm:$0xff] }
 0x680   :  { %10509 = vmatmul.mubr.bf16.gmra.mrb[0].mxu0 %v13768_v30  ;;  %10189 = vmatmul.mubr.msk.bf16.gmra.mrb[132].mxu1 %vm1362_vm4, %v1324_v15  ;;  %v3965_v37 = vmax.f32 %v3051_v56, 0.0  ;;  %v6217_v23 = vmax.f32 %v4955_v12, 0.0  ;;  %v1091_v15 = vld [vmem:[%s15495_s3 + $0xb80] sm:$0xff]  ;;  %v1326_v7 = vpack.c.bf16 %v1090_v8, %v1089_v18 }
 0x681   :  { %10512 = vmatprep.mubr.bf16.mxu0 %v4254_v51  ;;  %v3963_v57 = vmax.f32 %v3043_v14, 0.0  ;;  %10192 = vmatprep.mubr.msk.bf16.mxu1 %vm1362_vm4, %v1325_v55  ;;  %v6215_v9 = vmax.f32 %v4947_v0, 0.0  ;;  %v1092_v51 = vld [vmem:[%s15495_s3 + $0xb88] sm:$0xff] }
 0x682   :  { %v13826_v30 = vpack.c.bf16 %v3965_v37, %v3964_v59  ;;  %v13834_v29 = vpack.c.bf16 %v6217_v23, %v6216_v54 }
 0x683   :  { %v4256_v47 = vpack.c.bf16 %v3963_v57, %v3962_v31  ;;  %v10086_v55 = vpop.f32.mrb[28].mxu1  ;;  %v13836_v46 = vpack.c.bf16 %v6215_v9, %v6214_v32  ;;  %v10406_v56 = vpop.f32.mrb[152].mxu0  ;;  %v1327_v31 = vpack.c.bf16 %v1092_v51, %v1091_v15 }
 0x684   :  { %15509 = vst [vmem:[#allocation7_spill] sm:$0xff] %v13834_v29  ;;  %v3064_v59 = vadd.f32 %v13841_v53, %v10086_v55  ;;  %v3055_v12 = vpop.f32.mrb[29].mxu1  ;;  %v4968_v62 = vadd.f32 %v13576_v5, %v10406_v56  ;;  %v4959_v14 = vpop.f32.mrb[153].mxu0 }
 0x685   :  { %15510 = vst [vmem:[#allocation8_spill] sm:$0xff] %v13836_v46  ;;  %v3056_v0 = vadd.f32 %v13841_v53, %v3055_v12  ;;  %v10087_v37 = vpop.f32.mrb[30].mxu1  ;;  %v4960_v54 = vadd.f32 %v13576_v5, %v4959_v14  ;;  %v10407_v23 = vpop.f32.mrb[154].mxu0  ;;  %v1093_v14 = vld [vmem:[%s15495_s3 + $0xb90] sm:$0xff] }
 0x686   :  { %v3968_v57 = vmax.f32 %v3064_v59, 0.0  ;;  %v3067_v18 = vadd.f32 %v13841_v53, %v10087_v37  ;;  %v3058_v8 = vpop.f32.mrb[31].mxu1  ;;  %v4971_v32 = vadd.f32 %v13576_v5, %v10407_v23  ;;  %v4962_v9 = vpop.f32.mrb[155].mxu0  ;;  %v6220_v51 = vmax.f32 %v4968_v62, 0.0 }
 0x687   :  { %v3966_v36 = vmax.f32 %v3056_v0, 0.0  ;;  %v3059_v55 = vadd.f32 %v13841_v53, %v3058_v8  ;;  %v4963_v56 = vadd.f32 %v13576_v5, %v4962_v9  ;;  %v1094_v0 = vld [vmem:[%s15495_s3 + $0xb98] sm:$0xff]  ;;  %v6218_v37 = vmax.f32 %v4960_v54, 0.0 }
 0x688   :  { %10513 = vmatmul.mubr.bf16.gmra.mrb[4].mxu0 %v13797_v16  ;;  %10193 = vmatmul.mubr.msk.bf16.gmra.mrb[136].mxu1 %vm1362_vm4, %v1326_v7  ;;  %v3969_v15 = vmax.f32 %v3067_v18, 0.0  ;;  %v6221_v12 = vmax.f32 %v4971_v32, 0.0  ;;  %v1095_v7 = vld [vmem:[%s15495_s3 + $0xba0] sm:$0xff]  ;;  %v1328_v9 = vpack.c.bf16 %v1094_v0, %v1093_v14 }
 0x689   :  { %10516 = vmatprep.mubr.bf16.mxu0 %v4256_v47  ;;  %v3967_v59 = vmax.f32 %v3059_v55, 0.0  ;;  %10196 = vmatprep.mubr.msk.bf16.mxu1 %vm1362_vm4, %v1327_v31  ;;  %v6219_v23 = vmax.f32 %v4963_v56, 0.0  ;;  %v1096_v47 = vld [vmem:[%s15495_s3 + $0xba8] sm:$0xff] }
 0x68a   :  { %v13860_v16 = vpack.c.bf16 %v3969_v15, %v3968_v57  ;;  %v13868_v62 = vpack.c.bf16 %v6221_v12, %v6220_v51  ;;  %v1329_v60 = vpack.c.bf16 %v1096_v47, %v1095_v7 }
 0x68b   :  { %v4258_v31 = vpack.c.bf16 %v3967_v59, %v3966_v36  ;;  %v10090_v18 = vpop.f32.mrb[32].mxu1  ;;  %v13870_v8 = vpack.c.bf16 %v6219_v23, %v6218_v37  ;;  %v10410_v32 = vpop.f32.mrb[156].mxu0 }
 0x68c   :  { %15511 = vst [vmem:[#allocation9_spill] sm:$0xff] %v13868_v62  ;;  %v3080_v54 = vadd.f32 %v13841_v53, %v10090_v18  ;;  %v3071_v57 = vpop.f32.mrb[33].mxu1  ;;  %v4984_v55 = vadd.f32 %v13576_v5, %v10410_v32  ;;  %v4975_v56 = vpop.f32.mrb[157].mxu0 }
 0x68d   :  { %15512 = vst [vmem:[#allocation10_spill] sm:$0xff] %v13870_v8  ;;  %v3072_v15 = vadd.f32 %v13841_v53, %v3071_v57  ;;  %v10091_v35 = vpop.f32.mrb[34].mxu1  ;;  %v4976_v29 = vadd.f32 %v13576_v5, %v4975_v56  ;;  %v10411_v51 = vpop.f32.mrb[158].mxu0  ;;  %v1098_v57 = vld [vmem:[%s15495_s3 + $0xbb8] sm:$0xff] }
 0x68e   :  { %v3972_v12 = vmax.f32 %v3080_v54, 0.0  ;;  %v3083_v36 = vadd.f32 %v13841_v53, %v10091_v35  ;;  %v3074_v59 = vpop.f32.mrb[35].mxu1  ;;  %v4987_v37 = vadd.f32 %v13576_v5, %v10411_v51  ;;  %v4978_v14 = vpop.f32.mrb[159].mxu0  ;;  %v6224_v47 = vmax.f32 %v4984_v55, 0.0  ;;  %v1097_v35 = vld [vmem:[%s15495_s3 + $0xbb0] sm:$0xff] }
 0x68f   :  { %v3970_v0 = vmax.f32 %v3072_v15, 0.0  ;;  %v3075_v23 = vadd.f32 %v13841_v53, %v3074_v59  ;;  %v4979_v18 = vadd.f32 %v13576_v5, %v4978_v14  ;;  %v6222_v56 = vmax.f32 %v4976_v29, 0.0 }
 0x690   :  { %10517 = vmatmul.mubr.bf16.gmra.mrb[8].mxu0 %v13826_v30  ;;  %10197 = vmatmul.mubr.msk.bf16.gmra.mrb[140].mxu1 %vm1362_vm4, %v1328_v9  ;;  %v3973_v7 = vmax.f32 %v3083_v36, 0.0  ;;  %v6225_v32 = vmax.f32 %v4987_v37, 0.0  ;;  %v1099_v9 = vld [vmem:[%s15495_s3 + $0xbc0] sm:$0xff]  ;;  %v1330_v37 = vpack.c.bf16 %v1098_v57, %v1097_v35 }
 0x691   :  { %10520 = vmatprep.mubr.bf16.mxu0 %v4258_v31  ;;  %v3971_v54 = vmax.f32 %v3075_v23, 0.0  ;;  %10200 = vmatprep.mubr.msk.bf16.mxu1 %vm1362_vm4, %v1329_v60  ;;  %v6223_v15 = vmax.f32 %v4979_v18, 0.0  ;;  %v1100_v60 = vld [vmem:[%s15495_s3 + $0xbc8] sm:$0xff] }
 0x692   :  { %v13889_v30 = vpack.c.bf16 %v3973_v7, %v3972_v12  ;;  %v13897_v31 = vpack.c.bf16 %v6225_v32, %v6224_v47  ;;  %v1331_v62 = vpack.c.bf16 %v1100_v60, %v1099_v9 }
 0x693   :  { %v4260_v55 = vpack.c.bf16 %v3971_v54, %v3970_v0  ;;  %v10094_v51 = vpop.f32.mrb[36].mxu1  ;;  %v10414_v36 = vpop.f32.mrb[160].mxu0  ;;  %v11024_v59 = vpack.c.bf16 %v6223_v15, %v6222_v56 }
 0x694   :  { %15513 = vst [vmem:[#allocation11_spill] sm:$0xff] %v13897_v31  ;;  %v3096_v29 = vadd.f32 %v13841_v53, %v10094_v51  ;;  %v3087_v14 = vpop.f32.mrb[37].mxu1  ;;  %v5000_v12 = vadd.f32 %v13576_v5, %v10414_v36  ;;  %v4991_v23 = vpop.f32.mrb[161].mxu0 }
 0x695   :  { %v3088_v18 = vadd.f32 %v13841_v53, %v3087_v14  ;;  %v10095_v7 = vpop.f32.mrb[38].mxu1  ;;  %v4992_v8 = vadd.f32 %v13576_v5, %v4991_v23  ;;  %v10415_v46 = vpop.f32.mrb[162].mxu0  ;;  %11025 = vmatprep.subr.bf16.mxu0 %v11024_v59  ;;  %v1102_v59 = vld [vmem:[%s15495_s3 + $0xbd8] sm:$0xff] }
 0x696   :  { %v3976_v47 = vmax.f32 %v3096_v29, 0.0  ;;  %v3099_v0 = vadd.f32 %v13841_v53, %v10095_v7  ;;  %v3090_v32 = vpop.f32.mrb[39].mxu1  ;;  %v5003_v54 = vadd.f32 %v13576_v5, %v10415_v46  ;;  %v4994_v35 = vpop.f32.mrb[163].mxu0  ;;  %v6228_v60 = vmax.f32 %v5000_v12, 0.0  ;;  %v1101_v46 = vld [vmem:[%s15495_s3 + $0xbd0] sm:$0xff] }
 0x697   :  { %v3974_v57 = vmax.f32 %v3088_v18, 0.0  ;;  %v3091_v56 = vadd.f32 %v13841_v53, %v3090_v32  ;;  %v4995_v15 = vadd.f32 %v13576_v5, %v4994_v35  ;;  %v6226_v29 = vmax.f32 %v4992_v8, 0.0 }
 0x698   :  { %10521 = vmatmul.mubr.bf16.gmra.mrb[12].mxu0 %v13860_v16  ;;  %10201 = vmatmul.mubr.msk.bf16.gmra.mrb[144].mxu1 %vm1362_vm4, %v1330_v37  ;;  %v3977_v9 = vmax.f32 %v3099_v0, 0.0  ;;  %v6229_v51 = vmax.f32 %v5003_v54, 0.0  ;;  %v1103_v37 = vld [vmem:[%s15495_s3 + $0xbe0] sm:$0xff]  ;;  %v1332_v0 = vpack.c.bf16 %v1102_v59, %v1101_v46 }
 0x699   :  { %10524 = vmatprep.mubr.bf16.mxu0 %v4260_v55  ;;  %v3975_v36 = vmax.f32 %v3091_v56, 0.0  ;;  %10204 = vmatprep.mubr.msk.bf16.mxu1 %vm1362_vm4, %v1331_v62  ;;  %v6227_v14 = vmax.f32 %v4995_v15, 0.0  ;;  %v1104_v62 = vld [vmem:[%s15495_s3 + $0xbe8] sm:$0xff] }
 0x69a   :  { %v13916_v16 = vpack.c.bf16 %v3977_v9, %v3976_v47  ;;  %v13924_v55 = vpack.c.bf16 %v6229_v51, %v6228_v60  ;;  %v1333_v15 = vpack.c.bf16 %v1104_v62, %v1103_v37 }
 0x69b   :  { %v4262_v12 = vpack.c.bf16 %v3975_v36, %v3974_v57  ;;  %v10098_v23 = vpop.f32.mrb[40].mxu1  ;;  %v10418_v18 = vpop.f32.mrb[164].mxu0  ;;  %v13926_v7 = vpack.c.bf16 %v6227_v14, %v6226_v29 }
 0x69c   :  { %15514 = vst [vmem:[#allocation12_spill] sm:$0xff] %v13924_v55  ;;  %v3112_v8 = vadd.f32 %v13841_v53, %v10098_v23  ;;  %v3103_v47 = vpop.f32.mrb[41].mxu1  ;;  %v5016_v32 = vadd.f32 %v13576_v5, %v10418_v18  ;;  %v5007_v54 = vpop.f32.mrb[165].mxu0 }
 0x69d   :  { %15515 = vst [vmem:[#allocation13_spill] sm:$0xff] %v13926_v7  ;;  %v3104_v35 = vadd.f32 %v13841_v53, %v3103_v47  ;;  %v10099_v56 = vpop.f32.mrb[42].mxu1  ;;  %v5008_v9 = vadd.f32 %v13576_v5, %v5007_v54  ;;  %v10419_v60 = vpop.f32.mrb[166].mxu0  ;;  %v1105_v47 = vld [vmem:[%s15495_s3 + $0xbf0] sm:$0xff]  ;;  %v1106_v54 = vld [vmem:[%s15495_s3 + $0xbf8] sm:$0xff] }
 0x69e   :  { %v3980_v51 = vmax.f32 %v3112_v8, 0.0  ;;  %v3115_v57 = vadd.f32 %v13841_v53, %v10099_v56  ;;  %v3106_v36 = vpop.f32.mrb[43].mxu1  ;;  %v5019_v29 = vadd.f32 %v13576_v5, %v10419_v60  ;;  %v5010_v46 = vpop.f32.mrb[167].mxu0  ;;  %v6232_v62 = vmax.f32 %v5016_v32, 0.0 }
 0x69f   :  { %v3978_v59 = vmax.f32 %v3104_v35, 0.0  ;;  %v3107_v14 = vadd.f32 %v13841_v53, %v3106_v36  ;;  %v5011_v23 = vadd.f32 %v13576_v5, %v5010_v46  ;;  %v6230_v35 = vmax.f32 %v5008_v9, 0.0 }
 0x6a0   :  { %10525 = vmatmul.mubr.bf16.gmra.mrb[16].mxu0 %v13889_v30  ;;  %10205 = vmatmul.mubr.msk.bf16.gmra.mrb[148].mxu1 %vm1362_vm4, %v1332_v0  ;;  %v3981_v37 = vmax.f32 %v3115_v57, 0.0  ;;  %v6233_v18 = vmax.f32 %v5019_v29, 0.0  ;;  %v1107_v0 = vld [vmem:[%s15495_s3 + $0xc00] sm:$0xff]  ;;  %v1334_v29 = vpack.c.bf16 %v1106_v54, %v1105_v47 }
 0x6a1   :  { %10528 = vmatprep.mubr.bf16.mxu0 %v4262_v12  ;;  %v3979_v8 = vmax.f32 %v3107_v14, 0.0  ;;  %10208 = vmatprep.mubr.msk.bf16.mxu1 %vm1362_vm4, %v1333_v15  ;;  %v6231_v56 = vmax.f32 %v5011_v23, 0.0  ;;  %v1108_v12 = vld [vmem:[%s15495_s3 + $0xc08] sm:$0xff] }
 0x6a2   :  { %v13945_v30 = vpack.c.bf16 %v3981_v37, %v3980_v51  ;;  %v13953_v32 = vpack.c.bf16 %v6233_v18, %v6232_v62  ;;  %v1335_v58 = vpack.c.bf16 %v1108_v12, %v1107_v0 }
 0x6a3   :  { %v4264_v15 = vpack.c.bf16 %v3979_v8, %v3978_v59  ;;  %v10102_v60 = vpop.f32.mrb[44].mxu1  ;;  %v10422_v57 = vpop.f32.mrb[168].mxu0  ;;  %v13955_v36 = vpack.c.bf16 %v6231_v56, %v6230_v35 }
 0x6a4   :  { %15516 = vst [vmem:[#allocation14_spill] sm:$0xff] %v13953_v32  ;;  %v3128_v9 = vadd.f32 %v13841_v53, %v10102_v60  ;;  %v3119_v51 = vpop.f32.mrb[45].mxu1  ;;  %v5032_v46 = vadd.f32 %v13576_v5, %v10422_v57  ;;  %v5023_v14 = vpop.f32.mrb[169].mxu0 }
 0x6a5   :  { %15517 = vst [vmem:[#allocation15_spill] sm:$0xff] %v13955_v36  ;;  %v3120_v23 = vadd.f32 %v13841_v53, %v3119_v51  ;;  %v10103_v37 = vpop.f32.mrb[46].mxu1  ;;  %v5024_v55 = vadd.f32 %v13576_v5, %v5023_v14  ;;  %v10423_v62 = vpop.f32.mrb[170].mxu0  ;;  %v1109_v51 = vld [vmem:[%s15495_s3 + $0xc10] sm:$0xff]  ;;  %v1110_v14 = vld [vmem:[%s15495_s3 + $0xc18] sm:$0xff] }
 0x6a6   :  { %v3984_v18 = vmax.f32 %v3128_v9, 0.0  ;;  %v3131_v59 = vadd.f32 %v13841_v53, %v10103_v37  ;;  %v3122_v8 = vpop.f32.mrb[47].mxu1  ;;  %v5035_v35 = vadd.f32 %v13576_v5, %v10423_v62  ;;  %v5026_v47 = vpop.f32.mrb[171].mxu0  ;;  %v6236_v12 = vmax.f32 %v5032_v46, 0.0 }
 0x6a7   :  { %v3982_v54 = vmax.f32 %v3120_v23, 0.0  ;;  %v3123_v56 = vadd.f32 %v13841_v53, %v3122_v8  ;;  %v5027_v60 = vadd.f32 %v13576_v5, %v5026_v47  ;;  %v6234_v5 = vmax.f32 %v5024_v55, 0.0 }
 0x6a8   :  { %10529 = vmatmul.mubr.bf16.gmra.mrb[20].mxu0 %v13916_v16  ;;  %10209 = vmatmul.mubr.msk.bf16.gmra.mrb[152].mxu1 %vm1362_vm4, %v1334_v29  ;;  %v3985_v0 = vmax.f32 %v3131_v59, 0.0  ;;  %v6237_v57 = vmax.f32 %v5035_v35, 0.0  ;;  %v1111_v29 = vld [vmem:[%s15495_s3 + $0xc20] sm:$0xff]  ;;  %v1336_v8 = vpack.c.bf16 %v1110_v14, %v1109_v51 }
 0x6a9   :  { %10532 = vmatprep.mubr.bf16.mxu0 %v4264_v15  ;;  %v3983_v9 = vmax.f32 %v3123_v56, 0.0  ;;  %10212 = vmatprep.mubr.msk.bf16.mxu1 %vm1362_vm4, %v1335_v58  ;;  %v6235_v23 = vmax.f32 %v5027_v60, 0.0  ;;  %v1112_v58 = vld [vmem:[%s15495_s3 + $0xc28] sm:$0xff]  ;;  %v13990_v35 = vld [vmem:[%s15494_s7 + $0x4] ss:$0 sm:$0xff] }
 0x6aa   :  { %v13974_v16 = vpack.c.bf16 %v3985_v0, %v3984_v18  ;;  %v13982_v15 = vpack.c.bf16 %v6237_v57, %v6236_v12 }
 0x6ab   :  { %v4266_v46 = vpack.c.bf16 %v3983_v9, %v3982_v54  ;;  %v10106_v37 = vpop.f32.mrb[48].mxu1  ;;  %v10426_v62 = vpop.f32.mrb[172].mxu0  ;;  %v13984_v59 = vpack.c.bf16 %v6235_v23, %v6234_v5  ;;  %v1337_v54 = vpack.c.bf16 %v1112_v58, %v1111_v29 }
 0x6ac   :  { %15518 = vst [vmem:[#allocation16_spill] sm:$0xff] %v13982_v15  ;;  %v3144_v55 = vadd.f32 %v13841_v53, %v10106_v37  ;;  %v3135_v18 = vpop.f32.mrb[49].mxu1  ;;  %v5048_v47 = vadd.f32 %v13990_v35, %v10426_v62  ;;  %v5039_v56 = vpop.f32.mrb[173].mxu0 }
 0x6ad   :  { %15519 = vst [vmem:[#allocation17_spill] sm:$0xff] %v13984_v59  ;;  %v3136_v60 = vadd.f32 %v13841_v53, %v3135_v18  ;;  %v10107_v0 = vpop.f32.mrb[50].mxu1  ;;  %v5040_v12 = vadd.f32 %v13990_v35, %v5039_v56  ;;  %v10427_v57 = vpop.f32.mrb[174].mxu0  ;;  %v1113_v56 = vld [vmem:[%s15495_s3 + $0xc30] sm:$0xff] }
 0x6ae   :  { %v3988_v9 = vmax.f32 %v3144_v55, 0.0  ;;  %v3147_v51 = vadd.f32 %v13841_v53, %v10107_v0  ;;  %v3138_v14 = vpop.f32.mrb[51].mxu1  ;;  %v5051_v5 = vadd.f32 %v13990_v35, %v10427_v57  ;;  %v5042_v23 = vpop.f32.mrb[175].mxu0  ;;  %v6240_v58 = vmax.f32 %v5048_v47, 0.0 }
 0x6af   :  { %v3986_v37 = vmax.f32 %v3136_v60, 0.0  ;;  %v3139_v15 = vadd.f32 %v13841_v53, %v3138_v14  ;;  %v5043_v62 = vadd.f32 %v13990_v35, %v5042_v23  ;;  %v1114_v60 = vld [vmem:[%s15495_s3 + $0xc38] sm:$0xff]  ;;  %v6238_v0 = vmax.f32 %v5040_v12, 0.0 }
 0x6b0   :  { %10533 = vmatmul.mubr.bf16.gmra.mrb[24].mxu0 %v13945_v30  ;;  %10213 = vmatmul.mubr.msk.bf16.gmra.mrb[156].mxu1 %vm1362_vm4, %v1336_v8  ;;  %v3989_v29 = vmax.f32 %v3147_v51, 0.0  ;;  %v6241_v18 = vmax.f32 %v5051_v5, 0.0  ;;  %v1115_v8 = vld [vmem:[%s15495_s3 + $0xc40] sm:$0xff]  ;;  %v1338_v5 = vpack.c.bf16 %v1114_v60, %v1113_v56 }
 0x6b1   :  { %10536 = vmatprep.mubr.bf16.mxu0 %v4266_v46  ;;  %v3987_v55 = vmax.f32 %v3139_v15, 0.0  ;;  %10216 = vmatprep.mubr.msk.bf16.mxu1 %vm1362_vm4, %v1337_v54  ;;  %v6239_v57 = vmax.f32 %v5043_v62, 0.0  ;;  %v1116_v15 = vld [vmem:[%s15495_s3 + $0xc48] sm:$0xff] }
 0x6b2   :  { %v14008_v30 = vpack.c.bf16 %v3989_v29, %v3988_v9  ;;  %v14016_v46 = vpack.c.bf16 %v6241_v18, %v6240_v58  ;;  %v1339_v32 = vpack.c.bf16 %v1116_v15, %v1115_v8 }
 0x6b3   :  { %v4268_v47 = vpack.c.bf16 %v3987_v55, %v3986_v37  ;;  %v10110_v54 = vpop.f32.mrb[52].mxu1  ;;  %v14018_v51 = vpack.c.bf16 %v6239_v57, %v6238_v0  ;;  %v10430_v14 = vpop.f32.mrb[176].mxu0 }
 0x6b4   :  { %v3160_v12 = vadd.f32 %v13841_v53, %v10110_v54  ;;  %v3151_v9 = vpop.f32.mrb[53].mxu1  ;;  %v5064_v23 = vadd.f32 %v13990_v35, %v10430_v14  ;;  %v5055_v62 = vpop.f32.mrb[177].mxu0 }
 0x6b5   :  { %v3152_v29 = vadd.f32 %v13841_v53, %v3151_v9  ;;  %v10111_v59 = vpop.f32.mrb[54].mxu1  ;;  %v5056_v36 = vadd.f32 %v13990_v35, %v5055_v62  ;;  %v10431_v58 = vpop.f32.mrb[178].mxu0  ;;  %v1118_v9 = vld [vmem:[%s15495_s3 + $0xc58] sm:$0xff] }
 0x6b6   :  { %v3992_v18 = vmax.f32 %v3160_v12, 0.0  ;;  %v3163_v37 = vadd.f32 %v13841_v53, %v10111_v59  ;;  %v3154_v55 = vpop.f32.mrb[55].mxu1  ;;  %v5067_v0 = vadd.f32 %v13990_v35, %v10431_v58  ;;  %v5058_v56 = vpop.f32.mrb[179].mxu0  ;;  %v6244_v15 = vmax.f32 %v5064_v23, 0.0  ;;  %v1117_v59 = vld [vmem:[%s15495_s3 + $0xc50] sm:$0xff] }
 0x6b7   :  { %v3990_v60 = vmax.f32 %v3152_v29, 0.0  ;;  %v3155_v57 = vadd.f32 %v13841_v53, %v3154_v55  ;;  %v5059_v54 = vadd.f32 %v13990_v35, %v5058_v56  ;;  %v6242_v62 = vmax.f32 %v5056_v36, 0.0 }
 0x6b8   :  { %10537 = vmatmul.mubr.bf16.gmra.mrb[28].mxu0 %v13974_v16  ;;  %10217 = vmatmul.mubr.msk.bf16.gmra.mrb[160].mxu1 %vm1362_vm4, %v1338_v5  ;;  %v3993_v8 = vmax.f32 %v3163_v37, 0.0  ;;  %v6245_v14 = vmax.f32 %v5067_v0, 0.0  ;;  %v1119_v5 = vld [vmem:[%s15495_s3 + $0xc60] sm:$0xff]  ;;  %v1340_v0 = vpack.c.bf16 %v1118_v9, %v1117_v59 }
 0x6b9   :  { %10540 = vmatprep.mubr.bf16.mxu0 %v4268_v47  ;;  %v3991_v12 = vmax.f32 %v3155_v57, 0.0  ;;  %10220 = vmatprep.mubr.msk.bf16.mxu1 %vm1362_vm4, %v1339_v32  ;;  %v6243_v29 = vmax.f32 %v5059_v54, 0.0  ;;  %v1120_v32 = vld [vmem:[%s15495_s3 + $0xc68] sm:$0xff] }
 0x6ba   :  { %v14037_v16 = vpack.c.bf16 %v3993_v8, %v3992_v18  ;;  %v14045_v47 = vpack.c.bf16 %v6245_v14, %v6244_v15  ;;  %v1341_v20 = vpack.c.bf16 %v1120_v32, %v1119_v5 }
 0x6bb   :  { %v4270_v23 = vpack.c.bf16 %v3991_v12, %v3990_v60  ;;  %v10114_v58 = vpop.f32.mrb[56].mxu1  ;;  %v14047_v37 = vpack.c.bf16 %v6243_v29, %v6242_v62  ;;  %v10434_v55 = vpop.f32.mrb[180].mxu0 }
 0x6bc   :  { %15520 = vst [vmem:[#allocation18_spill] sm:$0xff] %v14045_v47  ;;  %v3176_v36 = vadd.f32 %v13841_v53, %v10114_v58  ;;  %v3167_v18 = vpop.f32.mrb[57].mxu1  ;;  %v5080_v56 = vadd.f32 %v13990_v35, %v10434_v55  ;;  %v5071_v57 = vpop.f32.mrb[181].mxu0 }
 0x6bd   :  { %15521 = vst [vmem:[#allocation19_spill] sm:$0xff] %v14047_v37  ;;  %v3168_v54 = vadd.f32 %v13841_v53, %v3167_v18  ;;  %v10115_v8 = vpop.f32.mrb[58].mxu1  ;;  %v5072_v7 = vadd.f32 %v13990_v35, %v5071_v57  ;;  %v10435_v15 = vpop.f32.mrb[182].mxu0  ;;  %v1121_v18 = vld [vmem:[%s15495_s3 + $0xc70] sm:$0xff]  ;;  %v1122_v57 = vld [vmem:[%s15495_s3 + $0xc78] sm:$0xff] }
 0x6be   :  { %v3996_v14 = vmax.f32 %v3176_v36, 0.0  ;;  %v3179_v60 = vadd.f32 %v13841_v53, %v10115_v8  ;;  %v3170_v12 = vpop.f32.mrb[59].mxu1  ;;  %v5083_v62 = vadd.f32 %v13990_v35, %v10435_v15  ;;  %v5074_v59 = vpop.f32.mrb[183].mxu0  ;;  %v6248_v32 = vmax.f32 %v5080_v56, 0.0 }
 0x6bf   :  { %v3994_v9 = vmax.f32 %v3168_v54, 0.0  ;;  %v3171_v29 = vadd.f32 %v13841_v53, %v3170_v12  ;;  %v5075_v58 = vadd.f32 %v13990_v35, %v5074_v59  ;;  %v6246_v54 = vmax.f32 %v5072_v7, 0.0 }
 0x6c0   :  { %10541 = vmatmul.mubr.bf16.gmra.mrb[32].mxu0 %v14008_v30  ;;  %10221 = vmatmul.mubr.msk.bf16.gmra.mrb[164].mxu1 %vm1362_vm4, %v1340_v0  ;;  %v3997_v5 = vmax.f32 %v3179_v60, 0.0  ;;  %v6249_v55 = vmax.f32 %v5083_v62, 0.0  ;;  %v1123_v0 = vld [vmem:[%s15495_s3 + $0xc80] sm:$0xff]  ;;  %v1342_v62 = vpack.c.bf16 %v1122_v57, %v1121_v18 }
 0x6c1   :  { %10544 = vmatprep.mubr.bf16.mxu0 %v4270_v23  ;;  %v3995_v36 = vmax.f32 %v3171_v29, 0.0  ;;  %10224 = vmatprep.mubr.msk.bf16.mxu1 %vm1362_vm4, %v1341_v20  ;;  %v6247_v8 = vmax.f32 %v5075_v58, 0.0  ;;  %v1124_v20 = vld [vmem:[%s15495_s3 + $0xc88] sm:$0xff] }
 0x6c2   :  { %v14066_v30 = vpack.c.bf16 %v3997_v5, %v3996_v14  ;;  %v14074_v23 = vpack.c.bf16 %v6249_v55, %v6248_v32  ;;  %v1343_v49 = vpack.c.bf16 %v1124_v20, %v1123_v0 }
 0x6c3   :  { %v4272_v56 = vpack.c.bf16 %v3995_v36, %v3994_v9  ;;  %v10118_v15 = vpop.f32.mrb[60].mxu1  ;;  %v14076_v60 = vpack.c.bf16 %v6247_v8, %v6246_v54  ;;  %v10438_v12 = vpop.f32.mrb[184].mxu0 }
 0x6c4   :  { %15522 = vst [vmem:[#allocation20_spill] sm:$0xff] %v14074_v23  ;;  %v3192_v7 = vadd.f32 %v13841_v53, %v10118_v15  ;;  %v3183_v14 = vpop.f32.mrb[61].mxu1  ;;  %v5096_v59 = vadd.f32 %v13990_v35, %v10438_v12  ;;  %v5087_v29 = vpop.f32.mrb[185].mxu0 }
 0x6c5   :  { %15523 = vst [vmem:[#allocation21_spill] sm:$0xff] %v14076_v60  ;;  %v3184_v58 = vadd.f32 %v13841_v53, %v3183_v14  ;;  %v10119_v5 = vpop.f32.mrb[62].mxu1  ;;  %v5088_v31 = vadd.f32 %v13990_v35, %v5087_v29  ;;  %v10439_v32 = vpop.f32.mrb[186].mxu0  ;;  %v1125_v14 = vld [vmem:[%s15495_s3 + $0xc90] sm:$0xff]  ;;  %v1126_v29 = vld [vmem:[%s15495_s3 + $0xc98] sm:$0xff] }
 0x6c6   :  { %v4000_v55 = vmax.f32 %v3192_v7, 0.0  ;;  %v3195_v9 = vadd.f32 %v13841_v53, %v10119_v5  ;;  %v3186_v36 = vpop.f32.mrb[63].mxu1  ;;  %v5099_v54 = vadd.f32 %v13990_v35, %v10439_v32  ;;  %v5090_v18 = vpop.f32.mrb[187].mxu0  ;;  %v6252_v20 = vmax.f32 %v5096_v59, 0.0 }
 0x6c7   :  { %v3998_v57 = vmax.f32 %v3184_v58, 0.0  ;;  %v3187_v8 = vadd.f32 %v13841_v53, %v3186_v36  ;;  %v5091_v15 = vadd.f32 %v13990_v35, %v5090_v18  ;;  %v6250_v58 = vmax.f32 %v5088_v31, 0.0 }
 0x6c8   :  { %10545 = vmatmul.mubr.bf16.gmra.mrb[36].mxu0 %v14037_v16  ;;  %10225 = vmatmul.mubr.msk.bf16.gmra.mrb[168].mxu1 %vm1362_vm4, %v1342_v62  ;;  %v4001_v0 = vmax.f32 %v3195_v9, 0.0  ;;  %v6253_v12 = vmax.f32 %v5099_v54, 0.0  ;;  %v1127_v62 = vld [vmem:[%s15495_s3 + $0xca0] sm:$0xff]  ;;  %v1344_v54 = vpack.c.bf16 %v1126_v29, %v1125_v14 }
 0x6c9   :  { %10548 = vmatprep.mubr.bf16.mxu0 %v4272_v56  ;;  %v3999_v7 = vmax.f32 %v3187_v8, 0.0  ;;  %10228 = vmatprep.mubr.msk.bf16.mxu1 %vm1362_vm4, %v1343_v49  ;;  %v6251_v5 = vmax.f32 %v5091_v15, 0.0  ;;  %v1128_v49 = vld [vmem:[%s15495_s3 + $0xca8] sm:$0xff] }
 0x6ca   :  { %v14095_v16 = vpack.c.bf16 %v4001_v0, %v4000_v55  ;;  %v14103_v56 = vpack.c.bf16 %v6253_v12, %v6252_v20  ;;  %v1345_v61 = vpack.c.bf16 %v1128_v49, %v1127_v62 }
 0x6cb   :  { %v4274_v59 = vpack.c.bf16 %v3999_v7, %v3998_v57  ;;  %v10122_v32 = vpop.f32.mrb[64].mxu1  ;;  %v14105_v9 = vpack.c.bf16 %v6251_v5, %v6250_v58  ;;  %v10442_v36 = vpop.f32.mrb[188].mxu0 }
 0x6cc   :  { %15524 = vst [vmem:[#allocation22_spill] sm:$0xff] %v14103_v56  ;;  %v3208_v31 = vadd.f32 %v13841_v53, %v10122_v32  ;;  %v3199_v55 = vpop.f32.mrb[65].mxu1  ;;  %v5112_v18 = vadd.f32 %v13990_v35, %v10442_v36  ;;  %v5103_v8 = vpop.f32.mrb[189].mxu0 }
 0x6cd   :  { %15525 = vst [vmem:[#allocation23_spill] sm:$0xff] %v14105_v9  ;;  %v3200_v15 = vadd.f32 %v13841_v53, %v3199_v55  ;;  %v10123_v0 = vpop.f32.mrb[66].mxu1  ;;  %v5104_v23 = vadd.f32 %v13990_v35, %v5103_v8  ;;  %v10443_v20 = vpop.f32.mrb[190].mxu0  ;;  %v1129_v55 = vld [vmem:[%s15495_s3 + $0xcb0] sm:$0xff]  ;;  %v1130_v8 = vld [vmem:[%s15495_s3 + $0xcb8] sm:$0xff] }
 0x6ce   :  { %v4004_v12 = vmax.f32 %v3208_v31, 0.0  ;;  %v3211_v57 = vadd.f32 %v13841_v53, %v10123_v0  ;;  %v3202_v7 = vpop.f32.mrb[67].mxu1  ;;  %v5115_v58 = vadd.f32 %v13990_v35, %v10443_v20  ;;  %v5106_v14 = vpop.f32.mrb[191].mxu0  ;;  %v6256_v49 = vmax.f32 %v5112_v18, 0.0 }
 0x6cf   :  { %v4002_v29 = vmax.f32 %v3200_v15, 0.0  ;;  %v3203_v5 = vadd.f32 %v13841_v53, %v3202_v7  ;;  %v5107_v32 = vadd.f32 %v13990_v35, %v5106_v14  ;;  %v6254_v15 = vmax.f32 %v5104_v23, 0.0 }
 0x6d0   :  { %10549 = vmatmul.mubr.bf16.gmra.mrb[40].mxu0 %v14066_v30  ;;  %10229 = vmatmul.mubr.msk.bf16.gmra.mrb[172].mxu1 %vm1362_vm4, %v1344_v54  ;;  %v4005_v62 = vmax.f32 %v3211_v57, 0.0  ;;  %v6257_v36 = vmax.f32 %v5115_v58, 0.0  ;;  %v1131_v54 = vld [vmem:[%s15495_s3 + $0xcc0] sm:$0xff]  ;;  %v1346_v58 = vpack.c.bf16 %v1130_v8, %v1129_v55 }
 0x6d1   :  { %10552 = vmatprep.mubr.bf16.mxu0 %v4274_v59  ;;  %v4003_v31 = vmax.f32 %v3203_v5, 0.0  ;;  %10232 = vmatprep.mubr.msk.bf16.mxu1 %vm1362_vm4, %v1345_v61  ;;  %v6255_v0 = vmax.f32 %v5107_v32, 0.0  ;;  %v1132_v61 = vld [vmem:[%s15495_s3 + $0xcc8] sm:$0xff] }
 0x6d2   :  { %v14124_v30 = vpack.c.bf16 %v4005_v62, %v4004_v12  ;;  %v14132_v59 = vpack.c.bf16 %v6257_v36, %v6256_v49  ;;  %v1347_v56 = vpack.c.bf16 %v1132_v61, %v1131_v54 }
 0x6d3   :  { %v4276_v18 = vpack.c.bf16 %v4003_v31, %v4002_v29  ;;  %v10126_v20 = vpop.f32.mrb[68].mxu1  ;;  %v10446_v57 = vpop.f32.mrb[192].mxu0  ;;  %v14134_v7 = vpack.c.bf16 %v6255_v0, %v6254_v15 }
 0x6d4   :  { %v3224_v23 = vadd.f32 %v13841_v53, %v10126_v20  ;;  %v3215_v12 = vpop.f32.mrb[69].mxu1  ;;  %v5128_v14 = vadd.f32 %v13990_v35, %v10446_v57  ;;  %v5119_v5 = vpop.f32.mrb[193].mxu0 }
 0x6d5   :  { %v3216_v32 = vadd.f32 %v13841_v53, %v3215_v12  ;;  %v10127_v62 = vpop.f32.mrb[70].mxu1  ;;  %v5120_v9 = vadd.f32 %v13990_v35, %v5119_v5  ;;  %v10447_v49 = vpop.f32.mrb[194].mxu0  ;;  %v1133_v12 = vld [vmem:[%s15495_s3 + $0xcd0] sm:$0xff]  ;;  %v1134_v5 = vld [vmem:[%s15495_s3 + $0xcd8] sm:$0xff] }
 0x6d6   :  { %v4008_v36 = vmax.f32 %v3224_v23, 0.0  ;;  %v3227_v29 = vadd.f32 %v13841_v53, %v10127_v62  ;;  %v3218_v31 = vpop.f32.mrb[71].mxu1  ;;  %v5131_v15 = vadd.f32 %v13990_v35, %v10447_v49  ;;  %v5122_v55 = vpop.f32.mrb[195].mxu0  ;;  %v6260_v61 = vmax.f32 %v5128_v14, 0.0 }
 0x6d7   :  { %v4006_v8 = vmax.f32 %v3216_v32, 0.0  ;;  %v3219_v0 = vadd.f32 %v13841_v53, %v3218_v31  ;;  %v5123_v20 = vadd.f32 %v13990_v35, %v5122_v55  ;;  %v6258_v32 = vmax.f32 %v5120_v9, 0.0 }
 0x6d8   :  { %10553 = vmatmul.mubr.bf16.gmra.mrb[44].mxu0 %v14095_v16  ;;  %10233 = vmatmul.mubr.msk.bf16.gmra.mrb[176].mxu1 %vm1362_vm4, %v1346_v58  ;;  %v4009_v54 = vmax.f32 %v3227_v29, 0.0  ;;  %v6261_v57 = vmax.f32 %v5131_v15, 0.0  ;;  %v1135_v58 = vld [vmem:[%s15495_s3 + $0xce0] sm:$0xff]  ;;  %v1348_v15 = vpack.c.bf16 %v1134_v5, %v1133_v12 }
 0x6d9   :  { %10556 = vmatprep.mubr.bf16.mxu0 %v4276_v18  ;;  %v4007_v23 = vmax.f32 %v3219_v0, 0.0  ;;  %10236 = vmatprep.mubr.msk.bf16.mxu1 %vm1362_vm4, %v1347_v56  ;;  %v6259_v62 = vmax.f32 %v5123_v20, 0.0  ;;  %v1136_v56 = vld [vmem:[%s15495_s3 + $0xce8] sm:$0xff] }
 0x6da   :  { %v14153_v16 = vpack.c.bf16 %v4009_v54, %v4008_v36  ;;  %v14161_v18 = vpack.c.bf16 %v6261_v57, %v6260_v61  ;;  %v1349_v60 = vpack.c.bf16 %v1136_v56, %v1135_v58 }
 0x6db   :  { %v4278_v14 = vpack.c.bf16 %v4007_v23, %v4006_v8  ;;  %v10130_v49 = vpop.f32.mrb[72].mxu1  ;;  %v10450_v29 = vpop.f32.mrb[196].mxu0  ;;  %v14163_v31 = vpack.c.bf16 %v6259_v62, %v6258_v32 }
 0x6dc   :  { %15526 = vst [vmem:[#allocation24_spill] sm:$0xff] %v14161_v18  ;;  %v3240_v9 = vadd.f32 %v13841_v53, %v10130_v49  ;;  %v3231_v36 = vpop.f32.mrb[73].mxu1  ;;  %v5144_v55 = vadd.f32 %v13990_v35, %v10450_v29  ;;  %v5135_v0 = vpop.f32.mrb[197].mxu0 }
 0x6dd   :  { %v3232_v20 = vadd.f32 %v13841_v53, %v3231_v36  ;;  %v10131_v54 = vpop.f32.mrb[74].mxu1  ;;  %v5136_v47 = vadd.f32 %v13990_v35, %v5135_v0  ;;  %v10451_v61 = vpop.f32.mrb[198].mxu0  ;;  %v1137_v36 = vld [vmem:[%s15495_s3 + $0xcf0] sm:$0xff]  ;;  %v1138_v0 = vld [vmem:[%s15495_s3 + $0xcf8] sm:$0xff] }
 0x6de   :  { %v4012_v57 = vmax.f32 %v3240_v9, 0.0  ;;  %v3243_v8 = vadd.f32 %v13841_v53, %v10131_v54  ;;  %v3234_v23 = vpop.f32.mrb[75].mxu1  ;;  %v5147_v32 = vadd.f32 %v13990_v35, %v10451_v61  ;;  %v5138_v12 = vpop.f32.mrb[199].mxu0  ;;  %v6264_v56 = vmax.f32 %v5144_v55, 0.0 }
 0x6df   :  { %v4010_v5 = vmax.f32 %v3232_v20, 0.0  ;;  %v3235_v62 = vadd.f32 %v13841_v53, %v3234_v23  ;;  %v5139_v49 = vadd.f32 %v13990_v35, %v5138_v12  ;;  %v6262_v20 = vmax.f32 %v5136_v47, 0.0 }
 0x6e0   :  { %10557 = vmatmul.mubr.bf16.gmra.mrb[48].mxu0 %v14124_v30  ;;  %10237 = vmatmul.mubr.msk.bf16.gmra.mrb[180].mxu1 %vm1362_vm4, %v1348_v15  ;;  %v4013_v58 = vmax.f32 %v3243_v8, 0.0  ;;  %v6265_v29 = vmax.f32 %v5147_v32, 0.0  ;;  %v1139_v15 = vld [vmem:[%s15495_s3 + $0xd00] sm:$0xff]  ;;  %v1350_v32 = vpack.c.bf16 %v1138_v0, %v1137_v36 }
 0x6e1   :  { %10560 = vmatprep.mubr.bf16.mxu0 %v4278_v14  ;;  %v4011_v9 = vmax.f32 %v3235_v62, 0.0  ;;  %10240 = vmatprep.mubr.msk.bf16.mxu1 %vm1362_vm4, %v1349_v60  ;;  %v6263_v54 = vmax.f32 %v5139_v49, 0.0  ;;  %v1140_v60 = vld [vmem:[%s15495_s3 + $0xd08] sm:$0xff] }
 0x6e2   :  { %v14182_v30 = vpack.c.bf16 %v4013_v58, %v4012_v57  ;;  %v14190_v14 = vpack.c.bf16 %v6265_v29, %v6264_v56  ;;  %v1351_v18 = vpack.c.bf16 %v1140_v60, %v1139_v15 }
 0x6e3   :  { %v4280_v55 = vpack.c.bf16 %v4011_v9, %v4010_v5  ;;  %v10134_v61 = vpop.f32.mrb[76].mxu1  ;;  %v14192_v8 = vpack.c.bf16 %v6263_v54, %v6262_v20  ;;  %v10454_v23 = vpop.f32.mrb[200].mxu0 }
 0x6e4   :  { %15527 = vst [vmem:[#allocation25_spill] sm:$0xff] %v14190_v14  ;;  %v3256_v47 = vadd.f32 %v13841_v53, %v10134_v61  ;;  %v3247_v57 = vpop.f32.mrb[77].mxu1  ;;  %v5160_v12 = vadd.f32 %v13990_v35, %v10454_v23  ;;  %v5151_v62 = vpop.f32.mrb[201].mxu0 }
 0x6e5   :  { %15528 = vst [vmem:[#allocation26_spill] sm:$0xff] %v14192_v8  ;;  %v3248_v49 = vadd.f32 %v13841_v53, %v3247_v57  ;;  %v10135_v58 = vpop.f32.mrb[78].mxu1  ;;  %v5152_v37 = vadd.f32 %v13990_v35, %v5151_v62  ;;  %v10455_v56 = vpop.f32.mrb[202].mxu0  ;;  %v1141_v57 = vld [vmem:[%s15495_s3 + $0xd10] sm:$0xff]  ;;  %v1142_v62 = vld [vmem:[%s15495_s3 + $0xd18] sm:$0xff] }
 0x6e6   :  { %v4016_v29 = vmax.f32 %v3256_v47, 0.0  ;;  %v3259_v5 = vadd.f32 %v13841_v53, %v10135_v58  ;;  %v3250_v9 = vpop.f32.mrb[79].mxu1  ;;  %v5163_v20 = vadd.f32 %v13990_v35, %v10455_v56  ;;  %v5154_v36 = vpop.f32.mrb[203].mxu0  ;;  %v6268_v60 = vmax.f32 %v5160_v12, 0.0 }
 0x6e7   :  { %v4014_v0 = vmax.f32 %v3248_v49, 0.0  ;;  %v3251_v54 = vadd.f32 %v13841_v53, %v3250_v9  ;;  %v5155_v61 = vadd.f32 %v13990_v35, %v5154_v36  ;;  %v6266_v49 = vmax.f32 %v5152_v37, 0.0 }
 0x6e8   :  { %10561 = vmatmul.mubr.bf16.gmra.mrb[52].mxu0 %v14153_v16  ;;  %10241 = vmatmul.mubr.msk.bf16.gmra.mrb[184].mxu1 %vm1362_vm4, %v1350_v32  ;;  %v4017_v15 = vmax.f32 %v3259_v5, 0.0  ;;  %v6269_v23 = vmax.f32 %v5163_v20, 0.0  ;;  %v1352_v9 = vpack.c.bf16 %v1142_v62, %v1141_v57 }
 0x6e9   :  { %10564 = vmatprep.mubr.bf16.mxu0 %v4280_v55  ;;  %v4015_v47 = vmax.f32 %v3251_v54, 0.0  ;;  %10244 = vmatprep.mubr.msk.bf16.mxu1 %vm1362_vm4, %v1351_v18  ;;  %v6267_v58 = vmax.f32 %v5155_v61, 0.0 }
 0x6ea   :  { %v4283_v16 = vpack.c.bf16 %v4017_v15, %v4016_v29  ;;  %v14211_v56 = vpack.c.bf16 %v6269_v23, %v6268_v60  ;;  %v6499_v60 = vld [vmem:[%s15497_s4 + $0x8] sm:$0xff] }
 0x6eb   :  { %v4282_v32 = vpack.c.bf16 %v4015_v47, %v4014_v0  ;;  %v10138_v12 = vpop.f32.mrb[80].mxu1  ;;  %v14213_v5 = vpack.c.bf16 %v6267_v58, %v6266_v49  ;;  %v10458_v55 = vpop.f32.mrb[204].mxu0 }
 0x6ec   :  { %15529 = vst [vmem:[#allocation27_spill] sm:$0xff] %v14211_v56  ;;  %v3272_v18 = vadd.f32 %v13841_v53, %v10138_v12  ;;  %v3263_v20 = vpop.f32.mrb[81].mxu1  ;;  %v5176_v36 = vadd.f32 %v13990_v35, %v10458_v55  ;;  %v5167_v54 = vpop.f32.mrb[205].mxu0 }
 0x6ed   :  { %v3264_v14 = vadd.f32 %v13841_v53, %v3263_v20  ;;  %v10139_v8 = vpop.f32.mrb[82].mxu1  ;;  %v5168_v37 = vadd.f32 %v13990_v35, %v5167_v54  ;;  %v10459_v29 = vpop.f32.mrb[206].mxu0 }
 0x6ee   :  { %v4020_v61 = vmax.f32 %v3272_v18, 0.0  ;;  %v3275_v0 = vadd.f32 %v13841_v53, %v10139_v8  ;;  %v3266_v15 = vpop.f32.mrb[83].mxu1  ;;  %v5179_v23 = vadd.f32 %v13990_v35, %v10459_v29  ;;  %v5170_v47 = vpop.f32.mrb[207].mxu0  ;;  %v6272_v12 = vmax.f32 %v5176_v36, 0.0 }
 0x6ef   :  { %v4018_v57 = vmax.f32 %v3264_v14, 0.0  ;;  %v3267_v62 = vadd.f32 %v13841_v53, %v3266_v15  ;;  %v5171_v49 = vadd.f32 %v13990_v35, %v5170_v47  ;;  %v6270_v18 = vmax.f32 %v5168_v37, 0.0 }
 0x6f0   :  { %10565 = vmatmul.mubr.bf16.gmra.mrb[56].mxu0 %v14182_v30  ;;  %10245 = vmatmul.mubr.msk.bf16.gmra.mrb[188].mxu1 %vm1362_vm4, %v1352_v9  ;;  %v4021_v58 = vmax.f32 %v3275_v0, 0.0  ;;  %v6273_v8 = vmax.f32 %v5179_v23, 0.0  ;;  %v14235_v30 = vld [vmem:[%s15494_s7 + $0x3] ss:$0 sm:$0xff] }
 0x6f1   :  { %10568 = vmatprep.mubr.bf16.mxu0 %v4282_v32  ;;  %v4019_v55 = vmax.f32 %v3267_v62, 0.0  ;;  %6593 = vmatprep.mubr.f32.mxu1 %v6499_v60  ;;  %v6271_v20 = vmax.f32 %v5171_v49, 0.0 }
 0x6f2   :  { %v4285_v54 = vpack.c.bf16 %v4021_v58, %v4020_v61  ;;  %v14228_v29 = vpack.c.bf16 %v6273_v8, %v6272_v12  ;;  %v6498_v61 = vld [vmem:[%s15497_s4] sm:$0xff] }
 0x6f3   :  { %v4284_v14 = vpack.c.bf16 %v4019_v55, %v4018_v57  ;;  %v10142_v56 = vpop.f32.mrb[84].mxu1  ;;  %v14230_v53 = vpack.c.bf16 %v6271_v20, %v6270_v18  ;;  %v10462_v15 = vpop.f32.mrb[208].mxu0  ;;  %v6501_v55 = vld [vmem:[%s15497_s4 + $0x18] sm:$0xff] }
 0x6f4   :  { %15530 = vst [vmem:[#allocation28_spill] sm:$0xff] %v14228_v29  ;;  %v3288_v9 = vadd.f32 %v14235_v30, %v10142_v56  ;;  %v3279_v32 = vpop.f32.mrb[85].mxu1  ;;  %v5192_v36 = vadd.f32 %v13990_v35, %v10462_v15  ;;  %v5183_v37 = vpop.f32.mrb[209].mxu0 }
 0x6f5   :  { %v3280_v0 = vadd.f32 %v14235_v30, %v3279_v32  ;;  %v10143_v60 = vpop.f32.mrb[86].mxu1  ;;  %v5184_v23 = vadd.f32 %v13990_v35, %v5183_v37  ;;  %v10463_v47 = vpop.f32.mrb[210].mxu0 }
 0x6f6   :  { %v4024_v57 = vmax.f32 %v3288_v9, 0.0  ;;  %v3291_v62 = vadd.f32 %v14235_v30, %v10143_v60  ;;  %v3282_v49 = vpop.f32.mrb[87].mxu1  ;;  %v5195_v56 = vadd.f32 %v13990_v35, %v10463_v47  ;;  %v5186_v58 = vpop.f32.mrb[211].mxu0  ;;  %v6276_v15 = vmax.f32 %v5192_v36, 0.0 }
 0x6f7   :  { %v4022_v12 = vmax.f32 %v3280_v0, 0.0  ;;  %v3283_v8 = vadd.f32 %v14235_v30, %v3282_v49  ;;  %v5187_v18 = vadd.f32 %v13990_v35, %v5186_v58  ;;  %v6274_v37 = vmax.f32 %v5184_v23, 0.0 }
 0x6f8   :  { %10569 = vmatmul.mubr.bf16.gmra.mrb[60].mxu0 %v4283_v16  ;;  %6594 = vmatmul.mubr.f32.vlgmr.msra.gmra.mrb[192].mxu1 %v6498_v61  ;;  %v4025_v20 = vmax.f32 %v3291_v62, 0.0  ;;  %v6277_v9 = vmax.f32 %v5195_v56, 0.0 }
 0x6f9   :  { %10931 = vmatpush3.bf16.msra.mxu1 %v13087_v50  ;;  %10572 = vmatprep.mubr.bf16.mxu0 %v4284_v14  ;;  %v4023_v32 = vmax.f32 %v3283_v8, 0.0  ;;  %v6275_v60 = vmax.f32 %v5187_v18, 0.0 }
 0x6fa   :  { %10933 = vmatprep.subr.bf16.mxu1 %v13194_v11  ;;  %v4287_v0 = vpack.c.bf16 %v4025_v20, %v4024_v57  ;;  %6663 = vmatprep.mubr.f32.mxu1 %v6501_v55  ;;  %v14253_v47 = vpack.c.bf16 %v6277_v9, %v6276_v15 }
 0x6fb   :  { %v4286_v49 = vpack.c.bf16 %v4023_v32, %v4022_v12  ;;  %v10146_v29 = vpop.f32.mrb[88].mxu1  ;;  %v14255_v58 = vpack.c.bf16 %v6275_v60, %v6274_v37  ;;  %v10466_v16 = vpop.f32.mrb[212].mxu0 }
 0x6fc   :  { %v3304_v36 = vadd.f32 %v14235_v30, %v10146_v29  ;;  %v3295_v61 = vpop.f32.mrb[89].mxu1  ;;  %v5208_v50 = vadd.f32 %v13990_v35, %v10466_v16  ;;  %v5199_v14 = vpop.f32.mrb[213].mxu0 }
 0x6fd   :  { %10935 = vmatpush3.bf16.msra.mxu1 %v13078_v41  ;;  %v3296_v23 = vadd.f32 %v14235_v30, %v3295_v61  ;;  %v10147_v11 = vpop.f32.mrb[90].mxu1  ;;  %v5200_v57 = vadd.f32 %v13990_v35, %v5199_v14  ;;  %v10467_v62 = vpop.f32.mrb[214].mxu0 }
 0x6fe   :  { %10937 = vmatprep.subr.bf16.mxu1 %v13228_v1  ;;  %v4028_v56 = vmax.f32 %v3304_v36, 0.0  ;;  %v3307_v12 = vadd.f32 %v14235_v30, %v10147_v11  ;;  %v3298_v8 = vpop.f32.mrb[91].mxu1  ;;  %v5211_v29 = vadd.f32 %v13990_v35, %v10467_v62  ;;  %v5202_v55 = vpop.f32.mrb[215].mxu0  ;;  %v6280_v9 = vmax.f32 %v5208_v50, 0.0 }
 0x6ff   :  { %v4026_v18 = vmax.f32 %v3296_v23, 0.0  ;;  %v3299_v20 = vadd.f32 %v14235_v30, %v3298_v8  ;;  %v5203_v41 = vadd.f32 %v13990_v35, %v5202_v55  ;;  %v6278_v37 = vmax.f32 %v5200_v57, 0.0 }
 0x700   :  { %10573 = vmatmul.mubr.bf16.gmra.mrb[64].mxu0 %v4285_v54  ;;  %v4029_v15 = vmax.f32 %v3307_v12, 0.0  ;;  %v6281_v32 = vmax.f32 %v5211_v29, 0.0 }
 0x701   :  { %10939 = vmatpush3.bf16.msra.mxu1 %v13114_v22  ;;  %10576 = vmatprep.mubr.bf16.mxu0 %v4286_v49  ;;  %v4027_v1 = vmax.f32 %v3299_v20, 0.0  ;;  %v6279_v60 = vmax.f32 %v5203_v41, 0.0 }
 0x702   :  { %10941 = vmatprep.subr.bf16.mxu1 %v13226_v39  ;;  %v4289_v16 = vpack.c.bf16 %v4029_v15, %v4028_v56  ;;  %v14269_v36 = vpack.c.bf16 %v6281_v32, %v6280_v9 }
 0x703   :  { %v4288_v61 = vpack.c.bf16 %v4027_v1, %v4026_v18  ;;  %v10150_v14 = vpop.f32.mrb[92].mxu1  ;;  %v14271_v23 = vpack.c.bf16 %v6279_v60, %v6278_v37  ;;  %v10470_v11 = vpop.f32.mrb[216].mxu0 }
 0x704   :  { %v3320_v54 = vadd.f32 %v14235_v30, %v10150_v14  ;;  %v3311_v50 = vpop.f32.mrb[93].mxu1  ;;  %v5224_v62 = vadd.f32 %v13990_v35, %v10470_v11  ;;  %v5215_v22 = vpop.f32.mrb[217].mxu0 }
 0x705   :  { %10943 = vmatpush3.bf16.msra.mxu1 %v13106_v17  ;;  %v3312_v49 = vadd.f32 %v14235_v30, %v3311_v50  ;;  %v10151_v57 = vpop.f32.mrb[94].mxu1  ;;  %v5216_v39 = vadd.f32 %v13990_v35, %v5215_v22  ;;  %v10471_v56 = vpop.f32.mrb[218].mxu0 }
 0x706   :  { %10945 = vmatprep.subr.bf16.mxu1 %v13257_v43  ;;  %v4032_v12 = vmax.f32 %v3320_v54, 0.0  ;;  %v3323_v8 = vadd.f32 %v14235_v30, %v10151_v57  ;;  %v3314_v29 = vpop.f32.mrb[95].mxu1  ;;  %v5227_v55 = vadd.f32 %v13990_v35, %v10471_v56  ;;  %v5218_v18 = vpop.f32.mrb[219].mxu0  ;;  %v6284_v9 = vmax.f32 %v5224_v62, 0.0 }
 0x707   :  { %v4030_v20 = vmax.f32 %v3312_v49, 0.0  ;;  %v3315_v41 = vadd.f32 %v14235_v30, %v3314_v29  ;;  %v5219_v17 = vadd.f32 %v13990_v35, %v5218_v18  ;;  %v6282_v1 = vmax.f32 %v5216_v39, 0.0 }
 0x708   :  { %10577 = vmatmul.mubr.bf16.gmra.mrb[68].mxu0 %v4287_v0  ;;  %v4033_v15 = vmax.f32 %v3323_v8, 0.0  ;;  %v6285_v32 = vmax.f32 %v5227_v55, 0.0 }
 0x709   :  { %10947 = vmatpush3.bf16.msra.mxu1 %v13140_v63  ;;  %10580 = vmatprep.mubr.bf16.mxu0 %v4288_v61  ;;  %v4031_v43 = vmax.f32 %v3315_v41, 0.0  ;;  %v6283_v37 = vmax.f32 %v5219_v17, 0.0 }
 0x70a   :  { %10949 = vmatprep.subr.bf16.mxu1 %v13255_v25  ;;  %v4291_v60 = vpack.c.bf16 %v4033_v15, %v4032_v12  ;;  %v14285_v14 = vpack.c.bf16 %v6285_v32, %v6284_v9 }
 0x70b   :  { %v4290_v11 = vpack.c.bf16 %v4031_v43, %v4030_v20  ;;  %v10154_v54 = vpop.f32.mrb[96].mxu1  ;;  %v14287_v50 = vpack.c.bf16 %v6283_v37, %v6282_v1  ;;  %v10474_v22 = vpop.f32.mrb[220].mxu0 }
 0x70c   :  { %v3336_v0 = vadd.f32 %v14235_v30, %v10154_v54  ;;  %v3327_v62 = vpop.f32.mrb[97].mxu1  ;;  %v5240_v49 = vadd.f32 %v13990_v35, %v10474_v22  ;;  %v5231_v63 = vpop.f32.mrb[221].mxu0 }
 0x70d   :  { %10951 = vmatpush3.bf16.msra.mxu1 %v13132_v42  ;;  %v3328_v61 = vadd.f32 %v14235_v30, %v3327_v62  ;;  %v10155_v57 = vpop.f32.mrb[98].mxu1  ;;  %v5232_v25 = vadd.f32 %v13990_v35, %v5231_v63  ;;  %v10475_v39 = vpop.f32.mrb[222].mxu0  ;;  %v6500_v63 = vld [vmem:[%s15497_s4 + $0x10] sm:$0xff] }
 0x70e   :  { %10953 = vmatprep.subr.bf16.mxu1 %v13286_v24  ;;  %v4036_v56 = vmax.f32 %v3336_v0, 0.0  ;;  %v3339_v12 = vadd.f32 %v14235_v30, %v10155_v57  ;;  %v3330_v8 = vpop.f32.mrb[99].mxu1  ;;  %v5243_v29 = vadd.f32 %v13990_v35, %v10475_v39  ;;  %v5234_v55 = vpop.f32.mrb[223].mxu0  ;;  %v6288_v17 = vmax.f32 %v5240_v49, 0.0 }
 0x70f   :  { %v4034_v18 = vmax.f32 %v3328_v61, 0.0  ;;  %v3331_v20 = vadd.f32 %v14235_v30, %v3330_v8  ;;  %v5235_v42 = vadd.f32 %v13990_v35, %v5234_v55  ;;  %v6286_v9 = vmax.f32 %v5232_v25, 0.0 }
 0x710   :  { %10581 = vmatmul.mubr.bf16.gmra.mrb[72].mxu0 %v4289_v16  ;;  %v4037_v41 = vmax.f32 %v3339_v12, 0.0  ;;  %v6289_v15 = vmax.f32 %v5243_v29, 0.0 }
 0x711   :  { %10955 = vmatpush3.bf16.msra.mxu1 %v13168_v38  ;;  %10584 = vmatprep.mubr.bf16.mxu0 %v4290_v11  ;;  %v4035_v24 = vmax.f32 %v3331_v20, 0.0  ;;  %v6287_v32 = vmax.f32 %v5235_v42, 0.0 }
 0x712   :  { %10957 = vmatprep.subr.bf16.mxu1 %v13284_v10  ;;  %v14301_v43 = vpack.c.bf16 %v4037_v41, %v4036_v56  ;;  %v14303_v1 = vpack.c.bf16 %v6289_v15, %v6288_v17 }
 0x713   :  { %v4292_v37 = vpack.c.bf16 %v4035_v24, %v4034_v18  ;;  %v10158_v54 = vpop.f32.mrb[100].mxu1  ;;  %v14305_v22 = vpack.c.bf16 %v6287_v32, %v6286_v9  ;;  %v10478_v16 = vpop.f32.mrb[224].mxu0  ;;  %v6505_v18 = vld [vmem:[%s15497_s4 + $0x38] sm:$0xff] }
 0x714   :  { %v3352_v0 = vadd.f32 %v14235_v30, %v10158_v54  ;;  %v3343_v62 = vpop.f32.mrb[101].mxu1  ;;  %v5256_v38 = vadd.f32 %v13990_v35, %v10478_v16  ;;  %v5247_v11 = vpop.f32.mrb[225].mxu0 }
 0x715   :  { %10959 = vmatpush3.bf16.msra.mxu1 %v13158_v19  ;;  %v3344_v49 = vadd.f32 %v14235_v30, %v3343_v62  ;;  %v10159_v10 = vpop.f32.mrb[102].mxu1  ;;  %v5248_v61 = vadd.f32 %v13990_v35, %v5247_v11  ;;  %v10479_v57 = vpop.f32.mrb[226].mxu0 }
 0x716   :  { %v4040_v25 = vmax.f32 %v3352_v0, 0.0  ;;  %v3355_v39 = vadd.f32 %v14235_v30, %v10159_v10  ;;  %v3346_v56 = vpop.f32.mrb[103].mxu1  ;;  %10993 = vmatprep.subr.bf16.mxu1 %v13664_v2  ;;  %v5259_v12 = vadd.f32 %v13990_v35, %v10479_v57  ;;  %v5250_v8 = vpop.f32.mrb[227].mxu0  ;;  %v6292_v42 = vmax.f32 %v5256_v38, 0.0 }
 0x717   :  { %v4038_v19 = vmax.f32 %v3344_v49, 0.0  ;;  %v3347_v29 = vadd.f32 %v14235_v30, %v3346_v56  ;;  %v5251_v55 = vadd.f32 %v13990_v35, %v5250_v8  ;;  %v6290_v2 = vmax.f32 %v5248_v61, 0.0 }
 0x718   :  { %10585 = vmatmul.mubr.bf16.gmra.mrb[76].mxu0 %v4291_v60  ;;  %v4041_v20 = vmax.f32 %v3355_v39, 0.0  ;;  %6664 = vmatmul.mubr.f32.vlgmr.msra.gmra.mrb[194].mxu1 %v6500_v63  ;;  %v6293_v41 = vmax.f32 %v5259_v12, 0.0 }
 0x719   :  { %10588 = vmatprep.mubr.bf16.mxu0 %v4292_v37  ;;  %v4039_v17 = vmax.f32 %v3347_v29, 0.0  ;;  %10995 = vmatpush3.bf16.msra.mxu1 %v13542_v13  ;;  %v6291_v15 = vmax.f32 %v5251_v55, 0.0  ;;  %v14333_v13 = vld [vmem:[%s15494_s7 + $0x4] ss:$0 sm:$0xff] }
 0x71a   :  { %v4295_v24 = vpack.c.bf16 %v4041_v20, %v4040_v25  ;;  %10997 = vmatprep.subr.bf16.mxu1 %v13660_v28  ;;  %v14325_v9 = vpack.c.bf16 %v6293_v41, %v6292_v42  ;;  %6803 = vmatprep.mubr.f32.mxu1 %v6505_v18 }
 0x71b   :  { %v4294_v35 = vpack.c.bf16 %v4039_v17, %v4038_v19  ;;  %v10162_v32 = vpop.f32.mrb[104].mxu1  ;;  %v14327_v54 = vpack.c.bf16 %v6291_v15, %v6290_v2  ;;  %v10482_v60 = vpop.f32.mrb[228].mxu0 }
 0x71c   :  { %v3368_v16 = vadd.f32 %v14235_v30, %v10162_v32  ;;  %v3359_v0 = vpop.f32.mrb[105].mxu1  ;;  %v5272_v37 = vadd.f32 %v14333_v13, %v10482_v60  ;;  %v5263_v62 = vpop.f32.mrb[229].mxu0 }
 0x71d   :  { %v3360_v28 = vadd.f32 %v14235_v30, %v3359_v0  ;;  %v10163_v38 = vpop.f32.mrb[106].mxu1  ;;  %10999 = vmatpush3.bf16.msra.mxu1 %v13539_v33  ;;  %v5264_v11 = vadd.f32 %v14333_v13, %v5263_v62  ;;  %v10483_v49 = vpop.f32.mrb[230].mxu0 }
 0x71e   :  { %v4044_v10 = vmax.f32 %v3368_v16, 0.0  ;;  %v3371_v63 = vadd.f32 %v14235_v30, %v10163_v38  ;;  %v3362_v61 = vpop.f32.mrb[107].mxu1  ;;  %11001 = vmatprep.subr.bf16.mxu1 %v13693_v48  ;;  %v5275_v57 = vadd.f32 %v14333_v13, %v10483_v49  ;;  %v5266_v25 = vpop.f32.mrb[231].mxu0  ;;  %v6296_v8 = vmax.f32 %v5272_v37, 0.0 }
 0x71f   :  { %v4042_v39 = vmax.f32 %v3360_v28, 0.0  ;;  %v3363_v56 = vadd.f32 %v14235_v30, %v3362_v61  ;;  %v5267_v12 = vadd.f32 %v14333_v13, %v5266_v25  ;;  %v6294_v55 = vmax.f32 %v5264_v11, 0.0 }
 0x720   :  { %10589 = vmatmul.mubr.bf16.gmra.mrb[80].mxu0 %v14301_v43  ;;  %v4045_v33 = vmax.f32 %v3371_v63, 0.0  ;;  %v6297_v19 = vmax.f32 %v5275_v57, 0.0 }
 0x721   :  { %10592 = vmatprep.mubr.bf16.mxu0 %v4294_v35  ;;  %v4043_v29 = vmax.f32 %v3363_v56, 0.0  ;;  %11003 = vmatpush3.bf16.msra.mxu1 %v13571_v4  ;;  %v6295_v18 = vmax.f32 %v5267_v12, 0.0 }
 0x722   :  { %v4297_v48 = vpack.c.bf16 %v4045_v33, %v4044_v10  ;;  %11005 = vmatprep.subr.bf16.mxu1 %v13689_v45  ;;  %v14347_v20 = vpack.c.bf16 %v6297_v19, %v6296_v8 }
 0x723   :  { %v4296_v42 = vpack.c.bf16 %v4043_v29, %v4042_v39  ;;  %v10166_v41 = vpop.f32.mrb[108].mxu1  ;;  %v14349_v17 = vpack.c.bf16 %v6295_v18, %v6294_v55  ;;  %v10486_v2 = vpop.f32.mrb[232].mxu0 }
 0x724   :  { %v3384_v43 = vadd.f32 %v14235_v30, %v10166_v41  ;;  %v3375_v15 = vpop.f32.mrb[109].mxu1  ;;  %v5288_v35 = vadd.f32 %v14333_v13, %v10486_v2  ;;  %v5279_v32 = vpop.f32.mrb[233].mxu0 }
 0x725   :  { %v3376_v4 = vadd.f32 %v14235_v30, %v3375_v15  ;;  %v10167_v60 = vpop.f32.mrb[110].mxu1  ;;  %11007 = vmatpush3.bf16.msra.mxu1 %v13568_v52  ;;  %v5280_v45 = vadd.f32 %v14333_v13, %v5279_v32  ;;  %v10487_v16 = vpop.f32.mrb[234].mxu0 }
 0x726   :  { %v4048_v0 = vmax.f32 %v3384_v43, 0.0  ;;  %v3387_v37 = vadd.f32 %v14235_v30, %v10167_v60  ;;  %v3378_v62 = vpop.f32.mrb[111].mxu1  ;;  %11009 = vmatprep.subr.bf16.mxu1 %v13722_v34  ;;  %v5291_v28 = vadd.f32 %v14333_v13, %v10487_v16  ;;  %v5282_v38 = vpop.f32.mrb[235].mxu0  ;;  %v6300_v52 = vmax.f32 %v5288_v35, 0.0 }
 0x727   :  { %v4046_v11 = vmax.f32 %v3376_v4, 0.0  ;;  %v3379_v49 = vadd.f32 %v14235_v30, %v3378_v62  ;;  %v5283_v10 = vadd.f32 %v14333_v13, %v5282_v38  ;;  %v6298_v25 = vmax.f32 %v5280_v45, 0.0 }
 0x728   :  { %10593 = vmatmul.mubr.bf16.gmra.mrb[84].mxu0 %v4295_v24  ;;  %v4049_v63 = vmax.f32 %v3387_v37, 0.0  ;;  %v6301_v61 = vmax.f32 %v5291_v28, 0.0 }
 0x729   :  { %10596 = vmatprep.mubr.bf16.mxu0 %v4296_v42  ;;  %v4047_v57 = vmax.f32 %v3379_v49, 0.0  ;;  %11011 = vmatpush3.bf16.msra.mxu1 %v13605_v40  ;;  %v6299_v39 = vmax.f32 %v5283_v10, 0.0 }
 0x72a   :  { %v4299_v56 = vpack.c.bf16 %v4049_v63, %v4048_v0  ;;  %11013 = vmatprep.subr.bf16.mxu1 %v13718_v27  ;;  %v14363_v34 = vpack.c.bf16 %v6301_v61, %v6300_v52 }
 0x72b   :  { %v4298_v12 = vpack.c.bf16 %v4047_v57, %v4046_v11  ;;  %v10170_v33 = vpop.f32.mrb[112].mxu1  ;;  %v14365_v8 = vpack.c.bf16 %v6299_v39, %v6298_v25  ;;  %v10490_v19 = vpop.f32.mrb[236].mxu0 }
 0x72c   :  { %v3400_v24 = vadd.f32 %v14235_v30, %v10170_v33  ;;  %v3391_v29 = vpop.f32.mrb[113].mxu1  ;;  %v5304_v55 = vadd.f32 %v14333_v13, %v10490_v19  ;;  %v5295_v18 = vpop.f32.mrb[237].mxu0 }
 0x72d   :  { %v3392_v40 = vadd.f32 %v14235_v30, %v3391_v29  ;;  %v10171_v42 = vpop.f32.mrb[114].mxu1  ;;  %11015 = vmatpush3.bf16.msra.mxu1 %v13602_v21  ;;  %v5296_v27 = vadd.f32 %v14333_v13, %v5295_v18  ;;  %v10491_v41 = vpop.f32.mrb[238].mxu0 }
 0x72e   :  { %v4052_v2 = vmax.f32 %v3400_v24, 0.0  ;;  %v3403_v43 = vadd.f32 %v14235_v30, %v10171_v42  ;;  %v3394_v15 = vpop.f32.mrb[115].mxu1  ;;  %11017 = vmatprep.subr.bf16.mxu1 %v13751_v26  ;;  %v5307_v35 = vadd.f32 %v14333_v13, %v10491_v41  ;;  %v5298_v32 = vpop.f32.mrb[239].mxu0  ;;  %v6304_v21 = vmax.f32 %v5304_v55, 0.0  ;;  %v6509_v42 = vld [vmem:[%s15497_s4 + $0x58] sm:$0xff] }
 0x72f   :  { %v4050_v4 = vmax.f32 %v3392_v40, 0.0  ;;  %v3395_v60 = vadd.f32 %v14235_v30, %v3394_v15  ;;  %v5299_v45 = vadd.f32 %v14333_v13, %v5298_v32  ;;  %v6302_v62 = vmax.f32 %v5296_v27, 0.0 }
 0x730   :  { %10597 = vmatmul.mubr.bf16.gmra.mrb[88].mxu0 %v4297_v48  ;;  %v4053_v16 = vmax.f32 %v3403_v43, 0.0  ;;  %v6305_v0 = vmax.f32 %v5307_v35, 0.0 }
 0x731   :  { %10600 = vmatprep.mubr.bf16.mxu0 %v4298_v12  ;;  %v4051_v37 = vmax.f32 %v3395_v60, 0.0  ;;  %11019 = vmatpush3.bf16.msra.mxu1 %v13634_v6  ;;  %v6303_v28 = vmax.f32 %v5299_v45, 0.0  ;;  %v6504_v12 = vld [vmem:[%s15497_s4 + $0x30] sm:$0xff] }
 0x732   :  { %v14378_v38 = vpack.c.bf16 %v4053_v16, %v4052_v2  ;;  %11021 = vmatprep.subr.bf16.mxu1 %v13747_v44  ;;  %v14381_v26 = vpack.c.bf16 %v6305_v0, %v6304_v21 }
 0x733   :  { %v4300_v11 = vpack.c.bf16 %v4051_v37, %v4050_v4  ;;  %v10174_v49 = vpop.f32.mrb[116].mxu1  ;;  %v14383_v10 = vpack.c.bf16 %v6303_v28, %v6302_v62  ;;  %v10494_v48 = vpop.f32.mrb[240].mxu0 }
 0x734   :  { %v3416_v63 = vadd.f32 %v14235_v30, %v10174_v49  ;;  %v3407_v52 = vpop.f32.mrb[117].mxu1  ;;  %v5320_v61 = vadd.f32 %v14333_v13, %v10494_v48  ;;  %v5311_v57 = vpop.f32.mrb[241].mxu0 }
 0x735   :  { %v3408_v6 = vadd.f32 %v14235_v30, %v3407_v52  ;;  %v10175_v25 = vpop.f32.mrb[118].mxu1  ;;  %11023 = vmatpush3.bf16.msra.mxu1 %v13631_v3  ;;  %v5312_v44 = vadd.f32 %v14333_v13, %v5311_v57  ;;  %v10495_v39 = vpop.f32.mrb[242].mxu0 }
 0x736   :  { %v4056_v33 = vmax.f32 %v3416_v63, 0.0  ;;  %v3419_v19 = vadd.f32 %v14235_v30, %v10175_v25  ;;  %v3410_v24 = vpop.f32.mrb[119].mxu1  ;;  %v5323_v29 = vadd.f32 %v14333_v13, %v10495_v39  ;;  %v5314_v55 = vpop.f32.mrb[243].mxu0  ;;  %11057 = vmatprep.subr.bf16.mxu1 %v14134_v7  ;;  %v6308_v41 = vmax.f32 %v5320_v61, 0.0 }
 0x737   :  { %v4054_v18 = vmax.f32 %v3408_v6, 0.0  ;;  %v3411_v40 = vadd.f32 %v14235_v30, %v3410_v24  ;;  %v5315_v3 = vadd.f32 %v14333_v13, %v5314_v55  ;;  %v6306_v15 = vmax.f32 %v5312_v44, 0.0 }
 0x738   :  { %10601 = vmatmul.mubr.bf16.gmra.mrb[92].mxu0 %v4299_v56  ;;  %v4057_v27 = vmax.f32 %v3419_v19, 0.0  ;;  %v6309_v2 = vmax.f32 %v5323_v29, 0.0  ;;  %6804 = vmatmul.mubr.f32.vlgmr.msra.gmra.mrb[196].mxu1 %v6504_v12  ;;  %v15531_v19 = vld [vmem:[#allocation19_spill] sm:$0xff] }
 0x739   :  { %10604 = vmatprep.mubr.bf16.mxu0 %v4300_v11  ;;  %v4055_v43 = vmax.f32 %v3411_v40, 0.0  ;;  %v6307_v35 = vmax.f32 %v5315_v3, 0.0  ;;  %11059 = vmatpush3.bf16.msra.mxu1 %v14018_v51 }
 0x73a   :  { %v4303_v7 = vpack.c.bf16 %v4057_v27, %v4056_v33  ;;  %v14402_v32 = vpack.c.bf16 %v6309_v2, %v6308_v41  ;;  %11061 = vmatprep.subr.bf16.mxu1 %v14132_v59  ;;  %6943 = vmatprep.mubr.f32.mxu1 %v6509_v42 }
 0x73b   :  { %v4302_v4 = vpack.c.bf16 %v4055_v43, %v4054_v18  ;;  %v10178_v60 = vpop.f32.mrb[120].mxu1  ;;  %v14405_v45 = vpack.c.bf16 %v6307_v35, %v6306_v15  ;;  %v10498_v56 = vpop.f32.mrb[244].mxu0 }
 0x73c   :  { %v3432_v16 = vadd.f32 %v14235_v30, %v10178_v60  ;;  %v3423_v21 = vpop.f32.mrb[121].mxu1  ;;  %v5336_v0 = vadd.f32 %v14333_v13, %v10498_v56  ;;  %v5327_v37 = vpop.f32.mrb[245].mxu0 }
 0x73d   :  { %v3424_v62 = vadd.f32 %v14235_v30, %v3423_v21  ;;  %v10179_v51 = vpop.f32.mrb[122].mxu1  ;;  %v5328_v28 = vadd.f32 %v14333_v13, %v5327_v37  ;;  %v10499_v11 = vpop.f32.mrb[246].mxu0  ;;  %11063 = vmatpush3.bf16.msra.mxu1 %v14016_v46  ;;  %v15534_v37 = vld [vmem:[#allocation26_spill] sm:$0xff] }
 0x73e   :  { %v4060_v59 = vmax.f32 %v3432_v16, 0.0  ;;  %v3435_v49 = vadd.f32 %v14235_v30, %v10179_v51  ;;  %v3426_v48 = vpop.f32.mrb[123].mxu1  ;;  %v5339_v63 = vadd.f32 %v14333_v13, %v10499_v11  ;;  %v5330_v52 = vpop.f32.mrb[247].mxu0  ;;  %11065 = vmatprep.subr.bf16.mxu1 %v14163_v31  ;;  %v6312_v44 = vmax.f32 %v5336_v0, 0.0  ;;  %v15532_v31 = vld [vmem:[#allocation24_spill] sm:$0xff] }
 0x73f   :  { %v4058_v61 = vmax.f32 %v3424_v62, 0.0  ;;  %v3427_v57 = vadd.f32 %v14235_v30, %v3426_v48  ;;  %v5331_v6 = vadd.f32 %v14333_v13, %v5330_v52  ;;  %v6310_v12 = vmax.f32 %v5328_v28, 0.0 }
 0x740   :  { %10605 = vmatmul.mubr.bf16.gmra.mrb[96].mxu0 %v14378_v38  ;;  %v4061_v25 = vmax.f32 %v3435_v49, 0.0  ;;  %v6313_v39 = vmax.f32 %v5339_v63, 0.0 }
 0x741   :  { %10608 = vmatprep.mubr.bf16.mxu0 %v4302_v4  ;;  %v4059_v46 = vmax.f32 %v3427_v57, 0.0  ;;  %v6311_v33 = vmax.f32 %v5331_v6, 0.0  ;;  %11067 = vmatpush3.bf16.msra.mxu1 %v15531_v19  ;;  %v15533_v4 = vld [vmem:[#allocation18_spill] sm:$0xff] }
 0x742   :  { %v4305_v24 = vpack.c.bf16 %v4061_v25, %v4060_v59  ;;  %v14419_v29 = vpack.c.bf16 %v6313_v39, %v6312_v44  ;;  %11069 = vmatprep.subr.bf16.mxu1 %v15532_v31  ;;  %v15536_v25 = vld [vmem:[#allocation25_spill] sm:$0xff] }
 0x743   :  { %v4304_v55 = vpack.c.bf16 %v4059_v46, %v4058_v61  ;;  %v10182_v18 = vpop.f32.mrb[124].mxu1  ;;  %v14422_v40 = vpack.c.bf16 %v6311_v33, %v6310_v12  ;;  %v10502_v3 = vpop.f32.mrb[248].mxu0  ;;  %v15535_v61 = vld [vmem:[#allocation21_spill] sm:$0xff] }
 0x744   :  { %v3448_v38 = vadd.f32 %v14235_v30, %v10182_v18  ;;  %v3439_v42 = vpop.f32.mrb[125].mxu1  ;;  %v5352_v27 = vadd.f32 %v14333_v13, %v10502_v3  ;;  %v5343_v41 = vpop.f32.mrb[249].mxu0 }
 0x745   :  { %v3440_v2 = vadd.f32 %v14235_v30, %v3439_v42  ;;  %v10183_v43 = vpop.f32.mrb[126].mxu1  ;;  %v5344_v15 = vadd.f32 %v14333_v13, %v5343_v41  ;;  %v10503_v35 = vpop.f32.mrb[250].mxu0  ;;  %11071 = vmatpush3.bf16.msra.mxu1 %v15533_v4  ;;  %v15537_v42 = vld [vmem:[#allocation20_spill] sm:$0xff] }
 0x746   :  { %v4064_v60 = vmax.f32 %v3448_v38, 0.0  ;;  %v3451_v56 = vadd.f32 %v14235_v30, %v10183_v43  ;;  %v3442_v16 = vpop.f32.mrb[127].mxu1  ;;  %v5355_v21 = vadd.f32 %v14333_v13, %v10503_v35  ;;  %v5346_v0 = vpop.f32.mrb[251].mxu0  ;;  %11073 = vmatprep.subr.bf16.mxu1 %v15534_v37  ;;  %v6316_v59 = vmax.f32 %v5352_v27, 0.0 }
 0x747   :  { %v4062_v62 = vmax.f32 %v3440_v2, 0.0  ;;  %v3443_v51 = vadd.f32 %v14235_v30, %v3442_v16  ;;  %v5347_v28 = vadd.f32 %v14333_v13, %v5346_v0  ;;  %v6314_v63 = vmax.f32 %v5344_v15, 0.0 }
 0x748   :  { %10609 = vmatmul.mubr.bf16.gmra.mrb[100].mxu0 %v4303_v7  ;;  %v4065_v11 = vmax.f32 %v3451_v56, 0.0  ;;  %v6317_v49 = vmax.f32 %v5355_v21, 0.0 }
 0x749   :  { %10612 = vmatprep.mubr.bf16.mxu0 %v4304_v55  ;;  %v4063_v48 = vmax.f32 %v3443_v51, 0.0  ;;  %v6315_v52 = vmax.f32 %v5347_v28, 0.0  ;;  %11075 = vmatpush3.bf16.msra.mxu1 %v15535_v61  ;;  %v15538_v51 = vld [vmem:[#allocation23_spill] sm:$0xff] }
 0x74a   :  { %v4307_v57 = vpack.c.bf16 %v4065_v11, %v4064_v60  ;;  %v14435_v6 = vpack.c.bf16 %v6317_v49, %v6316_v59  ;;  %11077 = vmatprep.subr.bf16.mxu1 %v15536_v25  ;;  %v15539_v59 = vld [vmem:[#allocation27_spill] sm:$0xff] }
 0x74b   :  { %v4306_v44 = vpack.c.bf16 %v4063_v48, %v4062_v62  ;;  %v10186_v39 = vpop.f32.mrb[128].mxu1  ;;  %v14438_v46 = vpack.c.bf16 %v6315_v52, %v6314_v63  ;;  %v10506_v12 = vpop.f32.mrb[252].mxu0 }
 0x74c   :  { %v3464_v7 = vadd.f32 %v14235_v30, %v10186_v39  ;;  %v3455_v33 = vpop.f32.mrb[129].mxu1  ;;  %v5368_v19 = vadd.f32 %v14333_v13, %v10506_v12  ;;  %v5359_v31 = vpop.f32.mrb[253].mxu0 }
 0x74d   :  { %v3456_v55 = vadd.f32 %v14235_v30, %v3455_v33  ;;  %v10187_v18 = vpop.f32.mrb[130].mxu1  ;;  %v5360_v3 = vadd.f32 %v14333_v13, %v5359_v31  ;;  %v10507_v38 = vpop.f32.mrb[254].mxu0  ;;  %11079 = vmatpush3.bf16.msra.mxu1 %v15537_v42  ;;  %v15540_v33 = vld [vmem:[#allocation22_spill] sm:$0xff] }
 0x74e   :  { %v4068_v27 = vmax.f32 %v3464_v7, 0.0  ;;  %v3467_v41 = vadd.f32 %v14235_v30, %v10187_v18  ;;  %v3458_v2 = vpop.f32.mrb[131].mxu1  ;;  %v5371_v43 = vadd.f32 %v14333_v13, %v10507_v38  ;;  %v5362_v15 = vpop.f32.mrb[255].mxu0  ;;  %11081 = vmatprep.subr.bf16.mxu1 %v14213_v5  ;;  %v6320_v16 = vmax.f32 %v5368_v19, 0.0  ;;  %v6508_v19 = vld [vmem:[%s15497_s4 + $0x50] sm:$0xff] }
 0x74f   :  { %v4066_v35 = vmax.f32 %v3456_v55, 0.0  ;;  %v3459_v4 = vadd.f32 %v14235_v30, %v3458_v2  ;;  %v5363_v60 = vadd.f32 %v14333_v13, %v5362_v15  ;;  %v6318_v37 = vmax.f32 %v5360_v3, 0.0  ;;  %v6513_v2 = vld [vmem:[%s15497_s4 + $0x78] sm:$0xff] }
 0x750   :  { %10613 = vmatmul.mubr.bf16.gmra.mrb[104].mxu0 %v4305_v24  ;;  %v4069_v56 = vmax.f32 %v3467_v41, 0.0  ;;  %v6321_v21 = vmax.f32 %v5371_v43, 0.0 }
 0x751   :  { %10616 = vmatprep.mubr.bf16.mxu0 %v4306_v44  ;;  %v4067_v0 = vmax.f32 %v3459_v4, 0.0  ;;  %v6319_v62 = vmax.f32 %v5363_v60, 0.0  ;;  %11083 = vmatpush3.bf16.msra.mxu1 %v15538_v51 }
 0x752   :  { %v14451_v28 = vpack.c.bf16 %v4069_v56, %v4068_v27  ;;  %v11124_v11 = vpack.c.bf16 %v6321_v21, %v6320_v16  ;;  %11085 = vmatprep.subr.bf16.mxu1 %v15539_v59 }
 0x753   :  { %v4308_v5 = vpack.c.bf16 %v4067_v0, %v4066_v35  ;;  %v10190_v49 = vpop.f32.mrb[132].mxu1  ;;  %v11120_v48 = vpack.c.bf16 %v6319_v62, %v6318_v37  ;;  %v10510_v63 = vpop.f32.mrb[0].mxu0 }
 0x754   :  { %v3480_v24 = vadd.f32 %v14235_v30, %v10190_v49  ;;  %v3471_v52 = vpop.f32.mrb[133].mxu1  ;;  %v5384_v61 = vadd.f32 %v14333_v13, %v10510_v63  ;;  %v5375_v25 = vpop.f32.mrb[1].mxu0 }
 0x755   :  { %v3472_v44 = vadd.f32 %v14235_v30, %v3471_v52  ;;  %v10191_v39 = vpop.f32.mrb[134].mxu1  ;;  %v5376_v12 = vadd.f32 %v14333_v13, %v5375_v25  ;;  %v10511_v7 = vpop.f32.mrb[2].mxu0  ;;  %11087 = vmatpush3.bf16.msra.mxu1 %v15540_v33 }
 0x756   :  { %v4072_v31 = vmax.f32 %v3480_v24, 0.0  ;;  %v3483_v55 = vadd.f32 %v14235_v30, %v10191_v39  ;;  %v3474_v18 = vpop.f32.mrb[135].mxu1  ;;  %v5387_v3 = vadd.f32 %v14333_v13, %v10511_v7  ;;  %v5378_v38 = vpop.f32.mrb[3].mxu0  ;;  %11121 = vmatprep.subr.bf16.mxu1 %v11120_v48  ;;  %v6324_v15 = vmax.f32 %v5384_v61, 0.0 }
 0x757   :  { %v4070_v42 = vmax.f32 %v3472_v44, 0.0  ;;  %v3475_v27 = vadd.f32 %v14235_v30, %v3474_v18  ;;  %v5379_v41 = vadd.f32 %v14333_v13, %v5378_v38  ;;  %v6322_v60 = vmax.f32 %v5376_v12, 0.0 }
 0x758   :  { %10617 = vmatmul.mubr.bf16.gmra.mrb[108].mxu0 %v4307_v57  ;;  %v4073_v43 = vmax.f32 %v3483_v55, 0.0  ;;  %v6325_v35 = vmax.f32 %v5387_v3, 0.0  ;;  %6944 = vmatmul.mubr.f32.vlgmr.msra.gmra.mrb[198].mxu1 %v6508_v19 }
 0x759   :  { %10620 = vmatprep.mubr.bf16.mxu0 %v4308_v5  ;;  %v4071_v4 = vmax.f32 %v3475_v27, 0.0  ;;  %v6323_v56 = vmax.f32 %v5379_v41, 0.0  ;;  %11123 = vmatpush3.bf16.msra.mxu1 %v14383_v10 }
 0x75a   :  { %v4311_v16 = vpack.c.bf16 %v4073_v43, %v4072_v31  ;;  %v11132_v21 = vpack.c.bf16 %v6325_v35, %v6324_v15  ;;  %11125 = vmatprep.subr.bf16.mxu1 %v11124_v11  ;;  %7083 = vmatprep.mubr.f32.mxu1 %v6513_v2 }
 0x75b   :  { %v4310_v0 = vpack.c.bf16 %v4071_v4, %v4070_v42  ;;  %v10194_v37 = vpop.f32.mrb[136].mxu1  ;;  %v11128_v62 = vpack.c.bf16 %v6323_v56, %v6322_v60  ;;  %v10514_v51 = vpop.f32.mrb[4].mxu0 }
 0x75c   :  { %v3496_v57 = vadd.f32 %v14235_v30, %v10194_v37  ;;  %v3487_v59 = vpop.f32.mrb[137].mxu1  ;;  %v5400_v49 = vadd.f32 %v14333_v13, %v10514_v51  ;;  %v5391_v48 = vpop.f32.mrb[5].mxu0 }
 0x75d   :  { %v3488_v5 = vadd.f32 %v14235_v30, %v3487_v59  ;;  %v10195_v63 = vpop.f32.mrb[138].mxu1  ;;  %v5392_v24 = vadd.f32 %v14333_v13, %v5391_v48  ;;  %v10515_v10 = vpop.f32.mrb[6].mxu0  ;;  %11127 = vmatpush3.bf16.msra.mxu1 %v14381_v26 }
 0x75e   :  { %v4076_v11 = vmax.f32 %v3496_v57, 0.0  ;;  %v3499_v52 = vadd.f32 %v14235_v30, %v10195_v63  ;;  %v3490_v61 = vpop.f32.mrb[139].mxu1  ;;  %v5403_v25 = vadd.f32 %v14333_v13, %v10515_v10  ;;  %v5394_v44 = vpop.f32.mrb[7].mxu0  ;;  %11129 = vmatprep.subr.bf16.mxu1 %v11128_v62  ;;  %v6328_v19 = vmax.f32 %v5400_v49, 0.0 }
 0x75f   :  { %v4074_v39 = vmax.f32 %v3488_v5, 0.0  ;;  %v3491_v12 = vadd.f32 %v14235_v30, %v3490_v61  ;;  %v5395_v7 = vadd.f32 %v14333_v13, %v5394_v44  ;;  %v6326_v55 = vmax.f32 %v5392_v24, 0.0 }
 0x760   :  { %10621 = vmatmul.mubr.bf16.gmra.mrb[112].mxu0 %v14451_v28  ;;  %v4077_v33 = vmax.f32 %v3499_v52, 0.0  ;;  %v6329_v31 = vmax.f32 %v5403_v25, 0.0 }
 0x761   :  { %10624 = vmatprep.mubr.bf16.mxu0 %v4310_v0  ;;  %v4075_v26 = vmax.f32 %v3491_v12, 0.0  ;;  %v6327_v18 = vmax.f32 %v5395_v7, 0.0  ;;  %11131 = vmatpush3.bf16.msra.mxu1 %v14405_v45 }
 0x762   :  { %v4313_v3 = vpack.c.bf16 %v4077_v33, %v4076_v11  ;;  %v11140_v38 = vpack.c.bf16 %v6329_v31, %v6328_v19  ;;  %11133 = vmatprep.subr.bf16.mxu1 %v11132_v21 }
 0x763   :  { %v4312_v42 = vpack.c.bf16 %v4075_v26, %v4074_v39  ;;  %v10198_v27 = vpop.f32.mrb[140].mxu1  ;;  %v11136_v41 = vpack.c.bf16 %v6327_v18, %v6326_v55  ;;  %v10518_v2 = vpop.f32.mrb[8].mxu0 }
 0x764   :  { %v3512_v43 = vadd.f32 %v14235_v30, %v10198_v27  ;;  %v3503_v15 = vpop.f32.mrb[141].mxu1  ;;  %v5416_v28 = vadd.f32 %v14333_v13, %v10518_v2  ;;  %v5407_v35 = vpop.f32.mrb[9].mxu0 }
 0x765   :  { %v3504_v4 = vadd.f32 %v14235_v30, %v3503_v15  ;;  %v10199_v60 = vpop.f32.mrb[142].mxu1  ;;  %v5408_v56 = vadd.f32 %v14333_v13, %v5407_v35  ;;  %v10519_v0 = vpop.f32.mrb[10].mxu0  ;;  %11135 = vmatpush3.bf16.msra.mxu1 %v14402_v32 }
 0x766   :  { %v4080_v45 = vmax.f32 %v3512_v43, 0.0  ;;  %v3515_v21 = vadd.f32 %v14235_v30, %v10199_v60  ;;  %v3506_v37 = vpop.f32.mrb[143].mxu1  ;;  %v5419_v62 = vadd.f32 %v14333_v13, %v10519_v0  ;;  %v5410_v51 = vpop.f32.mrb[11].mxu0  ;;  %11137 = vmatprep.subr.bf16.mxu1 %v11136_v41  ;;  %v6332_v5 = vmax.f32 %v5416_v28, 0.0 }
 0x767   :  { %v4078_v57 = vmax.f32 %v3504_v4, 0.0  ;;  %v3507_v59 = vadd.f32 %v14235_v30, %v3506_v37  ;;  %v5411_v49 = vadd.f32 %v14333_v13, %v5410_v51  ;;  %v6330_v32 = vmax.f32 %v5408_v56, 0.0  ;;  %v14494_v30 = vld [vmem:[%s15494_s7 + $0x3] ss:$0 sm:$0xff] }
 0x768   :  { %10625 = vmatmul.mubr.bf16.gmra.mrb[116].mxu0 %v4311_v16  ;;  %v4081_v48 = vmax.f32 %v3515_v21, 0.0  ;;  %v6333_v63 = vmax.f32 %v5419_v62, 0.0 }
 0x769   :  { %10628 = vmatprep.mubr.bf16.mxu0 %v4312_v42  ;;  %v4079_v24 = vmax.f32 %v3507_v59, 0.0  ;;  %v6331_v10 = vmax.f32 %v5411_v49, 0.0  ;;  %11139 = vmatpush3.bf16.msra.mxu1 %v14422_v40 }
 0x76a   :  { %v4315_v11 = vpack.c.bf16 %v4081_v48, %v4080_v45  ;;  %v11148_v52 = vpack.c.bf16 %v6333_v63, %v6332_v5  ;;  %11141 = vmatprep.subr.bf16.mxu1 %v11140_v38  ;;  %v6512_v63 = vld [vmem:[%s15497_s4 + $0x70] sm:$0xff] }
 0x76b   :  { %v4314_v61 = vpack.c.bf16 %v4079_v24, %v4078_v57  ;;  %v10202_v25 = vpop.f32.mrb[144].mxu1  ;;  %v11144_v44 = vpack.c.bf16 %v6331_v10, %v6330_v32  ;;  %v10522_v39 = vpop.f32.mrb[12].mxu0 }
 0x76c   :  { %v3528_v16 = vadd.f32 %v14494_v30, %v10202_v25  ;;  %v3519_v12 = vpop.f32.mrb[145].mxu1  ;;  %v5432_v7 = vadd.f32 %v14333_v13, %v10522_v39  ;;  %v5423_v33 = vpop.f32.mrb[13].mxu0 }
 0x76d   :  { %v3520_v40 = vadd.f32 %v14494_v30, %v3519_v12  ;;  %v10203_v19 = vpop.f32.mrb[146].mxu1  ;;  %v5424_v31 = vadd.f32 %v14333_v13, %v5423_v33  ;;  %v10523_v26 = vpop.f32.mrb[14].mxu0  ;;  %11143 = vmatpush3.bf16.msra.mxu1 %v14419_v29 }
 0x76e   :  { %v4084_v55 = vmax.f32 %v3528_v16, 0.0  ;;  %v3531_v18 = vadd.f32 %v14494_v30, %v10203_v19  ;;  %v3522_v38 = vpop.f32.mrb[147].mxu1  ;;  %v5435_v42 = vadd.f32 %v14333_v13, %v10523_v26  ;;  %v5426_v27 = vpop.f32.mrb[15].mxu0  ;;  %11145 = vmatprep.subr.bf16.mxu1 %v11144_v44  ;;  %v6336_v28 = vmax.f32 %v5432_v7, 0.0 }
 0x76f   :  { %v4082_v41 = vmax.f32 %v3520_v40, 0.0  ;;  %v3523_v2 = vadd.f32 %v14494_v30, %v3522_v38  ;;  %v5427_v43 = vadd.f32 %v14333_v13, %v5426_v27  ;;  %v6334_v29 = vmax.f32 %v5424_v31, 0.0 }
 0x770   :  { %10629 = vmatmul.mubr.bf16.gmra.mrb[120].mxu0 %v4313_v3  ;;  %v4085_v15 = vmax.f32 %v3531_v18, 0.0  ;;  %v6337_v35 = vmax.f32 %v5435_v42, 0.0 }
 0x771   :  { %10632 = vmatprep.mubr.bf16.mxu0 %v4314_v61  ;;  %v4083_v4 = vmax.f32 %v3523_v2, 0.0  ;;  %v6335_v60 = vmax.f32 %v5427_v43, 0.0  ;;  %11147 = vmatpush3.bf16.msra.mxu1 %v14438_v46 }
 0x772   :  { %v4317_v56 = vpack.c.bf16 %v4085_v15, %v4084_v55  ;;  %v14506_v0 = vpack.c.bf16 %v6337_v35, %v6336_v28  ;;  %11149 = vmatprep.subr.bf16.mxu1 %v11148_v52 }
 0x773   :  { %v4316_v45 = vpack.c.bf16 %v4083_v4, %v4082_v41  ;;  %v10206_v21 = vpop.f32.mrb[148].mxu1  ;;  %v14508_v37 = vpack.c.bf16 %v6335_v60, %v6334_v29  ;;  %v10526_v62 = vpop.f32.mrb[16].mxu0 }
 0x774   :  { %v3544_v3 = vadd.f32 %v14494_v30, %v10206_v21  ;;  %v3535_v51 = vpop.f32.mrb[149].mxu1  ;;  %v5448_v57 = vadd.f32 %v14333_v13, %v10526_v62  ;;  %v5439_v59 = vpop.f32.mrb[17].mxu0 }
 0x775   :  { %v3536_v49 = vadd.f32 %v14494_v30, %v3535_v51  ;;  %v10207_v48 = vpop.f32.mrb[150].mxu1  ;;  %v5440_v46 = vadd.f32 %v14333_v13, %v5439_v59  ;;  %v10527_v5 = vpop.f32.mrb[18].mxu0  ;;  %11151 = vmatpush3.bf16.msra.mxu1 %v14435_v6 }
 0x776   :  { %v4088_v24 = vmax.f32 %v3544_v3, 0.0  ;;  %v3547_v32 = vadd.f32 %v14494_v30, %v10207_v48  ;;  %v3538_v10 = vpop.f32.mrb[151].mxu1  ;;  %v5451_v52 = vadd.f32 %v14333_v13, %v10527_v5  ;;  %v5442_v61 = vpop.f32.mrb[19].mxu0  ;;  %v6340_v12 = vmax.f32 %v5448_v57, 0.0 }
 0x777   :  { %v4086_v25 = vmax.f32 %v3536_v49, 0.0  ;;  %v3539_v44 = vadd.f32 %v14494_v30, %v3538_v10  ;;  %v5443_v39 = vadd.f32 %v14333_v13, %v5442_v61  ;;  %v6338_v33 = vmax.f32 %v5440_v46, 0.0 }
 0x778   :  { %10633 = vmatmul.mubr.bf16.gmra.mrb[124].mxu0 %v4315_v11  ;;  %v4089_v16 = vmax.f32 %v3547_v32, 0.0  ;;  %v6341_v6 = vmax.f32 %v5451_v52, 0.0  ;;  %7084 = vmatmul.mubr.f32.vlgmr.msra.gmra.mrb[200].mxu1 %v6512_v63 }
 0x779   :  { %10636 = vmatprep.mubr.bf16.mxu0 %v4316_v45  ;;  %v4087_v7 = vmax.f32 %v3539_v44, 0.0  ;;  %v6339_v40 = vmax.f32 %v5443_v39, 0.0 }
 0x77a   :  { %v4319_v19 = vpack.c.bf16 %v4089_v16, %v4088_v24  ;;  %v14522_v31 = vpack.c.bf16 %v6341_v6, %v6340_v12 }
 0x77b   :  { %v4318_v26 = vpack.c.bf16 %v4087_v7, %v4086_v25  ;;  %v10210_v55 = vpop.f32.mrb[152].mxu1  ;;  %v14524_v18 = vpack.c.bf16 %v6339_v40, %v6338_v33  ;;  %v10530_v38 = vpop.f32.mrb[20].mxu0 }
 0x77c   :  { %v3560_v42 = vadd.f32 %v14494_v30, %v10210_v55  ;;  %v3551_v27 = vpop.f32.mrb[153].mxu1  ;;  %v5464_v11 = vadd.f32 %v14333_v13, %v10530_v38  ;;  %v5455_v41 = vpop.f32.mrb[21].mxu0 }
 0x77d   :  { %v3552_v2 = vadd.f32 %v14494_v30, %v3551_v27  ;;  %v10211_v43 = vpop.f32.mrb[154].mxu1  ;;  %v5456_v15 = vadd.f32 %v14333_v13, %v5455_v41  ;;  %v10531_v28 = vpop.f32.mrb[22].mxu0 }
 0x77e   :  { %v4092_v35 = vmax.f32 %v3560_v42, 0.0  ;;  %v3563_v4 = vadd.f32 %v14494_v30, %v10211_v43  ;;  %v3554_v29 = vpop.f32.mrb[155].mxu1  ;;  %v5467_v60 = vadd.f32 %v14333_v13, %v10531_v28  ;;  %v5458_v45 = vpop.f32.mrb[23].mxu0  ;;  %v6344_v57 = vmax.f32 %v5464_v11, 0.0 }
 0x77f   :  { %v4090_v21 = vmax.f32 %v3552_v2, 0.0  ;;  %v3555_v62 = vadd.f32 %v14494_v30, %v3554_v29  ;;  %v5459_v3 = vadd.f32 %v14333_v13, %v5458_v45  ;;  %v6342_v48 = vmax.f32 %v5456_v15, 0.0 }
 0x780   :  { %10637 = vmatmul.mubr.bf16.gmra.mrb[128].mxu0 %v4317_v56  ;;  %v4093_v51 = vmax.f32 %v3563_v4, 0.0  ;;  %v6345_v59 = vmax.f32 %v5467_v60, 0.0 }
 0x781   :  { %10640 = vmatprep.mubr.bf16.mxu0 %v4318_v26  ;;  %v4091_v49 = vmax.f32 %v3555_v62, 0.0  ;;  %v6343_v46 = vmax.f32 %v5459_v3, 0.0 }
 0x782   :  { %v4321_v5 = vpack.c.bf16 %v4093_v51, %v4092_v35  ;;  %v14534_v63 = vpack.c.bf16 %v6345_v59, %v6344_v57 }
 0x783   :  { %v4320_v24 = vpack.c.bf16 %v4091_v49, %v4090_v21  ;;  %v10214_v32 = vpop.f32.mrb[156].mxu1  ;;  %v14536_v10 = vpack.c.bf16 %v6343_v46, %v6342_v48  ;;  %v10534_v52 = vpop.f32.mrb[24].mxu0 }
 0x784   :  { %v3576_v61 = vadd.f32 %v14494_v30, %v10214_v32  ;;  %v3567_v25 = vpop.f32.mrb[157].mxu1  ;;  %v5480_v56 = vadd.f32 %v14333_v13, %v10534_v52  ;;  %v5471_v44 = vpop.f32.mrb[25].mxu0 }
 0x785   :  { %v3568_v39 = vadd.f32 %v14494_v30, %v3567_v25  ;;  %v10215_v16 = vpop.f32.mrb[158].mxu1  ;;  %v5472_v12 = vadd.f32 %v14333_v13, %v5471_v44  ;;  %v10535_v6 = vpop.f32.mrb[26].mxu0 }
 0x786   :  { %v4096_v7 = vmax.f32 %v3576_v61, 0.0  ;;  %v3579_v33 = vadd.f32 %v14494_v30, %v10215_v16  ;;  %v3570_v40 = vpop.f32.mrb[159].mxu1  ;;  %v5483_v26 = vadd.f32 %v14333_v13, %v10535_v6  ;;  %v5474_v55 = vpop.f32.mrb[27].mxu0  ;;  %v6348_v41 = vmax.f32 %v5480_v56, 0.0 }
 0x787   :  { %v4094_v38 = vmax.f32 %v3568_v39, 0.0  ;;  %v3571_v42 = vadd.f32 %v14494_v30, %v3570_v40  ;;  %v5475_v27 = vadd.f32 %v14333_v13, %v5474_v55  ;;  %v6346_v15 = vmax.f32 %v5472_v12, 0.0 }
 0x788   :  { %10641 = vmatmul.mubr.bf16.gmra.mrb[132].mxu0 %v4319_v19  ;;  %v4097_v11 = vmax.f32 %v3579_v33, 0.0  ;;  %v6349_v2 = vmax.f32 %v5483_v26, 0.0 }
 0x789   :  { %10644 = vmatprep.mubr.bf16.mxu0 %v4320_v24  ;;  %v4095_v43 = vmax.f32 %v3571_v42, 0.0  ;;  %v6347_v28 = vmax.f32 %v5475_v27, 0.0 }
 0x78a   :  { %v4323_v35 = vpack.c.bf16 %v4097_v11, %v4096_v7  ;;  %v14546_v4 = vpack.c.bf16 %v6349_v2, %v6348_v41 }
 0x78b   :  { %v4322_v29 = vpack.c.bf16 %v4095_v43, %v4094_v38  ;;  %v10218_v60 = vpop.f32.mrb[160].mxu1  ;;  %v14548_v45 = vpack.c.bf16 %v6347_v28, %v6346_v15  ;;  %v10538_v21 = vpop.f32.mrb[28].mxu0 }
 0x78c   :  { %v3592_v62 = vadd.f32 %v14494_v30, %v10218_v60  ;;  %v3583_v3 = vpop.f32.mrb[161].mxu1  ;;  %v5496_v19 = vadd.f32 %v14333_v13, %v10538_v21  ;;  %v5487_v51 = vpop.f32.mrb[29].mxu0 }
 0x78d   :  { %v3584_v57 = vadd.f32 %v14494_v30, %v3583_v3  ;;  %v10219_v59 = vpop.f32.mrb[162].mxu1  ;;  %v5488_v49 = vadd.f32 %v14333_v13, %v5487_v51  ;;  %v10539_v48 = vpop.f32.mrb[30].mxu0  ;;  %v14570_v3 = vld [vmem:[%s15494_s7 + $0x4] ss:$0 sm:$0xff] }
 0x78e   :  { %v4100_v46 = vmax.f32 %v3592_v62, 0.0  ;;  %v3595_v24 = vadd.f32 %v14494_v30, %v10219_v59  ;;  %v3586_v32 = vpop.f32.mrb[163].mxu1  ;;  %v5499_v52 = vadd.f32 %v14333_v13, %v10539_v48  ;;  %v5490_v61 = vpop.f32.mrb[31].mxu0  ;;  %v6352_v16 = vmax.f32 %v5496_v19, 0.0 }
 0x78f   :  { %v4098_v25 = vmax.f32 %v3584_v57, 0.0  ;;  %v3587_v56 = vadd.f32 %v14494_v30, %v3586_v32  ;;  %v5491_v44 = vadd.f32 %v14333_v13, %v5490_v61  ;;  %v6350_v7 = vmax.f32 %v5488_v49, 0.0 }
 0x790   :  { %10645 = vmatmul.mubr.bf16.gmra.mrb[136].mxu0 %v4321_v5  ;;  %v4101_v39 = vmax.f32 %v3595_v24, 0.0  ;;  %v6353_v12 = vmax.f32 %v5499_v52, 0.0 }
 0x791   :  { %10648 = vmatprep.mubr.bf16.mxu0 %v4322_v29  ;;  %v4099_v6 = vmax.f32 %v3587_v56, 0.0  ;;  %v6351_v33 = vmax.f32 %v5491_v44, 0.0 }
 0x792   :  { %v4325_v40 = vpack.c.bf16 %v4101_v39, %v4100_v46  ;;  %v14558_v26 = vpack.c.bf16 %v6353_v12, %v6352_v16 }
 0x793   :  { %v4324_v55 = vpack.c.bf16 %v4099_v6, %v4098_v25  ;;  %v10222_v38 = vpop.f32.mrb[164].mxu1  ;;  %v14560_v42 = vpack.c.bf16 %v6351_v33, %v6350_v7  ;;  %v10542_v27 = vpop.f32.mrb[32].mxu0 }
 0x794   :  { %v3608_v11 = vadd.f32 %v14494_v30, %v10222_v38  ;;  %v3599_v41 = vpop.f32.mrb[165].mxu1  ;;  %v5512_v5 = vadd.f32 %v14333_v13, %v10542_v27  ;;  %v5503_v2 = vpop.f32.mrb[33].mxu0 }
 0x795   :  { %v3600_v43 = vadd.f32 %v14494_v30, %v3599_v41  ;;  %v10223_v15 = vpop.f32.mrb[166].mxu1  ;;  %v5504_v28 = vadd.f32 %v14333_v13, %v5503_v2  ;;  %v10543_v29 = vpop.f32.mrb[34].mxu0 }
 0x796   :  { %v4104_v60 = vmax.f32 %v3608_v11, 0.0  ;;  %v3611_v21 = vadd.f32 %v14494_v30, %v10223_v15  ;;  %v3602_v62 = vpop.f32.mrb[167].mxu1  ;;  %v5515_v19 = vadd.f32 %v14570_v3, %v10543_v29  ;;  %v5506_v51 = vpop.f32.mrb[35].mxu0  ;;  %v6356_v48 = vmax.f32 %v5512_v5, 0.0 }
 0x797   :  { %v4102_v57 = vmax.f32 %v3600_v43, 0.0  ;;  %v3603_v59 = vadd.f32 %v14494_v30, %v3602_v62  ;;  %v5507_v49 = vadd.f32 %v14570_v3, %v5506_v51  ;;  %v6354_v32 = vmax.f32 %v5504_v28, 0.0 }
 0x798   :  { %10649 = vmatmul.mubr.bf16.gmra.mrb[140].mxu0 %v4323_v35  ;;  %v4105_v13 = vmax.f32 %v3611_v21, 0.0  ;;  %v6357_v46 = vmax.f32 %v5515_v19, 0.0 }
 0x799   :  { %10652 = vmatprep.mubr.bf16.mxu0 %v4324_v55  ;;  %v4103_v24 = vmax.f32 %v3603_v59, 0.0  ;;  %v6355_v52 = vmax.f32 %v5507_v49, 0.0 }
 0x79a   :  { %v4327_v61 = vpack.c.bf16 %v4105_v13, %v4104_v60  ;;  %v14575_v25 = vpack.c.bf16 %v6357_v46, %v6356_v48 }
 0x79b   :  { %v4326_v56 = vpack.c.bf16 %v4103_v24, %v4102_v57  ;;  %v10226_v44 = vpop.f32.mrb[168].mxu1  ;;  %v14577_v39 = vpack.c.bf16 %v6355_v52, %v6354_v32  ;;  %v10546_v16 = vpop.f32.mrb[36].mxu0 }
 0x79c   :  { %v3624_v12 = vadd.f32 %v14494_v30, %v10226_v44  ;;  %v3615_v6 = vpop.f32.mrb[169].mxu1  ;;  %v5528_v35 = vadd.f32 %v14570_v3, %v10546_v16  ;;  %v5519_v7 = vpop.f32.mrb[37].mxu0 }
 0x79d   :  { %v3616_v33 = vadd.f32 %v14494_v30, %v3615_v6  ;;  %v10227_v55 = vpop.f32.mrb[170].mxu1  ;;  %v5520_v38 = vadd.f32 %v14570_v3, %v5519_v7  ;;  %v10547_v27 = vpop.f32.mrb[38].mxu0 }
 0x79e   :  { %v4108_v11 = vmax.f32 %v3624_v12, 0.0  ;;  %v3627_v41 = vadd.f32 %v14494_v30, %v10227_v55  ;;  %v3618_v5 = vpop.f32.mrb[171].mxu1  ;;  %v5531_v2 = vadd.f32 %v14570_v3, %v10547_v27  ;;  %v5522_v43 = vpop.f32.mrb[39].mxu0  ;;  %v6360_v21 = vmax.f32 %v5528_v35, 0.0 }
 0x79f   :  { %v4106_v15 = vmax.f32 %v3616_v33, 0.0  ;;  %v3619_v28 = vadd.f32 %v14494_v30, %v3618_v5  ;;  %v5523_v29 = vadd.f32 %v14570_v3, %v5522_v43  ;;  %v6358_v51 = vmax.f32 %v5520_v38, 0.0 }
 0x7a0   :  { %10653 = vmatmul.mubr.bf16.gmra.mrb[144].mxu0 %v4325_v40  ;;  %v4109_v60 = vmax.f32 %v3627_v41, 0.0  ;;  %v6361_v62 = vmax.f32 %v5531_v2, 0.0 }
 0x7a1   :  { %10656 = vmatprep.mubr.bf16.mxu0 %v4326_v56  ;;  %v4107_v19 = vmax.f32 %v3619_v28, 0.0  ;;  %v6359_v57 = vmax.f32 %v5523_v29, 0.0 }
 0x7a2   :  { %v4329_v59 = vpack.c.bf16 %v4109_v60, %v4108_v11  ;;  %v14587_v49 = vpack.c.bf16 %v6361_v62, %v6360_v21 }
 0x7a3   :  { %v4328_v13 = vpack.c.bf16 %v4107_v19, %v4106_v15  ;;  %v10230_v48 = vpop.f32.mrb[172].mxu1  ;;  %v14589_v46 = vpack.c.bf16 %v6359_v57, %v6358_v51  ;;  %v10550_v24 = vpop.f32.mrb[40].mxu0 }
 0x7a4   :  { %v3640_v32 = vadd.f32 %v14494_v30, %v10230_v48  ;;  %v3631_v52 = vpop.f32.mrb[173].mxu1  ;;  %v5544_v40 = vadd.f32 %v14570_v3, %v10550_v24  ;;  %v5535_v44 = vpop.f32.mrb[41].mxu0 }
 0x7a5   :  { %v3632_v16 = vadd.f32 %v14494_v30, %v3631_v52  ;;  %v10231_v56 = vpop.f32.mrb[174].mxu1  ;;  %v5536_v12 = vadd.f32 %v14570_v3, %v5535_v44  ;;  %v10551_v6 = vpop.f32.mrb[42].mxu0 }
 0x7a6   :  { %v4112_v35 = vmax.f32 %v3640_v32, 0.0  ;;  %v3643_v7 = vadd.f32 %v14494_v30, %v10231_v56  ;;  %v3634_v33 = vpop.f32.mrb[175].mxu1  ;;  %v5547_v55 = vadd.f32 %v14570_v3, %v10551_v6  ;;  %v5538_v38 = vpop.f32.mrb[43].mxu0  ;;  %v6364_v2 = vmax.f32 %v5544_v40, 0.0 }
 0x7a7   :  { %v4110_v27 = vmax.f32 %v3632_v16, 0.0  ;;  %v3635_v11 = vadd.f32 %v14494_v30, %v3634_v33  ;;  %v5539_v41 = vadd.f32 %v14570_v3, %v5538_v38  ;;  %v6362_v28 = vmax.f32 %v5536_v12, 0.0 }
 0x7a8   :  { %10657 = vmatmul.mubr.bf16.gmra.mrb[148].mxu0 %v4327_v61  ;;  %v4113_v5 = vmax.f32 %v3643_v7, 0.0  ;;  %v6365_v43 = vmax.f32 %v5547_v55, 0.0 }
 0x7a9   :  { %10660 = vmatprep.mubr.bf16.mxu0 %v4328_v13  ;;  %v4111_v15 = vmax.f32 %v3635_v11, 0.0  ;;  %v6363_v29 = vmax.f32 %v5539_v41, 0.0 }
 0x7aa   :  { %v4331_v60 = vpack.c.bf16 %v4113_v5, %v4112_v35  ;;  %v14599_v21 = vpack.c.bf16 %v6365_v43, %v6364_v2 }
 0x7ab   :  { %v4330_v62 = vpack.c.bf16 %v4111_v15, %v4110_v27  ;;  %v10234_v19 = vpop.f32.mrb[176].mxu1  ;;  %v14601_v51 = vpack.c.bf16 %v6363_v29, %v6362_v28  ;;  %v10554_v57 = vpop.f32.mrb[44].mxu0 }
 0x7ac   :  { %v3656_v48 = vadd.f32 %v14494_v30, %v10234_v19  ;;  %v3647_v24 = vpop.f32.mrb[177].mxu1  ;;  %v5560_v61 = vadd.f32 %v14570_v3, %v10554_v57  ;;  %v5551_v32 = vpop.f32.mrb[45].mxu0 }
 0x7ad   :  { %v3648_v52 = vadd.f32 %v14494_v30, %v3647_v24  ;;  %v10235_v13 = vpop.f32.mrb[178].mxu1  ;;  %v5552_v40 = vadd.f32 %v14570_v3, %v5551_v32  ;;  %v10555_v44 = vpop.f32.mrb[46].mxu0 }
 0x7ae   :  { %v4116_v16 = vmax.f32 %v3656_v48, 0.0  ;;  %v3659_v56 = vadd.f32 %v14494_v30, %v10235_v13  ;;  %v3650_v12 = vpop.f32.mrb[179].mxu1  ;;  %v5563_v6 = vadd.f32 %v14570_v3, %v10555_v44  ;;  %v5554_v35 = vpop.f32.mrb[47].mxu0  ;;  %v6368_v27 = vmax.f32 %v5560_v61, 0.0 }
 0x7af   :  { %v4114_v7 = vmax.f32 %v3648_v52, 0.0  ;;  %v3651_v33 = vadd.f32 %v14494_v30, %v3650_v12  ;;  %v5555_v55 = vadd.f32 %v14570_v3, %v5554_v35  ;;  %v6366_v5 = vmax.f32 %v5552_v40, 0.0 }
 0x7b0   :  { %10661 = vmatmul.mubr.bf16.gmra.mrb[152].mxu0 %v4329_v59  ;;  %v4117_v38 = vmax.f32 %v3659_v56, 0.0  ;;  %v6369_v11 = vmax.f32 %v5563_v6, 0.0 }
 0x7b1   :  { %10664 = vmatprep.mubr.bf16.mxu0 %v4330_v62  ;;  %v4115_v41 = vmax.f32 %v3651_v33, 0.0  ;;  %v6367_v2 = vmax.f32 %v5555_v55, 0.0 }
 0x7b2   :  { %v4333_v43 = vpack.c.bf16 %v4117_v38, %v4116_v16  ;;  %v14611_v15 = vpack.c.bf16 %v6369_v11, %v6368_v27 }
 0x7b3   :  { %v4332_v28 = vpack.c.bf16 %v4115_v41, %v4114_v7  ;;  %v10238_v29 = vpop.f32.mrb[180].mxu1  ;;  %v14613_v19 = vpack.c.bf16 %v6367_v2, %v6366_v5  ;;  %v10558_v57 = vpop.f32.mrb[48].mxu0 }
 0x7b4   :  { %v3672_v48 = vadd.f32 %v14494_v30, %v10238_v29  ;;  %v3663_v24 = vpop.f32.mrb[181].mxu1  ;;  %v5576_v59 = vadd.f32 %v14570_v3, %v10558_v57  ;;  %v5567_v32 = vpop.f32.mrb[49].mxu0 }
 0x7b5   :  { %v3664_v61 = vadd.f32 %v14494_v30, %v3663_v24  ;;  %v10239_v62 = vpop.f32.mrb[182].mxu1  ;;  %v5568_v52 = vadd.f32 %v14570_v3, %v5567_v32  ;;  %v10559_v13 = vpop.f32.mrb[50].mxu0 }
 0x7b6   :  { %v4120_v40 = vmax.f32 %v3672_v48, 0.0  ;;  %v3675_v44 = vadd.f32 %v14494_v30, %v10239_v62  ;;  %v3666_v16 = vpop.f32.mrb[183].mxu1  ;;  %v5579_v56 = vadd.f32 %v14570_v3, %v10559_v13  ;;  %v5570_v12 = vpop.f32.mrb[51].mxu0  ;;  %v6372_v55 = vmax.f32 %v5576_v59, 0.0 }
 0x7b7   :  { %v4118_v6 = vmax.f32 %v3664_v61, 0.0  ;;  %v3667_v35 = vadd.f32 %v14494_v30, %v3666_v16  ;;  %v5571_v7 = vadd.f32 %v14570_v3, %v5570_v12  ;;  %v6370_v11 = vmax.f32 %v5568_v52, 0.0 }
 0x7b8   :  { %10665 = vmatmul.mubr.bf16.gmra.mrb[156].mxu0 %v4331_v60  ;;  %v4121_v33 = vmax.f32 %v3675_v44, 0.0  ;;  %v6373_v38 = vmax.f32 %v5579_v56, 0.0 }
 0x7b9   :  { %10668 = vmatprep.mubr.bf16.mxu0 %v4332_v28  ;;  %v4119_v27 = vmax.f32 %v3667_v35, 0.0  ;;  %v6371_v41 = vmax.f32 %v5571_v7, 0.0 }
 0x7ba   :  { %v4335_v5 = vpack.c.bf16 %v4121_v33, %v4120_v40  ;;  %v14623_v2 = vpack.c.bf16 %v6373_v38, %v6372_v55 }
 0x7bb   :  { %v4334_v29 = vpack.c.bf16 %v4119_v27, %v4118_v6  ;;  %v10242_v57 = vpop.f32.mrb[184].mxu1  ;;  %v14625_v48 = vpack.c.bf16 %v6371_v41, %v6370_v11  ;;  %v10562_v24 = vpop.f32.mrb[52].mxu0  ;;  %v6517_v27 = vld [vmem:[%s15497_s4 + $0x98] sm:$0xff] }
 0x7bc   :  { %v3688_v32 = vadd.f32 %v14494_v30, %v10242_v57  ;;  %v3679_v61 = vpop.f32.mrb[185].mxu1  ;;  %v5592_v60 = vadd.f32 %v14570_v3, %v10562_v24  ;;  %v5583_v62 = vpop.f32.mrb[53].mxu0  ;;  %7223 = vmatprep.mubr.f32.mxu1 %v6517_v27 }
 0x7bd   :  { %v3680_v59 = vadd.f32 %v14494_v30, %v3679_v61  ;;  %v10243_v28 = vpop.f32.mrb[186].mxu1  ;;  %v5584_v52 = vadd.f32 %v14570_v3, %v5583_v62  ;;  %v10563_v13 = vpop.f32.mrb[54].mxu0 }
 0x7be   :  { %v4124_v40 = vmax.f32 %v3688_v32, 0.0  ;;  %v3691_v44 = vadd.f32 %v14494_v30, %v10243_v28  ;;  %v3682_v16 = vpop.f32.mrb[187].mxu1  ;;  %v5595_v56 = vadd.f32 %v14570_v3, %v10563_v13  ;;  %v5586_v12 = vpop.f32.mrb[55].mxu0  ;;  %v6376_v55 = vmax.f32 %v5592_v60, 0.0 }
 0x7bf   :  { %v4122_v6 = vmax.f32 %v3680_v59, 0.0  ;;  %v3683_v35 = vadd.f32 %v14494_v30, %v3682_v16  ;;  %v5587_v7 = vadd.f32 %v14570_v3, %v5586_v12  ;;  %v6374_v41 = vmax.f32 %v5584_v52, 0.0 }
 0x7c0   :  { %10669 = vmatmul.mubr.bf16.gmra.mrb[160].mxu0 %v4333_v43  ;;  %v4125_v33 = vmax.f32 %v3691_v44, 0.0  ;;  %v6377_v38 = vmax.f32 %v5595_v56, 0.0 }
 0x7c1   :  { %10672 = vmatprep.mubr.bf16.mxu0 %v4334_v29  ;;  %v4123_v11 = vmax.f32 %v3683_v35, 0.0  ;;  %v6375_v57 = vmax.f32 %v5587_v7, 0.0 }
 0x7c2   :  { %v4337_v24 = vpack.c.bf16 %v4125_v33, %v4124_v40  ;;  %v14638_v32 = vpack.c.bf16 %v6377_v38, %v6376_v55 }
 0x7c3   :  { %v4336_v61 = vpack.c.bf16 %v4123_v11, %v4122_v6  ;;  %v10246_v62 = vpop.f32.mrb[188].mxu1  ;;  %v14640_v59 = vpack.c.bf16 %v6375_v57, %v6374_v41  ;;  %v10566_v43 = vpop.f32.mrb[56].mxu0 }
 0x7c4   :  { %v3704_v60 = vadd.f32 %v14494_v30, %v10246_v62  ;;  %v3695_v28 = vpop.f32.mrb[189].mxu1  ;;  %v5608_v13 = vadd.f32 %v14570_v3, %v10566_v43  ;;  %v5599_v44 = vpop.f32.mrb[57].mxu0 }
 0x7c5   :  { %v3696_v29 = vadd.f32 %v14494_v30, %v3695_v28  ;;  %v10247_v16 = vpop.f32.mrb[190].mxu1  ;;  %v5600_v52 = vadd.f32 %v14570_v3, %v5599_v44  ;;  %v10567_v56 = vpop.f32.mrb[58].mxu0 }
 0x7c6   :  { %v4128_v40 = vmax.f32 %v3704_v60, 0.0  ;;  %v3707_v12 = vadd.f32 %v14494_v30, %v10247_v16  ;;  %v3698_v6 = vpop.f32.mrb[191].mxu1  ;;  %v5611_v35 = vadd.f32 %v14570_v3, %v10567_v56  ;;  %v5602_v7 = vpop.f32.mrb[59].mxu0  ;;  %v6380_v11 = vmax.f32 %v5608_v13, 0.0 }
 0x7c7   :  { %v4126_v33 = vmax.f32 %v3696_v29, 0.0  ;;  %v3699_v55 = vadd.f32 %v14494_v30, %v3698_v6  ;;  %v5603_v38 = vadd.f32 %v14570_v3, %v5602_v7  ;;  %v6378_v62 = vmax.f32 %v5600_v52, 0.0 }
 0x7c8   :  { %10673 = vmatmul.mubr.bf16.gmra.mrb[164].mxu0 %v4335_v5  ;;  %v4129_v27 = vmax.f32 %v3707_v12, 0.0  ;;  %v6381_v41 = vmax.f32 %v5611_v35, 0.0 }
 0x7c9   :  { %10676 = vmatprep.mubr.bf16.mxu0 %v4336_v61  ;;  %v4127_v57 = vmax.f32 %v3699_v55, 0.0  ;;  %v6379_v43 = vmax.f32 %v5603_v38, 0.0 }
 0x7ca   :  { %v4339_v60 = vpack.c.bf16 %v4129_v27, %v4128_v40  ;;  %v14650_v28 = vpack.c.bf16 %v6381_v41, %v6380_v11 }
 0x7cb   :  { %v4338_v44 = vpack.c.bf16 %v4127_v57, %v4126_v33  ;;  %v14652_v16 = vpack.c.bf16 %v6379_v43, %v6378_v62  ;;  %v10570_v56 = vpop.f32.mrb[60].mxu0  ;;  %v6503_v62 = vld [vmem:[%s15497_s4 + $0x28] sm:$0xff] }
 0x7cc   :  { %v5624_v29 = vadd.f32 %v14570_v3, %v10570_v56  ;;  %v5615_v30 = vpop.f32.mrb[61].mxu0 }
 0x7cd   :  { %v5616_v6 = vadd.f32 %v14570_v3, %v5615_v30  ;;  %v10571_v5 = vpop.f32.mrb[62].mxu0 }
 0x7ce   :  { %v5627_v13 = vadd.f32 %v14570_v3, %v10571_v5  ;;  %v5618_v12 = vpop.f32.mrb[63].mxu0  ;;  %v6384_v52 = vmax.f32 %v5624_v29, 0.0 }
 0x7cf   :  { %v5619_v61 = vadd.f32 %v14570_v3, %v5618_v12  ;;  %v6382_v35 = vmax.f32 %v5616_v6, 0.0 }
 0x7d0   :  { %10677 = vmatmul.mubr.bf16.gmra.mrb[168].mxu0 %v4337_v24  ;;  %v6385_v40 = vmax.f32 %v5627_v13, 0.0 }
 0x7d1   :  { %10680 = vmatprep.mubr.bf16.mxu0 %v4338_v44  ;;  %v6383_v7 = vmax.f32 %v5619_v61, 0.0 }
 0x7d2   :  { %v11188_v33 = vpack.c.bf16 %v6385_v40, %v6384_v52 }
 0x7d3   :  { %v11184_v55 = vpack.c.bf16 %v6383_v7, %v6382_v35  ;;  %v10574_v38 = vpop.f32.mrb[64].mxu0  ;;  %v6507_v35 = vld [vmem:[%s15497_s4 + $0x48] sm:$0xff] }
 0x7d4   :  { %v5640_v27 = vadd.f32 %v14570_v3, %v10574_v38  ;;  %v5631_v11 = vpop.f32.mrb[65].mxu0 }
 0x7d5   :  { %v5632_v41 = vadd.f32 %v14570_v3, %v5631_v11  ;;  %v10575_v57 = vpop.f32.mrb[66].mxu0  ;;  %11185 = vmatprep.subr.bf16.mxu1 %v11184_v55 }
 0x7d6   :  { %v5643_v24 = vadd.f32 %v14570_v3, %v10575_v57  ;;  %v5634_v43 = vpop.f32.mrb[67].mxu0  ;;  %11187 = vmatpush3.bf16.msra.mxu1 %v14613_v19  ;;  %v6388_v56 = vmax.f32 %v5640_v27, 0.0  ;;  %v6502_v19 = vld [vmem:[%s15497_s4 + $0x20] sm:$0xff]  ;;  %v15541_v27 = vld [vmem:[#allocation4_spill] sm:$0xff]  ;;  %v15542_v57 = vld [vmem:[#allocation11_spill] sm:$0xff] }
 0x7d7   :  { %v5635_v44 = vadd.f32 %v14570_v3, %v5634_v43  ;;  %11189 = vmatprep.subr.bf16.mxu1 %v11188_v33  ;;  %v6386_v30 = vmax.f32 %v5632_v41, 0.0 }
 0x7d8   :  { %10681 = vmatmul.mubr.bf16.gmra.mrb[172].mxu0 %v4339_v60  ;;  %v6389_v29 = vmax.f32 %v5643_v24, 0.0 }
 0x7d9   :  { %6733 = vmatprep.mubr.f32.mxu0 %v6503_v62  ;;  %v6387_v6 = vmax.f32 %v5635_v44, 0.0 }
 0x7da   :  { %v11196_v5 = vpack.c.bf16 %v6389_v29, %v6388_v56  ;;  %11191 = vmatpush3.bf16.msra.mxu1 %v14611_v15  ;;  %v15543_v56 = vld [vmem:[#allocation3_spill] sm:$0xff] }
 0x7db   :  { %v11192_v13 = vpack.c.bf16 %v6387_v6, %v6386_v30  ;;  %v10578_v12 = vpop.f32.mrb[68].mxu0  ;;  %v15544_v6 = vld [vmem:[#allocation13_spill] sm:$0xff] }
 0x7dc   :  { %v5656_v61 = vadd.f32 %v14570_v3, %v10578_v12  ;;  %v5647_v52 = vpop.f32.mrb[69].mxu0 }
 0x7dd   :  { %v5648_v40 = vadd.f32 %v14570_v3, %v5647_v52  ;;  %v10579_v60 = vpop.f32.mrb[70].mxu0  ;;  %11193 = vmatprep.subr.bf16.mxu1 %v11192_v13  ;;  %v15545_v52 = vld [vmem:[#allocation6_spill] sm:$0xff] }
 0x7de   :  { %v5659_v7 = vadd.f32 %v14570_v3, %v10579_v60  ;;  %v5650_v15 = vpop.f32.mrb[71].mxu0  ;;  %11195 = vmatpush3.bf16.msra.mxu1 %v14625_v48  ;;  %v6392_v55 = vmax.f32 %v5656_v61, 0.0  ;;  %v15546_v60 = vld [vmem:[#allocation12_spill] sm:$0xff] }
 0x7df   :  { %v5651_v33 = vadd.f32 %v14570_v3, %v5650_v15  ;;  %11197 = vmatprep.subr.bf16.mxu1 %v11196_v5  ;;  %v6390_v11 = vmax.f32 %v5648_v40, 0.0 }
 0x7e0   :  { %6734 = vmatmul.mubr.f32.vlgmr.msra.gmra.mrb[176].mxu0 %v6502_v19  ;;  %v6393_v38 = vmax.f32 %v5659_v7, 0.0 }
 0x7e1   :  { %11027 = vmatpush3.bf16.msra.mxu0 %v15541_v27  ;;  %6873 = vmatprep.mubr.f32.mxu0 %v6507_v35  ;;  %v6391_v41 = vmax.f32 %v5651_v33, 0.0 }
 0x7e2   :  { %11029 = vmatprep.subr.bf16.mxu0 %v15542_v57  ;;  %v11204_v62 = vpack.c.bf16 %v6393_v38, %v6392_v55  ;;  %11199 = vmatpush3.bf16.msra.mxu1 %v14623_v2 }
 0x7e3   :  { %v11200_v24 = vpack.c.bf16 %v6391_v41, %v6390_v11  ;;  %v10582_v43 = vpop.f32.mrb[72].mxu0  ;;  %v15548_v11 = vld [vmem:[#allocation15_spill] sm:$0xff] }
 0x7e4   :  { %v5672_v48 = vadd.f32 %v14570_v3, %v10582_v43  ;;  %v5663_v44 = vpop.f32.mrb[73].mxu0  ;;  %v15549_v43 = vld [vmem:[#allocation8_spill] sm:$0xff] }
 0x7e5   :  { %11031 = vmatpush3.bf16.msra.mxu0 %v15543_v56  ;;  %v5664_v29 = vadd.f32 %v14570_v3, %v5663_v44  ;;  %v10583_v30 = vpop.f32.mrb[74].mxu0  ;;  %11201 = vmatprep.subr.bf16.mxu1 %v11200_v24  ;;  %v15550_v56 = vld [vmem:[#allocation14_spill] sm:$0xff] }
 0x7e6   :  { %11033 = vmatprep.subr.bf16.mxu0 %v15544_v6  ;;  %v5675_v5 = vadd.f32 %v14570_v3, %v10583_v30  ;;  %v5666_v13 = vpop.f32.mrb[75].mxu0  ;;  %11203 = vmatpush3.bf16.msra.mxu1 %v14640_v59  ;;  %v6396_v12 = vmax.f32 %v5672_v48, 0.0  ;;  %v15547_v59 = vld [vmem:[#allocation5_spill] sm:$0xff]  ;;  %v6516_v30 = vld [vmem:[%s15497_s4 + $0x90] sm:$0xff] }
 0x7e7   :  { %v5667_v2 = vadd.f32 %v14570_v3, %v5666_v13  ;;  %11205 = vmatprep.subr.bf16.mxu1 %v11204_v62  ;;  %v6394_v19 = vmax.f32 %v5664_v29, 0.0 }
 0x7e8   :  { %v6397_v61 = vmax.f32 %v5675_v5, 0.0 }
 0x7e9   :  { %11035 = vmatpush3.bf16.msra.mxu0 %v15545_v52  ;;  %v6395_v40 = vmax.f32 %v5667_v2, 0.0  ;;  %v6521_v2 = vld [vmem:[%s15497_s4 + $0xb8] sm:$0xff] }
 0x7ea   :  { %11037 = vmatprep.subr.bf16.mxu0 %v15546_v60  ;;  %v11212_v35 = vpack.c.bf16 %v6397_v61, %v6396_v12  ;;  %11207 = vmatpush3.bf16.msra.mxu1 %v14638_v32  ;;  %v15551_v12 = vld [vmem:[#allocation7_spill] sm:$0xff] }
 0x7eb   :  { %v11208_v7 = vpack.c.bf16 %v6395_v40, %v6394_v19  ;;  %v10586_v15 = vpop.f32.mrb[76].mxu0 }
 0x7ec   :  { %v5688_v33 = vadd.f32 %v14570_v3, %v10586_v15  ;;  %v5679_v55 = vpop.f32.mrb[77].mxu0  ;;  %v15553_v15 = vld [vmem:[#allocation10_spill] sm:$0xff] }
 0x7ed   :  { %11039 = vmatpush3.bf16.msra.mxu0 %v15547_v59  ;;  %v5680_v38 = vadd.f32 %v14570_v3, %v5679_v55  ;;  %v10587_v27 = vpop.f32.mrb[78].mxu0  ;;  %11209 = vmatprep.subr.bf16.mxu1 %v11208_v7  ;;  %v15554_v59 = vld [vmem:[#allocation16_spill] sm:$0xff] }
 0x7ee   :  { %11041 = vmatprep.subr.bf16.mxu0 %v15548_v11  ;;  %v5691_v41 = vadd.f32 %v14570_v3, %v10587_v27  ;;  %v5682_v57 = vpop.f32.mrb[79].mxu0  ;;  %11211 = vmatpush3.bf16.msra.mxu1 %v14652_v16  ;;  %v6400_v62 = vmax.f32 %v5688_v33, 0.0 }
 0x7ef   :  { %v5683_v32 = vadd.f32 %v14570_v3, %v5682_v57  ;;  %11213 = vmatprep.subr.bf16.mxu1 %v11212_v35  ;;  %v6398_v48 = vmax.f32 %v5680_v38, 0.0 }
 0x7f0   :  { %v6401_v24 = vmax.f32 %v5691_v41, 0.0 }
 0x7f1   :  { %11043 = vmatpush3.bf16.msra.mxu0 %v15549_v43  ;;  %v6399_v44 = vmax.f32 %v5683_v32, 0.0  ;;  %v15555_v32 = vld [vmem:[#allocation9_spill] sm:$0xff] }
 0x7f2   :  { %11045 = vmatprep.subr.bf16.mxu0 %v15550_v56  ;;  %v14700_v29 = vpack.c.bf16 %v6401_v24, %v6400_v62  ;;  %11215 = vmatpush3.bf16.msra.mxu1 %v14650_v28  ;;  %v15552_v28 = vld [vmem:[#allocation17_spill] sm:$0xff]  ;;  %v6506_v62 = vld [vmem:[%s15497_s4 + $0x40] sm:$0xff]  ;;  %v6511_v56 = vld [vmem:[%s15497_s4 + $0x68] sm:$0xff] }
 0x7f3   :  { %v14706_v16 = vpack.c.bf16 %v6399_v44, %v6398_v48  ;;  %v10590_v6 = vpop.f32.mrb[80].mxu0 }
 0x7f4   :  { %v5704_v5 = vadd.f32 %v14570_v3, %v10590_v6  ;;  %v5695_v13 = vpop.f32.mrb[81].mxu0 }
 0x7f5   :  { %11047 = vmatpush3.bf16.msra.mxu0 %v15551_v12  ;;  %v5696_v61 = vadd.f32 %v14570_v3, %v5695_v13  ;;  %v10591_v52 = vpop.f32.mrb[82].mxu0  ;;  %7224 = vmatmul.mubr.f32.vlgmr.msra.gmra.mrb[202].mxu1 %v6516_v30 }
 0x7f6   :  { %11049 = vmatprep.subr.bf16.mxu0 %v15552_v28  ;;  %v5707_v19 = vadd.f32 %v14570_v3, %v10591_v52  ;;  %v5698_v40 = vpop.f32.mrb[83].mxu0  ;;  %7363 = vmatprep.mubr.f32.mxu1 %v6521_v2  ;;  %v6404_v35 = vmax.f32 %v5704_v5, 0.0 }
 0x7f7   :  { %v5699_v60 = vadd.f32 %v14570_v3, %v5698_v40  ;;  %v6402_v33 = vmax.f32 %v5696_v61, 0.0 }
 0x7f8   :  { %v6405_v7 = vmax.f32 %v5707_v19, 0.0  ;;  %v15556_v19 = vld [vmem:[#allocation28_spill] sm:$0xff] }
 0x7f9   :  { %11051 = vmatpush3.bf16.msra.mxu0 %v15553_v15  ;;  %v6403_v55 = vmax.f32 %v5699_v60, 0.0 }
 0x7fa   :  { %11053 = vmatprep.subr.bf16.mxu0 %v15554_v59  ;;  %v14719_v38 = vpack.c.bf16 %v6405_v7, %v6404_v35 }
 0x7fb   :  { %v14721_v27 = vpack.c.bf16 %v6403_v55, %v6402_v33  ;;  %v10594_v11 = vpop.f32.mrb[84].mxu0 }
 0x7fc   :  { %v5720_v41 = vadd.f32 %v14570_v3, %v10594_v11  ;;  %v5711_v57 = vpop.f32.mrb[85].mxu0 }
 0x7fd   :  { %11055 = vmatpush3.bf16.msra.mxu0 %v15555_v32  ;;  %v5712_v24 = vadd.f32 %v14570_v3, %v5711_v57  ;;  %v10595_v43 = vpop.f32.mrb[86].mxu0 }
 0x7fe   :  { %11089 = vmatprep.subr.bf16.mxu0 %v14305_v22  ;;  %v5723_v48 = vadd.f32 %v14570_v3, %v10595_v43  ;;  %v5714_v44 = vpop.f32.mrb[87].mxu0  ;;  %v6408_v6 = vmax.f32 %v5720_v41, 0.0 }
 0x7ff   :  { %v5715_v30 = vadd.f32 %v14570_v3, %v5714_v44  ;;  %v6406_v13 = vmax.f32 %v5712_v24, 0.0 }
 0x800   :  { %6874 = vmatmul.mubr.f32.vlgmr.msra.gmra.mrb[178].mxu0 %v6506_v62  ;;  %v6409_v5 = vmax.f32 %v5723_v48, 0.0 }
 0x801   :  { %11091 = vmatpush3.bf16.msra.mxu0 %v14230_v53  ;;  %v6407_v2 = vmax.f32 %v5715_v30, 0.0  ;;  %7013 = vmatprep.mubr.f32.mxu0 %v6511_v56 }
 0x802   :  { %11093 = vmatprep.subr.bf16.mxu0 %v14303_v1  ;;  %v14737_v22 = vpack.c.bf16 %v6409_v5, %v6408_v6 }
 0x803   :  { %v14739_v12 = vpack.c.bf16 %v6407_v2, %v6406_v13  ;;  %v10598_v61 = vpop.f32.mrb[88].mxu0 }
 0x804   :  { %v5736_v52 = vadd.f32 %v14570_v3, %v10598_v61  ;;  %v5727_v28 = vpop.f32.mrb[89].mxu0 }
 0x805   :  { %11095 = vmatpush3.bf16.msra.mxu0 %v15556_v19  ;;  %v5728_v40 = vadd.f32 %v14570_v3, %v5727_v28  ;;  %v10599_v60 = vpop.f32.mrb[90].mxu0 }
 0x806   :  { %11097 = vmatprep.subr.bf16.mxu0 %v14327_v54  ;;  %v5739_v53 = vadd.f32 %v14570_v3, %v10599_v60  ;;  %v5730_v35 = vpop.f32.mrb[91].mxu0  ;;  %v6412_v7 = vmax.f32 %v5736_v52, 0.0 }
 0x807   :  { %v5731_v1 = vadd.f32 %v14570_v3, %v5730_v35  ;;  %v6410_v33 = vmax.f32 %v5728_v40, 0.0 }
 0x808   :  { %v6413_v15 = vmax.f32 %v5739_v53, 0.0 }
 0x809   :  { %11099 = vmatpush3.bf16.msra.mxu0 %v14255_v58  ;;  %v6411_v55 = vmax.f32 %v5731_v1, 0.0 }
 0x80a   :  { %11101 = vmatprep.subr.bf16.mxu0 %v14325_v9  ;;  %v14749_v59 = vpack.c.bf16 %v6413_v15, %v6412_v7 }
 0x80b   :  { %v14751_v11 = vpack.c.bf16 %v6411_v55, %v6410_v33  ;;  %v10602_v41 = vpop.f32.mrb[92].mxu0  ;;  %v6515_v33 = vld [vmem:[%s15497_s4 + $0x88] sm:$0xff] }
 0x80c   :  { %v5752_v54 = vadd.f32 %v14570_v3, %v10602_v41  ;;  %v5743_v57 = vpop.f32.mrb[93].mxu0 }
 0x80d   :  { %11103 = vmatpush3.bf16.msra.mxu0 %v14253_v47  ;;  %v5744_v32 = vadd.f32 %v14570_v3, %v5743_v57  ;;  %v10603_v62 = vpop.f32.mrb[94].mxu0 }
 0x80e   :  { %11105 = vmatprep.subr.bf16.mxu0 %v14349_v17  ;;  %v5755_v58 = vadd.f32 %v14570_v3, %v10603_v62  ;;  %v5746_v24 = vpop.f32.mrb[95].mxu0  ;;  %v6416_v43 = vmax.f32 %v5752_v54, 0.0 }
 0x80f   :  { %v5747_v9 = vadd.f32 %v14570_v3, %v5746_v24  ;;  %v6414_v44 = vmax.f32 %v5744_v32, 0.0 }
 0x810   :  { %v6417_v48 = vmax.f32 %v5755_v58, 0.0 }
 0x811   :  { %11107 = vmatpush3.bf16.msra.mxu0 %v14271_v23  ;;  %v6415_v56 = vmax.f32 %v5747_v9, 0.0 }
 0x812   :  { %11109 = vmatprep.subr.bf16.mxu0 %v14347_v20  ;;  %v14761_v30 = vpack.c.bf16 %v6417_v48, %v6416_v43 }
 0x813   :  { %v14763_v47 = vpack.c.bf16 %v6415_v56, %v6414_v44  ;;  %v10606_v6 = vpop.f32.mrb[96].mxu0 }
 0x814   :  { %v5768_v17 = vadd.f32 %v14570_v3, %v10606_v6  ;;  %v5759_v5 = vpop.f32.mrb[97].mxu0 }
 0x815   :  { %11111 = vmatpush3.bf16.msra.mxu0 %v14269_v36  ;;  %v5760_v13 = vadd.f32 %v14570_v3, %v5759_v5  ;;  %v10607_v2 = vpop.f32.mrb[98].mxu0 }
 0x816   :  { %11113 = vmatprep.subr.bf16.mxu0 %v14365_v8  ;;  %v5771_v23 = vadd.f32 %v14570_v3, %v10607_v2  ;;  %v5762_v61 = vpop.f32.mrb[99].mxu0  ;;  %v6420_v52 = vmax.f32 %v5768_v17, 0.0 }
 0x817   :  { %v5763_v20 = vadd.f32 %v14570_v3, %v5762_v61  ;;  %v6418_v19 = vmax.f32 %v5760_v13, 0.0 }
 0x818   :  { %v6421_v28 = vmax.f32 %v5771_v23, 0.0 }
 0x819   :  { %11115 = vmatpush3.bf16.msra.mxu0 %v14287_v50  ;;  %v6419_v40 = vmax.f32 %v5763_v20, 0.0  ;;  %v6510_v50 = vld [vmem:[%s15497_s4 + $0x60] sm:$0xff] }
 0x81a   :  { %11117 = vmatprep.subr.bf16.mxu0 %v14363_v34  ;;  %v14773_v60 = vpack.c.bf16 %v6421_v28, %v6420_v52 }
 0x81b   :  { %v14775_v36 = vpack.c.bf16 %v6419_v40, %v6418_v19  ;;  %v10610_v53 = vpop.f32.mrb[100].mxu0 }
 0x81c   :  { %v5784_v8 = vadd.f32 %v14570_v3, %v10610_v53  ;;  %v5775_v35 = vpop.f32.mrb[101].mxu0 }
 0x81d   :  { %11119 = vmatpush3.bf16.msra.mxu0 %v14285_v14  ;;  %v5776_v1 = vadd.f32 %v14570_v3, %v5775_v35  ;;  %v10611_v7 = vpop.f32.mrb[102].mxu0 }
 0x81e   :  { %v5787_v15 = vadd.f32 %v14570_v3, %v10611_v7  ;;  %11153 = vmatprep.subr.bf16.mxu0 %v14560_v42  ;;  %v5778_v34 = vpop.f32.mrb[103].mxu0  ;;  %v6424_v41 = vmax.f32 %v5784_v8, 0.0 }
 0x81f   :  { %v5779_v55 = vadd.f32 %v14570_v3, %v5778_v34  ;;  %v6422_v54 = vmax.f32 %v5776_v1, 0.0 }
 0x820   :  { %v6425_v14 = vmax.f32 %v5787_v15, 0.0  ;;  %7014 = vmatmul.mubr.f32.vlgmr.msra.gmra.mrb[180].mxu0 %v6510_v50 }
 0x821   :  { %v6423_v57 = vmax.f32 %v5779_v55, 0.0  ;;  %11155 = vmatpush3.bf16.msra.mxu0 %v14508_v37  ;;  %7153 = vmatprep.mubr.f32.mxu0 %v6515_v33 }
 0x822   :  { %v14790_v32 = vpack.c.bf16 %v6425_v14, %v6424_v41  ;;  %11157 = vmatprep.subr.bf16.mxu0 %v14558_v26 }
 0x823   :  { %v14793_v42 = vpack.c.bf16 %v6423_v57, %v6422_v54  ;;  %v10614_v62 = vpop.f32.mrb[104].mxu0 }
 0x824   :  { %v5800_v58 = vadd.f32 %v14570_v3, %v10614_v62  ;;  %v5791_v24 = vpop.f32.mrb[105].mxu0  ;;  %v9136_v62 = vpop.f32.mrb[192].mxu1 }
 0x825   :  { %v5792_v9 = vadd.f32 %v14570_v3, %v5791_v24  ;;  %v10615_v43 = vpop.f32.mrb[106].mxu0  ;;  %11159 = vmatpush3.bf16.msra.mxu0 %v14506_v0  ;;  %v9137_v24 = vpop.f32.mrb[193].mxu1 }
 0x826   :  { %v5803_v48 = vadd.f32 %v14570_v3, %v10615_v43  ;;  %v5794_v44 = vpop.f32.mrb[107].mxu0  ;;  %11161 = vmatprep.subr.bf16.mxu0 %v14577_v39  ;;  %v6428_v56 = vmax.f32 %v5800_v58, 0.0  ;;  %v6519_v43 = vld [vmem:[%s15497_s4 + $0xa8] sm:$0xff] }
 0x827   :  { %v5795_v37 = vadd.f32 %v14570_v3, %v5794_v44  ;;  %v6426_v6 = vmax.f32 %v5792_v9, 0.0  ;;  %v9171_v44 = vpop.f32.mrb[194].mxu1 }
 0x828   :  { %v6429_v26 = vmax.f32 %v5803_v48, 0.0  ;;  %v9138_v48 = vadd.f32 %v9137_v24, %v9136_v62 }
 0x829   :  { %v6427_v17 = vmax.f32 %v5795_v37, 0.0  ;;  %11163 = vmatpush3.bf16.msra.mxu0 %v14524_v18 }
 0x82a   :  { %v14802_v5 = vpack.c.bf16 %v6429_v26, %v6428_v56  ;;  %11165 = vmatprep.subr.bf16.mxu0 %v14575_v25  ;;  %v9172_v56 = vpop.f32.mrb[195].mxu1 }
 0x82b   :  { %v14805_v13 = vpack.c.bf16 %v6427_v17, %v6426_v6  ;;  %v10618_v0 = vpop.f32.mrb[108].mxu0  ;;  %v9173_v6 = vadd.f32 %v9172_v56, %v9171_v44 }
 0x82c   :  { %v5816_v2 = vadd.f32 %v14570_v3, %v10618_v0  ;;  %v5807_v23 = vpop.f32.mrb[109].mxu0 }
 0x82d   :  { %v5808_v39 = vadd.f32 %v14570_v3, %v5807_v23  ;;  %v10619_v61 = vpop.f32.mrb[110].mxu0  ;;  %11167 = vmatpush3.bf16.msra.mxu0 %v14522_v31  ;;  %v14847_v23 = vadd.f32 %v9173_v6, %v9138_v48 }
 0x82e   :  { %v5819_v20 = vadd.f32 %v14570_v3, %v10619_v61  ;;  %v5810_v52 = vpop.f32.mrb[111].mxu0  ;;  %11169 = vmatprep.subr.bf16.mxu0 %v14589_v46  ;;  %v6432_v28 = vmax.f32 %v5816_v2, 0.0  ;;  %v9241_v2 = vpop.f32.mrb[196].mxu1 }
 0x82f   :  { %v5811_v18 = vadd.f32 %v14570_v3, %v5810_v52  ;;  %v6430_v19 = vmax.f32 %v5808_v39, 0.0  ;;  %v9242_v39 = vpop.f32.mrb[197].mxu1 }
 0x830   :  { %v6433_v25 = vmax.f32 %v5819_v20, 0.0  ;;  %v14851_v52 = vadd.f32 %v9242_v39, %v9241_v2 }
 0x831   :  { %v6431_v40 = vmax.f32 %v5811_v18, 0.0  ;;  %11171 = vmatpush3.bf16.msra.mxu0 %v14536_v10 }
 0x832   :  { %v14814_v53 = vpack.c.bf16 %v6433_v25, %v6432_v28  ;;  %11173 = vmatprep.subr.bf16.mxu0 %v14587_v49 }
 0x833   :  { %v14817_v8 = vpack.c.bf16 %v6431_v40, %v6430_v19  ;;  %v10622_v31 = vpop.f32.mrb[112].mxu0 }
 0x834   :  { %v5832_v35 = vadd.f32 %v14570_v3, %v10622_v31  ;;  %v5823_v1 = vpop.f32.mrb[113].mxu0 }
 0x835   :  { %v5824_v46 = vadd.f32 %v14570_v3, %v5823_v1  ;;  %v10623_v7 = vpop.f32.mrb[114].mxu0  ;;  %11175 = vmatpush3.bf16.msra.mxu0 %v14534_v63 }
 0x836   :  { %v5835_v50 = vadd.f32 %v14570_v3, %v10623_v7  ;;  %v5826_v15 = vpop.f32.mrb[115].mxu0  ;;  %11177 = vmatprep.subr.bf16.mxu0 %v14601_v51  ;;  %v6436_v34 = vmax.f32 %v5832_v35, 0.0 }
 0x837   :  { %v5827_v10 = vadd.f32 %v14570_v3, %v5826_v15  ;;  %v6434_v33 = vmax.f32 %v5824_v46, 0.0 }
 0x838   :  { %v6437_v49 = vmax.f32 %v5835_v50, 0.0 }
 0x839   :  { %v6435_v55 = vmax.f32 %v5827_v10, 0.0  ;;  %11179 = vmatpush3.bf16.msra.mxu0 %v14548_v45  ;;  %v6514_v45 = vld [vmem:[%s15497_s4 + $0x80] sm:$0xff] }
 0x83a   :  { %v14826_v41 = vpack.c.bf16 %v6437_v49, %v6436_v34  ;;  %11181 = vmatprep.subr.bf16.mxu0 %v14599_v21 }
 0x83b   :  { %v14829_v14 = vpack.c.bf16 %v6435_v55, %v6434_v33  ;;  %v10626_v63 = vpop.f32.mrb[116].mxu0 }
 0x83c   :  { %v5848_v54 = vadd.f32 %v14570_v3, %v10626_v63  ;;  %v5839_v57 = vpop.f32.mrb[117].mxu0 }
 0x83d   :  { %v5840_v51 = vadd.f32 %v14570_v3, %v5839_v57  ;;  %v10627_v58 = vpop.f32.mrb[118].mxu0  ;;  %11183 = vmatpush3.bf16.msra.mxu0 %v14546_v4 }
 0x83e   :  { %v5851_v9 = vadd.f32 %v14570_v3, %v10627_v58  ;;  %v5842_v21 = vpop.f32.mrb[119].mxu0  ;;  %11217 = vmatprep.subr.bf16.mxu0 %v14763_v47  ;;  %v6440_v4 = vmax.f32 %v5848_v54, 0.0 }
 0x83f   :  { %v5843_v37 = vadd.f32 %v14570_v3, %v5842_v21  ;;  %v6438_v17 = vmax.f32 %v5840_v51, 0.0 }
 0x840   :  { %v6441_v26 = vmax.f32 %v5851_v9, 0.0  ;;  %7154 = vmatmul.mubr.f32.vlgmr.msra.gmra.mrb[182].mxu0 %v6514_v45 }
 0x841   :  { %v6439_v0 = vmax.f32 %v5843_v37, 0.0  ;;  %11219 = vmatpush3.bf16.msra.mxu0 %v14706_v16  ;;  %7293 = vmatprep.mubr.f32.mxu0 %v6519_v43  ;;  %v14857_v16 = vld [vmem:[%s15494_s7 + $0x4] ss:$0 sm:$0xff] }
 0x842   :  { %v14844_v47 = vpack.c.bf16 %v6441_v26, %v6440_v4  ;;  %11221 = vmatprep.subr.bf16.mxu0 %v14761_v30 }
 0x843   :  { %v14849_v61 = vpack.c.bf16 %v6439_v0, %v6438_v17  ;;  %v10630_v20 = vpop.f32.mrb[120].mxu0  ;;  %v6518_v0 = vld [vmem:[%s15497_s4 + $0xa0] sm:$0xff] }
 0x844   :  { %v5864_v18 = vadd.f32 %v14570_v3, %v10630_v20  ;;  %v5855_v28 = vpop.f32.mrb[121].mxu0 }
 0x845   :  { %v5856_v25 = vadd.f32 %v14857_v16, %v5855_v28  ;;  %v10631_v19 = vpop.f32.mrb[122].mxu0  ;;  %11223 = vmatpush3.bf16.msra.mxu0 %v14700_v29 }
 0x846   :  { %v5867_v30 = vadd.f32 %v14857_v16, %v10631_v19  ;;  %v5858_v40 = vpop.f32.mrb[123].mxu0  ;;  %11225 = vmatprep.subr.bf16.mxu0 %v14775_v36  ;;  %v6444_v35 = vmax.f32 %v5864_v18, 0.0 }
 0x847   :  { %v5859_v31 = vadd.f32 %v14857_v16, %v5858_v40  ;;  %v6442_v1 = vmax.f32 %v5856_v25, 0.0 }
 0x848   :  { %v6445_v3 = vmax.f32 %v5867_v30, 0.0 }
 0x849   :  { %v6443_v46 = vmax.f32 %v5859_v31, 0.0  ;;  %11227 = vmatpush3.bf16.msra.mxu0 %v14721_v27 }
 0x84a   :  { %v14865_v7 = vpack.c.bf16 %v6445_v3, %v6444_v35  ;;  %11229 = vmatprep.subr.bf16.mxu0 %v14773_v60 }
 0x84b   :  { %v14868_v50 = vpack.c.bf16 %v6443_v46, %v6442_v1  ;;  %v10634_v29 = vpop.f32.mrb[124].mxu0 }
 0x84c   :  { %v5880_v15 = vadd.f32 %v14857_v16, %v10634_v29  ;;  %v5871_v10 = vpop.f32.mrb[125].mxu0 }
 0x84d   :  { %v5872_v36 = vadd.f32 %v14857_v16, %v5871_v10  ;;  %v10635_v34 = vpop.f32.mrb[126].mxu0  ;;  %11231 = vmatpush3.bf16.msra.mxu0 %v14719_v38 }
 0x84e   :  { %v5883_v49 = vadd.f32 %v14857_v16, %v10635_v34  ;;  %v5874_v33 = vpop.f32.mrb[127].mxu0  ;;  %11233 = vmatprep.subr.bf16.mxu0 %v14793_v42  ;;  %v6448_v55 = vmax.f32 %v5880_v15, 0.0  ;;  %v9311_v42 = vpop.f32.mrb[198].mxu1 }
 0x84f   :  { %v5875_v27 = vadd.f32 %v14857_v16, %v5874_v33  ;;  %v6446_v63 = vmax.f32 %v5872_v36, 0.0 }
 0x850   :  { %v6449_v60 = vmax.f32 %v5883_v49, 0.0 }
 0x851   :  { %v6447_v54 = vmax.f32 %v5875_v27, 0.0  ;;  %11235 = vmatpush3.bf16.msra.mxu0 %v14739_v12  ;;  %v9312_v12 = vpop.f32.mrb[199].mxu1 }
 0x852   :  { %v11252_v57 = vpack.c.bf16 %v6449_v60, %v6448_v55  ;;  %11237 = vmatprep.subr.bf16.mxu0 %v14790_v32  ;;  %v14885_v43 = vadd.f32 %v9312_v12, %v9311_v42  ;;  %v9381_v12 = vpop.f32.mrb[200].mxu1 }
 0x853   :  { %v11248_v62 = vpack.c.bf16 %v6447_v54, %v6446_v63  ;;  %v10638_v51 = vpop.f32.mrb[128].mxu0 }
 0x854   :  { %v5896_v38 = vadd.f32 %v14857_v16, %v10638_v51  ;;  %v5887_v58 = vpop.f32.mrb[129].mxu0 }
 0x855   :  { %v5888_v45 = vadd.f32 %v14857_v16, %v5887_v58  ;;  %v10639_v24 = vpop.f32.mrb[130].mxu0  ;;  %11239 = vmatpush3.bf16.msra.mxu0 %v14737_v22  ;;  %11249 = vmatprep.subr.bf16.mxu1 %v11248_v62 }
 0x856   :  { %v5899_v9 = vadd.f32 %v14857_v16, %v10639_v24  ;;  %v5890_v21 = vpop.f32.mrb[131].mxu0  ;;  %11241 = vmatprep.subr.bf16.mxu0 %v14805_v13  ;;  %11251 = vmatpush3.bf16.msra.mxu1 %v14817_v8  ;;  %v6452_v48 = vmax.f32 %v5896_v38, 0.0  ;;  %v6520_v38 = vld [vmem:[%s15497_s4 + $0xb0] sm:$0xff]  ;;  %v15557_v24 = vmov 0.0|0.0  }
 0x857   :  { %v5891_v32 = vadd.f32 %v14857_v16, %v5890_v21  ;;  %11253 = vmatprep.subr.bf16.mxu1 %v11252_v57  ;;  %v6450_v37 = vmax.f32 %v5888_v45, 0.0 }
 0x858   :  { %v6453_v44 = vmax.f32 %v5899_v9, 0.0 }
 0x859   :  { %v6451_v56 = vmax.f32 %v5891_v32, 0.0  ;;  %11243 = vmatpush3.bf16.msra.mxu0 %v14751_v11 }
 0x85a   :  { %v11260_v22 = vpack.c.bf16 %v6453_v44, %v6452_v48  ;;  %11245 = vmatprep.subr.bf16.mxu0 %v14802_v5  ;;  %11255 = vmatpush3.bf16.msra.mxu1 %v14814_v53  ;;  %v6523_v53 = vld [vmem:[%s15497_s4 + $0xc8] sm:$0xff]  ;;  %v15558_v48 = vmov 0.0   ;;  %v9382_v44 = vpop.f32.mrb[201].mxu1 }
 0x85b   :  { %v11256_v13 = vpack.c.bf16 %v6451_v56, %v6450_v37  ;;  %v10642_v4 = vpop.f32.mrb[132].mxu0  ;;  %v14929_v56 = vadd.f32 %v9382_v44, %v9381_v12 }
 0x85c   :  { %v5912_v8 = vadd.f32 %v14857_v16, %v10642_v4  ;;  %v5903_v26 = vpop.f32.mrb[133].mxu0 }
 0x85d   :  { %v5904_v6 = vadd.f32 %v14857_v16, %v5903_v26  ;;  %v10643_v17 = vpop.f32.mrb[134].mxu0  ;;  %11247 = vmatpush3.bf16.msra.mxu0 %v14749_v59  ;;  %11257 = vmatprep.subr.bf16.mxu1 %v11256_v13 }
 0x85e   :  { %v5915_v11 = vadd.f32 %v14857_v16, %v10643_v17  ;;  %v5906_v5 = vpop.f32.mrb[135].mxu0  ;;  %11259 = vmatpush3.bf16.msra.mxu1 %v14829_v14  ;;  %v6456_v39 = vmax.f32 %v5912_v8, 0.0 }
 0x85f   :  { %v5907_v2 = vadd.f32 %v14857_v16, %v5906_v5  ;;  %11261 = vmatprep.subr.bf16.mxu1 %v11260_v22  ;;  %v6454_v59 = vmax.f32 %v5904_v6, 0.0 }
 0x860   :  { %v6457_v20 = vmax.f32 %v5915_v11, 0.0  ;;  %7294 = vmatmul.mubr.f32.vlgmr.msra.gmra.mrb[184].mxu0 %v6518_v0 }
 0x861   :  { %v6455_v18 = vmax.f32 %v5907_v2, 0.0  ;;  %7433 = vmatprep.mubr.f32.mxu0 %v6523_v53 }
 0x862   :  { %v11268_v28 = vpack.c.bf16 %v6457_v20, %v6456_v39  ;;  %11263 = vmatpush3.bf16.msra.mxu1 %v14826_v41 }
 0x863   :  { %v11264_v25 = vpack.c.bf16 %v6455_v18, %v6454_v59  ;;  %v10646_v19 = vpop.f32.mrb[136].mxu0 }
 0x864   :  { %v5928_v14 = vadd.f32 %v14857_v16, %v10646_v19  ;;  %v5919_v30 = vpop.f32.mrb[137].mxu0 }
 0x865   :  { %v5920_v40 = vadd.f32 %v14857_v16, %v5919_v30  ;;  %v10647_v31 = vpop.f32.mrb[138].mxu0  ;;  %11265 = vmatprep.subr.bf16.mxu1 %v11264_v25 }
 0x866   :  { %v5931_v35 = vadd.f32 %v14857_v16, %v10647_v31  ;;  %v5922_v3 = vpop.f32.mrb[139].mxu0  ;;  %11267 = vmatpush3.bf16.msra.mxu1 %v14849_v61  ;;  %v6460_v46 = vmax.f32 %v5928_v14, 0.0 }
 0x867   :  { %v5923_v1 = vadd.f32 %v14857_v16, %v5922_v3  ;;  %11269 = vmatprep.subr.bf16.mxu1 %v11268_v28  ;;  %v6458_v41 = vmax.f32 %v5920_v40, 0.0 }
 0x868   :  { %v6461_v29 = vmax.f32 %v5931_v35, 0.0 }
 0x869   :  { %v6459_v15 = vmax.f32 %v5923_v1, 0.0 }
 0x86a   :  { %v11276_v10 = vpack.c.bf16 %v6461_v29, %v6460_v46  ;;  %11271 = vmatpush3.bf16.msra.mxu1 %v14844_v47 }
 0x86b   :  { %v11272_v36 = vpack.c.bf16 %v6459_v15, %v6458_v41  ;;  %v10650_v34 = vpop.f32.mrb[140].mxu0 }
 0x86c   :  { %v5944_v49 = vadd.f32 %v14857_v16, %v10650_v34  ;;  %v5935_v33 = vpop.f32.mrb[141].mxu0 }
 0x86d   :  { %v5936_v27 = vadd.f32 %v14857_v16, %v5935_v33  ;;  %v10651_v55 = vpop.f32.mrb[142].mxu0  ;;  %11273 = vmatprep.subr.bf16.mxu1 %v11272_v36 }
 0x86e   :  { %v5947_v61 = vadd.f32 %v14857_v16, %v10651_v55  ;;  %v5938_v60 = vpop.f32.mrb[143].mxu0  ;;  %11275 = vmatpush3.bf16.msra.mxu1 %v14868_v50  ;;  %v6464_v54 = vmax.f32 %v5944_v49, 0.0 }
 0x86f   :  { %v5939_v63 = vadd.f32 %v14857_v16, %v5938_v60  ;;  %11277 = vmatprep.subr.bf16.mxu1 %v11276_v10  ;;  %v6462_v47 = vmax.f32 %v5936_v27, 0.0 }
 0x870   :  { %v6465_v57 = vmax.f32 %v5947_v61, 0.0 }
 0x871   :  { %v6463_v62 = vmax.f32 %v5939_v63, 0.0 }
 0x872   :  { %v14914_v51 = vpack.c.bf16 %v6465_v57, %v6464_v54  ;;  %11279 = vmatpush3.bf16.msra.mxu1 %v14865_v7 }
 0x873   :  { %v14920_v58 = vpack.c.bf16 %v6463_v62, %v6462_v47  ;;  %v10654_v45 = vpop.f32.mrb[144].mxu0  ;;  %11312 = vmatprep.subr.bf16.mxu1 %v15557_v24 }
 0x874   :  { %v5960_v50 = vadd.f32 %v14857_v16, %v10654_v45  ;;  %v5951_v42 = vpop.f32.mrb[145].mxu0 }
 0x875   :  { %v5952_v9 = vadd.f32 %v14857_v16, %v5951_v42  ;;  %v10655_v21 = vpop.f32.mrb[146].mxu0  ;;  %7364 = vmatmul.mubr.f32.vlgmr.msra.gmra.mrb[204].mxu1 %v6520_v38 }
 0x876   :  { %v5963_v32 = vadd.f32 %v14857_v16, %v10655_v21  ;;  %v5954_v7 = vpop.f32.mrb[147].mxu0  ;;  %10692 = vmatprep.mubr.msk.f32.mxu1 %vm11545_vm3, %v15558_v48  ;;  %v6468_v22 = vmax.f32 %v5960_v50, 0.0 }
 0x877   :  { %v5955_v37 = vadd.f32 %v14857_v16, %v5954_v7  ;;  %v6466_v4 = vmax.f32 %v5952_v9, 0.0 }
 0x878   :  { %v6469_v13 = vmax.f32 %v5963_v32, 0.0 }
 0x879   :  { %v6467_v8 = vmax.f32 %v5955_v37, 0.0 }
 0x87a   :  { %v14931_v26 = vpack.c.bf16 %v6469_v13, %v6468_v22 }
 0x87b   :  { %v14933_v6 = vpack.c.bf16 %v6467_v8, %v6466_v4  ;;  %v10658_v17 = vpop.f32.mrb[148].mxu0 }
 0x87c   :  { %v5976_v0 = vadd.f32 %v14857_v16, %v10658_v17  ;;  %v5967_v11 = vpop.f32.mrb[149].mxu0 }
 0x87d   :  { %v5968_v5 = vadd.f32 %v14857_v16, %v5967_v11  ;;  %v10659_v53 = vpop.f32.mrb[150].mxu0 }
 0x87e   :  { %v5979_v2 = vadd.f32 %v14857_v16, %v10659_v53  ;;  %v5970_v39 = vpop.f32.mrb[151].mxu0  ;;  %v6472_v59 = vmax.f32 %v5976_v0, 0.0 }
 0x87f   :  { %v5971_v20 = vadd.f32 %v14857_v16, %v5970_v39  ;;  %v6470_v28 = vmax.f32 %v5968_v5, 0.0 }
 0x880   :  { %v6473_v18 = vmax.f32 %v5979_v2, 0.0 }
 0x881   :  { %v6471_v25 = vmax.f32 %v5971_v20, 0.0 }
 0x882   :  { %v14939_v19 = vpack.c.bf16 %v6473_v18, %v6472_v59 }
 0x883   :  { %v14941_v14 = vpack.c.bf16 %v6471_v25, %v6470_v28  ;;  %v10662_v30 = vpop.f32.mrb[152].mxu0 }
 0x884   :  { %v5992_v40 = vadd.f32 %v14857_v16, %v10662_v30  ;;  %v5983_v31 = vpop.f32.mrb[153].mxu0 }
 0x885   :  { %v5984_v35 = vadd.f32 %v14857_v16, %v5983_v31  ;;  %v10663_v3 = vpop.f32.mrb[154].mxu0 }
 0x886   :  { %v5995_v1 = vadd.f32 %v14857_v16, %v10663_v3  ;;  %v5986_v46 = vpop.f32.mrb[155].mxu0  ;;  %v6476_v41 = vmax.f32 %v5992_v40, 0.0 }
 0x887   :  { %v5987_v29 = vadd.f32 %v14857_v16, %v5986_v46  ;;  %v6474_v10 = vmax.f32 %v5984_v35, 0.0 }
 0x888   :  { %v6477_v15 = vmax.f32 %v5995_v1, 0.0 }
 0x889   :  { %v6475_v36 = vmax.f32 %v5987_v29, 0.0 }
 0x88a   :  { %v14947_v34 = vpack.c.bf16 %v6477_v15, %v6476_v41 }
 0x88b   :  { %v14949_v49 = vpack.c.bf16 %v6475_v36, %v6474_v10  ;;  %v10666_v33 = vpop.f32.mrb[156].mxu0 }
 0x88c   :  { %v6008_v27 = vadd.f32 %v14857_v16, %v10666_v33  ;;  %v5999_v55 = vpop.f32.mrb[157].mxu0 }
 0x88d   :  { %v6000_v61 = vadd.f32 %v14857_v16, %v5999_v55  ;;  %v10667_v60 = vpop.f32.mrb[158].mxu0 }
 0x88e   :  { %v6011_v63 = vadd.f32 %v14857_v16, %v10667_v60  ;;  %v6002_v54 = vpop.f32.mrb[159].mxu0  ;;  %v6480_v47 = vmax.f32 %v6008_v27, 0.0 }
 0x88f   :  { %v6003_v57 = vadd.f32 %v14857_v16, %v6002_v54  ;;  %v6478_v38 = vmax.f32 %v6000_v61, 0.0  ;;  %v651_v54 = vld [vmem:[%s15494_s7 + $0x2] ss:$0 sm:$0xff] }
 0x890   :  { %v6481_v62 = vmax.f32 %v6011_v63, 0.0 }
 0x891   :  { %v6479_v45 = vmax.f32 %v6003_v57, 0.0 }
 0x892   :  { %v11284_v50 = vpack.c.bf16 %v6481_v62, %v6480_v47 }
 0x893   :  { %v11280_v42 = vpack.c.bf16 %v6479_v45, %v6478_v38  ;;  %v10670_v9 = vpop.f32.mrb[160].mxu0  ;;  %v15559_v38 = vld [vmem:[#allocation2_spill] sm:$0xff] }
 0x894   :  { %v6024_v21 = vadd.f32 %v14857_v16, %v10670_v9  ;;  %v6015_v12 = vpop.f32.mrb[161].mxu0  ;;  %v719_v45 = vadd.f32 %v15559_v38, %v651_v54 }
 0x895   :  { %v6016_v32 = vadd.f32 %v14857_v16, %v6015_v12  ;;  %v10671_v7 = vpop.f32.mrb[162].mxu0  ;;  %11281 = vmatprep.subr.bf16.mxu0 %v11280_v42 }
 0x896   :  { %v6027_v44 = vadd.f32 %v14857_v16, %v10671_v7  ;;  %v6018_v37 = vpop.f32.mrb[163].mxu0  ;;  %11283 = vmatpush3.bf16.msra.mxu0 %v14920_v58  ;;  %v6484_v13 = vmax.f32 %v6024_v21, 0.0 }
 0x897   :  { %v6019_v22 = vadd.f32 %v14857_v16, %v6018_v37  ;;  %11285 = vmatprep.subr.bf16.mxu0 %v11284_v50  ;;  %v6482_v8 = vmax.f32 %v6016_v32, 0.0  ;;  %v6522_v32 = vld [vmem:[%s15497_s4 + $0xc0] sm:$0xff]  ;;  %v722_v37 = vmax.f32 %v719_v45, 0.0 }
 0x898   :  { %v6485_v4 = vmax.f32 %v6027_v44, 0.0 }
 0x899   :  { %v6483_v17 = vmax.f32 %v6019_v22, 0.0  ;;  %v7509_v22 = vld [vmem:[%s15491_s5 + $0x1e0] sm:$0xff] }
 0x89a   :  { %v11292_v0 = vpack.c.bf16 %v6485_v4, %v6484_v13  ;;  %11287 = vmatpush3.bf16.msra.mxu0 %v14914_v51  ;;  %v6524_v4 = vld [vmem:[%s15497_s4 + $0xd0] sm:$0xff] }
 0x89b   :  { %v11288_v11 = vpack.c.bf16 %v6483_v17, %v6482_v8  ;;  %v10674_v5 = vpop.f32.mrb[164].mxu0 }
 0x89c   :  { %v6040_v53 = vadd.f32 %v14857_v16, %v10674_v5  ;;  %v6031_v2 = vpop.f32.mrb[165].mxu0  ;;  %v7514_v5 = vld [vmem:[%s15491_s5 + $0x208] sm:$0xff] }
 0x89d   :  { %v6032_v39 = vadd.f32 %v14857_v16, %v6031_v2  ;;  %v10675_v20 = vpop.f32.mrb[166].mxu0  ;;  %11289 = vmatprep.subr.bf16.mxu0 %v11288_v11  ;;  %v7512_v11 = vld [vmem:[%s15491_s5 + $0x1f8] sm:$0xff]  ;;  %v7515_v2 = vld [vmem:[%s15491_s5 + $0x210] sm:$0xff] }
 0x89e   :  { %v6043_v58 = vadd.f32 %v14857_v16, %v10675_v20  ;;  %v6034_v59 = vpop.f32.mrb[167].mxu0  ;;  %11291 = vmatpush3.bf16.msra.mxu0 %v14933_v6  ;;  %v6488_v28 = vmax.f32 %v6040_v53, 0.0 }
 0x89f   :  { %v6035_v18 = vadd.f32 %v14857_v16, %v6034_v59  ;;  %11293 = vmatprep.subr.bf16.mxu0 %v11292_v0  ;;  %v6486_v51 = vmax.f32 %v6032_v39, 0.0  ;;  %v7511_v0 = vld [vmem:[%s15491_s5 + $0x1f0] sm:$0xff]  ;;  %v7516_v39 = vld [vmem:[%s15491_s5 + $0x218] sm:$0xff]  ;;  %v7518_v59 = vld [vmem:[%s15491_s5 + $0x228] sm:$0xff] }
 0x8a0   :  { %v6489_v25 = vmax.f32 %v6043_v58, 0.0  ;;  %v11328_v20 = vpack.c.bf16 %v7516_v39, %v7515_v2  ;;  %v7517_v58 = vld [vmem:[%s15491_s5 + $0x220] sm:$0xff]  ;;  %v7623_v2 = vld [vmem:[%s15491_s5 + $0x330] sm:$0xff]  ;;  %v7624_v39 = vld [vmem:[%s15491_s5 + $0x338] sm:$0xff] }
 0x8a1   :  { %v6487_v30 = vmax.f32 %v6035_v18, 0.0 }
 0x8a2   :  { %v11300_v40 = vpack.c.bf16 %v6489_v25, %v6488_v28  ;;  %11295 = vmatpush3.bf16.msra.mxu0 %v14931_v26  ;;  %v11331_v28 = vpack.c.bf16 %v7518_v59, %v7517_v58  ;;  %v11362_v58 = vpack.c.bf16 %v7624_v39, %v7623_v2  ;;  %v7607_v59 = vld [vmem:[%s15491_s5 + $0x2b0] sm:$0xff]  ;;  %v7722_v39 = vld [vmem:[%s15498_s6 + $0xa8] sm:$0xff] }
 0x8a3   :  { %v11296_v31 = vpack.c.bf16 %v6487_v30, %v6486_v51  ;;  %v10678_v35 = vpop.f32.mrb[168].mxu0  ;;  %v7519_v30 = vld [vmem:[%s15491_s5 + $0x230] sm:$0xff] }
 0x8a4   :  { %v6056_v3 = vadd.f32 %v14857_v16, %v10678_v35  ;;  %v6047_v1 = vpop.f32.mrb[169].mxu0  ;;  %v7719_v2 = vld [vmem:[%s15498_s6 + $0x90] sm:$0xff] }
 0x8a5   :  { %v6048_v46 = vadd.f32 %v14857_v16, %v6047_v1  ;;  %v10679_v29 = vpop.f32.mrb[170].mxu0  ;;  %11297 = vmatprep.subr.bf16.mxu0 %v11296_v31 }
 0x8a6   :  { %v6059_v6 = vadd.f32 %v14857_v16, %v10679_v29  ;;  %v6050_v41 = vpop.f32.mrb[171].mxu0  ;;  %11299 = vmatpush3.bf16.msra.mxu0 %v14941_v14  ;;  %v6492_v10 = vmax.f32 %v6056_v3, 0.0 }
 0x8a7   :  { %v6051_v15 = vadd.f32 %v14857_v16, %v6050_v41  ;;  %11301 = vmatprep.subr.bf16.mxu0 %v11300_v40  ;;  %v6490_v26 = vmax.f32 %v6048_v46, 0.0  ;;  %v7520_v40 = vld [vmem:[%s15491_s5 + $0x238] sm:$0xff] }
 0x8a8   :  { %v6493_v36 = vmax.f32 %v6059_v6, 0.0  ;;  %v11334_v31 = vpack.c.bf16 %v7520_v40, %v7519_v30  ;;  %v7609_v40 = vld [vmem:[%s15491_s5 + $0x2c0] sm:$0xff] }
 0x8a9   :  { %v6491_v33 = vmax.f32 %v6051_v15, 0.0 }
 0x8aa   :  { %v11308_v27 = vpack.c.bf16 %v6493_v36, %v6492_v10  ;;  %11303 = vmatpush3.bf16.msra.mxu0 %v14939_v19 }
 0x8ab   :  { %v11304_v55 = vpack.c.bf16 %v6491_v33, %v6490_v26  ;;  %v10682_v61 = vpop.f32.mrb[172].mxu0  ;;  %v7521_v26 = vld [vmem:[%s15491_s5 + $0x240] sm:$0xff]  ;;  %v7522_v33 = vld [vmem:[%s15491_s5 + $0x248] sm:$0xff] }
 0x8ac   :  { %v6072_v60 = vadd.f32 %v14857_v16, %v10682_v61  ;;  %v6063_v63 = vpop.f32.mrb[173].mxu0  ;;  %v7613_v61 = vld [vmem:[%s15491_s5 + $0x2e0] sm:$0xff] }
 0x8ad   :  { %v6064_v14 = vadd.f32 %v14857_v16, %v6063_v63  ;;  %v10683_v57 = vpop.f32.mrb[174].mxu0  ;;  %11305 = vmatprep.subr.bf16.mxu0 %v11304_v55  ;;  %v7597_v63 = vld [vmem:[%s15491_s5 + $0x260] sm:$0xff] }
 0x8ae   :  { %v6075_v47 = vadd.f32 %v14857_v16, %v10683_v57  ;;  %v6066_v62 = vpop.f32.mrb[175].mxu0  ;;  %11307 = vmatpush3.bf16.msra.mxu0 %v14949_v49  ;;  %v6496_v50 = vmax.f32 %v6072_v60, 0.0  ;;  %v7614_v60 = vld [vmem:[%s15491_s5 + $0x2e8] sm:$0xff] }
 0x8af   :  { %v6067_v19 = vadd.f32 %v14857_v16, %v6066_v62  ;;  %11309 = vmatprep.subr.bf16.mxu0 %v11308_v27  ;;  %v6494_v9 = vmax.f32 %v6064_v14, 0.0  ;;  %v11337_v27 = vpack.c.bf16 %v7522_v33, %v7521_v26  ;;  %v11342_v14 = vpack.c.bf16 %v7614_v60, %v7613_v61  ;;  %v7598_v57 = vld [vmem:[%s15491_s5 + $0x268] sm:$0xff]  ;;  %v7616_v62 = vld [vmem:[%s15491_s5 + $0x2f8] sm:$0xff]  ;;  %v7627_v61 = vld [vmem:[%s15491_s5 + $0x350] sm:$0xff] }
 0x8b0   :  { %v6497_v42 = vmax.f32 %v6075_v47, 0.0  ;;  %v7615_v47 = vld [vmem:[%s15491_s5 + $0x2f0] sm:$0xff]  ;;  %v11344_v38 = vpack.c.bf16 %v7598_v57, %v7597_v63  ;;  %v7628_v60 = vld [vmem:[%s15491_s5 + $0x358] sm:$0xff] }
 0x8b1   :  { %v6495_v21 = vmax.f32 %v6067_v19, 0.0  ;;  %v11346_v45 = vpack.c.bf16 %v7616_v62, %v7615_v47  ;;  %v11370_v63 = vpack.c.bf16 %v7628_v60, %v7627_v61  ;;  %v7702_v47 = vld [vmem:[%s15498_s6 + $0x8] sm:$0xff]  ;;  %v7704_v62 = vld [vmem:[%s15498_s6 + $0x18] sm:$0xff] }
 0x8b2   :  { %v11316_v12 = vpack.c.bf16 %v6497_v42, %v6496_v50  ;;  %11311 = vmatpush3.bf16.msra.mxu0 %v14947_v34  ;;  %v7510_v34 = vld [vmem:[%s15491_s5 + $0x1e8] sm:$0xff]  ;;  %v7599_v50 = vld [vmem:[%s15491_s5 + $0x270] sm:$0xff]  ;;  %v7600_v42 = vld [vmem:[%s15491_s5 + $0x278] sm:$0xff] }
 0x8b3   :  { %v11313_v7 = vpack.c.bf16 %v6495_v21, %v6494_v9  ;;  %v9206_v44 = vpop.f32.mrb[176].mxu0  ;;  %v11319_v8 = vpack.c.bf16 %v7510_v34, %v7509_v22  ;;  %v7617_v9 = vld [vmem:[%s15491_s5 + $0x300] sm:$0xff]  ;;  %11343 = vmatprep.subr.bf16.mxu0 %v11342_v14  ;;  %v7620_v22 = vld [vmem:[%s15491_s5 + $0x318] sm:$0xff] }
 0x8b4   :  { %v9207_v49 = vpop.f32.mrb[177].mxu0  ;;  %v7612_v14 = vld [vmem:[%s15491_s5 + $0x2d8] sm:$0xff] }
 0x8b5   :  { %7434 = vmatmul.mubr.f32.vlgmr.msra.gmra.mrb[186].mxu0 %v6522_v32  ;;  %11314 = vmatpush3.bf16.msra.mxu1 %v11313_v7  ;;  %v9208_v16 = vadd.f32 %v9207_v49, %v9206_v44  ;;  %v11348_v32 = vpack.c.bf16 %v7600_v42, %v7599_v50  ;;  %v7602_v49 = vld [vmem:[%s15491_s5 + $0x288] sm:$0xff]  ;;  %v7708_v42 = vld [vmem:[%s15498_s6 + $0x38] sm:$0xff] }
 0x8b6   :  { %7694 = vmatprep.mubr.f32.mxu0 %v722_v37  ;;  %11315 = vmatprep.subr.bf16.mxu1 %v15557_v24  ;;  %v7601_v37 = vld [vmem:[%s15491_s5 + $0x280] sm:$0xff]  ;;  %v7706_v50 = vld [vmem:[%s15498_s6 + $0x28] sm:$0xff] }
 0x8b7   :  { %v6736_v13 = vadd.f32 %v9208_v16, %v14847_v23  ;;  %v11322_v23 = vpack.c.bf16 %v7512_v11, %v7511_v0  ;;  %11345 = vmatpush3.bf16.msra.mxu0 %v11344_v38  ;;  %v7619_v16 = vld [vmem:[%s15491_s5 + $0x310] sm:$0xff]  ;;  %v7621_v0 = vld [vmem:[%s15491_s5 + $0x320] sm:$0xff]  ;;  %v7622_v11 = vld [vmem:[%s15491_s5 + $0x328] sm:$0xff]  ;;  %v11374_v38 = vpack.c.bf16 %v7704_v62, %v7702_v47 }
 0x8b8   :  { %11347 = vmatprep.subr.bf16.mxu0 %v11346_v45  ;;  %v7703_v45 = vld [vmem:[%s15498_s6 + $0x10] sm:$0xff]  ;;  %v8563_v47 = vld [vmem:[%s15494_s7 + $0x7] ss:$8 sm:$0x3] }
 0x8b9   :  { %11317 = vmatpush3.bf16.msra.mxu1 %v11316_v12  ;;  %v6806_v17 = vadd.f32 %v14851_v52, %v6736_v13  ;;  %v7513_v52 = vld [vmem:[%s15491_s5 + $0x200] sm:$0xff]  ;;  %v7618_v12 = vld [vmem:[%s15491_s5 + $0x308] sm:$0xff]  ;;  %v11352_v13 = vpack.c.bf16 %v7602_v49, %v7601_v37 }
 0x8ba   :  { %11318 = vmatprep.subr.bf16.mxu1 %v15557_v24  ;;  %v11325_v53 = vpack.c.bf16 %v7514_v5, %v7513_v52  ;;  %v11350_v44 = vpack.c.bf16 %v7618_v12, %v7617_v9  ;;  %v11358_v52 = vpack.c.bf16 %v7622_v11, %v7621_v0  ;;  %v7605_v5 = vld [vmem:[%s15491_s5 + $0x2a0] sm:$0xff]  ;;  %v7715_v0 = vld [vmem:[%s15498_s6 + $0x70] sm:$0xff]  ;;  %v7718_v11 = vld [vmem:[%s15498_s6 + $0x88] sm:$0xff] }
 0x8bb   :  { %11349 = vmatpush3.bf16.msra.mxu0 %v11348_v32  ;;  %v7705_v12 = vld [vmem:[%s15498_s6 + $0x20] sm:$0xff]  ;;  %v7707_v32 = vld [vmem:[%s15498_s6 + $0x30] sm:$0xff] }
 0x8bc   :  { %10693 = vmatmul.mubr.msk.f32.vlgmr.msra.gmra.mrb[206].mxu1 %vm6525_vm6, %v6524_v4  ;;  %11351 = vmatprep.subr.bf16.mxu0 %v11350_v44  ;;  %v11354_v4 = vpack.c.bf16 %v7620_v22, %v7619_v16  ;;  %v7712_v44 = vld [vmem:[%s15498_s6 + $0x58] sm:$0xff]  ;;  %v11380_v37 = vpack.c.bf16 %v7707_v32, %v7705_v12  ;;  %v7709_v16 = vld [vmem:[%s15498_s6 + $0x40] sm:$0xff]  ;;  %v7711_v22 = vld [vmem:[%s15498_s6 + $0x50] sm:$0xff] }
 0x8bd   :  { %11320 = vmatpush3.bf16.msra.mxu1 %v11319_v8  ;;  %10727 = vmatprep.mubr.msk.f32.mxu1 %vm11545_vm3, %v15558_v48  ;;  %v7603_v8 = vld [vmem:[%s15491_s5 + $0x290] sm:$0xff] }
 0x8be   :  { %11321 = vmatprep.subr.bf16.mxu1 %v15557_v24 }
 0x8bf   :  { %11353 = vmatpush3.bf16.msra.mxu0 %v11352_v13  ;;  %v7716_v13 = vld [vmem:[%s15498_s6 + $0x78] sm:$0xff] }
 0x8c0   :  { %11355 = vmatprep.subr.bf16.mxu0 %v11354_v4  ;;  %v11384_v4 = vpack.c.bf16 %v7711_v22, %v7709_v16 }
 0x8c1   :  { %11323 = vmatpush3.bf16.msra.mxu1 %v11322_v23 }
 0x8c2   :  { %11324 = vmatprep.subr.bf16.mxu1 %v15557_v24 }
 0x8c5   :  { %11326 = vmatpush3.bf16.msra.mxu1 %v11325_v53  ;;  %v7606_v53 = vld [vmem:[%s15491_s5 + $0x2a8] sm:$0xff] }
 0x8c6   :  { %11327 = vmatprep.subr.bf16.mxu1 %v15557_v24 }
 0x8c8   :  { %v9451_v18 = vpop.f32.mrb[202].mxu1 }
 0x8c9   :  { %11329 = vmatpush3.bf16.msra.mxu1 %v11328_v20  ;;  %v9452_v25 = vpop.f32.mrb[203].mxu1  ;;  %v11360_v20 = vpack.c.bf16 %v7606_v53, %v7605_v5  ;;  %v7717_v53 = vld [vmem:[%s15498_s6 + $0x80] sm:$0xff] }
 0x8ca   :  { %11330 = vmatprep.subr.bf16.mxu1 %v15557_v24  ;;  %v9453_v51 = vadd.f32 %v9452_v25, %v9451_v18  ;;  %v7608_v18 = vld [vmem:[%s15491_s5 + $0x2b8] sm:$0xff]  ;;  %v7626_v25 = vld [vmem:[%s15491_s5 + $0x348] sm:$0xff] }
 0x8cd   :  { %11332 = vmatpush3.bf16.msra.mxu1 %v11331_v28  ;;  %v7625_v28 = vld [vmem:[%s15491_s5 + $0x340] sm:$0xff] }
 0x8ce   :  { %11333 = vmatprep.subr.bf16.mxu1 %v15557_v24  ;;  %v11366_v30 = vpack.c.bf16 %v7626_v25, %v7625_v28  ;;  %v7723_v28 = vld [vmem:[%s15498_s6 + $0xb0] sm:$0xff] }
 0x8d1   :  { %11335 = vmatpush3.bf16.msra.mxu1 %v11334_v31  ;;  %v7610_v31 = vld [vmem:[%s15491_s5 + $0x2c8] sm:$0xff] }
 0x8d2   :  { %11336 = vmatprep.subr.bf16.mxu1 %v15557_v24 }
 0x8d3   :  { %v9276_v35 = vpop.f32.mrb[178].mxu0 }
 0x8d4   :  { %v9277_v3 = vpop.f32.mrb[179].mxu0 }
 0x8d5   :  { %v9278_v1 = vadd.f32 %v9277_v3, %v9276_v35  ;;  %11338 = vmatpush3.bf16.msra.mxu1 %v11337_v27  ;;  %v11368_v35 = vpack.c.bf16 %v7610_v31, %v7609_v40 }
 0x8d6   :  { %11339 = vmatprep.subr.bf16.mxu1 %v15557_v24 }
 0x8d7   :  { %v6876_v46 = vadd.f32 %v9278_v1, %v6806_v17  ;;  %v7604_v17 = vld [vmem:[%s15491_s5 + $0x298] sm:$0xff] }
 0x8d8   :  { %v11356_v23 = vpack.c.bf16 %v7604_v17, %v7603_v8  ;;  %v7713_v17 = vld [vmem:[%s15498_s6 + $0x60] sm:$0xff] }
 0x8d9   :  { %v6946_v29 = vadd.f32 %v14885_v43, %v6876_v46  ;;  %v7523_v43 = vld [vmem:[%s15491_s5 + $0x250] sm:$0xff] }
 0x8da   :  { %11357 = vmatpush3.bf16.msra.mxu0 %v11356_v23  ;;  %v7720_v23 = vld [vmem:[%s15498_s6 + $0x98] sm:$0xff] }
 0x8db   :  { %11359 = vmatprep.subr.bf16.mxu0 %v11358_v52  ;;  %v11388_v52 = vpack.c.bf16 %v7715_v0, %v7713_v17  ;;  %v11390_v5 = vpack.c.bf16 %v7720_v23, %v7718_v11  ;;  %v7860_v0 = vld [vmem:[%s15498_s6 + $0x110] sm:$0xff]  ;;  %v7863_v11 = vld [vmem:[%s15498_s6 + $0x128] sm:$0xff]  ;;  %v7865_v23 = vld [vmem:[%s15498_s6 + $0x138] sm:$0xff] }
 0x8de   :  { %11361 = vmatpush3.bf16.msra.mxu0 %v11360_v20  ;;  %v7724_v20 = vld [vmem:[%s15498_s6 + $0xb8] sm:$0xff] }
 0x8df   :  { %11363 = vmatprep.subr.bf16.mxu0 %v11362_v58  ;;  %v11392_v58 = vpack.c.bf16 %v7719_v2, %v7717_v53  ;;  %v7862_v53 = vld [vmem:[%s15498_s6 + $0x120] sm:$0xff]  ;;  %v7864_v2 = vld [vmem:[%s15498_s6 + $0x130] sm:$0xff] }
 0x8f3   :  { %v9346_v6 = vpop.f32.mrb[180].mxu0 }
 0x8f4   :  { %v9347_v41 = vpop.f32.mrb[181].mxu0 }
 0x8f5   :  { %v9348_v15 = vadd.f32 %v9347_v41, %v9346_v6 }
 0x8f7   :  { %v7016_v10 = vadd.f32 %v9348_v15, %v6946_v29 }
 0x8f9   :  { %v7086_v36 = vadd.f32 %v14929_v56, %v7016_v10  ;;  %v7524_v56 = vld [vmem:[%s15491_s5 + $0x258] sm:$0xff] }
 0x8fa   :  { %v11340_v55 = vpack.c.bf16 %v7524_v56, %v7523_v43 }
 0x8fc   :  { %11341 = vmatpush3.bf16.msra.mxu1 %v11340_v55 }
 0x8fd   :  { %11375 = vmatprep.subr.bf16.mxu1 %v11374_v38 }
 0x913   :  { %v9416_v54 = vpop.f32.mrb[182].mxu0 }
 0x914   :  { %v9417_v19 = vpop.f32.mrb[183].mxu0 }
 0x915   :  { %v9418_v21 = vadd.f32 %v9417_v19, %v9416_v54  ;;  %v7611_v54 = vld [vmem:[%s15491_s5 + $0x2d0] sm:$0xff]  ;;  %v7701_v19 = vld [vmem:[%s15498_s6] sm:$0xff] }
 0x916   :  { %v11372_v57 = vpack.c.bf16 %v7612_v14, %v7611_v54  ;;  %v11376_v9 = vpack.c.bf16 %v7703_v45, %v7701_v19  ;;  %v7736_v54 = vlaneseq }
 0x917   :  { %v7156_v7 = vadd.f32 %v9418_v21, %v7086_v36  ;;  %v11378_v21 = vpack.c.bf16 %v7708_v42, %v7706_v50 }
 0x918   :  { %v7737_v14 = vshrl.u32 %v7736_v54, 7 }
 0x919   :  { %v7226_v34 = vadd.f32 %v9453_v51, %v7156_v7  ;;  %v11364_v51 = vpack.c.bf16 %v7608_v18, %v7607_v59  ;;  %v7710_v7 = vld [vmem:[%s15498_s6 + $0x48] sm:$0xff]  ;;  %v11394_v59 = vpack.c.bf16 %v7724_v20, %v7722_v39  ;;  %v7721_v18 = vld [vmem:[%s15498_s6 + $0xa0] sm:$0xff]  ;;  %v7869_v20 = vld [vmem:[%s15498_s6 + $0x158] sm:$0xff] }
 0x91a   :  { %v11382_v49 = vpack.c.bf16 %v7712_v44, %v7710_v7  ;;  %v11396_v25 = vpack.c.bf16 %v7723_v28, %v7721_v18  ;;  %v15261_v62 = vsub.s32 1, %v7737_v14  ;;  %v7867_v39 = vld [vmem:[%s15498_s6 + $0x148] sm:$0xff]  ;;  %v7866_v18 = vld [vmem:[%s15498_s6 + $0x140] sm:$0xff]  ;;  %v7868_v28 = vld [vmem:[%s15498_s6 + $0x150] sm:$0xff] }
 0x91b   :  { %11365 = vmatpush3.bf16.msra.mxu0 %v11364_v51  ;;  %v7525_v51 = vld [vmem:[%s15494_s7 + $0x5] ss:$0 sm:$0xff] }
 0x91c   :  { %11367 = vmatprep.subr.bf16.mxu0 %v11366_v30  ;;  %v7743_v38 = vrot.slane %v8563_v47, %v15261_v62 }
 0x91f   :  { %11369 = vmatpush3.bf16.msra.mxu0 %v11368_v35 }
 0x920   :  { %11371 = vmatprep.subr.bf16.mxu0 %v11370_v63 }
 0x923   :  { %11373 = vmatpush3.bf16.msra.mxu0 %v11372_v57  ;;  %v15256_v57 = vsub.s32 0, %v7737_v14 }
 0x925   :  { %v7739_v19 = vrot.slane %v8563_v47, %v15256_v57 }
 0x933   :  { %v9486_v3 = vpop.f32.mrb[184].mxu0 }
 0x934   :  { %v9487_v1 = vpop.f32.mrb[185].mxu0 }
 0x935   :  { %v9488_v46 = vadd.f32 %v9487_v1, %v9486_v3  ;;  %v7726_v3 = vld [vmem:[%s15498_s6 + $0xc8] sm:$0xff]  ;;  %v7728_v1 = vld [vmem:[%s15498_s6 + $0xd8] sm:$0xff] }
 0x937   :  { %v7296_v29 = vadd.f32 %v9488_v46, %v7226_v34  ;;  %v7714_v34 = vld [vmem:[%s15498_s6 + $0x68] sm:$0xff]  ;;  %v11398_v46 = vpack.c.bf16 %v7728_v1, %v7726_v3  ;;  %v7872_v3 = vld [vmem:[%s15498_s6 + $0x170] sm:$0xff] }
 0x938   :  { %v11386_v8 = vpack.c.bf16 %v7716_v13, %v7714_v34  ;;  %v7859_v13 = vld [vmem:[%s15498_s6 + $0x108] sm:$0xff] }
 0x948   :  { %v9521_v6 = vpop.f32.mrb[204].mxu1 }
 0x949   :  { %v9522_v41 = vpop.f32.mrb[205].mxu1 }
 0x94a   :  { %v9523_v15 = vadd.f32 %v9522_v41, %v9521_v6  ;;  %v7727_v6 = vld [vmem:[%s15498_s6 + $0xd0] sm:$0xff] }
 0x94c   :  { %v7366_v10 = vadd.f32 %v9523_v15, %v7296_v29  ;;  %v7725_v29 = vld [vmem:[%s15498_s6 + $0xc0] sm:$0xff]  ;;  %v7730_v15 = vld [vmem:[%s15498_s6 + $0xe8] sm:$0xff] }
 0x94d   :  { %v11400_v41 = vpack.c.bf16 %v7727_v6, %v7725_v29 }
 0x988   :  { %v9556_v36 = vpop.f32.mrb[186].mxu0 }
 0x989   :  { %v9557_v26 = vpop.f32.mrb[187].mxu0 }
 0x98a   :  { %v9558_v33 = vadd.f32 %v9557_v26, %v9556_v36  ;;  %v7729_v26 = vld [vmem:[%s15498_s6 + $0xe0] sm:$0xff] }
 0x98c   :  { %v7436_v27 = vadd.f32 %v9558_v33, %v7366_v10  ;;  %v7732_v10 = vld [vmem:[%s15498_s6 + $0xf8] sm:$0xff]  ;;  %v7731_v33 = vld [vmem:[%s15498_s6 + $0xf0] sm:$0xff] }
 0x98d   :  { %v11402_v36 = vpack.c.bf16 %v7732_v10, %v7730_v15 }
 0x98f   :  { %v7505_v43 = vpop.f32.mrb[206].mxu1 }
 0x990   :  { %v7506_v56 = vadd.f32 %v7505_v43, %v7436_v27  ;;  %v10694_v55 = vpop.f32.mrb[207].mxu1  ;;  %v11404_v27 = vpack.c.bf16 %v7731_v33, %v7729_v26 }
 0x992   :  { %10728 = vmatmul.mubr.f32.vlgmr.msra.gmra.mrb[208].mxu1 %v7506_v56  ;;  %v7629_v56 = vld [vmem:[%s15494_s7 + $0x6] ss:$0 sm:$0xff] }
 0x993   :  { %7810 = vmatprep.mubr.f32.mxu1 %v15558_v48  ;;  %11377 = vmatpush1.bf16.msra.mxu1 %v11376_v9 }
 0x994   :  { %11379 = vmatprep.subr.bf16.mxu1 %v11378_v21 }
 0x997   :  { %11381 = vmatpush1.bf16.msra.mxu1 %v11380_v37 }
 0x998   :  { %11383 = vmatprep.subr.bf16.mxu1 %v11382_v49 }
 0x99b   :  { %11385 = vmatpush1.bf16.msra.mxu1 %v11384_v4  ;;  %v7861_v4 = vld [vmem:[%s15498_s6 + $0x118] sm:$0xff] }
 0x99c   :  { %11387 = vmatprep.subr.bf16.mxu1 %v11386_v8  ;;  %v7858_v8 = vld [vmem:[%s15498_s6 + $0x100] sm:$0xff]  ;;  %v11406_v17 = vpack.c.bf16 %v7861_v4, %v7859_v13 }
 0x99e   :  { %11407 = vmatprep.subr.bf16.mxu0 %v11406_v17  ;;  %v8008_v17 = vld [vmem:[%s15498_s6 + $0x1b0] sm:$0xff] }
 0x99f   :  { %11389 = vmatpush1.bf16.msra.mxu1 %v11388_v52  ;;  %v11408_v52 = vpack.c.bf16 %v7860_v0, %v7858_v8  ;;  %v8006_v8 = vld [vmem:[%s15498_s6 + $0x1a0] sm:$0xff]  ;;  %v8011_v0 = vld [vmem:[%s15498_s6 + $0x1c8] sm:$0xff] }
 0x9a0   :  { %11391 = vmatprep.subr.bf16.mxu1 %v11390_v5  ;;  %v11410_v5 = vpack.c.bf16 %v7865_v23, %v7863_v11  ;;  %v8013_v11 = vld [vmem:[%s15498_s6 + $0x1d8] sm:$0xff]  ;;  %v11428_v23 = vpack.c.bf16 %v8008_v17, %v8006_v8  ;;  %v8232_v17 = vld [vmem:[%s15491_s5 + $0x3c0] sm:$0xff] }
 0x9a3   :  { %11393 = vmatpush1.bf16.msra.mxu1 %v11392_v58  ;;  %v11412_v58 = vpack.c.bf16 %v7864_v2, %v7862_v53  ;;  %v8012_v53 = vld [vmem:[%s15498_s6 + $0x1d0] sm:$0xff]  ;;  %v8015_v2 = vld [vmem:[%s15498_s6 + $0x1e8] sm:$0xff] }
 0x9a4   :  { %11395 = vmatprep.subr.bf16.mxu1 %v11394_v59  ;;  %v11414_v59 = vpack.c.bf16 %v7869_v20, %v7867_v39  ;;  %v8017_v39 = vld [vmem:[%s15498_s6 + $0x1f8] sm:$0xff] }
 0x9a7   :  { %11397 = vmatpush1.bf16.msra.mxu1 %v11396_v25  ;;  %v7871_v25 = vld [vmem:[%s15498_s6 + $0x168] sm:$0xff] }
 0x9a8   :  { %11399 = vmatprep.subr.bf16.mxu1 %v11398_v46 }
 0x9ab   :  { %11401 = vmatpush1.bf16.msra.mxu1 %v11400_v41 }
 0x9ac   :  { %11403 = vmatprep.subr.bf16.mxu1 %v11402_v36 }
 0x9af   :  { %11405 = vmatpush1.bf16.msra.mxu1 %v11404_v27 }
 0x9b0   :  { %11438 = vmatprep.subr.bf16.mxu1 %v15557_v24 }
 0xa65   :  { %v7592_v30 = vpop.f32.mrb[208].mxu1 }
 0xa66   :  { %v7593_v40 = vadd.f32 %v7592_v30, %v7525_v51  ;;  %v10729_v31 = vpop.f32.mrb[209].mxu1  ;;  %v7873_v51 = vld [vmem:[%s15498_s6 + $0x178] sm:$0xff] }
 0xa67   :  { %v11418_v31 = vpack.c.bf16 %v7873_v51, %v7871_v25 }
 0xa68   :  { %v7596_v35 = vmax.f32 %v7593_v40, 0.0  ;;  %v11416_v40 = vpack.c.bf16 %v7868_v28, %v7866_v18  ;;  %v8016_v18 = vld [vmem:[%s15498_s6 + $0x1f0] sm:$0xff] }
 0xa6a   :  { %7695 = vmatmul.mubr.f32.vlgmr.msra.gmra.mrb[188].mxu0 %v7596_v35  ;;  %v7870_v35 = vld [vmem:[%s15498_s6 + $0x160] sm:$0xff] }
 0xa6b   :  { %7954 = vmatprep.mubr.f32.mxu0 %v15558_v48  ;;  %11409 = vmatpush1.bf16.msra.mxu0 %v11408_v52  ;;  %v11420_v46 = vpack.c.bf16 %v7872_v3, %v7870_v35  ;;  %v11430_v52 = vpack.c.bf16 %v8013_v11, %v8011_v0  ;;  %v8233_v0 = vld [vmem:[%s15491_s5 + $0x3c8] sm:$0xff] }
 0xa6c   :  { %11411 = vmatprep.subr.bf16.mxu0 %v11410_v5  ;;  %v8010_v5 = vld [vmem:[%s15498_s6 + $0x1c0] sm:$0xff]  ;;  %v11457_v11 = vpack.c.bf16 %v8233_v0, %v8232_v17 }
 0xa6d   :  { %v11432_v20 = vpack.c.bf16 %v8012_v53, %v8010_v5 }
 0xa6f   :  { %11413 = vmatpush1.bf16.msra.mxu0 %v11412_v58  ;;  %v11434_v58 = vpack.c.bf16 %v8017_v39, %v8015_v2  ;;  %v8236_v39 = vld [vmem:[%s15491_s5 + $0x3e0] sm:$0xff] }
 0xa70   :  { %11415 = vmatprep.subr.bf16.mxu0 %v11414_v59  ;;  %v8014_v59 = vld [vmem:[%s15498_s6 + $0x1e0] sm:$0xff] }
 0xa71   :  { %v11436_v51 = vpack.c.bf16 %v8016_v18, %v8014_v59  ;;  %v8238_v59 = vld [vmem:[%s15491_s5 + $0x3f0] sm:$0xff]  ;;  %v8239_v18 = vld [vmem:[%s15491_s5 + $0x3f8] sm:$0xff] }
 0xa73   :  { %11417 = vmatpush1.bf16.msra.mxu0 %v11416_v40 }
 0xa74   :  { %11419 = vmatprep.subr.bf16.mxu0 %v11418_v31 }
 0xa77   :  { %11421 = vmatpush1.bf16.msra.mxu0 %v11420_v46 }
 0xb3d   :  { %v9613_v43 = vpop.f32.mrb[188].mxu0 }
 0xb3e   :  { %v9614_v55 = vpop.f32.mrb[189].mxu0 }
 0xb3f   :  { %v9615_v61 = vadd.f32 %v9614_v55, %v9613_v43 }
 0xb41   :  { %v7697_v60 = vadd.f32 %v9615_v61, %v7629_v56  ;;  %v8566_v56 = vld [vmem:[%s15494_s7 + $0x10] ss:$8 sm:$0x3] }
 0xb42   :  { %v7880_v55 = vrot.slane %v8566_v56, %v15256_v57  ;;  %v7884_v61 = vrot.slane %v8566_v56, %v15261_v62 }
 0xb43   :  { %v7700_v63 = vmax.f32 %v7697_v60, 0.0 }
 0xb45   :  { %7811 = vmatmul.mubr.f32.vlgmr.msra.gmra.mrb[210].mxu1 %v7700_v63 }
 0xb46   :  { %10746 = vmatprep.mubr.msk.f32.mxu1 %vm11545_vm3, %v15558_v48 }
 0xc18   :  { %v7812_v45 = vpop.f32.mrb[210].mxu1 }
 0xc19   :  { %v7813_v50 = vadd.f32 %v7812_v45, %v7739_v19  ;;  %v7814_v42 = vpop.f32.mrb[211].mxu1 }
 0xc1a   :  { %v7815_v9 = vadd.f32 %v7814_v42, %v7743_v38 }
 0xc1b   :  { %11480 = vtanh.f32 %v7813_v50  ;;  %v8564_v32 = vmul.f32 -1.442695, %v7813_v50 }
 0xc1c   :  { %11482 = vtanh.f32 %v7815_v9  ;;  %v8565_v41 = vmul.f32 -1.442695, %v7815_v9 }
 0xc1d   :  { %11484 = vpow2.f32 %v8564_v32 }
 0xc25   :  { %v11481_v21 = vpop.eup %11480 }
 0xc26   :  { %7825 = vrot.lane.b32.xlu0 %v11481_v21, %s11547_s0  ;;  %v11483_v12 = vpop.eup %11482 }
 0xc27   :  { %v11485_v7 = vpop.eup %11484 }
 0xc28   :  { %v7820_v44 = vadd.f32 1.0, %v11485_v7  ;;  %v8003_v7 = vld [vmem:[%s15498_s6 + $0x188] sm:$0xff] }
 0xc2a   :  { %7843 = vrot.lane.b32.xlu0 %v11483_v12, %s11547_s0  ;;  %11486 = vrcp.f32 %v7820_v44  ;;  %v8005_v44 = vld [vmem:[%s15498_s6 + $0x198] sm:$0xff] }
 0xc34   :  { %v11487_v37 = vpop.eup %11486 }
 0xc98   :  { %v7826_v49 = vpop.permute.xlu0 %7825 }
 0xc99   :  { %v7828_v16 = vmul.f32 %v11487_v37, %v7826_v49  ;;  %v11422_v49 = vpack.c.bf16 %v8005_v44, %v8003_v7  ;;  %v8153_v7 = vld [vmem:[%s15491_s5 + $0x398] sm:$0xff] }
 0xc9b   :  { %11488 = vtanh.f32 %v7828_v16  ;;  %v8004_v16 = vld [vmem:[%s15498_s6 + $0x190] sm:$0xff]  ;;  %11423 = vmatprep.subr.bf16.mxu0 %v11422_v49 }
 0xc9c   :  { %v7844_v22 = vpop.permute.xlu0 %7843 }
 0xc9d   :  { %v7846_v34 = vmul.f32 %v11487_v37, %v7844_v22  ;;  %v8007_v22 = vld [vmem:[%s15498_s6 + $0x1a8] sm:$0xff] }
 0xc9f   :  { %11490 = vtanh.f32 %v7846_v34  ;;  %v8009_v34 = vld [vmem:[%s15498_s6 + $0x1b8] sm:$0xff] }
 0xca0   :  { %11492 = vpow2.f32 %v8565_v41  ;;  %v11426_v4 = vpack.c.bf16 %v8009_v34, %v8007_v22  ;;  %v8229_v22 = vld [vmem:[%s15491_s5 + $0x3a8] sm:$0xff]  ;;  %v8230_v34 = vld [vmem:[%s15491_s5 + $0x3b0] sm:$0xff] }
 0xca5   :  { %v11489_v30 = vpop.eup %11488 }
 0xca6   :  { %7831 = vrot.lane.b32.xlu1 %v11489_v30, %s11548_s21 }
 0xca9   :  { %v11491_v1 = vpop.eup %11490 }
 0xcaa   :  { %7849 = vrot.lane.b32.xlu1 %v11491_v1, %s11548_s21  ;;  %v11493_v15 = vpop.eup %11492 }
 0xcab   :  { %v7839_v10 = vadd.f32 1.0, %v11493_v15  ;;  %v8570_v15 = vld [vmem:[%s15494_s7 + $0x11] ss:$8 sm:$0x3] }
 0xcad   :  { %11494 = vrcp.f32 %v7839_v10  ;;  %v8024_v10 = vrot.slane %v8570_v15, %v15256_v57 }
 0xcb7   :  { %v11495_v26 = vpop.eup %11494 }
 0xd18   :  { %v7832_v29 = vpop.permute.xlu1 %7831 }
 0xd19   :  { %v7834_v6 = vmul.f32 %v11487_v37, %v7832_v29  ;;  %v8002_v37 = vld [vmem:[%s15498_s6 + $0x180] sm:$0xff] }
 0xd1a   :  { %v11424_v13 = vpack.c.bf16 %v8004_v16, %v8002_v37  ;;  %v8228_v16 = vld [vmem:[%s15491_s5 + $0x3a0] sm:$0xff] }
 0xd1b   :  { %7854 = vrot.lane.b32.xlu0 %v7834_v6, %s11548_s21 }
 0xd1c   :  { %v7850_v36 = vpop.permute.xlu1 %7849 }
 0xd1d   :  { %v7852_v33 = vmul.f32 %v11495_v26, %v7850_v36  ;;  %v8028_v36 = vrot.slane %v8570_v15, %v15261_v62 }
 0xd8d   :  { %v7855_v27 = vpop.permute.xlu0 %7854 }
 0xd8e   :  { %v7857_v43 = vsel %vm6525_vm6, %v7855_v27, %v7852_v33 }
 0xd8f   :  { %8567 = vmatmul.mubr.msk.f32.vlgmr.msra.gmra.mrb[190].mxu0 %vm188_vm2, %v7857_v43 }
 0xd90   :  { %8098 = vmatprep.mubr.f32.mxu0 %v15558_v48  ;;  %11425 = vmatpush1.bf16.msra.mxu0 %v11424_v13  ;;  %v11451_v13 = vpack.c.bf16 %v8229_v22, %v8228_v16 }
 0xd91   :  { %11427 = vmatprep.subr.bf16.mxu0 %v11426_v4  ;;  %v8231_v4 = vld [vmem:[%s15491_s5 + $0x3b8] sm:$0xff] }
 0xd92   :  { %v11454_v8 = vpack.c.bf16 %v8231_v4, %v8230_v34 }
 0xd94   :  { %11429 = vmatpush1.bf16.msra.mxu0 %v11428_v23  ;;  %v8234_v23 = vld [vmem:[%s15491_s5 + $0x3d0] sm:$0xff] }
 0xd95   :  { %11431 = vmatprep.subr.bf16.mxu0 %v11430_v52  ;;  %v8235_v52 = vld [vmem:[%s15491_s5 + $0x3d8] sm:$0xff] }
 0xd96   :  { %v11460_v2 = vpack.c.bf16 %v8235_v52, %v8234_v23 }
 0xd98   :  { %11433 = vmatpush1.bf16.msra.mxu0 %v11432_v20  ;;  %v8237_v20 = vld [vmem:[%s15491_s5 + $0x3e8] sm:$0xff] }
 0xd99   :  { %11435 = vmatprep.subr.bf16.mxu0 %v11434_v58  ;;  %v11463_v58 = vpack.c.bf16 %v8237_v20, %v8236_v39 }
 0xd9c   :  { %11437 = vmatpush1.bf16.msra.mxu0 %v11436_v51  ;;  %v8241_v51 = vld [vmem:[%s15491_s5 + $0x408] sm:$0xff] }
 0xd9d   :  { %11450 = vmatprep.subr.bf16.mxu0 %v15557_v24 }
 0xe62   :  { %v7956_v60 = vpop.f32.mrb[190].mxu0 }
 0xe63   :  { %v7957_v63 = vadd.f32 %v7956_v60, %v7880_v55  ;;  %v7958_v54 = vpop.f32.mrb[191].mxu0 }
 0xe64   :  { %v7959_v14 = vadd.f32 %v7958_v54, %v7884_v61 }
 0xe65   :  { %11496 = vtanh.f32 %v7957_v63  ;;  %v8568_v38 = vmul.f32 -1.442695, %v7957_v63 }
 0xe66   :  { %11498 = vtanh.f32 %v7959_v14  ;;  %v8569_v31 = vmul.f32 -1.442695, %v7959_v14 }
 0xe67   :  { %11500 = vpow2.f32 %v8568_v38  ;;  %v8148_v38 = vld [vmem:[%s15491_s5 + $0x370] sm:$0xff] }
 0xe6f   :  { %v11497_v47 = vpop.eup %11496 }
 0xe70   :  { %v11499_v19 = vpop.eup %11498  ;;  %7969 = vrot.lane.b32.xlu1 %v11497_v47, %s11547_s0  ;;  %v8146_v47 = vld [vmem:[%s15491_s5 + $0x360] sm:$0xff] }
 0xe71   :  { %7987 = vrot.lane.b32.xlu0 %v11499_v19, %s11547_s0  ;;  %v11501_v45 = vpop.eup %11500  ;;  %v8147_v19 = vld [vmem:[%s15491_s5 + $0x368] sm:$0xff] }
 0xe72   :  { %v7964_v50 = vadd.f32 1.0, %v11501_v45  ;;  %v11439_v45 = vpack.c.bf16 %v8147_v19, %v8146_v47 }
 0xe74   :  { %11502 = vrcp.f32 %v7964_v50  ;;  %v8149_v50 = vld [vmem:[%s15491_s5 + $0x378] sm:$0xff]  ;;  %11440 = vmatpush3.bf16.msra.mxu1 %v11439_v45 }
 0xe75   :  { %11441 = vmatprep.subr.bf16.mxu1 %v15557_v24 }
 0xe7e   :  { %v11503_v42 = vpop.eup %11502 }
 0xee2   :  { %v7970_v9 = vpop.permute.xlu1 %7969 }
 0xee3   :  { %v7972_v21 = vmul.f32 %v11503_v42, %v7970_v9  ;;  %v7988_v12 = vpop.permute.xlu0 %7987  ;;  %v8150_v9 = vld [vmem:[%s15491_s5 + $0x380] sm:$0xff] }
 0xee4   :  { %v7990_v32 = vmul.f32 %v11503_v42, %v7988_v12 }
 0xee5   :  { %11504 = vtanh.f32 %v7972_v21  ;;  %v8151_v21 = vld [vmem:[%s15491_s5 + $0x388] sm:$0xff] }
 0xee6   :  { %11506 = vtanh.f32 %v7990_v32  ;;  %v11445_v12 = vpack.c.bf16 %v8151_v21, %v8150_v9  ;;  %v8152_v32 = vld [vmem:[%s15491_s5 + $0x390] sm:$0xff] }
 0xee7   :  { %11508 = vpow2.f32 %v8569_v31  ;;  %v11448_v49 = vpack.c.bf16 %v8153_v7, %v8152_v32 }
 0xeef   :  { %v11505_v28 = vpop.eup %11504 }
 0xef0   :  { %v11507_v25 = vpop.eup %11506  ;;  %7975 = vrot.lane.b32.xlu1 %v11505_v28, %s11548_s21  ;;  %v11466_v28 = vpack.c.bf16 %v8239_v18, %v8238_v59 }
 0xef1   :  { %7993 = vrot.lane.b32.xlu0 %v11507_v25, %s11548_s21  ;;  %v11509_v35 = vpop.eup %11508  ;;  %v8240_v25 = vld [vmem:[%s15491_s5 + $0x400] sm:$0xff] }
 0xef2   :  { %v7983_v3 = vadd.f32 1.0, %v11509_v35 }
 0xef4   :  { %11510 = vrcp.f32 %v7983_v3 }
 0xefe   :  { %v11511_v46 = vpop.eup %11510 }
 0xf62   :  { %v7976_v30 = vpop.permute.xlu1 %7975 }
 0xf63   :  { %v7978_v40 = vmul.f32 %v11503_v42, %v7976_v30  ;;  %v7994_v1 = vpop.permute.xlu0 %7993  ;;  %v11442_v42 = vpack.c.bf16 %v8149_v50, %v8148_v38  ;;  %v11469_v30 = vpack.c.bf16 %v8241_v51, %v8240_v25 }
 0xf64   :  { %v7996_v29 = vmul.f32 %v11511_v46, %v7994_v1 }
 0xf65   :  { %7998 = vrot.lane.b32.xlu1 %v7978_v40, %s11548_s21  ;;  %11443 = vmatpush3.bf16.msra.mxu1 %v11442_v42 }
 0xf66   :  { %11444 = vmatprep.subr.bf16.mxu1 %v15557_v24 }
 0xf69   :  { %11446 = vmatpush3.bf16.msra.mxu1 %v11445_v12 }
 0xf6a   :  { %11447 = vmatprep.subr.bf16.mxu1 %v15557_v24 }
 0xf6d   :  { %11449 = vmatpush3.bf16.msra.mxu1 %v11448_v49 }
 0xfd7   :  { %v7999_v6 = vpop.permute.xlu1 %7998 }
 0xfd8   :  { %v8001_v41 = vsel %vm6525_vm6, %v7999_v6, %v7996_v29 }
 0xfd9   :  { %8571 = vmatmul.mubr.msk.f32.vlgmr.msra.gmra.mrb[192].mxu0 %vm188_vm2, %v8001_v41  ;;  %v8242_v41 = vld [vmem:[%s15491_s5 + $0x410] sm:$0xff] }
 0xfda   :  { %10781 = vmatprep.mubr.msk.f32.mxu0 %vm11545_vm3, %v15558_v48  ;;  %11452 = vmatpush3.bf16.msra.mxu0 %v11451_v13 }
 0xfdb   :  { %11453 = vmatprep.subr.bf16.mxu0 %v15557_v24 }
 0xfde   :  { %11455 = vmatpush3.bf16.msra.mxu0 %v11454_v8 }
 0xfdf   :  { %11456 = vmatprep.subr.bf16.mxu0 %v15557_v24 }
 0xfe2   :  { %11458 = vmatpush3.bf16.msra.mxu0 %v11457_v11 }
 0xfe3   :  { %11459 = vmatprep.subr.bf16.mxu0 %v15557_v24 }
 0xfe6   :  { %11461 = vmatpush3.bf16.msra.mxu0 %v11460_v2 }
 0xfe7   :  { %11462 = vmatprep.subr.bf16.mxu0 %v15557_v24 }
 0xfea   :  { %11464 = vmatpush3.bf16.msra.mxu0 %v11463_v58 }
 0xfeb   :  { %11465 = vmatprep.subr.bf16.mxu0 %v15557_v24 }
 0xfee   :  { %11467 = vmatpush3.bf16.msra.mxu0 %v11466_v28 }
 0xfef   :  { %11468 = vmatprep.subr.bf16.mxu0 %v15557_v24 }
 0xff2   :  { %11470 = vmatpush3.bf16.msra.mxu0 %v11469_v30 }
 0xff3   :  { %11471 = vmatprep.subr.bf16.mxu0 %v15557_v24  ;;  %v8243_v24 = vld [vmem:[%s15491_s5 + $0x418] sm:$0xff] }
 0xff4   :  { %v11472_v15 = vpack.c.bf16 %v8243_v24, %v8242_v41 }
 0xff6   :  { %11473 = vmatpush3.bf16.msra.mxu0 %v11472_v15 }
0x10ac   :  { %v8100_v26 = vpop.f32.mrb[192].mxu0 }
0x10ad   :  { %v8101_v33 = vadd.f32 %v8100_v26, %v8024_v10  ;;  %v8102_v27 = vpop.f32.mrb[193].mxu0  ;;  %v8154_v10 = vld [vmem:[%s15494_s7 + $0x12] ss:$0 sm:$0xff] }
0x10ae   :  { %v15389_v43 = vadd.f32 %v8102_v27, %v8028_v36  ;;  %v8244_v27 = vld [vmem:[%s15494_s7 + $0x13] ss:$0 sm:$0xff] }
0x10af   :  { %11512 = vtanh.f32 %v8101_v33  ;;  %v8572_v48 = vmul.f32 -1.442695, %v8101_v33 }
0x10b0   :  { %11514 = vtanh.f32 %v15389_v43  ;;  %v8573_v40 = vmul.f32 -1.442695, %v15389_v43 }
0x10b1   :  { %11516 = vpow2.f32 %v8572_v48 }
0x10b9   :  { %v11513_v56 = vpop.eup %11512 }
0x10ba   :  { %v11515_v55 = vpop.eup %11514  ;;  %8113 = vrot.lane.b32.xlu0 %v11513_v56, %s11547_s0 }
0x10bb   :  { %8131 = vrot.lane.b32.xlu1 %v11515_v55, %s11547_s0  ;;  %v11517_v61 = vpop.eup %11516 }
0x10bc   :  { %v8108_v57 = vadd.f32 1.0, %v11517_v61 }
0x10be   :  { %11518 = vrcp.f32 %v8108_v57 }
0x10c8   :  { %v11519_v62 = vpop.eup %11518 }
0x112c   :  { %v8114_v60 = vpop.permute.xlu0 %8113 }
0x112d   :  { %v8116_v63 = vmul.f32 %v11519_v62, %v8114_v60  ;;  %v8132_v54 = vpop.permute.xlu1 %8131 }
0x112e   :  { %v8134_v14 = vmul.f32 %v11519_v62, %v8132_v54 }
0x112f   :  { %11520 = vtanh.f32 %v8116_v63 }
0x1130   :  { %11522 = vtanh.f32 %v8134_v14 }
0x1131   :  { %11524 = vpow2.f32 %v8573_v40 }
0x1139   :  { %v11521_v44 = vpop.eup %11520 }
0x113a   :  { %v11523_v37 = vpop.eup %11522  ;;  %8119 = vrot.lane.b32.xlu0 %v11521_v44, %s11548_s21 }
0x113b   :  { %8137 = vrot.lane.b32.xlu1 %v11523_v37, %s11548_s21  ;;  %v11525_v31 = vpop.eup %11524 }
0x113c   :  { %v8127_v35 = vadd.f32 1.0, %v11525_v31 }
0x113e   :  { %11526 = vrcp.f32 %v8127_v35 }
0x1148   :  { %v11527_v1 = vpop.eup %11526 }
0x11ac   :  { %v8120_v5 = vpop.permute.xlu0 %8119 }
0x11ad   :  { %v8122_v53 = vmul.f32 %v11519_v62, %v8120_v5  ;;  %v8138_v3 = vpop.permute.xlu1 %8137 }
0x11ae   :  { %v8140_v46 = vmul.f32 %v11527_v1, %v8138_v3 }
0x11af   :  { %8142 = vrot.lane.b32.xlu0 %v8122_v53, %s11548_s21 }
0x1221   :  { %v8143_v29 = vpop.permute.xlu0 %8142 }
0x1222   :  { %v8145_v6 = vsel %vm6525_vm6, %v8143_v29, %v8140_v46 }
0x1223   :  { %10747 = vmatmul.mubr.msk.f32.vlgmr.msra.gmra.mrb[212].mxu1 %vm188_vm2, %v8145_v6 }
0x12f6   :  { %v8224_v36 = vpop.f32.mrb[212].mxu1 }
0x12f7   :  { %v8225_v26 = vadd.f32 %v8224_v36, %v8154_v10  ;;  %v10748_v33 = vpop.f32.mrb[213].mxu1 }
0x12f9   :  { %10782 = vmatmul.mubr.f32.vlgmr.msra.gmra.mrb[194].mxu0 %v8225_v26 }
0x13cc   :  { %v8311_v43 = vpop.f32.mrb[194].mxu0 }
0x13cd   :  { %v8312_v56 = vadd.f32 %v8311_v43, %v8244_v27  ;;  %v10783_v55 = vpop.f32.mrb[195].mxu0 }
0x13cf   :  { %v8575_v48 = vmul.f32 -1.442695, %v8312_v56 }
0x13d1   :  { %11528 = vpow2.f32 %v8575_v48 }
0x13db   :  { %v11529_v61 = vpop.eup %11528 }
0x13dc   :  { %v8318_v57 = vadd.f32 1.0, %v11529_v61 }
0x13de   :  { %11530 = vrcp.f32 %v8318_v57 }
0x13e8   :  { %v11531_v62 = vpop.eup %11530 }
0x13e9   :  { %8321 = vst [vmem:[%s15499_s8] sm:$0xff] %v11531_v62 }

</bundles_post_ra>
